<compile_context>
chip_gen: v6e
topology: v6e:2x2x1
jax: 0.10.0
libtpu: 0.0.40
codegen_flags: <defaults>
</compile_context>

<pallas_src>
import functools

import jax
import jax.numpy as jnp
from jax.experimental import pallas as pl
from jax.experimental.pallas import tpu as pltpu

EMBEDDING_DIM = 128
BLOCK_SIZE = 64
NUM_HEADS = 4
HEAD_SIZE = EMBEDDING_DIM // NUM_HEADS  # 32


def _multihead_kernel(x_ref, wqkv_ref, wo_ref, bo_ref, o_ref,
                      *, num_heads, head_size):
    # x_ref:   (B_blk, T, C)  bf16
    # wqkv_ref:(C, 3C)        bf16   (columns = [Wq | Wk | Wv], head-contiguous)
    # wo_ref:  (H, hs, C)     bf16   (per-head output-projection slabs)
    # bo_ref:  (1, C)         f32
    # o_ref:   (B_blk, T, C)  f32
    Bb, T, C = x_ref.shape
    H, hs = num_heads, head_size
    M = Bb * T

    # ---- fused QKV projection: one (M, C) @ (C, 3C) MXU matmul ----
    xf = x_ref[...].reshape(M, C)                                    # bf16
    qkv = jnp.dot(xf, wqkv_ref[...],
                  preferred_element_type=jnp.float32)                # (M, 3C) f32

    # ---- regroup into a merged (H*B_blk) batch axis for batched attention ----
    def split_heads(base):
        # (M, hs) lane slices -> (H*Bb, T, hs), index (h*Bb + b, t, d)
        parts = [
            qkv[:, base + h * hs: base + (h + 1) * hs].reshape(Bb, T, hs)
            for h in range(H)
        ]
        return jnp.concatenate(parts, axis=0).astype(jnp.bfloat16)

    q = split_heads(0)          # (H*Bb, T, hs) bf16
    k = split_heads(C)
    v = split_heads(2 * C)

    # ---- causal-masked softmax attention, batched over all (head, batch) ----
    scale = jnp.float32(hs) ** -0.5
    row = jax.lax.broadcasted_iota(jnp.int32, (T, T), 0)
    col = jax.lax.broadcasted_iota(jnp.int32, (T, T), 1)
    addmask = jnp.where(col <= row, 0.0, -1e30).astype(jnp.float32)  # (T, T)

    s = jnp.einsum('bqd,bkd->bqk', q, k,
                   preferred_element_type=jnp.float32)               # (H*Bb, T, T)
    wei = s * scale + addmask[None, :, :]

    m = jnp.max(wei, axis=-1, keepdims=True)
    p = jnp.exp(wei - m)
    denom = jnp.sum(p, axis=-1, keepdims=True)
    attn = (p * pl.reciprocal(denom, approx=True)).astype(jnp.bfloat16)

    o = jnp.einsum('bqk,bkd->bqd', attn, v,
                   preferred_element_type=jnp.float32)               # (H*Bb, T, hs)

    # ---- output projection: batched per-head matmul + sum over heads ----
    o = o.reshape(H, M, hs).astype(jnp.bfloat16)                     # (H, M, hs)
    ph = jnp.einsum('hmd,hdc->hmc', o, wo_ref[...],
                    preferred_element_type=jnp.float32)              # (H, M, C)
    proj = jnp.sum(ph, axis=0) + bo_ref[...]                         # (M, C) f32

    o_ref[...] = proj.reshape(Bb, T, C).astype(o_ref.dtype)


def _pick_batch_block(B, T, row_target=256):
    """Largest divisor of B with B_blk * T <= max(row_target, T)."""
    best = 1
    for d in range(1, B + 1):
        if B % d == 0 and d * T <= max(row_target, T):
            best = d
    return best


def multihead_attention(x, wq, wk, wv, wo, bo, *, num_heads=NUM_HEADS):
    B, T, C = x.shape
    assert C % num_heads == 0
    hs = C // num_heads
    b_blk = _pick_batch_block(B, T)

    # Pack / reshape weights once in the wrapper; bf16 operands for the MXU.
    wqkv = jnp.concatenate([wq, wk, wv], axis=1).astype(jnp.bfloat16)  # (C, 3C)
    wo_h = wo.reshape(num_heads, hs, C).astype(jnp.bfloat16)           # (H, hs, C)
    x_bf = x.astype(jnp.bfloat16)
    bo_f = bo.astype(jnp.float32)

    kernel = functools.partial(_multihead_kernel,
                               num_heads=num_heads, head_size=hs)

    return pl.pallas_call(
        kernel,
        out_shape=jax.ShapeDtypeStruct((B, T, C), jnp.float32),
        grid_spec=pltpu.PrefetchScalarGridSpec(
            num_scalar_prefetch=0,
            grid=(B // b_blk,),
            in_specs=[
                pl.BlockSpec((b_blk, T, C), lambda b: (b, 0, 0)),       # x
                pl.BlockSpec((C, 3 * C), lambda b: (0, 0)),             # Wqkv
                pl.BlockSpec((num_heads, hs, C), lambda b: (0, 0, 0)),  # Wo (heads)
                pl.BlockSpec((1, C), lambda b: (0, 0)),                 # bo
            ],
            out_specs=pl.BlockSpec((b_blk, T, C), lambda b: (b, 0, 0)),
        ),
        compiler_params=pltpu.CompilerParams(
            dimension_semantics=("parallel",)),
    )(x_bf, wqkv, wo_h, bo_f)


def multihead_reference(x, wq, wk, wv, wo, bo,
                        *, num_heads=NUM_HEADS, head_size=HEAD_SIZE):
    """Pure-JAX reference matching the PyTorch forward (eval mode)."""
    B, T, C = x.shape
    q = x @ wq
    k = x @ wk
    v = x @ wv
    outs = []
    mask = jnp.tril(jnp.ones((T, T), dtype=bool))
    for h in range(num_heads):
        sl = slice(h * head_size, (h + 1) * head_size)
        wei = (q[..., sl] @ jnp.swapaxes(k[..., sl], -2, -1)) * head_size ** -0.5
        wei = jnp.where(mask, wei, -jnp.inf)
        wei = jax.nn.softmax(wei, axis=-1)
        outs.append(wei @ v[..., sl])
    concat = jnp.concatenate(outs, axis=-1)
    return concat @ wo + bo[0]


if __name__ == "__main__":
    B, T, C = 8, BLOCK_SIZE, EMBEDDING_DIM  # 2 parallel grid steps at B_blk=4

    key = jax.random.PRNGKey(0)
    kx, kq, kk, kv, ko, kb = jax.random.split(key, 6)

    x = jax.random.normal(kx, (B, T, C), dtype=jnp.float32)
    # PyTorch Linear stores (out, in); build (in, out) matrices so y = x @ W (+ b).
    wq = 0.02 * jax.random.normal(kq, (C, C), dtype=jnp.float32)
    wk = 0.02 * jax.random.normal(kk, (C, C), dtype=jnp.float32)
    wv = 0.02 * jax.random.normal(kv, (C, C), dtype=jnp.float32)
    wo = 0.02 * jax.random.normal(ko, (C, C), dtype=jnp.float32)
    bo = 0.02 * jax.random.normal(kb, (1, C), dtype=jnp.float32)

    out = multihead_attention(x, wq, wk, wv, wo, bo)
    out = jax.block_until_ready(out)

    # bf16-matched reference (kernel feeds bf16 operands to the MXU, f32 accum).
    cast = lambda a: a.astype(jnp.bfloat16).astype(jnp.float32)
    ref = multihead_reference(cast(x), cast(wq), cast(wk), cast(wv), cast(wo), bo)

    assert out.shape == (B, T, C)
    max_err = float(jnp.max(jnp.abs(out - ref)))
    assert jnp.allclose(out, ref, atol=1e-2, rtol=1e-2), f"mismatch vs reference ({max_err})"

    # TODO(synk): dropout (p=0.2) on attention weights and projection output is
    # identity here (eval/inference semantics).
    print("KERNEL_OK")
</pallas_src>

<mosaic_0001>
module attributes {stable_mosaic.version = 11 : i64} {
  func.func @_multihead_kernel(%arg0: i32, %arg1: memref<4x64x128xbf16, #tpu.memory_space<vmem>>, %arg2: memref<128x384xbf16, #tpu.memory_space<vmem>>, %arg3: memref<4x32x128xbf16, #tpu.memory_space<vmem>>, %arg4: memref<1x128xf32, #tpu.memory_space<vmem>>, %arg5: memref<4x64x128xf32, #tpu.memory_space<vmem>>) attributes {dimension_semantics = [#tpu.dimension_semantics<parallel>], iteration_bounds = array<i64: 2>, scalar_prefetch = 0 : i64, scratch_operands = 0 : i64, tpu.core_type = #tpu.core_type<tc>, window_params = [{transform_indices = @transform_0, window_bounds = array<i64: 4, 64, 128>}, {pipeline_mode = #tpu.pipeline_mode<synchronous>, transform_indices = @transform_1, window_bounds = array<i64: 128, 384>}, {pipeline_mode = #tpu.pipeline_mode<synchronous>, transform_indices = @transform_2, window_bounds = array<i64: 4, 32, 128>}, {pipeline_mode = #tpu.pipeline_mode<synchronous>, transform_indices = @transform_3, window_bounds = array<i64: 1, 128>}, {transform_indices = @transform_4, window_bounds = array<i64: 4, 64, 128>}]} {
    %c0 = arith.constant 0 : index
    %c0_0 = arith.constant 0 : index
    %c0_1 = arith.constant 0 : index
    %0 = vector.load %arg1[%c0, %c0_0, %c0_1] : memref<4x64x128xbf16, #tpu.memory_space<vmem>>, vector<4x64x128xbf16>
    %1 = vector.shape_cast %0 : vector<4x64x128xbf16> to vector<256x128xbf16>
    %c0_2 = arith.constant 0 : index
    %c0_3 = arith.constant 0 : index
    %2 = vector.load %arg2[%c0_2, %c0_3] : memref<128x384xbf16, #tpu.memory_space<vmem>>, vector<128x384xbf16>
    %cst = arith.constant dense<0.000000e+00> : vector<256x384xf32>
    %3 = tpu.matmul %1, %2, %cst {dimension_numbers = #tpu.dot_dimension_numbers<[1], [0], [0], [1], [0, 0, 1, 1], [], []>} : vector<256x128xbf16>, vector<128x384xbf16>, vector<256x384xf32> -> vector<256x384xf32>
    %4 = vector.extract_strided_slice %3 {offsets = [0, 0], sizes = [256, 32], strides = [1, 1]} : vector<256x384xf32> to vector<256x32xf32>
    %5 = vector.shape_cast %4 : vector<256x32xf32> to vector<4x64x32xf32>
    %6 = vector.extract_strided_slice %3 {offsets = [0, 32], sizes = [256, 32], strides = [1, 1]} : vector<256x384xf32> to vector<256x32xf32>
    %7 = vector.shape_cast %6 : vector<256x32xf32> to vector<4x64x32xf32>
    %8 = vector.extract_strided_slice %3 {offsets = [0, 64], sizes = [256, 32], strides = [1, 1]} : vector<256x384xf32> to vector<256x32xf32>
    %9 = vector.shape_cast %8 : vector<256x32xf32> to vector<4x64x32xf32>
    %10 = vector.extract_strided_slice %3 {offsets = [0, 96], sizes = [256, 32], strides = [1, 1]} : vector<256x384xf32> to vector<256x32xf32>
    %11 = vector.shape_cast %10 : vector<256x32xf32> to vector<4x64x32xf32>
    %12 = tpu.concatenate %5, %7, %9, %11 in 0 : vector<4x64x32xf32>, vector<4x64x32xf32>, vector<4x64x32xf32>, vector<4x64x32xf32> -> vector<16x64x32xf32>
    %13 = arith.truncf %12 : vector<16x64x32xf32> to vector<16x64x32xbf16>
    %14 = vector.extract_strided_slice %3 {offsets = [0, 128], sizes = [256, 32], strides = [1, 1]} : vector<256x384xf32> to vector<256x32xf32>
    %15 = vector.shape_cast %14 : vector<256x32xf32> to vector<4x64x32xf32>
    %16 = vector.extract_strided_slice %3 {offsets = [0, 160], sizes = [256, 32], strides = [1, 1]} : vector<256x384xf32> to vector<256x32xf32>
    %17 = vector.shape_cast %16 : vector<256x32xf32> to vector<4x64x32xf32>
    %18 = vector.extract_strided_slice %3 {offsets = [0, 192], sizes = [256, 32], strides = [1, 1]} : vector<256x384xf32> to vector<256x32xf32>
    %19 = vector.shape_cast %18 : vector<256x32xf32> to vector<4x64x32xf32>
    %20 = vector.extract_strided_slice %3 {offsets = [0, 224], sizes = [256, 32], strides = [1, 1]} : vector<256x384xf32> to vector<256x32xf32>
    %21 = vector.shape_cast %20 : vector<256x32xf32> to vector<4x64x32xf32>
    %22 = tpu.concatenate %15, %17, %19, %21 in 0 : vector<4x64x32xf32>, vector<4x64x32xf32>, vector<4x64x32xf32>, vector<4x64x32xf32> -> vector<16x64x32xf32>
    %23 = arith.truncf %22 : vector<16x64x32xf32> to vector<16x64x32xbf16>
    %24 = vector.extract_strided_slice %3 {offsets = [0, 256], sizes = [256, 32], strides = [1, 1]} : vector<256x384xf32> to vector<256x32xf32>
    %25 = vector.shape_cast %24 : vector<256x32xf32> to vector<4x64x32xf32>
    %26 = vector.extract_strided_slice %3 {offsets = [0, 288], sizes = [256, 32], strides = [1, 1]} : vector<256x384xf32> to vector<256x32xf32>
    %27 = vector.shape_cast %26 : vector<256x32xf32> to vector<4x64x32xf32>
    %28 = vector.extract_strided_slice %3 {offsets = [0, 320], sizes = [256, 32], strides = [1, 1]} : vector<256x384xf32> to vector<256x32xf32>
    %29 = vector.shape_cast %28 : vector<256x32xf32> to vector<4x64x32xf32>
    %30 = vector.extract_strided_slice %3 {offsets = [0, 352], sizes = [256, 32], strides = [1, 1]} : vector<256x384xf32> to vector<256x32xf32>
    %31 = vector.shape_cast %30 : vector<256x32xf32> to vector<4x64x32xf32>
    %32 = tpu.concatenate %25, %27, %29, %31 in 0 : vector<4x64x32xf32>, vector<4x64x32xf32>, vector<4x64x32xf32>, vector<4x64x32xf32> -> vector<16x64x32xf32>
    %33 = arith.truncf %32 : vector<16x64x32xf32> to vector<16x64x32xbf16>
    %cst_4 = arith.constant 3.200000e+01 : f32
    %cst_5 = arith.constant -5.000000e-01 : f32
    %34 = math.powf %cst_4, %cst_5 : f32
    %35 = tpu.iota {dimensions = array<i32: 0>} : vector<64x64xi32>
    %36 = tpu.iota {dimensions = array<i32: 1>} : vector<64x64xi32>
    %37 = arith.cmpi sle, %36, %35 : vector<64x64xi32>
    %cst_6 = arith.constant 0.000000e+00 : f32
    %cst_7 = arith.constant -1.000000e+30 : f32
    %38 = vector.broadcast %cst_6 : f32 to vector<64x64xf32>
    %39 = vector.broadcast %cst_7 : f32 to vector<64x64xf32>
    %40 = arith.select %37, %38, %39 : vector<64x64xi1>, vector<64x64xf32>
    "tpu.trace_start"() <{level = 10 : i32, message = "bqd,bkd->bqk"}> : () -> ()
    %cst_8 = arith.constant dense<0.000000e+00> : vector<16x64x64xf32>
    %41 = tpu.matmul %13, %23, %cst_8 {dimension_numbers = #tpu.dot_dimension_numbers<[2], [2], [1], [1], [0, 0, 0, 1, 1, 1], [0], [0]>} : vector<16x64x32xbf16>, vector<16x64x32xbf16>, vector<16x64x64xf32> -> vector<16x64x64xf32>
    "tpu.trace_stop"() : () -> ()
    %42 = vector.broadcast %34 : f32 to vector<16x64x64xf32>
    %43 = arith.mulf %41, %42 : vector<16x64x64xf32>
    %44 = vector.shape_cast %40 : vector<64x64xf32> to vector<1x64x64xf32>
    %45 = vector.broadcast %44 : vector<1x64x64xf32> to vector<16x64x64xf32>
    %46 = arith.addf %43, %45 : vector<16x64x64xf32>
    %cst_9 = arith.constant dense<0xFF800000> : vector<16x64xf32>
    %47 = vector.multi_reduction <maximumf>, %46, %cst_9 [2] : vector<16x64x64xf32> to vector<16x64xf32>
    %48 = vector.shape_cast %47 : vector<16x64xf32> to vector<16x64x1xf32>
    %49 = vector.broadcast %48 : vector<16x64x1xf32> to vector<16x64x64xf32>
    %50 = arith.subf %46, %49 : vector<16x64x64xf32>
    %51 = math.exp %50 : vector<16x64x64xf32>
    %cst_10 = arith.constant dense<0.000000e+00> : vector<16x64xf32>
    %52 = vector.multi_reduction <add>, %51, %cst_10 [2] : vector<16x64x64xf32> to vector<16x64xf32>
    %53 = vector.shape_cast %52 : vector<16x64xf32> to vector<16x64x1xf32>
    %54 = tpu.reciprocal %53 {approx = true} : vector<16x64x1xf32> -> vector<16x64x1xf32>
    %55 = vector.broadcast %54 : vector<16x64x1xf32> to vector<16x64x64xf32>
    %56 = arith.mulf %51, %55 : vector<16x64x64xf32>
    %57 = arith.truncf %56 : vector<16x64x64xf32> to vector<16x64x64xbf16>
    "tpu.trace_start"() <{level = 10 : i32, message = "bqk,bkd->bqd"}> : () -> ()
    %cst_11 = arith.constant dense<0.000000e+00> : vector<16x64x32xf32>
    %58 = tpu.matmul %57, %33, %cst_11 {dimension_numbers = #tpu.dot_dimension_numbers<[2], [1], [1], [2], [0, 0, 0, 1, 1, 2], [0], [0]>} : vector<16x64x64xbf16>, vector<16x64x32xbf16>, vector<16x64x32xf32> -> vector<16x64x32xf32>
    "tpu.trace_stop"() : () -> ()
    %59 = vector.shape_cast %58 : vector<16x64x32xf32> to vector<4x256x32xf32>
    %60 = arith.truncf %59 : vector<4x256x32xf32> to vector<4x256x32xbf16>
    %c0_12 = arith.constant 0 : index
    %c0_13 = arith.constant 0 : index
    %c0_14 = arith.constant 0 : index
    %61 = vector.load %arg3[%c0_12, %c0_13, %c0_14] : memref<4x32x128xbf16, #tpu.memory_space<vmem>>, vector<4x32x128xbf16>
    "tpu.trace_start"() <{level = 10 : i32, message = "hmd,hdc->hmc"}> : () -> ()
    %cst_15 = arith.constant dense<0.000000e+00> : vector<4x256x128xf32>
    %62 = tpu.matmul %60, %61, %cst_15 {dimension_numbers = #tpu.dot_dimension_numbers<[2], [1], [1], [2], [0, 0, 0, 1, 1, 2], [0], [0]>} : vector<4x256x32xbf16>, vector<4x32x128xbf16>, vector<4x256x128xf32> -> vector<4x256x128xf32>
    "tpu.trace_stop"() : () -> ()
    %cst_16 = arith.constant dense<0.000000e+00> : vector<256x128xf32>
    %63 = vector.multi_reduction <add>, %62, %cst_16 [0] : vector<4x256x128xf32> to vector<256x128xf32>
    %c0_17 = arith.constant 0 : index
    %c0_18 = arith.constant 0 : index
    %64 = vector.load %arg4[%c0_17, %c0_18] : memref<1x128xf32, #tpu.memory_space<vmem>>, vector<1x128xf32>
    %65 = vector.broadcast %64 : vector<1x128xf32> to vector<256x128xf32>
    %66 = arith.addf %63, %65 : vector<256x128xf32>
    %67 = vector.shape_cast %66 : vector<256x128xf32> to vector<4x64x128xf32>
    %c0_19 = arith.constant 0 : index
    %c0_20 = arith.constant 0 : index
    %c0_21 = arith.constant 0 : index
    %68 = vector.load %arg5[%c0_19, %c0_20, %c0_21] : memref<4x64x128xf32, #tpu.memory_space<vmem>>, vector<4x64x128xf32>
    tpu.vector_store %arg5[%c0_19, %c0_20, %c0_21], %67 {strides = array<i32>} : memref<4x64x128xf32, #tpu.memory_space<vmem>>, vector<4x64x128xf32>,
    return
  }
  func.func @transform_0(%arg0: i32) -> (i32, i32, i32) {
    %c0_i32 = arith.constant 0 : i32
    %c0_i32_0 = arith.constant 0 : i32
    %c0_i32_1 = arith.constant 0 : i32
    return %arg0, %c0_i32, %c0_i32_0 : i32, i32, i32
  }
  func.func @transform_1(%arg0: i32) -> (i32, i32) {
    %c0_i32 = arith.constant 0 : i32
    %c0_i32_0 = arith.constant 0 : i32
    %c0_i32_1 = arith.constant 0 : i32
    return %c0_i32, %c0_i32_0 : i32, i32
  }
  func.func @transform_2(%arg0: i32) -> (i32, i32, i32) {
    %c0_i32 = arith.constant 0 : i32
    %c0_i32_0 = arith.constant 0 : i32
    %c0_i32_1 = arith.constant 0 : i32
    %c0_i32_2 = arith.constant 0 : i32
    return %c0_i32, %c0_i32_0, %c0_i32_1 : i32, i32, i32
  }
  func.func @transform_3(%arg0: i32) -> (i32, i32) {
    %c0_i32 = arith.constant 0 : i32
    %c0_i32_0 = arith.constant 0 : i32
    %c0_i32_1 = arith.constant 0 : i32
    return %c0_i32, %c0_i32_0 : i32, i32
  }
  func.func @transform_4(%arg0: i32) -> (i32, i32, i32) {
    %c0_i32 = arith.constant 0 : i32
    %c0_i32_0 = arith.constant 0 : i32
    %c0_i32_1 = arith.constant 0 : i32
    return %arg0, %c0_i32, %c0_i32_0 : i32, i32, i32
  }
}

</mosaic_0001>

<bundles_post_ra>
// kernel: tpu_custom_call.1
= control target key start
LH: loop header
LB: loop body
LE: loop exit
PB: predicated region body
PF: predicated region fallthrough
CT: control target
= control target key end

     0   :  { %9 = vsyncpa [#allocation3], 0  ;;  %s14706_s0 = inlined_call_operand.hbm [shape: bf16[8,64,128], index: 0, kind: input, shape index: {}]   ;;  %s14707_s1 = inlined_call_operand.hbm [shape: bf16[128,384], index: 1, kind: input, shape index: {}]   ;;  %s14708_s2 = inlined_call_operand.hbm [shape: bf16[4,32,128], index: 2, kind: input, shape index: {}]   ;;  %s14709_s3 = inlined_call_operand.vmem [shape: f32[1,128], index: 3, kind: input, shape index: {}]   ;;  %s14710_s4 = inlined_call_operand.hbm [shape: f32[8,64,128], index: 4, kind: output, shape index: {}]  }
   0x1   :  { %11 = vsyncpa [#allocation3 + $0x1], 0 }
   0x2   :  { %12 = vsyncpa [#allocation6], 0 }
   0x3   :  { %13 = vsyncpa [#allocation4], 0 }
   0x4   :  { %15 = vsyncpa [#allocation4 + $0x1], 0  ;;  %s10635_s15 = smov 0   ;;  %s10637_s16 = smov 0  }
   0x5   :  { %s10639_s17 = smov 0   ;;  %s10641_s18 = smov 0  }
   0x6 LB: > { %s10656_s19 = sadd.s32 4294967295, %s10593_s18   ;;  %s7694_s20 = sadd.s32 4294967294, %s10593_s18   ;;  %s10593_s18 = sphi %s10641_s18, %s15551_s18   ;;  %s10589_s17 = sphi %s10639_s17, %s15550_s17   ;;  %s10585_s16 = sphi %s10637_s16, %s15549_s16   ;;  %s10581_s15 = sphi %s10635_s15, %s15548_s15  }
   0x7   : > { %p41_p0 = scmp.ne.s32.totalorder %s10585_s16, %s10581_s15  ;;  %p14711_p1 = scmp.eq.s32.totalorder %s10656_s19, 0 }
   0x8   : > { %p134_p3 = scmp.eq.s32.totalorder %s7694_s20, 1  ;;  %p7695_p5 = scmp.ge.s32.totalorder %s10593_s18, 1 }
   0x9   : > { %p10665_p4 = por %p14711_p1, %p41_p0  ;;  %p141_p7 = scmp.lt.s32.totalorder %s10593_s18, 3 }
   0xa   : > { %p10670_p6 = por %p134_p3, %p41_p0  ;;  %s10595_s24 = smov [#allocation5]  }
   0xb   : > { %s14966_s21 = scalar_select %p10665_p4, 1, 0 }
   0xc   : > { %s14967_s22 = scalar_select %p10670_p6, 1, 0 }
   0xd   : > { %p10675_p8 = pnand %p7695_p5, %p141_p7  ;;  %s153_s25 = sshll.u32 %s10595_s24, 4  ;;  %s154_s25 = int_to_ptr.vmem [resolvable:$true] %s153_s25 }
   0xe   : > { %s10596_s27 = smov [#allocation7]   ;;  %s10456_s29 = scalar_lea.vmem %s154_s25, 3072 }
   0xf   : > { %s14968_s23 = scalar_select %p10675_p8, 1, 0 }
  0x10   : > { %p9091_p9 = pneg %p10675_p8  ;;  %s166_s28 = sshll.u32 %s10596_s27, 4  ;;  %s167_s28 = int_to_ptr.vmem [resolvable:$true] %s166_s28 }
  0x11   : > { %p10457_p13 = scmp.ne.s32.totalorder %s154_s25, %s10456_s29  ;;  %p10464_p5 = scmp.lt.s32.totalorder %s154_s25, %s154_s25 }
  0x12   : > { %p10684_p11 = pnand %p9091_p9, %p14711_p1  ;;  %p10465_p7 = scmp.lt.s32.totalorder %s10456_s29, %s10456_s29 }
  0x14   : > { %p10447_p12 = pneg %p10684_p11  ;;  %p10466_p10 = por %p10465_p7, %p10464_p5 }
  0x16   : > { %p10459_p0 = pnand %p10457_p13, %p10447_p12 }
  0x18   : > { %p10460_p3 = pneg %p10459_p0 }
  0x1a   : > { %p10467_p9 = pnand %p10466_p10, %p10460_p3 }
  0x1c   : > { %10470 = shalt.err (!%p10467_p9)
}
  0x1d   : > { %s10597_s30 = smov 192   ;;  %s10598_s5 = smov 12  }
  0x1e   : > { %9094 = dma.hbm_to_vmem [thread:$0]  (!%p10684_p11), %s14707_s1, 3072, %s154_s25, [#allocation6], %s10597_s30, %s10597_s30, %s10598_s5  }
  0x1f   : > { %s10482_s8 = scalar_lea.vmem %s167_s28, 1024  ;;  %p10490_p2 = scmp.lt.s32.totalorder %s167_s28, %s167_s28 }
  0x20   : > { %p10483_p1 = scmp.ne.s32.totalorder %s167_s28, %s10482_s8  ;;  %p10491_p6 = scmp.lt.s32.totalorder %s10482_s8, %s10482_s8 }
  0x22   : > { %p10485_p13 = pnand %p10483_p1, %p10447_p12  ;;  %p10492_p5 = por %p10491_p6, %p10490_p2 }
  0x24   : > { %p10486_p0 = pneg %p10485_p13 }
  0x26   : > { %p10493_p10 = pnand %p10492_p5, %p10486_p0 }
  0x28   : > { %10496 = shalt.err (!%p10493_p10)
}
  0x29   : > { %s10599_s9 = smov 64   ;;  %s10600_s10 = smov 4  }
  0x2a   : > { %9097 = dma.hbm_to_vmem [thread:$0]  (!%p10684_p11), %s14708_s2, 1024, %s167_s28, [#allocation6], %s10599_s9, %s10599_s9, %s10600_s10  }
  0x2b   : > { %s10710_s13 = sadd.s32 1, %s10593_s18   ;;  %s28_s20 = sadd.s32 1, %s10589_s17 }
  0x2c   : > { %s25_s14 = ssub.s32 %s10593_s18, %s10710_s13  ;;  %p35_p2 = scmp.ne.s32.totalorder %s10589_s17, %s10585_s16 }
  0x2d   : > { %p26_p1 = scmp.eq.s32.totalorder %s25_s14, 0  ;;  %p36_p6 = scmp.eq.s32.totalorder %s10593_s18, 0 }
  0x2e   : > { %p14970_p3 = scmp.eq.s32.totalorder %s10656_s19, 1  ;;  %p9108_p9 = scmp.lt.s32.totalorder %s10593_s18, 2 }
  0x2f   : > { %s10719_s24 = scalar_select %p26_p1, %s10589_s17, %s28_s20  }
  0x30   : > { %p37_p12 = por %p36_p6, %p35_p2  ;;  %p10723_p7 = por %p14970_p3, %p35_p2 }
  0x31   : > { %s183_s26 = sand.u32 1, %s10589_s17   ;;  %s7956_s28 = sshll.u32 %s10593_s18, 11 }
  0x32   : > { %s14971_s25 = scalar_select %p10723_p7, 1, 0 }
  0x33   : > { %s7699_s27 = sshll.u32 %s183_s26, 7  ;;  %s10733_s5 = scalar_lea.hbm %s14706_s0, %s7956_s28 }
  0x34   : > { %s187_s6 = scalar_lea.vmem [#allocation2], %s7699_s27  ;;  %p10737_p11 = pnand %p9108_p9, %p37_p12 }
  0x35   : > { %s195_s7 = sshll.u32 %s187_s6, 4  ;;  %s10741_s11 = scalar_lea.sflag [#allocation3], %s183_s26  ;;  %s10735_s7 = int_to_ptr.vmem [resolvable:$true] %s195_s7 }
  0x36   : > { %s10497_s12 = scalar_lea.hbm %s10733_s5, 2048  ;;  %p10499_p0 = pneg %p10737_p11 }
  0x37   : > { %p10498_p13 = scmp.ne.s32.totalorder %s10733_s5, %s10497_s12  ;;  %s10502_s27 = scalar_lea.hbm %s14706_s0, 4096 }
  0x38   : > { %p10503_p1 = scmp.lt.s32.totalorder %s10733_s5, %s14706_s0  ;;  %p10504_p2 = scmp.lt.s32.totalorder %s10502_s27, %s10497_s12 }
  0x39   : > { %p10500_p5 = pnand %p10499_p0, %p10498_p13 }
  0x3a   : > { %p10505_p6 = por %p10504_p2, %p10503_p1 }
  0x3b   : > { %p10501_p10 = pneg %p10500_p5 }
  0x3d   : > { %p10506_p12 = pnand %p10505_p6, %p10501_p10 }
  0x3f   : > { %10509 = shalt.err (!%p10506_p12)
}
  0x40   : > { %s10510_s26 = scalar_lea.vmem %s10735_s7, 2048  ;;  %s10601_s30 = smov [#allocation2]  }
  0x41   : > { %p10511_p3 = scmp.ne.s32.totalorder %s10735_s7, %s10510_s26  ;;  %s10515_s6 = sshll.u32 %s10601_s30, 4  ;;  %s10516_s6 = int_to_ptr.vmem [resolvable:$false] %s10515_s6 }
  0x42   : > { %s10517_s14 = scalar_lea.vmem %s10516_s6, 4096  ;;  %p10518_p5 = scmp.lt.s32.totalorder %s10735_s7, %s10516_s6 }
  0x43   : > { %p10513_p9 = pnand %p10511_p3, %p10499_p0  ;;  %p10519_p7 = scmp.lt.s32.totalorder %s10517_s14, %s10510_s26 }
  0x45   : > { %p10514_p13 = pneg %p10513_p9  ;;  %p10520_p4 = por %p10519_p7, %p10518_p5 }
  0x47   : > { %p10521_p8 = pnand %p10520_p4, %p10514_p13 }
  0x49   : > { %10524 = shalt.err (!%p10521_p8)
}
  0x4a   : > { %9101 = dma.hbm_to_vmem [thread:$0]  (!%p10737_p11), %s10733_s5, 2048, %s10735_s7, %s10741_s11, %s10599_s9, %s10599_s9, %s10600_s10  }
  0x4b   : > { %p14973_p0 = scmp.ne.s32.totalorder %s14968_s23, 0 }
  0x4d   : > { %207 = sbr.rel (%p14973_p0) target bundleno = 2644 (0xa54), region = 36 }
  0x52   : > { %s10768_s12 = sand.u32 1, %s10585_s16   ;;  %p14974_p4 = scmp.ne.s32.totalorder %s14966_s21, 0 }
  0x53   : > { %s7704_s20 = sshll.u32 %s10768_s12, 7  ;;  %s210_s27 = scalar_lea.sflag [#allocation3], %s10768_s12 }
  0x54   : > { %s10772_s28 = scalar_lea.vmem [#allocation2], %s7704_s20 }
  0x55   : > { %10568 = dma.done.wait (%p14974_p4), %s210_s27, 2048  }
  0x56   : > { %10570 = vsyncadd (%p14974_p4), %s210_s27, 4294965248  ;;  %p14975_p8 = scmp.eq.s32.totalorder %s10656_s19, 0 }
  0x58   : > { %10572 = dma.done.wait (%p14975_p8), [#allocation6], 4096   ;;  %p14976_p7 = pmov %p14975_p8 }
  0x59   : > { %v10602_v0 = vmov 0   ;;  %v9877_v1 = vld [vmem:[#allocation5 + $0xac] ss:$12 sps:$4 sm:$0xff]   ;;  %v9879_v2 = vld [vmem:[#allocation5 + $0xb0] ss:$12 sps:$4 sm:$0xff]   ;;  %v9909_v19 = vld [vmem:[%s10772_s28] sm:$0xff]  }
  0x5a   : > { %10574 = vsyncadd (%p14976_p7), [#allocation6], 4294963200  ;;  %569 = vmatprep.mubr.bf16.mxu0 %v10602_v0  ;;  %537 = vmatprep.subr.bf16.mxu0 %v9877_v1  ;;  %v9880_v3 = vld [vmem:[#allocation5 + $0xa8] ss:$12 sps:$4 sm:$0xff]   ;;  %v9883_v5 = vld [vmem:[#allocation5 + $0x98] ss:$12 sps:$4 sm:$0xff]  }
  0x5b   : > { %8311 = vmatprep.subr.bf16.mxu1 %v9879_v2  ;;  %v9881_v4 = vld [vmem:[#allocation5 + $0x94] ss:$12 sps:$4 sm:$0xff]   ;;  %538 = vmatpush1.bf16.msra.mxu0 %v9880_v3  ;;  %v9884_v6 = vld [vmem:[#allocation5 + $0x90] ss:$12 sps:$4 sm:$0xff]   ;;  %v9888_v9 = vld [vmem:[#allocation5 + $0x78] ss:$12 sps:$4 sm:$0xff]  }
  0x5c   : > { %8312 = vmatpush3.bf16.msra.mxu1 %v9879_v2  ;;  %539 = vmatprep.subr.bf16.mxu0 %v9881_v4  ;;  %v9885_v7 = vld [vmem:[#allocation5 + $0x7c] ss:$12 sps:$4 sm:$0xff]   ;;  %v9887_v8 = vld [vmem:[#allocation5 + $0x80] ss:$12 sps:$4 sm:$0xff]   ;;  %v9889_v10 = vld [vmem:[#allocation5 + $0x64] ss:$12 sps:$4 sm:$0xff]  }
  0x5d   : > { %8313 = vmatprep.subr.bf16.mxu1 %v9883_v5  ;;  %v9891_v11 = vld [vmem:[#allocation5 + $0x68] ss:$12 sps:$4 sm:$0xff]   ;;  %v9892_v12 = vld [vmem:[#allocation5 + $0x60] ss:$12 sps:$4 sm:$0xff]   ;;  %v9895_v14 = vld [vmem:[#allocation5 + $0x50] ss:$12 sps:$4 sm:$0xff]   ;;  %8327 = vmatprep.mubr.bf16.mxu1 %v9909_v19 }
  0x5e   : > { %v9893_v13 = vld [vmem:[#allocation5 + $0x4c] ss:$12 sps:$4 sm:$0xff]   ;;  %v9896_v15 = vld [vmem:[#allocation5 + $0x48] ss:$12 sps:$4 sm:$0xff]   ;;  %v9900_v18 = vld [vmem:[#allocation5 + $0x30] ss:$12 sps:$4 sm:$0xff]  }
  0x5f   : > { %540 = vmatpush1.bf16.msra.mxu0 %v9884_v6  ;;  %v9897_v16 = vld [vmem:[#allocation5 + $0x34] ss:$12 sps:$4 sm:$0xff]   ;;  %v9899_v17 = vld [vmem:[#allocation5 + $0x38] ss:$12 sps:$4 sm:$0xff]   ;;  %v9901_v20 = vld [vmem:[#allocation5 + $0x1c] ss:$12 sps:$4 sm:$0xff]  }
  0x60   : > { %8314 = vmatpush3.bf16.msra.mxu1 %v9883_v5  ;;  %541 = vmatprep.subr.bf16.mxu0 %v9885_v7  ;;  %v9903_v21 = vld [vmem:[#allocation5 + $0x20] ss:$12 sps:$4 sm:$0xff]   ;;  %v9904_v22 = vld [vmem:[#allocation5 + $0x18] ss:$12 sps:$4 sm:$0xff]   ;;  %v9907_v24 = vld [vmem:[#allocation5 + $0x8] ss:$12 sps:$4 sm:$0xff]  }
  0x61   : > { %8315 = vmatprep.subr.bf16.mxu1 %v9887_v8  ;;  %v9905_v23 = vld [vmem:[#allocation5 + $0x4] ss:$12 sps:$4 sm:$0xff]   ;;  %v9908_v25 = vld [vmem:[#allocation5] ss:$12 sps:$4 sm:$0xff]   ;;  %v9912_v28 = vld [vmem:[%s10772_s28 + $0x18] sm:$0xff]   ;;  %vm2070_vm0 = vcmask 261120  }
  0x62   : > { %v9910_v26 = vld [vmem:[%s10772_s28 + $0x8] sm:$0xff]   ;;  %v9911_v27 = vld [vmem:[%s10772_s28 + $0x10] sm:$0xff]   ;;  %v9913_v29 = vld [vmem:[%s10772_s28 + $0x20] sm:$0xff]   ;;  %s10603_s21 = smov 96   ;;  %s10604_s23 = smov 64   ;;  %vm3751_vm3 = vcmask 523264  }
  0x63   : > { %542 = vmatpush1.bf16.msra.mxu0 %v9888_v9  ;;  %v9914_v30 = vld [vmem:[%s10772_s28 + $0x28] sm:$0xff]   ;;  %v9915_v31 = vld [vmem:[%s10772_s28 + $0x30] sm:$0xff]   ;;  %v9916_v32 = vld [vmem:[%s10772_s28 + $0x38] sm:$0xff]   ;;  %s10605_s9 = smov 32   ;;  %s7707_s10 = sshll.u32 %s10768_s12, 8 }
  0x64   : > { %8316 = vmatpush3.bf16.msra.mxu1 %v9887_v8  ;;  %543 = vmatprep.subr.bf16.mxu0 %v9889_v10  ;;  %v9917_v33 = vld [vmem:[%s10772_s28 + $0x40] sm:$0xff]   ;;  %v9918_v34 = vld [vmem:[%s10772_s28 + $0x48] sm:$0xff]   ;;  %v9919_v35 = vld [vmem:[%s10772_s28 + $0x50] sm:$0xff]   ;;  %s14555_s8 = scalar_lea.vmem [#allocation8], %s7707_s10  ;;  %s7958_s11 = sshll.u32 %s10656_s19, 12 }
  0x65   : > { %8317 = vmatprep.subr.bf16.mxu1 %v9891_v11  ;;  %v9920_v36 = vld [vmem:[%s10772_s28 + $0x58] sm:$0xff]   ;;  %v9921_v37 = vld [vmem:[%s10772_s28 + $0x60] sm:$0xff]   ;;  %v9922_v38 = vld [vmem:[%s10772_s28 + $0x68] sm:$0xff]   ;;  %s7602_s29 = sshll.u32 %s14555_s8, 4  ;;  %s14658_s6 = scalar_lea.hbm %s14710_s4, %s7958_s11  ;;  %s14660_s29 = int_to_ptr.vmem [resolvable:$true] %s7602_s29 }
  0x66   : > { %v9923_v39 = vld [vmem:[%s10772_s28 + $0x70] sm:$0xff]   ;;  %v9924_v40 = vld [vmem:[%s10772_s28 + $0x78] sm:$0xff]   ;;  %s7588_s19 = scalar_lea.sflag [#allocation4], %s10768_s12  ;;  %s10525_s14 = scalar_lea.vmem %s14660_s29, 4096 }
  0x67   : > { %544 = vmatpush1.bf16.msra.mxu0 %v9892_v12  ;;  %p10526_p11 = scmp.ne.s32.totalorder %s14660_s29, %s10525_s14  ;;  %p15545_p10 = scmp.ne.s32.totalorder %s14971_s25, 0 }
  0x68   : > { %8318 = vmatpush3.bf16.msra.mxu1 %v9891_v11  ;;  %545 = vmatprep.subr.bf16.mxu0 %v9893_v13  ;;  %s10607_s20 = smov [#allocation8]  }
  0x69   : > { %8319 = vmatprep.subr.bf16.mxu1 %v9895_v14  ;;  %p10527_p1 = pnand %p10526_p11, %p15545_p10  ;;  %s10529_s27 = sshll.u32 %s10607_s20, 4  ;;  %s10530_s27 = int_to_ptr.vmem [resolvable:$false] %s10529_s27 }
  0x6a   : > { %s10531_s28 = scalar_lea.vmem %s10530_s27, 8192  ;;  %p10532_p6 = scmp.lt.s32.totalorder %s14660_s29, %s10530_s27 }
  0x6b   : > { %546 = vmatpush1.bf16.msra.mxu0 %v9896_v15  ;;  %p10528_p2 = pneg %p10527_p1  ;;  %p10533_p12 = scmp.lt.s32.totalorder %s10531_s28, %s10525_s14 }
  0x6c   : > { %8320 = vmatpush3.bf16.msra.mxu1 %v9895_v14  ;;  %547 = vmatprep.subr.bf16.mxu0 %v9897_v16 }
  0x6d   : > { %8321 = vmatprep.subr.bf16.mxu1 %v9899_v17  ;;  %p10534_p3 = por %p10533_p12, %p10532_p6 }
  0x6f   : > { %548 = vmatpush1.bf16.msra.mxu0 %v9900_v18  ;;  %p10535_p9 = pnand %p10534_p3, %p10528_p2 }
  0x70   : > { %8322 = vmatpush3.bf16.msra.mxu1 %v9899_v17  ;;  %549 = vmatprep.subr.bf16.mxu0 %v9901_v20 }
  0x71   : > { %8323 = vmatprep.subr.bf16.mxu1 %v9903_v21 }
  0x73   : > { %550 = vmatpush1.bf16.msra.mxu0 %v9904_v22 }
  0x74   : > { %8324 = vmatpush3.bf16.msra.mxu1 %v9903_v21  ;;  %551 = vmatprep.subr.bf16.mxu0 %v9905_v23 }
  0x75   : > { %8325 = vmatprep.subr.bf16.mxu1 %v9907_v24 }
  0x77   : > { %552 = vmatpush1.bf16.msra.mxu0 %v9908_v25 }
  0x78   : > { %8326 = vmatpush3.bf16.msra.mxu1 %v9907_v24 }
  0x7a   : > { %570 = vmatmul.mubr.bf16.vlgmr.msra.gmra.mxu0 %v9909_v19 }
  0x7b   : > { %8328 = vmatmul.mubr.bf16.vlgmr.msra.gmra.mxu1 %v9910_v26  ;;  %579 = vmatprep.mubr.bf16.mxu0 %v10602_v0 }
  0x7c   : > { %8331 = vmatprep.mubr.bf16.mxu1 %v9911_v27 }
  0x82   : > { %580 = vmatmul.mubr.bf16.gmra.mxu0 %v9910_v26 }
  0x83   : > { %8332 = vmatmul.mubr.bf16.gmra.mxu1 %v9912_v28  ;;  %589 = vmatprep.mubr.bf16.mxu0 %v10602_v0 }
  0x84   : > { %8335 = vmatprep.mubr.bf16.mxu1 %v9913_v29 }
  0x8a   : > { %590 = vmatmul.mubr.bf16.gmra.mxu0 %v9911_v27 }
  0x8b   : > { %8336 = vmatmul.mubr.bf16.gmra.mxu1 %v9914_v30  ;;  %599 = vmatprep.mubr.bf16.mxu0 %v10602_v0 }
  0x8c   : > { %8339 = vmatprep.mubr.bf16.mxu1 %v9915_v31 }
  0x92   : > { %600 = vmatmul.mubr.bf16.gmra.mxu0 %v9912_v28 }
  0x93   : > { %8340 = vmatmul.mubr.bf16.gmra.mxu1 %v9916_v32  ;;  %609 = vmatprep.mubr.bf16.mxu0 %v10602_v0 }
  0x94   : > { %8343 = vmatprep.mubr.bf16.mxu1 %v9917_v33 }
  0x9a   : > { %610 = vmatmul.mubr.bf16.gmra.mxu0 %v9913_v29 }
  0x9b   : > { %8344 = vmatmul.mubr.bf16.gmra.mxu1 %v9918_v34  ;;  %619 = vmatprep.mubr.bf16.mxu0 %v10602_v0 }
  0x9c   : > { %8347 = vmatprep.mubr.bf16.mxu1 %v9919_v35 }
  0xa2   : > { %620 = vmatmul.mubr.bf16.gmra.mxu0 %v9914_v30 }
  0xa3   : > { %8348 = vmatmul.mubr.bf16.gmra.mxu1 %v9920_v36  ;;  %629 = vmatprep.mubr.bf16.mxu0 %v10602_v0 }
  0xa4   : > { %8351 = vmatprep.mubr.bf16.mxu1 %v9921_v37 }
  0xaa   : > { %630 = vmatmul.mubr.bf16.gmra.mxu0 %v9915_v31 }
  0xab   : > { %8352 = vmatmul.mubr.bf16.gmra.mxu1 %v9922_v38  ;;  %639 = vmatprep.mubr.bf16.mxu0 %v10602_v0 }
  0xac   : > { %8355 = vmatprep.mubr.bf16.mxu1 %v9923_v39 }
  0xb2   : > { %640 = vmatmul.mubr.bf16.gmra.mxu0 %v9916_v32 }
  0xb3   : > { %8356 = vmatmul.mubr.bf16.gmra.mxu1 %v9924_v40  ;;  %649 = vmatprep.mubr.bf16.mxu0 %v10602_v0 }
  0xba   : > { %650 = vmatmul.mubr.bf16.gmra.mxu0 %v9917_v33 }
  0xbb   : > { %659 = vmatprep.mubr.bf16.mxu0 %v10602_v0 }
  0xc2   : > { %660 = vmatmul.mubr.bf16.gmra.mxu0 %v9918_v34 }
  0xc3   : > { %669 = vmatprep.mubr.bf16.mxu0 %v10602_v0 }
  0xca   : > { %670 = vmatmul.mubr.bf16.gmra.mxu0 %v9919_v35 }
  0xcb   : > { %679 = vmatprep.mubr.bf16.mxu0 %v10602_v0 }
  0xd2   : > { %680 = vmatmul.mubr.bf16.gmra.mxu0 %v9920_v36 }
  0xd3   : > { %689 = vmatprep.mubr.bf16.mxu0 %v10602_v0 }
  0xda   : > { %690 = vmatmul.mubr.bf16.gmra.mxu0 %v9921_v37 }
  0xdb   : > { %699 = vmatprep.mubr.bf16.mxu0 %v10602_v0 }
  0xe2   : > { %700 = vmatmul.mubr.bf16.gmra.mxu0 %v9922_v38 }
  0xe3   : > { %709 = vmatprep.mubr.bf16.mxu0 %v10602_v0 }
  0xea   : > { %710 = vmatmul.mubr.bf16.gmra.mxu0 %v9923_v39 }
  0xeb   : > { %719 = vmatprep.mubr.bf16.mxu0 %v10602_v0 }
  0xf2   : > { %720 = vmatmul.mubr.bf16.gmra.mxu0 %v9924_v40 }
 0x13a   : > { %v571_v41 = vpop.f32.mrf.mxu0 }
 0x13b   : > { %v8329_v42 = vpop.f32.mrf.mxu1 }
 0x13c   : > { %v10814_v43 = vpop.f32.mrf.mxu0 }
 0x13d   : > { %v10816_v44 = vpop.f32.mrf.mxu1 }
 0x13e   : > { %14977 = vst [vmem:[#allocation12_spill] sm:$0xff] %v10816_v44  ;;  %v575_v45 = vpop.f32.mrf.mxu0 }
 0x13f   : > { %v8330_v46 = vpop.f32.mrf.mxu1  ;;  %v1211_v47 = vpack.c.bf16 %v575_v45, %v571_v41  ;;  %v9157_v51 = vpack.i.bf16 %v575_v45, %v571_v41 }
 0x140   : > { %v10818_v48 = vpack.i.bf16 %v8330_v46, %v8329_v42  ;;  %v10820_v49 = vpop.f32.mrf.mxu0  ;;  %v10824_v52 = vpack.c.bf16 %v8330_v46, %v8329_v42 }
 0x141   : > { %v10822_v50 = vpop.f32.mrf.mxu1  ;;  %8367 = vmatprep.mubr.msk.bf16.mxu1 %vm2070_vm0, %v1211_v47  ;;  %9158 = vrot.lane.b32.xlu0 %v9157_v51, %s10603_s21  ;;  %v9177_v3 = vpack.i.bf16 %v10820_v49, %v10814_v43 }
 0x142   : > { %14978 = vst [vmem:[#allocation13_spill] sm:$0xff] %v10818_v48  ;;  %14979 = vst [vmem:[#allocation14_spill] sm:$0xff] %v10822_v50  ;;  %9173 = vrot.lane.b32.xlu1 %v10818_v48, %s10603_s21  ;;  %v10830_v53 = vpop.f32.mrf.mxu0  ;;  %v10882_v15 = vpack.i.bf16 %v10822_v50, %v10816_v44 }
 0x143   : > { %14980 = vst [vmem:[#allocation15_spill] sm:$0xff] %v10824_v52  ;;  %v8333_v54 = vpop.f32.mrf.mxu1 }
 0x144   : > { %v10832_v55 = vpop.f32.mrf.mxu0  ;;  %14989 = vst [vmem:[#allocation24_spill] sm:$0xff] %v10882_v15 }
 0x145   : > { %v10834_v56 = vpop.f32.mrf.mxu1  ;;  %9163 = vrot.lane.b32.xlu0 %v9157_v51, %s10604_s23 }
 0x146   : > { %14981 = vst [vmem:[#allocation16_spill] sm:$0xff] %v10834_v56  ;;  %v10837_v57 = vpop.f32.mrf.mxu0 }
 0x147   : > { %v8334_v58 = vpop.f32.mrf.mxu1  ;;  %v9197_v60 = vpack.i.bf16 %v10837_v57, %v10830_v53 }
 0x148   : > { %v10839_v59 = vpack.i.bf16 %v8334_v58, %v8333_v54  ;;  %v10843_v61 = vpop.f32.mrf.mxu0  ;;  %v10847_v63 = vpack.c.bf16 %v8334_v58, %v8333_v54 }
 0x149   : > { %v10845_v62 = vpop.f32.mrf.mxu1  ;;  %9198 = vrot.lane.b32.xlu1 %v9197_v60, %s10604_s23  ;;  %9168 = vrot.lane.b32.xlu0 %v9157_v51, %s10605_s9  ;;  %v9212_v13 = vpack.i.bf16 %v10843_v61, %v10832_v55  ;;  %v1596_v42 = vpack.c.bf16 %v10843_v61, %v10832_v55 }
 0x14a   : > { %14982 = vst [vmem:[#allocation17_spill] sm:$0xff] %v10839_v59  ;;  %14983 = vst [vmem:[#allocation18_spill] sm:$0xff] %v10845_v62  ;;  %v10851_v0 = vpop.f32.mrf.mxu0  ;;  %v10915_v30 = vpack.i.bf16 %v10845_v62, %v10834_v56 }
 0x14b   : > { %14984 = vst [vmem:[#allocation19_spill] sm:$0xff] %v10847_v63  ;;  %v8337_v1 = vpop.f32.mrf.mxu1 }
 0x14c   : > { %v10853_v2 = vpop.f32.mrf.mxu0  ;;  %14994 = vst [vmem:[#allocation29_spill] sm:$0xff] %v10915_v30 }
 0x14d   : > { %v10857_v4 = vpop.f32.mrf.mxu1  ;;  %9203 = vrot.lane.b32.xlu1 %v9197_v60, %s10605_s9  ;;  %9178 = vrot.lane.b32.xlu0 %v9177_v3, %s10604_s23 }
 0x14e   : > { %14985 = vst [vmem:[#allocation20_spill] sm:$0xff] %v10857_v4  ;;  %v10861_v5 = vpop.f32.mrf.mxu0 }
 0x14f   : > { %v8338_v6 = vpop.f32.mrf.mxu1  ;;  %v9227_v27 = vpack.i.bf16 %v10861_v5, %v10851_v0 }
 0x150   : > { %v10863_v7 = vpack.i.bf16 %v8338_v6, %v8337_v1  ;;  %v10865_v8 = vpop.f32.mrf.mxu0  ;;  %v10869_v10 = vpack.c.bf16 %v8338_v6, %v8337_v1  ;;  %v2087_v6 = vsel %vm2070_vm0, %v1596_v42, 0 }
 0x151   : > { %v10867_v9 = vpop.f32.mrf.mxu1  ;;  %9208 = vrot.lane.b32.xlu1 %v10839_v59, %s10603_s21  ;;  %9183 = vrot.lane.b32.xlu0 %v9177_v3, %s10605_s9  ;;  %v1597_v28 = vpack.c.bf16 %v10865_v8, %v10853_v2  ;;  %v9247_v41 = vpack.i.bf16 %v10865_v8, %v10853_v2 }
 0x152   : > { %14986 = vst [vmem:[#allocation21_spill] sm:$0xff] %v10863_v7  ;;  %14987 = vst [vmem:[#allocation22_spill] sm:$0xff] %v10867_v9  ;;  %v10874_v11 = vpop.f32.mrf.mxu0 }
 0x153   : > { %14988 = vst [vmem:[#allocation23_spill] sm:$0xff] %v10869_v10  ;;  %v8341_v12 = vpop.f32.mrf.mxu1  ;;  %v2090_v40 = vsel %vm2070_vm0, %v1597_v28, 0 }
 0x154   : > { %v10878_v14 = vpop.f32.mrf.mxu0 }
 0x155   : > { %v10884_v16 = vpop.f32.mrf.mxu1  ;;  %9213 = vrot.lane.b32.xlu1 %v9212_v13, %s10604_s23  ;;  %9188 = vrot.lane.b32.xlu0 %v10882_v15, %s10603_s21 }
 0x156   : > { %14990 = vst [vmem:[#allocation25_spill] sm:$0xff] %v10884_v16  ;;  %v10889_v17 = vpop.f32.mrf.mxu0 }
 0x157   : > { %v8342_v18 = vpop.f32.mrf.mxu1  ;;  %v9262_v54 = vpack.i.bf16 %v10889_v17, %v10874_v11 }
 0x158   : > { %v10891_v19 = vpack.i.bf16 %v8342_v18, %v8341_v12  ;;  %v10893_v20 = vpop.f32.mrf.mxu0  ;;  %v10897_v22 = vpack.c.bf16 %v8342_v18, %v8341_v12  ;;  %v1595_v12 = vpack.c.bf16 %v10820_v49, %v10814_v43  ;;  %v10971_v18 = vpack.i.bf16 %v10867_v9, %v10857_v4 }
 0x159   : > { %v10895_v21 = vpop.f32.mrf.mxu1  ;;  %9218 = vrot.lane.b32.xlu1 %v9212_v13, %s10605_s9  ;;  %v1598_v23 = vpack.c.bf16 %v10893_v20, %v10878_v14  ;;  %9193 = vrot.lane.b32.xlu0 %v9197_v60, %s10603_s21 }
 0x15a   : > { %14991 = vst [vmem:[#allocation26_spill] sm:$0xff] %v10891_v19  ;;  %14992 = vst [vmem:[#allocation27_spill] sm:$0xff] %v10895_v21  ;;  %v10903_v24 = vpop.f32.mrf.mxu0 }
 0x15b   : > { %14993 = vst [vmem:[#allocation28_spill] sm:$0xff] %v10897_v22  ;;  %v8345_v25 = vpop.f32.mrf.mxu1  ;;  %9015 = vmatprep.subr.msk.bf16.mxu1 %vm2070_vm0, %v1598_v23  ;;  %v2093_v26 = vsel %vm2070_vm0, %v1598_v23, 0  ;;  %15002 = vst [vmem:[#allocation37_spill] sm:$0xff] %v10971_v18 }
 0x15c   : > { %v10911_v29 = vpop.f32.mrf.mxu0  ;;  %8360 = vmatpush3.bf16.xpose.msra.mxu1 %v2093_v26 }
 0x15d   : > { %v10917_v31 = vpop.f32.mrf.mxu1  ;;  %9228 = vrot.lane.b32.xlu1 %v9227_v27, %s10603_s21  ;;  %9016 = vmatprep.subr.msk.bf16.mxu1 %vm2070_vm0, %v1597_v28  ;;  %v9282_v28 = vpack.i.bf16 %v10893_v20, %v10878_v14 }
 0x15e   : > { %14995 = vst [vmem:[#allocation30_spill] sm:$0xff] %v10917_v31  ;;  %9223 = vrot.lane.b32.xlu0 %v10915_v30, %s10603_s21  ;;  %v10923_v32 = vpop.f32.mrf.mxu0 }
 0x15f   : > { %v8346_v33 = vpop.f32.mrf.mxu1 }
 0x160   : > { %v10925_v34 = vpack.i.bf16 %v8346_v33, %v8345_v25  ;;  %v10927_v35 = vpop.f32.mrf.mxu0  ;;  %v10931_v37 = vpack.c.bf16 %v8346_v33, %v8345_v25 }
 0x161   : > { %v10929_v36 = vpop.f32.mrf.mxu1  ;;  %9238 = vrot.lane.b32.xlu1 %v9227_v27, %s10605_s9 }
 0x162   : > { %14996 = vst [vmem:[#allocation31_spill] sm:$0xff] %v10925_v34  ;;  %14997 = vst [vmem:[#allocation32_spill] sm:$0xff] %v10929_v36  ;;  %9233 = vrot.lane.b32.xlu0 %v9227_v27, %s10604_s23  ;;  %v10935_v38 = vpop.f32.mrf.mxu0  ;;  %v2084_v27 = vsel %vm2070_vm0, %v1595_v12, 0 }
 0x163   : > { %14998 = vst [vmem:[#allocation33_spill] sm:$0xff] %v10931_v37  ;;  %v8349_v39 = vpop.f32.mrf.mxu1 }
 0x164   : > { %v10942_v45 = vpop.f32.mrf.mxu0  ;;  %8362 = vmatpush3.bf16.xpose.msra.mxu1 %v2090_v40 }
 0x165   : > { %v10944_v46 = vpop.f32.mrf.mxu1  ;;  %9248 = vrot.lane.b32.xlu1 %v9247_v41, %s10604_s23  ;;  %9017 = vmatprep.subr.msk.bf16.mxu1 %vm2070_vm0, %v1596_v42  ;;  %v1212_v42 = vpack.c.bf16 %v10837_v57, %v10830_v53  ;;  %v9317_v57 = vpack.i.bf16 %v10927_v35, %v10911_v29 }
 0x166   : > { %14999 = vst [vmem:[#allocation34_spill] sm:$0xff] %v10944_v46  ;;  %9243 = vrot.lane.b32.xlu0 %v10863_v7, %s10603_s21  ;;  %v10950_v47 = vpop.f32.mrf.mxu0 }
 0x167   : > { %v8350_v51 = vpop.f32.mrf.mxu1 }
 0x168   : > { %v10954_v58 = vpack.i.bf16 %v8350_v51, %v8349_v39  ;;  %v10956_v60 = vpop.f32.mrf.mxu0  ;;  %v10958_v1 = vpack.c.bf16 %v8350_v51, %v8349_v39 }
 0x169   : > { %9263 = vrot.lane.b32.xlu1 %v9262_v54, %s10603_s21 }
 0x16a   : > { %15000 = vst [vmem:[#allocation35_spill] sm:$0xff] %v10954_v58  ;;  %15001 = vst [vmem:[#allocation36_spill] sm:$0xff] %v10958_v1  ;;  %9253 = vrot.lane.b32.xlu0 %v9247_v41, %s10605_s9  ;;  %v10962_v3 = vpop.f32.mrf.mxu0  ;;  %v10999_v41 = vpack.i.bf16 %v10895_v21, %v10884_v16 }
 0x16c   : > { %v10967_v13 = vpop.f32.mrf.mxu0  ;;  %8364 = vmatpush3.bf16.xpose.msra.mxu1 %v2087_v6  ;;  %15003 = vst [vmem:[#allocation38_spill] sm:$0xff] %v10999_v41  ;;  %v1213_v6 = vpack.c.bf16 %v10861_v5, %v10851_v0  ;;  %v9297_v0 = vpack.i.bf16 %v10923_v32, %v10903_v24 }
 0x16d   : > { %9268 = vrot.lane.b32.xlu1 %v9262_v54, %s10604_s23  ;;  %9018 = vmatprep.subr.msk.bf16.mxu1 %vm2070_vm0, %v1595_v12 }
 0x16e   : > { %9258 = vrot.lane.b32.xlu0 %v10971_v18, %s10603_s21  ;;  %v10977_v23 = vpop.f32.mrf.mxu0  ;;  %v1215_v18 = vpack.c.bf16 %v10923_v32, %v10903_v24 }
 0x16f   : > { %v9372_v15 = vpack.i.bf16 %v10977_v23, %v10962_v3  ;;  %v1217_v30 = vpack.c.bf16 %v10977_v23, %v10962_v3 }
 0x170   : > { %v10979_v25 = vpop.f32.mrf.mxu0 }
 0x171   : > { %9273 = vrot.lane.b32.xlu1 %v9262_v54, %s10605_s9  ;;  %v1601_v54 = vpack.c.bf16 %v10979_v25, %v10967_v13  ;;  %v9392_v23 = vpack.i.bf16 %v10979_v25, %v10967_v13 }
 0x172   : > { %9278 = vrot.lane.b32.xlu0 %v10891_v19, %s10603_s21  ;;  %v10984_v26 = vpop.f32.mrf.mxu0 }
 0x174   : > { %v10989_v33 = vpop.f32.mrf.mxu0  ;;  %8366 = vmatpush3.bf16.xpose.msra.mxu1 %v2084_v27 }
 0x175   : > { %9283 = vrot.lane.b32.xlu1 %v9282_v28, %s10604_s23 }
 0x176   : > { %9288 = vrot.lane.b32.xlu0 %v9282_v28, %s10605_s9  ;;  %v10993_v39 = vpop.f32.mrf.mxu0 }
 0x178   : > { %v10995_v40 = vpop.f32.mrf.mxu0 }
 0x179   : > { %9313 = vrot.lane.b32.xlu1 %v10925_v34, %s10603_s21  ;;  %v1602_v51 = vpack.c.bf16 %v10995_v40, %v10989_v33  ;;  %v9332_v34 = vpack.i.bf16 %v10950_v47, %v10935_v38 }
 0x17a   : > { %9293 = vrot.lane.b32.xlu0 %v10999_v41, %s10603_s21  ;;  %v11013_v12 = vpop.f32.mrf.mxu0  ;;  %v11096_v41 = vpop.f32.mrf.mxu1 }
 0x17b   : > { %8368 = vmatmul.mubr.msk.bf16.vlgmr.msra.gmra.mxu1 %vm2070_vm0, %v1212_v42  ;;  %9019 = vmatprep.subr.msk.bf16.mxu1 %vm2070_vm0, %v1602_v51  ;;  %v2182_v53 = vsel %vm2070_vm0, %v1602_v51, 0  ;;  %v11034_v42 = vpack.i.bf16 %v10929_v36, %v10917_v31  ;;  %15005 = vst [vmem:[#allocation40_spill] sm:$0xff] %v11096_v41  ;;  %v9427_v36 = vpack.i.bf16 %v10995_v40, %v10989_v33 }
 0x17c   : > { %v11020_v27 = vpop.f32.mrf.mxu0  ;;  %8371 = vmatprep.mubr.msk.bf16.mxu1 %vm2070_vm0, %v1213_v6  ;;  %8376 = vmatpush3.bf16.xpose.msra.mxu1 %v2182_v53  ;;  %v1214_v6 = vpack.c.bf16 %v10889_v17, %v10874_v11  ;;  %v2179_v53 = vsel %vm2070_vm0, %v1601_v54, 0  ;;  %v1600_v11 = vpack.c.bf16 %v10956_v60, %v10942_v45 }
 0x17d   : > { %9318 = vrot.lane.b32.xlu1 %v9317_v57, %s10604_s23  ;;  %9020 = vmatprep.subr.msk.bf16.mxu1 %vm2070_vm0, %v1601_v54  ;;  %15004 = vst [vmem:[#allocation39_spill] sm:$0xff] %v11034_v42 }
 0x17e   : > { %9298 = vrot.lane.b32.xlu0 %v9297_v0, %s10603_s21  ;;  %v11028_v5 = vpop.f32.mrf.mxu0 }
 0x17f   : > { %v1219_v28 = vpack.c.bf16 %v11028_v5, %v11013_v12 }
 0x180   : > { %v11036_v51 = vpop.f32.mrf.mxu0 }
 0x181   : > { %9328 = vrot.lane.b32.xlu1 %v11034_v42, %s10603_s21  ;;  %8399 = vmatprep.mubr.msk.bf16.mxu0 %vm2070_vm0, %v1219_v28  ;;  %v2176_v28 = vsel %vm2070_vm0, %v1600_v11, 0 }
 0x182   : > { %9303 = vrot.lane.b32.xlu0 %v9297_v0, %s10604_s23  ;;  %v11047_v7 = vpop.f32.mrf.mxu0 }
 0x183   : > { %8372 = vmatmul.mubr.msk.bf16.gmra.mxu1 %vm2070_vm0, %v1214_v6  ;;  %v9462_v10 = vpack.i.bf16 %v10878_v14, %v11047_v7 }
 0x184   : > { %v11054_v17 = vpop.f32.mrf.mxu0  ;;  %8378 = vmatpush3.bf16.xpose.msra.mxu1 %v2179_v53  ;;  %8383 = vmatprep.mubr.msk.bf16.mxu1 %vm2070_vm0, %v1215_v18  ;;  %v1599_v18 = vpack.c.bf16 %v10927_v35, %v10911_v29 }
 0x185   : > { %9333 = vrot.lane.b32.xlu1 %v9332_v34, %s10603_s21  ;;  %9021 = vmatprep.subr.msk.bf16.mxu1 %vm2070_vm0, %v1600_v11 }
 0x186   : > { %9308 = vrot.lane.b32.xlu0 %v9297_v0, %s10605_s9  ;;  %v11060_v24 = vpop.f32.mrf.mxu0  ;;  %v9357_v0 = vpack.i.bf16 %v10956_v60, %v10942_v45  ;;  %v2173_v6 = vsel %vm2070_vm0, %v1599_v18, 0 }
 0x187   : > { %v9467_v16 = vpack.i.bf16 %v11060_v24, %v10893_v20 }
 0x188   : > { %v11062_v32 = vpop.f32.mrf.mxu0 }
 0x189   : > { %9338 = vrot.lane.b32.xlu1 %v9332_v34, %s10604_s23  ;;  %v9487_v20 = vpack.i.bf16 %v11062_v32, %v11054_v17 }
 0x18a   : > { %9323 = vrot.lane.b32.xlu0 %v9317_v57, %s10605_s9  ;;  %v11066_v54 = vpop.f32.mrf.mxu0 }
 0x18c   : > { %v11073_v53 = vpop.f32.mrf.mxu0  ;;  %8380 = vmatpush3.bf16.xpose.msra.mxu1 %v2176_v28  ;;  %v9367_v28 = vpack.i.bf16 %v10967_v13, %v10820_v49  ;;  %v1604_v13 = vpack.c.bf16 %v11062_v32, %v11054_v17 }
 0x18d   : > { %9343 = vrot.lane.b32.xlu1 %v9332_v34, %s10605_s9  ;;  %9022 = vmatprep.subr.msk.bf16.mxu1 %vm2070_vm0, %v1599_v18 }
 0x18e   : > { %9358 = vrot.lane.b32.xlu0 %v9357_v0, %s10605_s9  ;;  %v11080_v57 = vpop.f32.mrf.mxu0 }
 0x18f   : > { %v11084_v11 = vpack.i.bf16 %v11080_v57, %v11066_v54 }
 0x190   : > { %v11086_v42 = vpop.f32.mrf.mxu0 }
 0x191   : > { %9348 = vrot.lane.b32.xlu1 %v10954_v58, %s10603_s21  ;;  %v1605_v48 = vpack.c.bf16 %v11086_v42, %v11073_v53 }
 0x192   : > { %9368 = vrot.lane.b32.xlu0 %v9367_v28, %s10603_s21  ;;  %v11093_v34 = vpop.f32.mrf.mxu0  ;;  %v11108_v28 = vpack.i.bf16 %v11096_v41, %v10944_v46 }
 0x194   : > { %v11098_v19 = vpop.f32.mrf.mxu0  ;;  %8382 = vmatpush3.bf16.xpose.msra.mxu1 %v2173_v6  ;;  %15006 = vst [vmem:[#allocation41_spill] sm:$0xff] %v11108_v28  ;;  %v1216_v6 = vpack.c.bf16 %v10950_v47, %v10935_v38  ;;  %v9387_v47 = vpack.i.bf16 %v10942_v45, %v10979_v25 }
 0x195   : > { %9353 = vrot.lane.b32.xlu1 %v9357_v0, %s10604_s23 }
 0x196   : > { %9373 = vrot.lane.b32.xlu0 %v9372_v15, %s10603_s21  ;;  %v11104_v49 = vpop.f32.mrf.mxu0 }
 0x197   : > { %v11112_v18 = vpack.i.bf16 %v11104_v49, %v11093_v34 }
 0x198   : > { %v11114_v58 = vpop.f32.mrf.mxu0 }
 0x199   : > { %9363 = vrot.lane.b32.xlu1 %v11108_v28, %s10603_s21  ;;  %v1606_v0 = vpack.c.bf16 %v11114_v58, %v11098_v19 }
 0x19a   : > { %9378 = vrot.lane.b32.xlu0 %v9372_v15, %s10604_s23  ;;  %v11127_v59 = vpop.f32.mrf.mxu0 }
 0x19b   : > { %8384 = vmatmul.mubr.msk.bf16.vlgmr.msra.gmra.mxu1 %vm2070_vm0, %v1216_v6  ;;  %9023 = vmatprep.subr.msk.bf16.mxu0 %vm2070_vm0, %v1606_v0  ;;  %v2271_v38 = vsel %vm2070_vm0, %v1606_v0, 0  ;;  %v9402_v0 = vpack.i.bf16 %v10989_v33, %v10843_v61 }
 0x19c   : > { %v11134_v28 = vpop.f32.mrf.mxu0  ;;  %8387 = vmatprep.mubr.msk.bf16.mxu1 %vm2070_vm0, %v1217_v30  ;;  %8392 = vmatpush3.bf16.xpose.msra.mxu0 %v2271_v38  ;;  %v2268_v38 = vsel %vm2070_vm0, %v1605_v48, 0 }
 0x19d   : > { %9388 = vrot.lane.b32.xlu1 %v9387_v47, %s10603_s21  ;;  %9024 = vmatprep.subr.msk.bf16.mxu0 %vm2070_vm0, %v1605_v48 }
 0x19e   : > { %9383 = vrot.lane.b32.xlu0 %v9372_v15, %s10605_s9  ;;  %v11140_v3 = vpop.f32.mrf.mxu0  ;;  %v1218_v15 = vpack.c.bf16 %v10993_v39, %v10984_v26 }
 0x19f   : > { %v11146_v6 = vpack.i.bf16 %v11140_v3, %v11127_v59  ;;  %v1223_v45 = vpack.c.bf16 %v11140_v3, %v11127_v59 }
 0x1a0   : > { %v11150_v30 = vpop.f32.mrf.mxu0 }
 0x1a1   : > { %9393 = vrot.lane.b32.xlu1 %v9392_v23, %s10604_s23 }
 0x1a2   : > { %9403 = vrot.lane.b32.xlu0 %v9402_v0, %s10603_s21  ;;  %v11161_v25 = vpop.f32.mrf.mxu0  ;;  %v9407_v0 = vpack.i.bf16 %v10993_v39, %v10984_v26  ;;  %v1603_v26 = vpack.c.bf16 %v11036_v51, %v11020_v27 }
 0x1a3   : > { %8388 = vmatmul.mubr.msk.bf16.gmra.mxu1 %vm2070_vm0, %v1218_v15  ;;  %v9437_v15 = vpack.i.bf16 %v11028_v5, %v11013_v12  ;;  %v9422_v5 = vpack.i.bf16 %v10814_v43, %v10995_v40  ;;  %v1221_v43 = vpack.c.bf16 %v11080_v57, %v11066_v54 }
 0x1a4   : > { %v11166_v61 = vpop.f32.mrf.mxu0  ;;  %8394 = vmatpush3.bf16.xpose.msra.mxu0 %v2268_v38  ;;  %8415 = vmatprep.mubr.msk.bf16.mxu1 %vm2070_vm0, %v1223_v45  ;;  %v2262_v12 = vsel %vm2070_vm0, %v1603_v26, 0 }
 0x1a5   : > { %9398 = vrot.lane.b32.xlu1 %v9392_v23, %s10605_s9  ;;  %9025 = vmatprep.subr.msk.bf16.mxu0 %vm2070_vm0, %v1604_v13  ;;  %v2265_v23 = vsel %vm2070_vm0, %v1604_v13, 0 }
 0x1a6   : > { %9428 = vrot.lane.b32.xlu0 %v9427_v36, %s10604_s23  ;;  %v11174_v48 = vpop.f32.mrf.mxu0 }
 0x1a7   : > { %v11182_v38 = vpack.i.bf16 %v11174_v48, %v11161_v25 }
 0x1a8   : > { %v11184_v33 = vpop.f32.mrf.mxu0 }
 0x1a9   : > { %9408 = vrot.lane.b32.xlu1 %v9407_v0, %s10603_s21 }
 0x1aa   : > { %9433 = vrot.lane.b32.xlu0 %v9427_v36, %s10605_s9  ;;  %v11189_v45 = vpop.f32.mrf.mxu0 }
 0x1ac   : > { %v11193_v39 = vpop.f32.mrf.mxu0  ;;  %8396 = vmatpush3.bf16.xpose.msra.mxu0 %v2265_v23 }
 0x1ad   : > { %9413 = vrot.lane.b32.xlu1 %v9407_v0, %s10604_s23  ;;  %9026 = vmatprep.subr.msk.bf16.mxu0 %vm2070_vm0, %v1603_v26  ;;  %v9452_v26 = vpack.i.bf16 %v11036_v51, %v11020_v27 }
 0x1ae   : > { %9438 = vrot.lane.b32.xlu0 %v9437_v15, %s10603_s21  ;;  %v11200_v13 = vpop.f32.mrf.mxu0 }
 0x1af   : > { %v11204_v36 = vpack.i.bf16 %v11200_v13, %v11189_v45 }
 0x1b0   : > { %v11206_v47 = vpop.f32.mrf.mxu0 }
 0x1b1   : > { %9418 = vrot.lane.b32.xlu1 %v9407_v0, %s10605_s9 }
 0x1b2   : > { %9443 = vrot.lane.b32.xlu0 %v9437_v15, %s10604_s23  ;;  %v11210_v23 = vpop.f32.mrf.mxu0 }
 0x1b3   : > { %v9159_v31 = vpop.permute.xlu0 %9158 }
 0x1b4   : > { %v11215_v37 = vpop.f32.mrf.mxu0  ;;  %8398 = vmatpush3.bf16.xpose.msra.mxu0 %v2262_v12  ;;  %v11221_v0 = vpop.permute.xlu1 %9173 }
 0x1b5   : > { %9423 = vrot.lane.b32.xlu1 %v9422_v5, %s10603_s21  ;;  %15007 = vst [vmem:[#allocation42_spill] sm:$0xff] %v11221_v0  ;;  %v1609_v0 = vpack.c.bf16 %v11206_v47, %v11193_v39 }
 0x1b6   : > { %9448 = vrot.lane.b32.xlu0 %v9437_v15, %s10605_s9  ;;  %v11219_v41 = vpop.f32.mrf.mxu0  ;;  %v1220_v15 = vpack.c.bf16 %v11060_v24, %v11047_v7 }
 0x1b7   : > { %v11225_v46 = vpack.i.bf16 %v11219_v41, %v11210_v23  ;;  %v11231_v40 = vpop.permute.xlu0 %9163 }
 0x1b8   : > { %v11233_v12 = vpop.f32.mrf.mxu0 }
 0x1b9   : > { %9453 = vrot.lane.b32.xlu1 %v9452_v26, %s10604_s23  ;;  %v1610_v5 = vpack.c.bf16 %v11233_v12, %v11215_v37 }
 0x1ba   : > { %9458 = vrot.lane.b32.xlu0 %v9452_v26, %s10605_s9  ;;  %v9161_v26 = vunpack.i.h.bf16 %v9159_v31 }
 0x1bb   : > { %v11243_v9 = vpop.permute.xlu1 %9198  ;;  %8400 = vmatmul.mubr.msk.bf16.vlgmr.msra.gmra.mxu0 %vm2070_vm0, %v1220_v15  ;;  %9027 = vmatprep.subr.msk.bf16.mxu1 %vm2070_vm0, %v1610_v5  ;;  %v2360_v4 = vsel %vm2070_vm0, %v1610_v5, 0  ;;  %v11250_v21 = vpop.permute.xlu0 %9168  ;;  %v9160_v15 = vunpack.i.l.bf16 %v9159_v31  ;;  %v1222_v5 = vpack.c.bf16 %v11104_v49, %v11093_v34 }
 0x1bc   : > { %15008 = vst [vmem:[#allocation43_spill] sm:$0xff] %v11250_v21  ;;  %8403 = vmatprep.mubr.msk.bf16.mxu0 %vm2070_vm0, %v1221_v43  ;;  %8408 = vmatpush3.bf16.xpose.msra.mxu1 %v2360_v4  ;;  %v9472_v43 = vpack.i.bf16 %v11060_v24, %v11047_v7  ;;  %v9497_v24 = vpack.i.bf16 %v11073_v53, %v10927_v35 }
 0x1bd   : > { %9463 = vrot.lane.b32.xlu1 %v9462_v10, %s10603_s21  ;;  %9028 = vmatprep.subr.msk.bf16.mxu1 %vm2070_vm0, %v1609_v0  ;;  %v2357_v10 = vsel %vm2070_vm0, %v1609_v0, 0  ;;  %v1227_v31 = vpack.c.bf16 %v9161_v26, %v9160_v15  ;;  %v9502_v15 = vpack.i.bf16 %v11080_v57, %v10865_v8  ;;  %v1607_v35 = vpack.c.bf16 %v11150_v30, %v11134_v28 }
 0x1be   : > { %9468 = vrot.lane.b32.xlu0 %v9467_v16, %s10603_s21  ;;  %v1608_v16 = vpack.c.bf16 %v11184_v33, %v11166_v61 }
 0x1bf   : > { %v11260_v14 = vpop.permute.xlu1 %9203  ;;  %v11264_v4 = vpop.permute.xlu0 %9178 }
 0x1c0   : > { %15009 = vst [vmem:[#allocation44_spill] sm:$0xff] %v11260_v14 }
 0x1c1   : > { %9473 = vrot.lane.b32.xlu1 %v9472_v43, %s10604_s23 }
 0x1c2   : > { %9488 = vrot.lane.b32.xlu0 %v9487_v20, %s10605_s9 }
 0x1c3   : > { %v11273_v22 = vpop.permute.xlu1 %9208  ;;  %8404 = vmatmul.mubr.msk.bf16.gmra.mxu0 %vm2070_vm0, %v1222_v5  ;;  %v11276_v7 = vpop.permute.xlu0 %9183  ;;  %v2354_v5 = vsel %vm2070_vm0, %v1608_v16, 0 }
 0x1c4   : > { %15010 = vst [vmem:[#allocation45_spill] sm:$0xff] %v11273_v22  ;;  %15011 = vst [vmem:[#allocation46_spill] sm:$0xff] %v11276_v7  ;;  %8410 = vmatpush3.bf16.xpose.msra.mxu1 %v2357_v10  ;;  %8431 = vmatprep.mubr.msk.bf16.mxu0 %vm2070_vm0, %v1227_v31  ;;  %v15014_v31 = vpack.i.bf16 %v10853_v2, %v11066_v54  ;;  %v9517_v54 = vpack.i.bf16 %v11054_v17, %v11086_v42 }
 0x1c5   : > { %9478 = vrot.lane.b32.xlu1 %v9472_v43, %s10605_s9  ;;  %9029 = vmatprep.subr.msk.bf16.mxu1 %vm2070_vm0, %v1608_v16  ;;  %v2351_v16 = vsel %vm2070_vm0, %v1607_v35, 0 }
 0x1c6   : > { %9498 = vrot.lane.b32.xlu0 %v9497_v24, %s10603_s21 }
 0x1c7   : > { %v11284_v0 = vpop.permute.xlu1 %9213  ;;  %v11286_v26 = vpop.permute.xlu0 %9188 }
 0x1c8   : > { %15012 = vst [vmem:[#allocation47_spill] sm:$0xff] %v11286_v26 }
 0x1c9   : > { %9483 = vrot.lane.b32.xlu1 %v9487_v20, %s10604_s23  ;;  %v9522_v20 = vpack.i.bf16 %v11086_v42, %v11073_v53  ;;  %v1224_v53 = vpack.c.bf16 %v11174_v48, %v11161_v25  ;;  %v9532_v42 = vpack.i.bf16 %v10832_v55, %v11093_v34 }
 0x1ca   : > { %9503 = vrot.lane.b32.xlu0 %v9502_v15, %s10603_s21  ;;  %v9537_v15 = vpack.i.bf16 %v11098_v19, %v10956_v60 }
 0x1cb   : > { %v11295_v43 = vpop.permute.xlu1 %9218  ;;  %v11297_v10 = vpop.permute.xlu0 %9193 }
 0x1cc   : > { %15013 = vst [vmem:[#allocation48_spill] sm:$0xff] %v11295_v43  ;;  %8412 = vmatpush3.bf16.xpose.msra.mxu1 %v2354_v5  ;;  %v1225_v5 = vpack.c.bf16 %v11200_v13, %v11189_v45  ;;  %v1226_v45 = vpack.c.bf16 %v11219_v41, %v11210_v23  ;;  %v9577_v23 = vpack.i.bf16 %v11127_v59, %v11150_v30 }
 0x1cd   : > { %9493 = vrot.lane.b32.xlu1 %v15014_v31, %s10603_s21  ;;  %9030 = vmatprep.subr.msk.bf16.mxu1 %vm2070_vm0, %v1607_v35  ;;  %v9557_v31 = vpack.i.bf16 %v11114_v58, %v11098_v19  ;;  %v9552_v19 = vpack.i.bf16 %v10911_v29, %v11114_v58  ;;  %v9582_v29 = vpack.i.bf16 %v11150_v30, %v11134_v28 }
 0x1ce   : > { %9508 = vrot.lane.b32.xlu0 %v11084_v11, %s10604_s23 }
 0x1cf   : > { %v11306_v8 = vpop.permute.xlu1 %9228 }
 0x1d0   : > { %v11308_v57 = vpop.permute.xlu0 %9223 }
 0x1d1   : > { %15015 = vst [vmem:[#allocation49_spill] sm:$0xff] %v11308_v57  ;;  %9513 = vrot.lane.b32.xlu1 %v11084_v11, %s10605_s9 }
 0x1d2   : > { %9523 = vrot.lane.b32.xlu0 %v9522_v20, %s10604_s23 }
 0x1d3   : > { %v11316_v2 = vpop.permute.xlu1 %9238 }
 0x1d4   : > { %15016 = vst [vmem:[#allocation50_spill] sm:$0xff] %v11316_v2  ;;  %v11320_v24 = vpop.permute.xlu0 %9233  ;;  %8414 = vmatpush3.bf16.xpose.msra.mxu1 %v2351_v16 }
 0x1d5   : > { %9518 = vrot.lane.b32.xlu1 %v9517_v54, %s10603_s21 }
 0x1d6   : > { %9538 = vrot.lane.b32.xlu0 %v9537_v15, %s10603_s21  ;;  %v9612_v15 = vpack.i.bf16 %v11134_v28, %v11184_v33  ;;  %v15027_v28 = vpack.i.bf16 %v11104_v49, %v11174_v48 }
 0x1d7   : > { %v11328_v11 = vpop.permute.xlu1 %9248 }
 0x1d8   : > { %v11332_v35 = vpop.permute.xlu0 %9243 }
 0x1d9   : > { %15017 = vst [vmem:[#allocation51_spill] sm:$0xff] %v11332_v35  ;;  %9528 = vrot.lane.b32.xlu1 %v9522_v20, %s10605_s9 }
 0x1da   : > { %9548 = vrot.lane.b32.xlu0 %v11112_v18, %s10605_s9 }
 0x1db   : > { %v11337_v60 = vpop.permute.xlu1 %9263  ;;  %8416 = vmatmul.mubr.msk.bf16.vlgmr.msra.gmra.mxu1 %vm2070_vm0, %v1224_v53 }
 0x1dc   : > { %v11342_v17 = vpop.permute.xlu0 %9253  ;;  %8419 = vmatprep.mubr.msk.bf16.mxu1 %vm2070_vm0, %v1225_v5 }
 0x1dd   : > { %15018 = vst [vmem:[#allocation52_spill] sm:$0xff] %v11342_v17  ;;  %9533 = vrot.lane.b32.xlu1 %v9532_v42, %s10603_s21 }
 0x1de   : > { %9558 = vrot.lane.b32.xlu0 %v9557_v31, %s10604_s23 }
 0x1df   : > { %v11351_v13 = vpop.permute.xlu1 %9268 }
 0x1e0   : > { %v11353_v20 = vpop.permute.xlu0 %9258 }
 0x1e1   : > { %15019 = vst [vmem:[#allocation53_spill] sm:$0xff] %v11353_v20  ;;  %9543 = vrot.lane.b32.xlu1 %v11112_v18, %s10604_s23 }
 0x1e2   : > { %9568 = vrot.lane.b32.xlu0 %v11146_v6, %s10604_s23 }
 0x1e3   : > { %v11359_v55 = vpop.permute.xlu1 %9273  ;;  %8420 = vmatmul.mubr.msk.bf16.gmra.mxu1 %vm2070_vm0, %v1226_v45 }
 0x1e4   : > { %15020 = vst [vmem:[#allocation54_spill] sm:$0xff] %v11359_v55  ;;  %v11364_v34 = vpop.permute.xlu0 %9278 }
 0x1e5   : > { %15021 = vst [vmem:[#allocation55_spill] sm:$0xff] %v11364_v34  ;;  %9553 = vrot.lane.b32.xlu1 %v9552_v19, %s10603_s21  ;;  %v9627_v19 = vpack.i.bf16 %v11193_v39, %v11036_v51 }
 0x1e6   : > { %9573 = vrot.lane.b32.xlu0 %v11146_v6, %s10605_s9  ;;  %v15025_v6 = vpack.i.bf16 %v11161_v25, %v11140_v3  ;;  %v9622_v3 = vpack.i.bf16 %v11184_v33, %v11166_v61 }
 0x1e7   : > { %v11369_v41 = vpop.permute.xlu1 %9283 }
 0x1e8   : > { %v11371_v18 = vpop.permute.xlu0 %9288 }
 0x1e9   : > { %15022 = vst [vmem:[#allocation56_spill] sm:$0xff] %v11371_v18  ;;  %9563 = vrot.lane.b32.xlu1 %v9557_v31, %s10605_s9 }
 0x1ea   : > { %9578 = vrot.lane.b32.xlu0 %v9577_v23, %s10603_s21 }
 0x1eb   : > { %v11377_v16 = vpop.permute.xlu1 %9313 }
 0x1ec   : > { %15023 = vst [vmem:[#allocation57_spill] sm:$0xff] %v11377_v16  ;;  %v11381_v58 = vpop.permute.xlu0 %9293 }
 0x1ed   : > { %15024 = vst [vmem:[#allocation58_spill] sm:$0xff] %v11381_v58  ;;  %9583 = vrot.lane.b32.xlu1 %v9582_v29, %s10604_s23 }
 0x1ee   : > { %9593 = vrot.lane.b32.xlu0 %v15025_v6, %s10603_s21 }
 0x1ef   : > { %v11388_v54 = vpop.permute.xlu1 %9318 }
 0x1f0   : > { %v9299_v59 = vpop.permute.xlu0 %9298 }
 0x1f1   : > { %v9301_v53 = vunpack.i.h.bf16 %v9299_v59  ;;  %v9300_v5 = vunpack.i.l.bf16 %v9299_v59  ;;  %9588 = vrot.lane.b32.xlu1 %v9582_v29, %s10605_s9  ;;  %v9647_v29 = vpack.i.bf16 %v11166_v61, %v11206_v47  ;;  %v9657_v59 = vpack.i.bf16 %v11206_v47, %v11193_v39 }
 0x1f2   : > { %9613 = vrot.lane.b32.xlu0 %v9612_v15, %s10603_s21  ;;  %v9662_v61 = vpack.i.bf16 %v11215_v37, %v11062_v32  ;;  %v9682_v32 = vpack.i.bf16 %v11020_v27, %v11233_v12 }
 0x1f3   : > { %v1231_v30 = vpack.c.bf16 %v9301_v53, %v9300_v5  ;;  %v11394_v42 = vpop.permute.xlu1 %9328 }
 0x1f4   : > { %15026 = vst [vmem:[#allocation59_spill] sm:$0xff] %v11394_v42  ;;  %v11396_v31 = vpop.permute.xlu0 %9303 }
 0x1f5   : > { %8447 = vmatprep.mubr.msk.bf16.mxu1 %vm2070_vm0, %v1231_v30  ;;  %9598 = vrot.lane.b32.xlu1 %v15027_v28, %s10603_s21 }
 0x1f6   : > { %9623 = vrot.lane.b32.xlu0 %v9622_v3, %s10605_s9 }
 0x1f7   : > { %v11406_v25 = vpop.permute.xlu1 %9333 }
 0x1f8   : > { %v11408_v45 = vpop.permute.xlu0 %9308 }
 0x1f9   : > { %15028 = vst [vmem:[#allocation60_spill] sm:$0xff] %v11408_v45  ;;  %9603 = vrot.lane.b32.xlu1 %v11182_v38, %s10604_s23 }
 0x1fa   : > { %9628 = vrot.lane.b32.xlu0 %v9627_v19, %s10603_s21 }
 0x1fb   : > { %v11415_v33 = vpop.permute.xlu1 %9338 }
 0x1fc   : > { %15029 = vst [vmem:[#allocation61_spill] sm:$0xff] %v11415_v33  ;;  %v11417_v23 = vpop.permute.xlu0 %9323 }
 0x1fd   : > { %15030 = vst [vmem:[#allocation62_spill] sm:$0xff] %v11417_v23  ;;  %9608 = vrot.lane.b32.xlu1 %v11182_v38, %s10605_s9 }
 0x1fe   : > { %9633 = vrot.lane.b32.xlu0 %v11204_v36, %s10603_s21 }
 0x1ff   : > { %v11423_v49 = vpop.permute.xlu1 %9343 }
 0x200   : > { %15031 = vst [vmem:[#allocation63_spill] sm:$0xff] %v11423_v49  ;;  %v11425_v48 = vpop.permute.xlu0 %9358 }
 0x201   : > { %15032 = vst [vmem:[#allocation64_spill] sm:$0xff] %v11425_v48  ;;  %9618 = vrot.lane.b32.xlu1 %v9622_v3, %s10604_s23  ;;  %v9687_v3 = vpack.i.bf16 %v11233_v12, %v11215_v37  ;;  %v15058_v48 = vmov -1e+30  }
 0x202   : > { %9638 = vrot.lane.b32.xlu0 %v11204_v36, %s10604_s23 }
 0x203   : > { %v11430_v51 = vpop.permute.xlu1 %9348 }
 0x204   : > { %15033 = vst [vmem:[#allocation65_spill] sm:$0xff] %v11430_v51  ;;  %v11434_v6 = vpop.permute.xlu0 %9368 }
 0x205   : > { %9648 = vrot.lane.b32.xlu1 %v9647_v29, %s10603_s21  ;;  %v11481_v29 = vpop.f32.mrf.mxu1  ;;  %v9371_v51 = vunpack.i.h.bf16 %v11434_v6 }
 0x206   : > { %9643 = vrot.lane.b32.xlu0 %v11204_v36, %s10605_s9  ;;  %15038 = vst [vmem:[#allocation70_spill] sm:$0xff] %v11481_v29  ;;  %v2043_v29 = vlaneseq }
 0x207   : > { %v11439_v38 = vpop.permute.xlu1 %9353 }
 0x208   : > { %v11443_v15 = vpop.permute.xlu0 %9373  ;;  %v11531_v62 = vand.u32 127, %v2043_v29 }
 0x209   : > { %9658 = vrot.lane.b32.xlu1 %v9657_v59, %s10605_s9 }
 0x20a   : > { %9653 = vrot.lane.b32.xlu0 %v9657_v59, %s10604_s23 }
 0x20b   : > { %v11447_v53 = vpop.permute.xlu1 %9363 }
 0x20c   : > { %15034 = vst [vmem:[#allocation66_spill] sm:$0xff] %v11447_v53  ;;  %v11451_v5 = vpop.permute.xlu0 %9378 }
 0x20d   : > { %15035 = vst [vmem:[#allocation67_spill] sm:$0xff] %v11451_v5  ;;  %9668 = vrot.lane.b32.xlu1 %v11225_v46, %s10603_s21 }
 0x20e   : > { %9663 = vrot.lane.b32.xlu0 %v9662_v61, %s10603_s21  ;;  %v11487_v61 = vpop.f32.mrf.mxu1 }
 0x20f   : > { %v11456_v36 = vpop.permute.xlu1 %9388  ;;  %15041 = vst [vmem:[#allocation73_spill] sm:$0xff] %v11487_v61 }
 0x210   : > { %v11458_v47 = vpop.permute.xlu0 %9383  ;;  %v9390_v53 = vunpack.i.l.bf16 %v11456_v36 }
 0x211   : > { %15036 = vst [vmem:[#allocation68_spill] sm:$0xff] %v11458_v47  ;;  %9678 = vrot.lane.b32.xlu1 %v11225_v46, %s10605_s9 }
 0x212   : > { %9673 = vrot.lane.b32.xlu0 %v11225_v46, %s10604_s23  ;;  %v1617_v34 = vpack.c.bf16 %v9390_v53, %v9371_v51 }
 0x213   : > { %v11464_v39 = vpop.permute.xlu1 %9393 }
 0x214   : > { %v11468_v30 = vpop.permute.xlu0 %9403 }
 0x215   : > { %9683 = vrot.lane.b32.xlu1 %v9682_v32, %s10603_s21  ;;  %v11493_v32 = vpop.f32.mrf.mxu1  ;;  %v9406_v20 = vunpack.i.h.bf16 %v11468_v30 }
 0x216   : > { %9688 = vrot.lane.b32.xlu0 %v9687_v3, %s10604_s23  ;;  %15043 = vst [vmem:[#allocation75_spill] sm:$0xff] %v11493_v32 }
 0x217   : > { %v11474_v28 = vpop.permute.xlu1 %9398 }
 0x218   : > { %15037 = vst [vmem:[#allocation69_spill] sm:$0xff] %v11474_v28  ;;  %v11476_v19 = vpop.permute.xlu0 %9428 }
 0x219   : > { %9693 = vrot.lane.b32.xlu1 %v9687_v3, %s10605_s9  ;;  %v11499_v3 = vpop.f32.mrf.mxu1 }
 0x21a   : > { %15044 = vst [vmem:[#allocation76_spill] sm:$0xff] %v11499_v3 }
 0x21b   : > { %v11479_v46 = vpop.permute.xlu1 %9408  ;;  %v11509_v61 = vpop.f32.mrf.mxu1 }
 0x21c   : > { %v11483_v27 = vpop.permute.xlu0 %9433  ;;  %15047 = vst [vmem:[#allocation79_spill] sm:$0xff] %v11509_v61  ;;  %v2044_v61 = vshrl.u32 %v2043_v29, 7 }
 0x21d   : > { %15039 = vst [vmem:[#allocation71_spill] sm:$0xff] %v11483_v27  ;;  %v11518_v1 = vpop.f32.mrf.mxu1 }
 0x21e   : > { %15049 = vst [vmem:[#allocation81_spill] sm:$0xff] %v11518_v1  ;;  %v2046_v52 = vadd.s32 16, %v2044_v61  ;;  %vm2054_vm2 = vcmp.le.s32.totalorder %v11531_v62, %v2044_v61  ;;  %v2048_v2 = vadd.s32 32, %v2044_v61 }
 0x21f   : > { %v11485_v59 = vpop.permute.xlu1 %9413  ;;  %v11526_v44 = vpop.f32.mrf.mxu1 }
 0x220   : > { %15040 = vst [vmem:[#allocation72_spill] sm:$0xff] %v11485_v59  ;;  %v11489_v37 = vpop.permute.xlu0 %9438  ;;  %15051 = vst [vmem:[#allocation83_spill] sm:$0xff] %v11526_v44  ;;  %vm2056_vm1 = vcmp.le.s32.totalorder %v11531_v62, %v2046_v52  ;;  %v14786_v44 = vmov -1e+30   ;;  %vm2058_vm8 = vcmp.le.s32.totalorder %v11531_v62, %v2048_v2  ;;  %v9266_v59 = vunpack.i.h.bf16 %v11337_v60 }
 0x221   : > { %v11554_v52 = vsel %vm2054_vm2, 0.0, %v14786_v44 }
 0x223   : > { %v11491_v12 = vpop.permute.xlu1 %9418 }
 0x224   : > { %15042 = vst [vmem:[#allocation74_spill] sm:$0xff] %v11491_v12  ;;  %v11495_v42 = vpop.permute.xlu0 %9443 }
 0x227   : > { %v11497_v16 = vpop.permute.xlu1 %9423 }
 0x228   : > { %v9425_v35 = vunpack.i.l.bf16 %v11497_v16  ;;  %v11504_v58 = vpop.permute.xlu0 %9448 }
 0x229   : > { %15045 = vst [vmem:[#allocation77_spill] sm:$0xff] %v11504_v58  ;;  %v2051_v58 = vadd.s32 56, %v2044_v61 }
 0x22a   : > { %v1618_v26 = vpack.c.bf16 %v9425_v35, %v9406_v20 }
 0x22b   : > { %v11507_v57 = vpop.permute.xlu1 %9453  ;;  %vm2061_vm7 = vcmp.le.s32.totalorder %v11531_v62, %v2051_v58 }
 0x22c   : > { %15046 = vst [vmem:[#allocation78_spill] sm:$0xff] %v11507_v57  ;;  %v11511_v32 = vpop.permute.xlu0 %9458  ;;  %9035 = vmatprep.subr.msk.bf16.mxu1 %vm2070_vm0, %v1618_v26  ;;  %v2538_v3 = vsel %vm2070_vm0, %v1618_v26, 0 }
 0x22d   : > { %15048 = vst [vmem:[#allocation80_spill] sm:$0xff] %v11511_v32  ;;  %8440 = vmatpush3.bf16.xpose.msra.mxu1 %v2538_v3  ;;  %v2535_v3 = vsel %vm2070_vm0, %v1617_v34, 0 }
 0x22e   : > { %9036 = vmatprep.subr.msk.bf16.mxu1 %vm2070_vm0, %v1617_v34  ;;  %v11543_v34 = vsel %vm2056_vm1, 0.0, %v14786_v44 }
 0x22f   : > { %v11516_v22 = vpop.permute.xlu1 %9463 }
 0x230   : > { %v9466_v35 = vunpack.i.h.bf16 %v11516_v22  ;;  %v11521_v20 = vpop.permute.xlu0 %9468 }
 0x231   : > { %v9470_v51 = vunpack.i.l.bf16 %v11521_v20 }
 0x233   : > { %v1614_v53 = vpack.c.bf16 %v9470_v51, %v9466_v35  ;;  %v11524_v50 = vpop.permute.xlu1 %9473  ;;  %v11537_v35 = vpop.f32.mrf.mxu1 }
 0x234   : > { %15050 = vst [vmem:[#allocation82_spill] sm:$0xff] %v11524_v50  ;;  %v11528_v26 = vpop.permute.xlu0 %9488  ;;  %15054 = vst [vmem:[#allocation86_spill] sm:$0xff] %v11537_v35 }
 0x235   : > { %15052 = vst [vmem:[#allocation84_spill] sm:$0xff] %v11528_v26  ;;  %9031 = vmatprep.subr.msk.bf16.mxu0 %vm2070_vm0, %v1614_v53  ;;  %v2449_v1 = vsel %vm2070_vm0, %v1614_v53, 0  ;;  %8442 = vmatpush3.bf16.xpose.msra.mxu1 %v2535_v3  ;;  %v2047_v53 = vadd.s32 24, %v2044_v61  ;;  %v2045_v3 = vadd.s32 8, %v2044_v61 }
 0x236   : > { %8424 = vmatpush3.bf16.xpose.msra.mxu0 %v2449_v1 }
 0x237   : > { %v11535_v56 = vpop.permute.xlu1 %9478  ;;  %vm2057_vm4 = vcmp.le.s32.totalorder %v11531_v62, %v2047_v53  ;;  %vm2055_vm5 = vcmp.le.s32.totalorder %v11531_v62, %v2045_v3 }
 0x238   : > { %15053 = vst [vmem:[#allocation85_spill] sm:$0xff] %v11535_v56  ;;  %v11539_v51 = vpop.permute.xlu0 %9498  ;;  %v2050_v56 = vadd.s32 48, %v2044_v61  ;;  %v11571_v14 = vsel %vm2057_vm4, 0.0, %v15058_v48  ;;  %v11574_v28 = vsel %vm2055_vm5, 0.0, %v15058_v48 }
 0x23a   : > { %vm2060_vm6 = vcmp.le.s32.totalorder %v11531_v62, %v2050_v56 }
 0x23b   : > { %v8369_v29 = vpop.f32.mrf.mxu1  ;;  %v11545_v63 = vpop.permute.xlu1 %9483 }
 0x23c   : > { %v3497_v1 = vmul.f32 0.17677669, %v8369_v29  ;;  %v11548_v12 = vpop.permute.xlu0 %9503 }
 0x23d   : > { %v2129_v35 = vpop.f32.mrf.mxu1  ;;  %v9505_v29 = vunpack.i.l.bf16 %v11548_v12 }
 0x23e   : > { %v11551_v47 = vadd.f32 %v3497_v1, %v11543_v34  ;;  %v3495_v49 = vmul.f32 0.17677669, %v2129_v35 }
 0x23f   : > { %v8370_v32 = vpop.f32.mrf.mxu1  ;;  %v11557_v26 = vpop.permute.xlu1 %9493 }
 0x240   : > { %15055 = vst [vmem:[#allocation87_spill] sm:$0xff] %v11551_v47  ;;  %v9496_v23 = vunpack.i.h.bf16 %v11557_v26  ;;  %v11562_v55 = vpop.permute.xlu0 %9508  ;;  %v11566_v1 = vadd.f32 %v3495_v49, %v11554_v52  ;;  %v3498_v35 = vmul.f32 0.17677669, %v8370_v32  ;;  %v3758_v53 = vsel %vm3751_vm3, %v11551_v47, -inf }
 0x241   : > { %15056 = vst [vmem:[#allocation88_spill] sm:$0xff] %v11562_v55  ;;  %v2132_v44 = vpop.f32.mrf.mxu1  ;;  %3759 = vmax.xlane.f32.xlu0 %v3758_v53  ;;  %v2049_v49 = vadd.s32 40, %v2044_v61  ;;  %v11580_v32 = vsel %vm2060_vm6, 0.0, %v15058_v48 }
 0x242   : > { %15057 = vst [vmem:[#allocation89_spill] sm:$0xff] %v11566_v1  ;;  %v1613_v3 = vpack.c.bf16 %v9505_v29, %v9496_v23  ;;  %v3496_v45 = vmul.f32 0.17677669, %v2132_v44  ;;  %v11587_v23 = vadd.f32 %v3498_v35, %v11571_v14  ;;  %v3752_v58 = vsel %vm3751_vm3, %v11566_v1, -inf }
 0x243   : > { %v8373_v7 = vpop.f32.mrf.mxu1  ;;  %v11576_v56 = vpop.permute.xlu1 %9513  ;;  %vm2059_vm9 = vcmp.le.s32.totalorder %v11531_v62, %v2049_v49  ;;  %v9391_v1 = vunpack.i.h.bf16 %v11456_v36 }
 0x244   : > { %15059 = vst [vmem:[#allocation90_spill] sm:$0xff] %v11576_v56  ;;  %v3501_v47 = vmul.f32 0.17677669, %v8373_v7  ;;  %v11582_v27 = vpop.permute.xlu0 %9523  ;;  %9032 = vmatprep.subr.msk.bf16.mxu0 %vm2070_vm0, %v1613_v3  ;;  %v2446_v44 = vsel %vm2070_vm0, %v1613_v3, 0  ;;  %15060 = vst [vmem:[#allocation91_spill] sm:$0xff] %v11587_v23  ;;  %v11593_v61 = vadd.f32 %v3496_v45, %v11574_v28  ;;  %v11596_v7 = vsel %vm2061_vm7, 0.0, %v15058_v48 }
 0x245   : > { %v2145_v29 = vpop.f32.mrf.mxu1  ;;  %8426 = vmatpush3.bf16.xpose.msra.mxu0 %v2446_v44  ;;  %3753 = vmax.xlane.f32.xlu0 %v3752_v58  ;;  %v11607_v44 = vsel %vm2058_vm8, 0.0, %v15058_v48  ;;  %v11616_v62 = vsel %vm2059_vm9, 0.0, %v15058_v48 }
 0x246   : > { %15061 = vst [vmem:[#allocation92_spill] sm:$0xff] %v11593_v61  ;;  %v11599_v53 = vadd.f32 %v3501_v47, %v11580_v32  ;;  %v3499_v3 = vmul.f32 0.17677669, %v2145_v29  ;;  %v3755_v2 = vsel %vm3751_vm3, %v11593_v61, -inf  ;;  %v3761_v29 = vsel %vm3751_vm3, %v11587_v23, -inf }
 0x247   : > { %v8374_v35 = vpop.f32.mrf.mxu1  ;;  %v11601_v56 = vpop.permute.xlu1 %9518  ;;  %3756 = vmax.xlane.f32.xlu1 %v3755_v2 }
 0x248   : > { %15062 = vst [vmem:[#allocation93_spill] sm:$0xff] %v11599_v53  ;;  %v3502_v45 = vmul.f32 0.17677669, %v8374_v35  ;;  %v9539_v58 = vpop.permute.xlu0 %9538  ;;  %v11619_v49 = vadd.f32 %v3499_v3, %v11607_v44  ;;  %v3770_v36 = vsel %vm3751_vm3, %v11599_v53, -inf  ;;  %v9405_v3 = vunpack.i.l.bf16 %v11468_v30 }
 0x249   : > { %v9540_v43 = vunpack.i.l.bf16 %v9539_v58  ;;  %v2148_v47 = vpop.f32.mrf.mxu1  ;;  %3762 = vmax.xlane.f32.xlu0 %v3761_v29  ;;  %v9426_v29 = vunpack.i.h.bf16 %v11497_v16 }
 0x24a   : > { %v11613_v21 = vadd.f32 %v3502_v45, %v11596_v7  ;;  %v3500_v17 = vmul.f32 0.17677669, %v2148_v47  ;;  %15064 = vst [vmem:[#allocation95_spill] sm:$0xff] %v11619_v49 }
 0x24b   : > { %v1616_v35 = vpack.c.bf16 %v9540_v43, %v9391_v1  ;;  %v11621_v2 = vpop.permute.xlu1 %9528  ;;  %3771 = vmax.xlane.f32.xlu1 %v3770_v36  ;;  %v3764_v1 = vsel %vm3751_vm3, %v11619_v49, -inf }
 0x24c   : > { %15063 = vst [vmem:[#allocation94_spill] sm:$0xff] %v11613_v21  ;;  %15065 = vst [vmem:[#allocation96_spill] sm:$0xff] %v11621_v2  ;;  %v11625_v61 = vpop.permute.xlu0 %9548  ;;  %v3773_v45 = vsel %vm3751_vm3, %v11613_v21, -inf  ;;  %v11632_v47 = vadd.f32 %v3500_v17, %v11616_v62 }
 0x24d   : > { %15066 = vst [vmem:[#allocation97_spill] sm:$0xff] %v11625_v61  ;;  %9037 = vmatprep.subr.msk.bf16.mxu1 %vm2070_vm0, %v1616_v35  ;;  %v2532_v48 = vsel %vm2070_vm0, %v1616_v35, 0  ;;  %3774 = vmax.xlane.f32.xlu0 %v3773_v45  ;;  %v9370_v35 = vunpack.i.l.bf16 %v11434_v6 }
 0x24e   : > { %15067 = vst [vmem:[#allocation98_spill] sm:$0xff] %v11632_v47  ;;  %8444 = vmatpush3.bf16.xpose.msra.mxu1 %v2532_v48  ;;  %v3767_v17 = vsel %vm3751_vm3, %v11632_v47, -inf }
 0x24f   : > { %v11634_v43 = vpop.permute.xlu1 %9533  ;;  %3765 = vmax.xlane.f32.xlu1 %v3764_v1  ;;  %v1611_v53 = vpack.c.bf16 %v9370_v35, %v9426_v29  ;;  %v9500_v1 = vunpack.i.l.bf16 %v11539_v51 }
 0x250   : > { %v9536_v36 = vunpack.i.h.bf16 %v11634_v43  ;;  %v11641_v21 = vpop.permute.xlu0 %9558 }
 0x251   : > { %3768 = vmax.xlane.f32.xlu0 %v3767_v17 }
 0x252   : > { %v1612_v45 = vpack.c.bf16 %v9405_v3, %v9536_v36  ;;  %v9541_v3 = vunpack.i.h.bf16 %v9539_v58  ;;  %v9336_v58 = vunpack.i.h.bf16 %v11406_v25 }
 0x253   : > { %v11646_v48 = vpop.permute.xlu1 %9543 }
 0x254   : > { %15068 = vst [vmem:[#allocation99_spill] sm:$0xff] %v11646_v48  ;;  %v11648_v49 = vpop.permute.xlu0 %9568  ;;  %9033 = vmatprep.subr.msk.bf16.mxu0 %vm2070_vm0, %v1612_v45  ;;  %v2443_v16 = vsel %vm2070_vm0, %v1612_v45, 0  ;;  %v2440_v45 = vsel %vm2070_vm0, %v1611_v53, 0  ;;  %v9196_v48 = vunpack.i.h.bf16 %v11297_v10 }
 0x255   : > { %15069 = vst [vmem:[#allocation100_spill] sm:$0xff] %v11648_v49  ;;  %8428 = vmatpush3.bf16.xpose.msra.mxu0 %v2443_v16 }
 0x256   : > { %9034 = vmatprep.subr.msk.bf16.mxu0 %vm2070_vm0, %v1611_v53  ;;  %v9231_v53 = vunpack.i.h.bf16 %v11306_v8 }
 0x257   : > { %v9554_v30 = vpop.permute.xlu1 %9553 }
 0x258   : > { %v9556_v47 = vunpack.i.h.bf16 %v9554_v30  ;;  %v9555_v23 = vunpack.i.l.bf16 %v9554_v30  ;;  %v11654_v6 = vpop.permute.xlu0 %9573  ;;  %v9195_v30 = vunpack.i.l.bf16 %v11297_v10  ;;  %v9376_v10 = vunpack.i.h.bf16 %v11443_v15 }
 0x259   : > { %15070 = vst [vmem:[#allocation101_spill] sm:$0xff] %v11654_v6 }
 0x25a   : > { %v1615_v36 = vpack.c.bf16 %v9500_v1, %v9556_v47  ;;  %v1622_v35 = vpack.c.bf16 %v9555_v23, %v9541_v3  ;;  %v9335_v23 = vunpack.i.l.bf16 %v11406_v25  ;;  %v9230_v3 = vunpack.i.l.bf16 %v11306_v8 }
 0x25b   : > { %v8385_v17 = vpop.f32.mrf.mxu1  ;;  %v11656_v29 = vpop.permute.xlu1 %9563  ;;  %v9375_v25 = vunpack.i.l.bf16 %v11443_v15  ;;  %v1228_v8 = vpack.c.bf16 %v9196_v48, %v9195_v30  ;;  %v9501_v15 = vunpack.i.h.bf16 %v11539_v51 }
 0x25c   : > { %15071 = vst [vmem:[#allocation102_spill] sm:$0xff] %v11656_v29  ;;  %v3505_v61 = vmul.f32 0.17677669, %v8385_v17  ;;  %v11658_v2 = vpop.permute.xlu0 %9578  ;;  %9038 = vmatprep.subr.msk.bf16.mxu1 %vm2070_vm0, %v1615_v36  ;;  %v2529_v16 = vsel %vm2070_vm0, %v1615_v36, 0  ;;  %v1232_v55 = vpack.c.bf16 %v9336_v58, %v9335_v23  ;;  %v2627_v48 = vsel %vm2070_vm0, %v1622_v35, 0 }
 0x25d   : > { %v2218_v6 = vpop.f32.mrf.mxu1  ;;  %8430 = vmatpush3.bf16.xpose.msra.mxu0 %v2440_v45  ;;  %8446 = vmatpush3.bf16.xpose.msra.mxu1 %v2529_v16  ;;  %v9411_v58 = vunpack.i.h.bf16 %v11479_v46 }
 0x25e   : > { %v11668_v47 = vadd.f32 %v3505_v61, %v11543_v34  ;;  %v3503_v1 = vmul.f32 0.17677669, %v2218_v6  ;;  %9039 = vmatprep.subr.msk.bf16.mxu0 %vm2070_vm0, %v1622_v35  ;;  %v9520_v61 = vunpack.i.l.bf16 %v11601_v56 }
 0x25f   : > { %v8386_v36 = vpop.f32.mrf.mxu1  ;;  %v11673_v17 = vpop.permute.xlu1 %9583 }
 0x260   : > { %15072 = vst [vmem:[#allocation103_spill] sm:$0xff] %v11668_v47  ;;  %15073 = vst [vmem:[#allocation104_spill] sm:$0xff] %v11673_v17  ;;  %v3506_v45 = vmul.f32 0.17677669, %v8386_v36  ;;  %v11676_v16 = vpop.permute.xlu0 %9593  ;;  %v11681_v6 = vadd.f32 %v3503_v1, %v11554_v52  ;;  %v3782_v49 = vsel %vm3751_vm3, %v11668_v47, -inf  ;;  %v1229_v36 = vpack.c.bf16 %v9231_v53, %v9230_v3 }
 0x261   : > { %v2221_v29 = vpop.f32.mrf.mxu1  ;;  %3783 = vmax.xlane.f32.xlu1 %v3782_v49  ;;  %v9265_v1 = vunpack.i.l.bf16 %v11337_v60  ;;  %v1621_v30 = vpack.c.bf16 %v9520_v61, %v9501_v15  ;;  %v9441_v53 = vunpack.i.h.bf16 %v11489_v37  ;;  %v9440_v3 = vunpack.i.l.bf16 %v11489_v37 }
 0x262   : > { %15074 = vst [vmem:[#allocation105_spill] sm:$0xff] %v11681_v6  ;;  %v11686_v17 = vadd.f32 %v3506_v45, %v11571_v14  ;;  %v3504_v50 = vmul.f32 0.17677669, %v2221_v29  ;;  %v1233_v29 = vpack.c.bf16 %v9376_v10, %v9375_v25  ;;  %v3776_v60 = vsel %vm3751_vm3, %v11681_v6, -inf }
 0x263   : > { %v8389_v18 = vpop.f32.mrf.mxu1  ;;  %v11690_v5 = vpop.permute.xlu1 %9588 }
 0x264   : > { %15075 = vst [vmem:[#allocation106_spill] sm:$0xff] %v11686_v17  ;;  %v3509_v33 = vmul.f32 0.17677669, %v8389_v18  ;;  %v11693_v57 = vpop.permute.xlu0 %9613  ;;  %8432 = vmatmul.mubr.msk.bf16.vlgmr.msra.gmra.mxu0 %vm2070_vm0, %v1228_v8  ;;  %8448 = vmatmul.mubr.msk.bf16.vlgmr.msra.gmra.mxu1 %vm2070_vm0, %v1232_v55  ;;  %v3785_v49 = vsel %vm3751_vm3, %v11686_v17, -inf  ;;  %v11704_v18 = vadd.f32 %v3504_v50, %v11574_v28  ;;  %v9410_v55 = vunpack.i.l.bf16 %v11479_v46 }
 0x265   : > { %v2234_v51 = vpop.f32.mrf.mxu1  ;;  %8435 = vmatprep.mubr.msk.bf16.mxu0 %vm2070_vm0, %v1229_v36  ;;  %8456 = vmatpush3.bf16.xpose.msra.mxu0 %v2627_v48  ;;  %v1230_v36 = vpack.c.bf16 %v9266_v59, %v9265_v1  ;;  %v2624_v59 = vsel %vm2070_vm0, %v1621_v30, 0 }
 0x266   : > { %15076 = vst [vmem:[#allocation107_spill] sm:$0xff] %v11704_v18  ;;  %v11709_v35 = vadd.f32 %v3509_v33, %v11580_v32  ;;  %v3507_v23 = vmul.f32 0.17677669, %v2234_v51  ;;  %3786 = vmax.xlane.f32.xlu0 %v3785_v49  ;;  %3777 = vmax.xlane.f32.xlu1 %v3776_v60  ;;  %v9595_v33 = vunpack.i.l.bf16 %v11676_v16  ;;  %v3779_v8 = vsel %vm3751_vm3, %v11704_v18, -inf }
 0x267   : > { %8451 = vmatprep.mubr.msk.bf16.mxu1 %vm2070_vm0, %v1233_v29  ;;  %9040 = vmatprep.subr.msk.bf16.mxu0 %vm2070_vm0, %v1621_v30  ;;  %v8390_v50 = vpop.f32.mrf.mxu1  ;;  %v11715_v10 = vpop.permute.xlu1 %9598  ;;  %v1234_v15 = vpack.c.bf16 %v9411_v58, %v9410_v55  ;;  %v1235_v29 = vpack.c.bf16 %v9441_v53, %v9440_v3  ;;  %v9581_v51 = vunpack.i.h.bf16 %v11658_v2 }
 0x268   : > { %15077 = vst [vmem:[#allocation108_spill] sm:$0xff] %v11709_v35  ;;  %v3510_v45 = vmul.f32 0.17677669, %v8390_v50  ;;  %v11717_v25 = vpop.permute.xlu0 %9623  ;;  %v11721_v46 = vadd.f32 %v3507_v23, %v11607_v44  ;;  %v3794_v37 = vsel %vm3751_vm3, %v11709_v35, -inf }
 0x269   : > { %v2237_v61 = vpop.f32.mrf.mxu1  ;;  %v1239_v58 = vpack.c.bf16 %v9595_v33, %v9581_v51 }
 0x26a   : > { %15078 = vst [vmem:[#allocation109_spill] sm:$0xff] %v11721_v46  ;;  %v11728_v48 = vadd.f32 %v3510_v45, %v11596_v7  ;;  %v3508_v49 = vmul.f32 0.17677669, %v2237_v61  ;;  %3780 = vmax.xlane.f32.xlu0 %v3779_v8  ;;  %3795 = vmax.xlane.f32.xlu1 %v3794_v37  ;;  %v3788_v55 = vsel %vm3751_vm3, %v11721_v46, -inf }
 0x26b   : > { %v11731_v60 = vpop.permute.xlu1 %9603 }
 0x26c   : > { %15079 = vst [vmem:[#allocation110_spill] sm:$0xff] %v11728_v48  ;;  %v11733_v23 = vpop.permute.xlu0 %9628  ;;  %8436 = vmatmul.mubr.msk.bf16.gmra.mxu0 %vm2070_vm0, %v1230_v36  ;;  %8452 = vmatmul.mubr.msk.bf16.gmra.mxu1 %vm2070_vm0, %v1234_v15  ;;  %v3797_v1 = vsel %vm3751_vm3, %v11728_v48, -inf  ;;  %v11744_v53 = vadd.f32 %v3508_v49, %v11616_v62 }
 0x26d   : > { %8458 = vmatpush3.bf16.xpose.msra.mxu0 %v2624_v59  ;;  %8463 = vmatprep.mubr.msk.bf16.mxu0 %vm2070_vm0, %v1235_v29 }
 0x26e   : > { %15080 = vst [vmem:[#allocation111_spill] sm:$0xff] %v11744_v53  ;;  %3798 = vmax.xlane.f32.xlu0 %v3797_v1  ;;  %3789 = vmax.xlane.f32.xlu1 %v3788_v55  ;;  %v3791_v50 = vsel %vm3751_vm3, %v11744_v53, -inf  ;;  %v9521_v53 = vunpack.i.h.bf16 %v11601_v56 }
 0x26f   : > { %8479 = vmatprep.mubr.msk.bf16.mxu1 %vm2070_vm0, %v1239_v58  ;;  %v11747_v3 = vpop.permute.xlu1 %9608 }
 0x270   : > { %15081 = vst [vmem:[#allocation112_spill] sm:$0xff] %v11747_v3  ;;  %v11749_v30 = vpop.permute.xlu0 %9633 }
 0x272   : > { %3792 = vmax.xlane.f32.xlu0 %v3791_v50 }
 0x273   : > { %v11753_v45 = vpop.permute.xlu1 %9618 }
 0x274   : > { %v11755_v33 = vpop.permute.xlu0 %9638 }
 0x277   : > { %v11757_v61 = vpop.permute.xlu1 %9648 }
 0x278   : > { %v11759_v8 = vpop.permute.xlu0 %9643 }
 0x279   : > { %15082 = vst [vmem:[#allocation113_spill] sm:$0xff] %v11759_v8 }
 0x27b   : > { %v11761_v37 = vpop.permute.xlu1 %9658  ;;  %v8401_v36 = vpop.f32.mrf.mxu0 }
 0x27c   : > { %v11763_v15 = vpop.permute.xlu0 %9653  ;;  %v3513_v49 = vmul.f32 0.17677669, %v8401_v36 }
 0x27d   : > { %v2307_v29 = vpop.f32.mrf.mxu0 }
 0x27e   : > { %v11766_v51 = vadd.f32 %v3513_v49, %v11543_v34  ;;  %v3511_v59 = vmul.f32 0.17677669, %v2307_v29 }
 0x27f   : > { %v11768_v1 = vpop.permute.xlu1 %9668  ;;  %v8402_v58 = vpop.f32.mrf.mxu0 }
 0x280   : > { %15083 = vst [vmem:[#allocation114_spill] sm:$0xff] %v11766_v51  ;;  %v9664_v55 = vpop.permute.xlu0 %9663  ;;  %v3514_v50 = vmul.f32 0.17677669, %v8402_v58  ;;  %v11772_v46 = vadd.f32 %v3511_v59, %v11554_v52  ;;  %v3806_v35 = vsel %vm3751_vm3, %v11766_v51, -inf }
 0x281   : > { %v9665_v48 = vunpack.i.l.bf16 %v9664_v55  ;;  %v2310_v36 = vpop.f32.mrf.mxu0  ;;  %3807 = vmax.xlane.f32.xlu1 %v3806_v35 }
 0x282   : > { %15084 = vst [vmem:[#allocation115_spill] sm:$0xff] %v11772_v46  ;;  %v11777_v18 = vadd.f32 %v3514_v50, %v11571_v14  ;;  %v3512_v49 = vmul.f32 0.17677669, %v2310_v36  ;;  %v3800_v51 = vsel %vm3751_vm3, %v11772_v46, -inf  ;;  %v9666_v36 = vunpack.i.h.bf16 %v9664_v55 }
 0x283   : > { %v1620_v29 = vpack.c.bf16 %v9665_v48, %v9521_v53  ;;  %v11779_v6 = vpop.permute.xlu1 %9678  ;;  %v8405_v17 = vpop.f32.mrf.mxu0  ;;  %v9630_v53 = vunpack.i.l.bf16 %v11733_v23 }
 0x284   : > { %15085 = vst [vmem:[#allocation116_spill] sm:$0xff] %v11777_v18  ;;  %15086 = vst [vmem:[#allocation117_spill] sm:$0xff] %v11779_v6  ;;  %v3517_v58 = vmul.f32 0.17677669, %v8405_v17  ;;  %v3809_v56 = vsel %vm3751_vm3, %v11777_v18, -inf  ;;  %v11788_v35 = vadd.f32 %v3512_v49, %v11574_v28 }
 0x285   : > { %9041 = vmatprep.subr.msk.bf16.mxu0 %vm2070_vm0, %v1620_v29  ;;  %v2621_v59 = vsel %vm2070_vm0, %v1620_v29, 0  ;;  %3810 = vmax.xlane.f32.xlu0 %v3809_v56  ;;  %v2323_v50 = vpop.f32.mrf.mxu0 }
 0x286   : > { %15087 = vst [vmem:[#allocation118_spill] sm:$0xff] %v11788_v35  ;;  %v11791_v48 = vadd.f32 %v3517_v58, %v11580_v32  ;;  %8460 = vmatpush3.bf16.xpose.msra.mxu0 %v2621_v59  ;;  %3801 = vmax.xlane.f32.xlu1 %v3800_v51  ;;  %v3515_v17 = vmul.f32 0.17677669, %v2323_v50  ;;  %v3803_v29 = vsel %vm3751_vm3, %v11788_v35, -inf  ;;  %v9286_v58 = vunpack.i.h.bf16 %v11369_v41 }
 0x287   : > { %v9684_v18 = vpop.permute.xlu1 %9683  ;;  %v8406_v47 = vpop.f32.mrf.mxu0  ;;  %v9285_v59 = vunpack.i.l.bf16 %v11369_v41  ;;  %v9650_v51 = vunpack.i.l.bf16 %v11757_v61 }
 0x288   : > { %v11797_v56 = vadd.f32 %v3515_v17, %v11607_v44  ;;  %v9686_v46 = vunpack.i.h.bf16 %v9684_v18  ;;  %v9685_v49 = vunpack.i.l.bf16 %v9684_v18  ;;  %v3518_v6 = vmul.f32 0.17677669, %v8406_v47 }
 0x289   : > { %3804 = vmax.xlane.f32.xlu0 %v3803_v29  ;;  %v3818_v55 = vsel %vm3751_vm3, %v11791_v48, -inf  ;;  %v2326_v50 = vpop.f32.mrf.mxu0  ;;  %v9631_v18 = vunpack.i.h.bf16 %v11733_v23  ;;  %v9465_v23 = vunpack.i.l.bf16 %v11516_v22  ;;  %v9651_v22 = vunpack.i.h.bf16 %v11757_v61 }
 0x28a   : > { %v1619_v8 = vpack.c.bf16 %v9630_v53, %v9686_v46  ;;  %v1626_v3 = vpack.c.bf16 %v9685_v49, %v9666_v36  ;;  %v11805_v35 = vadd.f32 %v3518_v6, %v11596_v7  ;;  %3819 = vmax.xlane.f32.xlu1 %v3818_v55  ;;  %v3516_v17 = vmul.f32 0.17677669, %v2326_v50 }
 0x28b   : > { %v3812_v47 = vsel %vm3751_vm3, %v11797_v56, -inf  ;;  %v1630_v53 = vpack.c.bf16 %v9286_v58, %v9285_v59  ;;  %v1625_v29 = vpack.c.bf16 %v9650_v51, %v9631_v18  ;;  %v9471_v49 = vunpack.i.h.bf16 %v11521_v20 }
 0x28c   : > { %9042 = vmatprep.subr.msk.bf16.mxu0 %vm2070_vm0, %v1619_v8  ;;  %9043 = vmatprep.subr.msk.bf16.mxu1 %vm2070_vm0, %v1626_v3  ;;  %v2618_v41 = vsel %vm2070_vm0, %v1619_v8, 0  ;;  %v3821_v46 = vsel %vm3751_vm3, %v11805_v35, -inf  ;;  %v2716_v6 = vsel %vm2070_vm0, %v1626_v3, 0  ;;  %v11817_v36 = vadd.f32 %v3516_v17, %v11616_v62 }
 0x28d   : > { %3822 = vmax.xlane.f32.xlu0 %v3821_v46  ;;  %8472 = vmatpush3.bf16.xpose.msra.mxu1 %v2716_v6  ;;  %v9495_v58 = vunpack.i.l.bf16 %v11557_v26  ;;  %v9251_v3 = vunpack.i.h.bf16 %v11328_v11  ;;  %v9250_v59 = vunpack.i.l.bf16 %v11328_v11  ;;  %v9506_v51 = vunpack.i.h.bf16 %v11548_v12 }
 0x28e   : > { %8462 = vmatpush3.bf16.xpose.msra.mxu0 %v2618_v41  ;;  %3813 = vmax.xlane.f32.xlu1 %v3812_v47  ;;  %v3815_v8 = vsel %vm3751_vm3, %v11817_v36, -inf  ;;  %v1236_v20 = vpack.c.bf16 %v9471_v49, %v9465_v23  ;;  %v9615_v50 = vunpack.i.l.bf16 %v11693_v57  ;;  %v2805_v26 = vsel %vm2070_vm0, %v1630_v53, 0 }
 0x28f   : > { %9047 = vmatprep.subr.msk.bf16.mxu0 %vm2070_vm0, %v1630_v53  ;;  %9044 = vmatprep.subr.msk.bf16.mxu1 %vm2070_vm0, %v1625_v29  ;;  %v1237_v55 = vpack.c.bf16 %v9506_v51, %v9495_v58  ;;  %v1629_v17 = vpack.c.bf16 %v9251_v3, %v9250_v59  ;;  %v2713_v18 = vsel %vm2070_vm0, %v1625_v29, 0  ;;  %v9601_v11 = vunpack.i.h.bf16 %v11715_v10 }
 0x290   : > { %v1624_v47 = vpack.c.bf16 %v9615_v50, %v9651_v22  ;;  %v9166_v12 = vunpack.i.h.bf16 %v11231_v40  ;;  %v9165_v61 = vunpack.i.l.bf16 %v11231_v40  ;;  %v9216_v41 = vunpack.i.h.bf16 %v11284_v0 }
 0x291   : > { %3816 = vmax.xlane.f32.xlu0 %v3815_v8  ;;  %v9215_v46 = vunpack.i.l.bf16 %v11284_v0  ;;  %v9535_v53 = vunpack.i.l.bf16 %v11634_v43  ;;  %v9616_v6 = vunpack.i.h.bf16 %v11693_v57  ;;  %v9580_v8 = vunpack.i.l.bf16 %v11658_v2 }
 0x292   : > { %v1243_v49 = vpack.c.bf16 %v9166_v12, %v9165_v61  ;;  %v2802_v59 = vsel %vm2070_vm0, %v1629_v17, 0  ;;  %v2710_v43 = vsel %vm2070_vm0, %v1624_v47, 0  ;;  %v9181_v50 = vunpack.i.h.bf16 %v11264_v4 }
 0x293   : > { %v1238_v29 = vpack.c.bf16 %v9601_v11, %v9535_v53  ;;  %v1628_v3 = vpack.c.bf16 %v9216_v41, %v9215_v46  ;;  %v1623_v51 = vpack.c.bf16 %v9580_v8, %v9616_v6 }
 0x295   : > { %8464 = vmatmul.mubr.msk.bf16.vlgmr.msra.gmra.mxu0 %vm2070_vm0, %v1236_v20  ;;  %8474 = vmatpush3.bf16.xpose.msra.mxu1 %v2713_v18  ;;  %v2707_v8 = vsel %vm2070_vm0, %v1623_v51, 0 }
 0x296   : > { %8467 = vmatprep.mubr.msk.bf16.mxu0 %vm2070_vm0, %v1237_v55  ;;  %8488 = vmatpush3.bf16.xpose.msra.mxu0 %v2805_v26  ;;  %v9431_v26 = vunpack.i.h.bf16 %v11476_v19 }
 0x297   : > { %9048 = vmatprep.subr.msk.bf16.mxu0 %vm2070_vm0, %v1629_v17  ;;  %9045 = vmatprep.subr.msk.bf16.mxu1 %vm2070_vm0, %v1624_v47  ;;  %v9180_v17 = vunpack.i.l.bf16 %v11264_v4  ;;  %v9430_v47 = vunpack.i.l.bf16 %v11476_v19  ;;  %v2799_v19 = vsel %vm2070_vm0, %v1628_v3, 0 }
 0x299   : > { %v1627_v6 = vpack.c.bf16 %v9181_v50, %v9180_v17  ;;  %v9560_v50 = vunpack.i.l.bf16 %v11641_v21  ;;  %v9635_v17 = vunpack.i.l.bf16 %v11749_v30 }
 0x29b   : > { %v8417_v23 = vpop.f32.mrf.mxu1 }
 0x29c   : > { %v3521_v58 = vmul.f32 0.17677669, %v8417_v23 }
 0x29d   : > { %8468 = vmatmul.mubr.msk.bf16.gmra.mxu0 %vm2070_vm0, %v1238_v29  ;;  %v2396_v40 = vpop.f32.mrf.mxu1  ;;  %8476 = vmatpush3.bf16.xpose.msra.mxu1 %v2710_v43  ;;  %v1634_v29 = vpack.c.bf16 %v9431_v26, %v9430_v47  ;;  %v9600_v43 = vunpack.i.l.bf16 %v11715_v10  ;;  %v9596_v26 = vunpack.i.h.bf16 %v11676_v16 }
 0x29e   : > { %v11848_v22 = vadd.f32 %v3521_v58, %v11543_v34  ;;  %v3519_v0 = vmul.f32 0.17677669, %v2396_v40  ;;  %8490 = vmatpush3.bf16.xpose.msra.mxu0 %v2802_v59  ;;  %8495 = vmatprep.mubr.msk.bf16.mxu0 %vm2070_vm0, %v1243_v49  ;;  %v9396_v59 = vunpack.i.h.bf16 %v11464_v39 }
 0x29f   : > { %9049 = vmatprep.subr.msk.bf16.mxu0 %vm2070_vm0, %v1628_v3  ;;  %v8418_v57 = vpop.f32.mrf.mxu1  ;;  %9046 = vmatprep.subr.msk.bf16.mxu1 %vm2070_vm0, %v1623_v51 }
 0x2a0   : > { %v11854_v2 = vadd.f32 %v3519_v0, %v11554_v52  ;;  %v3522_v20 = vmul.f32 0.17677669, %v8418_v57  ;;  %v3830_v55 = vsel %vm3751_vm3, %v11848_v22, -inf  ;;  %v9395_v0 = vunpack.i.l.bf16 %v11464_v39 }
 0x2a1   : > { %3831 = vmax.xlane.f32.xlu1 %v3830_v55  ;;  %v2399_v18 = vpop.f32.mrf.mxu1  ;;  %v9561_v55 = vunpack.i.h.bf16 %v11641_v21  ;;  %v9636_v39 = vunpack.i.h.bf16 %v11749_v30 }
 0x2a2   : > { %v11864_v11 = vadd.f32 %v3522_v20, %v11571_v14  ;;  %v3520_v12 = vmul.f32 0.17677669, %v2399_v18  ;;  %v3824_v61 = vsel %vm3751_vm3, %v11854_v2, -inf  ;;  %v1633_v16 = vpack.c.bf16 %v9396_v59, %v9395_v0 }
 0x2a3   : > { %v8421_v41 = vpop.f32.mrf.mxu1  ;;  %v1241_v30 = vpack.c.bf16 %v9636_v39, %v9635_v17  ;;  %v9671_v59 = vunpack.i.h.bf16 %v11768_v1  ;;  %v9670_v0 = vunpack.i.l.bf16 %v11768_v1  ;;  %v9271_v17 = vunpack.i.h.bf16 %v11351_v13 }
 0x2a4   : > { %v3525_v46 = vmul.f32 0.17677669, %v8421_v41  ;;  %v3833_v53 = vsel %vm3751_vm3, %v11864_v11, -inf  ;;  %v11871_v4 = vadd.f32 %v3520_v12, %v11574_v28 }
 0x2a5   : > { %3825 = vmax.xlane.f32.xlu1 %v3824_v61  ;;  %3834 = vmax.xlane.f32.xlu0 %v3833_v53  ;;  %v2412_v23 = vpop.f32.mrf.mxu1  ;;  %v1240_v61 = vpack.c.bf16 %v9600_v43, %v9596_v26  ;;  %v1638_v53 = vpack.c.bf16 %v9561_v55, %v9560_v50  ;;  %v9355_v43 = vunpack.i.l.bf16 %v11439_v38  ;;  %v1242_v1 = vpack.c.bf16 %v9671_v59, %v9670_v0 }
 0x2a6   : > { %v11875_v49 = vadd.f32 %v3525_v46, %v11580_v32  ;;  %8492 = vmatpush3.bf16.xpose.msra.mxu0 %v2799_v19  ;;  %v3523_v58 = vmul.f32 0.17677669, %v2412_v23  ;;  %v3827_v40 = vsel %vm3751_vm3, %v11871_v4, -inf  ;;  %8478 = vmatpush3.bf16.xpose.msra.mxu1 %v2707_v8  ;;  %v2796_v46 = vsel %vm2070_vm0, %v1627_v6, 0 }
 0x2a7   : > { %9050 = vmatprep.subr.msk.bf16.mxu0 %vm2070_vm0, %v1627_v6  ;;  %v8422_v3 = vpop.f32.mrf.mxu1  ;;  %9051 = vmatprep.subr.msk.bf16.mxu1 %vm2070_vm0, %v1634_v29  ;;  %v2894_v19 = vsel %vm2070_vm0, %v1634_v29, 0  ;;  %v9201_v8 = vunpack.i.h.bf16 %v11243_v9  ;;  %v9236_v6 = vunpack.i.h.bf16 %v11320_v24  ;;  %v9306_v29 = vunpack.i.h.bf16 %v11396_v31 }
 0x2a8   : > { %v11885_v57 = vadd.f32 %v3523_v58, %v11607_v44  ;;  %v3526_v51 = vmul.f32 0.17677669, %v8422_v3  ;;  %v3842_v20 = vsel %vm3751_vm3, %v11875_v49, -inf  ;;  %v9200_v58 = vunpack.i.l.bf16 %v11243_v9 }
 0x2a9   : > { %3828 = vmax.xlane.f32.xlu0 %v3827_v40  ;;  %3843 = vmax.xlane.f32.xlu1 %v3842_v20  ;;  %v2415_v10 = vpop.f32.mrf.mxu1  ;;  %v9235_v40 = vunpack.i.l.bf16 %v11320_v24  ;;  %v9305_v3 = vunpack.i.l.bf16 %v11396_v31  ;;  %v9356_v9 = vunpack.i.h.bf16 %v11439_v38  ;;  %v9526_v24 = vunpack.i.h.bf16 %v11582_v27 }
 0x2aa   : > { %v11896_v47 = vadd.f32 %v3526_v51, %v11596_v7  ;;  %v3524_v18 = vmul.f32 0.17677669, %v2415_v10  ;;  %v3836_v12 = vsel %vm3751_vm3, %v11885_v57, -inf  ;;  %v1244_v51 = vpack.c.bf16 %v9201_v8, %v9200_v58  ;;  %v15088_v58 = vld [vmem:[#allocation78_spill] sm:$0xff] }
 0x2ab   : > { %v9525_v20 = vunpack.i.l.bf16 %v11582_v27  ;;  %v1245_v55 = vpack.c.bf16 %v9236_v6, %v9235_v40  ;;  %v1247_v50 = vpack.c.bf16 %v9306_v29, %v9305_v3  ;;  %v1632_v39 = vpack.c.bf16 %v9356_v9, %v9355_v43  ;;  %v15089_v9 = vld [vmem:[#allocation61_spill] sm:$0xff] }
 0x2ac   : > { %v3845_v21 = vsel %vm3751_vm3, %v11896_v47, -inf  ;;  %v11903_v41 = vadd.f32 %v3524_v18, %v11616_v62  ;;  %v2891_v31 = vsel %vm2070_vm0, %v1633_v16, 0  ;;  %v9270_v38 = vunpack.i.l.bf16 %v11351_v13 }
 0x2ad   : > { %3837 = vmax.xlane.f32.xlu1 %v3836_v12  ;;  %3846 = vmax.xlane.f32.xlu0 %v3845_v21  ;;  %v1637_v10 = vpack.c.bf16 %v9526_v24, %v9525_v20  ;;  %v2983_v27 = vsel %vm2070_vm0, %v1638_v53, 0  ;;  %v9446_v26 = vunpack.i.h.bf16 %v11495_v42  ;;  %v9445_v18 = vunpack.i.l.bf16 %v11495_v42  ;;  %v11936_v12 = vpop.permute.xlu0 %9673  ;;  %v15090_v24 = vld [vmem:[#allocation67_spill] sm:$0xff] }
 0x2ae   : > { %8480 = vmatmul.mubr.msk.bf16.vlgmr.msra.gmra.mxu1 %vm2070_vm0, %v1240_v61  ;;  %8494 = vmatpush3.bf16.xpose.msra.mxu0 %v2796_v46  ;;  %v3839_v23 = vsel %vm3751_vm3, %v11903_v41, -inf  ;;  %v9321_v61 = vunpack.i.h.bf16 %v11388_v54  ;;  %v9320_v13 = vunpack.i.l.bf16 %v11388_v54  ;;  %v1246_v21 = vpack.c.bf16 %v9271_v17, %v9270_v38 }
 0x2af   : > { %8483 = vmatprep.mubr.msk.bf16.mxu1 %vm2070_vm0, %v1241_v30  ;;  %8504 = vmatpush3.bf16.xpose.msra.mxu1 %v2894_v19  ;;  %v9486_v30 = vunpack.i.h.bf16 %v11545_v63  ;;  %v9485_v46 = vunpack.i.l.bf16 %v11545_v63  ;;  %v2980_v8 = vsel %vm2070_vm0, %v1637_v10, 0  ;;  %v9456_v6 = vunpack.i.h.bf16 %v15088_v58 }
 0x2b0   : > { %9052 = vmatprep.subr.msk.bf16.mxu1 %vm2070_vm0, %v1633_v16  ;;  %9055 = vmatprep.subr.msk.bf16.mxu0 %vm2070_vm0, %v1638_v53  ;;  %v1251_v16 = vpack.c.bf16 %v9446_v26, %v9445_v18  ;;  %v1631_v42 = vpack.c.bf16 %v9321_v61, %v9320_v13  ;;  %v2888_v53 = vsel %vm2070_vm0, %v1632_v39, 0  ;;  %v9455_v40 = vunpack.i.l.bf16 %v15088_v58  ;;  %v15092_v13 = vld [vmem:[#allocation72_spill] sm:$0xff] }
 0x2b1   : > { %3840 = vmax.xlane.f32.xlu0 %v3839_v23  ;;  %v1636_v19 = vpack.c.bf16 %v9486_v30, %v9485_v46  ;;  %v9689_v23 = vpop.permute.xlu0 %9688  ;;  %v9341_v43 = vunpack.i.h.bf16 %v15089_v9  ;;  %v9381_v20 = vunpack.i.h.bf16 %v15090_v24  ;;  %v15093_v30 = vld [vmem:[#allocation82_spill] sm:$0xff]  ;;  %v9620_v58 = vunpack.i.l.bf16 %v11753_v45 }
 0x2b2   : > { %v9691_v54 = vunpack.i.h.bf16 %v9689_v23  ;;  %v9690_v63 = vunpack.i.l.bf16 %v9689_v23  ;;  %v2885_v0 = vsel %vm2070_vm0, %v1631_v42, 0  ;;  %v1635_v29 = vpack.c.bf16 %v9456_v6, %v9455_v40  ;;  %v15095_v23 = vld [vmem:[#allocation100_spill] sm:$0xff] }
 0x2b3   : > { %v2977_v3 = vsel %vm2070_vm0, %v1636_v19, 0  ;;  %v9476_v46 = vunpack.i.h.bf16 %v15093_v30  ;;  %v15096_v6 = vld [vmem:[#allocation52_spill] sm:$0xff] }
 0x2b4   : > { %v1642_v59 = vpack.c.bf16 %v9691_v54, %v9690_v63  ;;  %v2974_v61 = vsel %vm2070_vm0, %v1635_v29, 0  ;;  %v9570_v54 = vunpack.i.l.bf16 %v15095_v23  ;;  %v9621_v63 = vunpack.i.h.bf16 %v11753_v45 }
 0x2b5   : > { %8496 = vmatmul.mubr.msk.bf16.vlgmr.msra.gmra.mxu0 %vm2070_vm0, %v1244_v51  ;;  %v9340_v51 = vunpack.i.l.bf16 %v15089_v9  ;;  %v9256_v40 = vunpack.i.h.bf16 %v15096_v6 }
 0x2b6   : > { %8484 = vmatmul.mubr.msk.bf16.gmra.mxu1 %vm2070_vm0, %v1242_v1  ;;  %8499 = vmatprep.mubr.msk.bf16.mxu0 %vm2070_vm0, %v1245_v55  ;;  %v9380_v55 = vunpack.i.l.bf16 %v15090_v24  ;;  %v9656_v1 = vunpack.i.h.bf16 %v11763_v15  ;;  %v3072_v26 = vsel %vm2070_vm0, %v1642_v59, 0 }
 0x2b7   : > { %8506 = vmatpush3.bf16.xpose.msra.mxu1 %v2891_v31  ;;  %8511 = vmatprep.mubr.msk.bf16.mxu1 %vm2070_vm0, %v1247_v50  ;;  %v9655_v50 = vunpack.i.l.bf16 %v11763_v15  ;;  %v1248_v38 = vpack.c.bf16 %v9341_v43, %v9340_v51  ;;  %v9415_v15 = vunpack.i.l.bf16 %v15092_v13  ;;  %v1640_v51 = vpack.c.bf16 %v9621_v63, %v9620_v58 }
 0x2b8   : > { %8520 = vmatpush3.bf16.xpose.msra.mxu0 %v2983_v27  ;;  %9053 = vmatprep.subr.msk.bf16.mxu1 %vm2070_vm0, %v1632_v39  ;;  %v15091_v39 = vld [vmem:[#allocation56_spill] sm:$0xff] }
 0x2b9   : > { %9056 = vmatprep.subr.msk.bf16.mxu0 %vm2070_vm0, %v1637_v10  ;;  %v9291_v31 = vunpack.i.h.bf16 %v15091_v39  ;;  %v9290_v17 = vunpack.i.l.bf16 %v15091_v39  ;;  %v1249_v10 = vpack.c.bf16 %v9381_v20, %v9380_v55  ;;  %v1641_v27 = vpack.c.bf16 %v9656_v1, %v9655_v50  ;;  %v15097_v20 = vld [vmem:[#allocation99_spill] sm:$0xff] }
 0x2ba   : > { %v9546_v55 = vunpack.i.h.bf16 %v15097_v20  ;;  %v9545_v1 = vunpack.i.l.bf16 %v15097_v20  ;;  %v15098_v50 = vld [vmem:[#allocation43_spill] sm:$0xff] }
 0x2bb   : > { %v1646_v18 = vpack.c.bf16 %v9291_v31, %v9290_v17  ;;  %v3069_v43 = vsel %vm2070_vm0, %v1641_v27, 0  ;;  %v9171_v39 = vunpack.i.h.bf16 %v15098_v50  ;;  %v9170_v31 = vunpack.i.l.bf16 %v15098_v50  ;;  %v15099_v17 = vld [vmem:[#allocation104_spill] sm:$0xff] }
 0x2bc   : > { %v9676_v50 = vunpack.i.h.bf16 %v11936_v12 }
 0x2bd   : > { %8500 = vmatmul.mubr.msk.bf16.gmra.mxu0 %vm2070_vm0, %v1246_v21  ;;  %v9416_v21 = vunpack.i.h.bf16 %v15092_v13  ;;  %v3161_v45 = vsel %vm2070_vm0, %v1646_v18, 0  ;;  %v1259_v13 = vpack.c.bf16 %v9171_v39, %v9170_v31  ;;  %v9675_v39 = vunpack.i.l.bf16 %v11936_v12  ;;  %v15108_v12 = vld [vmem:[#allocation50_spill] sm:$0xff] }
 0x2be   : > { %8527 = vmatprep.mubr.msk.bf16.mxu0 %vm2070_vm0, %v1251_v16  ;;  %v9475_v16 = vunpack.i.l.bf16 %v15093_v30 }
 0x2bf   : > { %8508 = vmatpush3.bf16.xpose.msra.mxu1 %v2888_v53 }
 0x2c0   : > { %8522 = vmatpush3.bf16.xpose.msra.mxu0 %v2980_v8  ;;  %9054 = vmatprep.subr.msk.bf16.mxu1 %vm2070_vm0, %v1631_v42  ;;  %v15094_v42 = vld [vmem:[#allocation88_spill] sm:$0xff]  ;;  %v9571_v8 = vunpack.i.h.bf16 %v15095_v23 }
 0x2c1   : > { %9057 = vmatprep.subr.msk.bf16.mxu0 %vm2070_vm0, %v1636_v19  ;;  %v9511_v53 = vunpack.i.h.bf16 %v15094_v42  ;;  %v9510_v19 = vunpack.i.l.bf16 %v15094_v42 }
 0x2c2   : > { %v1255_v9 = vpack.c.bf16 %v9571_v8, %v9570_v54 }
 0x2c7   : > { %8510 = vmatpush3.bf16.xpose.msra.mxu1 %v2885_v0  ;;  %v1250_v0 = vpack.c.bf16 %v9416_v21, %v9415_v15  ;;  %v3066_v15 = vsel %vm2070_vm0, %v1640_v51, 0 }
 0x2c8   : > { %8524 = vmatpush3.bf16.xpose.msra.mxu0 %v2977_v3  ;;  %9059 = vmatprep.subr.msk.bf16.mxu1 %vm2070_vm0, %v1642_v59  ;;  %v9255_v59 = vunpack.i.l.bf16 %v15096_v6  ;;  %v1253_v3 = vpack.c.bf16 %v9511_v53, %v9510_v19  ;;  %v15102_v19 = vld [vmem:[#allocation46_spill] sm:$0xff]  ;;  %v9606_v6 = vunpack.i.h.bf16 %v11731_v60 }
 0x2c9   : > { %9058 = vmatprep.subr.msk.bf16.mxu0 %vm2070_vm0, %v1635_v29  ;;  %v1252_v29 = vpack.c.bf16 %v9476_v46, %v9475_v16  ;;  %v15101_v16 = vld [vmem:[#allocation71_spill] sm:$0xff]  ;;  %v9186_v23 = vunpack.i.h.bf16 %v15102_v19  ;;  %v9185_v8 = vunpack.i.l.bf16 %v15102_v19 }
 0x2ca   : > { %v1645_v24 = vpack.c.bf16 %v9256_v40, %v9255_v59  ;;  %v9436_v42 = vunpack.i.h.bf16 %v15101_v16  ;;  %v9435_v53 = vunpack.i.l.bf16 %v15101_v16  ;;  %v9605_v40 = vunpack.i.l.bf16 %v11731_v60 }
 0x2cb   : > { %v1643_v58 = vpack.c.bf16 %v9186_v23, %v9185_v8 }
 0x2cc   : > { %v3158_v46 = vsel %vm2070_vm0, %v1645_v24, 0  ;;  %v1650_v54 = vpack.c.bf16 %v9436_v42, %v9435_v53  ;;  %v1256_v60 = vpack.c.bf16 %v9606_v6, %v9605_v40  ;;  %v1258_v53 = vpack.c.bf16 %v9676_v50, %v9675_v39  ;;  %v15110_v40 = vld [vmem:[#allocation54_spill] sm:$0xff]  ;;  %v9694_v39 = vpop.permute.xlu1 %9693 }
 0x2cd   : > { %v3152_v31 = vsel %vm2070_vm0, %v1643_v58, 0 }
 0x2ce   : > { %8512 = vmatmul.mubr.msk.bf16.vlgmr.msra.gmra.mxu1 %vm2070_vm0, %v1248_v38  ;;  %v9586_v38 = vunpack.i.h.bf16 %v15099_v17 }
 0x2cf   : > { %8515 = vmatprep.mubr.msk.bf16.mxu1 %vm2070_vm0, %v1249_v10  ;;  %8536 = vmatpush3.bf16.xpose.msra.mxu1 %v3072_v26  ;;  %v9585_v10 = vunpack.i.l.bf16 %v15099_v17  ;;  %v15105_v17 = vld [vmem:[#allocation60_spill] sm:$0xff] }
 0x2d0   : > { %8526 = vmatpush3.bf16.xpose.msra.mxu0 %v2974_v61  ;;  %9060 = vmatprep.subr.msk.bf16.mxu1 %vm2070_vm0, %v1641_v27  ;;  %v15100_v27 = vld [vmem:[#allocation48_spill] sm:$0xff]  ;;  %v1254_v61 = vpack.c.bf16 %v9546_v55, %v9545_v1  ;;  %v3250_v1 = vsel %vm2070_vm0, %v1650_v54, 0 }
 0x2d1   : > { %9063 = vmatprep.subr.msk.bf16.mxu0 %vm2070_vm0, %v1646_v18  ;;  %v9221_v26 = vunpack.i.h.bf16 %v15100_v27  ;;  %v9220_v18 = vunpack.i.l.bf16 %v15100_v27  ;;  %v1639_v21 = vpack.c.bf16 %v9586_v38, %v9585_v10  ;;  %v9311_v38 = vunpack.i.h.bf16 %v15105_v17  ;;  %v15106_v27 = vld [vmem:[#allocation44_spill] sm:$0xff] }
 0x2d2   : > { %v9310_v10 = vunpack.i.l.bf16 %v15105_v17 }
 0x2d3   : > { %v1644_v30 = vpack.c.bf16 %v9221_v26, %v9220_v18  ;;  %v3063_v63 = vsel %vm2070_vm0, %v1639_v21, 0  ;;  %v9206_v26 = vunpack.i.h.bf16 %v15106_v27  ;;  %v9205_v18 = vunpack.i.l.bf16 %v15106_v27  ;;  %v15114_v27 = vld [vmem:[#allocation80_spill] sm:$0xff] }
 0x2d4   : > { %v1263_v19 = vpack.c.bf16 %v9311_v38, %v9310_v10  ;;  %v9696_v38 = vunpack.i.h.bf16 %v9694_v39  ;;  %v9695_v10 = vunpack.i.l.bf16 %v9694_v39 }
 0x2d5   : > { %v3155_v59 = vsel %vm2070_vm0, %v1644_v30, 0  ;;  %v1260_v23 = vpack.c.bf16 %v9206_v26, %v9205_v18  ;;  %v9461_v26 = vunpack.i.h.bf16 %v15114_v27  ;;  %v9460_v18 = vunpack.i.l.bf16 %v15114_v27 }
 0x2d6   : > { %8516 = vmatmul.mubr.msk.bf16.gmra.mxu1 %vm2070_vm0, %v1250_v0  ;;  %v9641_v0 = vunpack.i.h.bf16 %v11755_v33 }
 0x2d7   : > { %8528 = vmatmul.mubr.msk.bf16.vlgmr.msra.gmra.mxu0 %vm2070_vm0, %v1252_v29  ;;  %8538 = vmatpush3.bf16.xpose.msra.mxu1 %v3069_v43  ;;  %v9640_v29 = vunpack.i.l.bf16 %v11755_v33 }
 0x2d8   : > { %8531 = vmatprep.mubr.msk.bf16.mxu0 %vm2070_vm0, %v1253_v3  ;;  %8543 = vmatprep.mubr.msk.bf16.mxu1 %vm2070_vm0, %v1255_v9  ;;  %v15103_v3 = vld [vmem:[#allocation69_spill] sm:$0xff] }
 0x2d9   : > { %8552 = vmatpush3.bf16.xpose.msra.mxu0 %v3161_v45  ;;  %9061 = vmatprep.subr.msk.bf16.mxu1 %vm2070_vm0, %v1640_v51  ;;  %v9401_v9 = vunpack.i.h.bf16 %v15103_v3  ;;  %v9400_v43 = vunpack.i.l.bf16 %v15103_v3  ;;  %v15104_v51 = vld [vmem:[#allocation102_spill] sm:$0xff]  ;;  %v1257_v20 = vpack.c.bf16 %v9641_v0, %v9640_v29  ;;  %v9275_v0 = vunpack.i.l.bf16 %v15110_v40 }
 0x2da   : > { %9064 = vmatprep.subr.msk.bf16.mxu0 %vm2070_vm0, %v1645_v24  ;;  %v9566_v24 = vunpack.i.h.bf16 %v15104_v51  ;;  %v9565_v45 = vunpack.i.l.bf16 %v15104_v51  ;;  %v15111_v29 = vld [vmem:[#allocation62_spill] sm:$0xff] }
 0x2db   : > { %v1649_v55 = vpack.c.bf16 %v9401_v9, %v9400_v43  ;;  %v9326_v3 = vunpack.i.h.bf16 %v15111_v29  ;;  %v9325_v9 = vunpack.i.l.bf16 %v15111_v29  ;;  %v15112_v43 = vld [vmem:[#allocation77_spill] sm:$0xff] }
 0x2dc   : > { %v1654_v33 = vpack.c.bf16 %v9566_v24, %v9565_v45  ;;  %v9451_v51 = vunpack.i.h.bf16 %v15112_v43  ;;  %v9450_v24 = vunpack.i.l.bf16 %v15112_v43  ;;  %v15113_v45 = vld [vmem:[#allocation84_spill] sm:$0xff] }
 0x2de   : > { %v3339_v6 = vsel %vm2070_vm0, %v1654_v33, 0  ;;  %v1267_v50 = vpack.c.bf16 %v9451_v51, %v9450_v24  ;;  %v9626_v24 = vunpack.i.h.bf16 %v11717_v25 }
 0x2df   : > { %8532 = vmatmul.mubr.msk.bf16.gmra.mxu0 %vm2070_vm0, %v1254_v61  ;;  %8540 = vmatpush3.bf16.xpose.msra.mxu1 %v3066_v15  ;;  %v15107_v61 = vld [vmem:[#allocation64_spill] sm:$0xff]  ;;  %v9241_v15 = vunpack.i.h.bf16 %v15108_v12 }
 0x2e0   : > { %8559 = vmatprep.mubr.msk.bf16.mxu0 %vm2070_vm0, %v1259_v13  ;;  %9062 = vmatprep.subr.msk.bf16.mxu1 %vm2070_vm0, %v1639_v21  ;;  %v9361_v13 = vunpack.i.h.bf16 %v15107_v61  ;;  %v9360_v21 = vunpack.i.l.bf16 %v15107_v61  ;;  %v1658_v61 = vpack.c.bf16 %v9696_v38, %v9695_v10  ;;  %v15123_v10 = vld [vmem:[#allocation18_spill] sm:$0xff] }
 0x2e1   : > { %8554 = vmatpush3.bf16.xpose.msra.mxu0 %v3158_v46  ;;  %v15109_v46 = vld [vmem:[#allocation96_spill] sm:$0xff] }
 0x2e2   : > { %9065 = vmatprep.subr.msk.bf16.mxu0 %vm2070_vm0, %v1644_v30  ;;  %v9240_v30 = vunpack.i.l.bf16 %v15108_v12  ;;  %v9531_v16 = vunpack.i.h.bf16 %v15109_v46  ;;  %v9530_v42 = vunpack.i.l.bf16 %v15109_v46  ;;  %v1648_v8 = vpack.c.bf16 %v9361_v13, %v9360_v21  ;;  %v15115_v21 = vld [vmem:[#allocation63_spill] sm:$0xff] }
 0x2e3   : > { %v9346_v12 = vunpack.i.h.bf16 %v15115_v21 }
 0x2e7   : > { %8542 = vmatpush3.bf16.xpose.msra.mxu1 %v3063_v63  ;;  %v1261_v63 = vpack.c.bf16 %v9241_v15, %v9240_v30  ;;  %v9345_v15 = vunpack.i.l.bf16 %v15115_v21  ;;  %v1651_v30 = vpack.c.bf16 %v9461_v26, %v9460_v18  ;;  %v15124_v26 = vld [vmem:[#allocation97_spill] sm:$0xff]  ;;  %v9590_v21 = vunpack.i.l.bf16 %v11690_v5 }
 0x2e8   : > { %9067 = vmatprep.subr.msk.bf16.mxu1 %vm2070_vm0, %v1650_v54  ;;  %v3247_v54 = vsel %vm2070_vm0, %v1649_v55, 0  ;;  %v9551_v18 = vunpack.i.h.bf16 %v15124_v26 }
 0x2e9   : > { %8556 = vmatpush3.bf16.xpose.msra.mxu0 %v3155_v59  ;;  %v9276_v59 = vunpack.i.h.bf16 %v15110_v40 }
 0x2ea   : > { %9066 = vmatprep.subr.msk.bf16.mxu0 %vm2070_vm0, %v1643_v58  ;;  %v1653_v58 = vpack.c.bf16 %v9531_v16, %v9530_v42  ;;  %v15116_v16 = vld [vmem:[#allocation68_spill] sm:$0xff] }
 0x2eb   : > { %v9386_v42 = vunpack.i.h.bf16 %v15116_v16 }
 0x2ec   : > { %v3336_v17 = vsel %vm2070_vm0, %v1653_v58, 0 }
 0x2ee   : > { %8544 = vmatmul.mubr.msk.bf16.vlgmr.msra.gmra.mxu1 %vm2070_vm0, %v1256_v60  ;;  %v9491_v60 = vunpack.i.h.bf16 %v15113_v45 }
 0x2ef   : > { %8547 = vmatprep.mubr.msk.bf16.mxu1 %vm2070_vm0, %v1257_v20  ;;  %8568 = vmatpush3.bf16.xpose.msra.mxu1 %v3250_v1  ;;  %v9490_v20 = vunpack.i.l.bf16 %v15113_v45  ;;  %v1647_v1 = vpack.c.bf16 %v9326_v3, %v9325_v9  ;;  %v15119_v9 = vld [vmem:[#allocation85_spill] sm:$0xff]  ;;  %v9625_v45 = vunpack.i.l.bf16 %v11717_v25  ;;  %v15122_v25 = vld [vmem:[#allocation16_spill] sm:$0xff] }
 0x2f0   : > { %9068 = vmatprep.subr.msk.bf16.mxu1 %vm2070_vm0, %v1649_v55  ;;  %v1262_v55 = vpack.c.bf16 %v9276_v59, %v9275_v0  ;;  %v3330_v0 = vsel %vm2070_vm0, %v1651_v30, 0  ;;  %v9481_v43 = vunpack.i.h.bf16 %v15119_v9  ;;  %v9480_v51 = vunpack.i.l.bf16 %v15119_v9 }
 0x2f1   : > { %8558 = vmatpush3.bf16.xpose.msra.mxu0 %v3152_v31  ;;  %v1652_v31 = vpack.c.bf16 %v9491_v60, %v9490_v20  ;;  %v3241_v13 = vsel %vm2070_vm0, %v1647_v1, 0  ;;  %v15120_v60 = vld [vmem:[#allocation19_spill] sm:$0xff]  ;;  %v15121_v20 = vld [vmem:[#allocation90_spill] sm:$0xff]  ;;  %v1981_v27 = vpack.c.bf16 %v15123_v10, %v15122_v25 }
 0x2f2   : > { %9071 = vmatprep.subr.msk.bf16.mxu0 %vm2070_vm0, %v1654_v33  ;;  %v3244_v33 = vsel %vm2070_vm0, %v1648_v8, 0  ;;  %v1268_v39 = vpack.c.bf16 %v9481_v43, %v9480_v51  ;;  %v15131_v43 = vld [vmem:[#allocation113_spill] sm:$0xff] }
 0x2f3   : > { %v3333_v46 = vsel %vm2070_vm0, %v1652_v31, 0  ;;  %v9646_v51 = vunpack.i.h.bf16 %v15131_v43 }
 0x2f6   : > { %8548 = vmatmul.mubr.msk.bf16.gmra.mxu1 %vm2070_vm0, %v1258_v53  ;;  %v9385_v53 = vunpack.i.l.bf16 %v15116_v16  ;;  %v15126_v16 = vld [vmem:[#allocation12_spill] sm:$0xff] }
 0x2f7   : > { %8570 = vmatpush3.bf16.xpose.msra.mxu1 %v3247_v54  ;;  %8575 = vmatprep.mubr.msk.bf16.mxu1 %vm2070_vm0, %v1263_v19  ;;  %v9661_v19 = vunpack.i.h.bf16 %v11761_v37 }
 0x2f8   : > { %8560 = vmatmul.mubr.msk.bf16.vlgmr.msra.gmra.mxu0 %vm2070_vm0, %v1260_v23  ;;  %9069 = vmatprep.subr.msk.bf16.mxu1 %vm2070_vm0, %v1648_v8  ;;  %v9660_v23 = vunpack.i.l.bf16 %v11761_v37  ;;  %v1264_v8 = vpack.c.bf16 %v9346_v12, %v9345_v15  ;;  %v1265_v54 = vpack.c.bf16 %v9386_v42, %v9385_v53  ;;  %v15118_v37 = vld [vmem:[#allocation101_spill] sm:$0xff]  ;;  %v15127_v42 = vld [vmem:[#allocation14_spill] sm:$0xff] }
 0x2f9   : > { %8563 = vmatprep.mubr.msk.bf16.mxu0 %vm2070_vm0, %v1261_v63  ;;  %8584 = vmatpush3.bf16.xpose.msra.mxu0 %v3339_v6  ;;  %v15117_v6 = vld [vmem:[#allocation74_spill] sm:$0xff]  ;;  %v9576_v29 = vunpack.i.h.bf16 %v15118_v37  ;;  %v9575_v3 = vunpack.i.l.bf16 %v15118_v37  ;;  %v1979_v53 = vpack.c.bf16 %v15127_v42, %v15126_v16 }
 0x2fa   : > { %9072 = vmatprep.subr.msk.bf16.mxu0 %vm2070_vm0, %v1653_v58  ;;  %v1657_v63 = vpack.c.bf16 %v9661_v19, %v9660_v23  ;;  %v3428_v58 = vsel %vm2070_vm0, %v1658_v61, 0  ;;  %v9421_v40 = vunpack.i.h.bf16 %v15117_v6  ;;  %v9420_v59 = vunpack.i.l.bf16 %v15117_v6  ;;  %v12107_v23 = vpop.xlane.xlu0 %3759 }
 0x2ff   : > { %8572 = vmatpush3.bf16.xpose.msra.mxu1 %v3244_v33  ;;  %v1266_v33 = vpack.c.bf16 %v9421_v40, %v9420_v59 }
 0x300   : > { %8564 = vmatmul.mubr.msk.bf16.gmra.mxu0 %vm2070_vm0, %v1262_v55  ;;  %9070 = vmatprep.subr.msk.bf16.mxu1 %vm2070_vm0, %v1647_v1  ;;  %v9516_v55 = vunpack.i.h.bf16 %v15121_v20  ;;  %v9515_v1 = vunpack.i.l.bf16 %v15121_v20 }
 0x301   : > { %8586 = vmatpush3.bf16.xpose.msra.mxu0 %v3336_v17  ;;  %8591 = vmatprep.mubr.msk.bf16.mxu0 %vm2070_vm0, %v1267_v50  ;;  %v1271_v50 = vpack.c.bf16 %v9576_v29, %v9575_v3  ;;  %v3425_v17 = vsel %vm2070_vm0, %v1657_v63, 0  ;;  %v15130_v3 = vld [vmem:[#allocation28_spill] sm:$0xff] }
 0x302   : > { %9073 = vmatprep.subr.msk.bf16.mxu0 %vm2070_vm0, %v1652_v31  ;;  %v1656_v31 = vpack.c.bf16 %v9626_v24, %v9625_v45  ;;  %v1269_v38 = vpack.c.bf16 %v9516_v55, %v9515_v1  ;;  %v9645_v24 = vunpack.i.l.bf16 %v15131_v43  ;;  %v12123_v1 = vpop.xlane.xlu0 %3753 }
 0x307   : > { %8574 = vmatpush3.bf16.xpose.msra.mxu1 %v3241_v13  ;;  %v9591_v13 = vunpack.i.h.bf16 %v11690_v5 }
 0x308   : > { %9075 = vmatprep.subr.msk.bf16.mxu1 %vm2070_vm0, %v1658_v61  ;;  %v9550_v61 = vunpack.i.l.bf16 %v15124_v26 }
 0x309   : > { %8588 = vmatpush3.bf16.xpose.msra.mxu0 %v3333_v46  ;;  %v1655_v15 = vpack.c.bf16 %v9591_v13, %v9590_v21  ;;  %v3422_v46 = vsel %vm2070_vm0, %v1656_v31, 0  ;;  %v15133_v13 = vld [vmem:[#allocation27_spill] sm:$0xff] }
 0x30a   : > { %9074 = vmatprep.subr.msk.bf16.mxu0 %vm2070_vm0, %v1651_v30  ;;  %v1270_v12 = vpack.c.bf16 %v9551_v18, %v9550_v61  ;;  %v15125_v30 = vld [vmem:[#allocation15_spill] sm:$0xff]  ;;  %v15132_v61 = vld [vmem:[#allocation25_spill] sm:$0xff] }
 0x30b   : > { %v1985_v21 = vpack.c.bf16 %v15133_v13, %v15132_v61  ;;  %v15140_v61 = vld [vmem:[#allocation22_spill] sm:$0xff] }
 0x30e   : > { %8576 = vmatmul.mubr.msk.bf16.vlgmr.msra.gmra.mxu1 %vm2070_vm0, %v1264_v8 }
 0x30f   : > { %8579 = vmatprep.mubr.msk.bf16.mxu1 %vm2070_vm0, %v1265_v54  ;;  %8600 = vmatpush3.bf16.xpose.msra.mxu1 %v3428_v58  ;;  %v15128_v54 = vld [vmem:[#allocation36_spill] sm:$0xff] }
 0x310   : > { %9076 = vmatprep.subr.msk.bf16.mxu1 %vm2070_vm0, %v1657_v63  ;;  %v3419_v63 = vsel %vm2070_vm0, %v1655_v15, 0 }
 0x311   : > { %8590 = vmatpush3.bf16.xpose.msra.mxu0 %v3330_v0  ;;  %v15129_v0 = vld [vmem:[#allocation112_spill] sm:$0xff] }
 0x312   : > { %8615 = vmatprep.subr.bf16.mxu0 %v15120_v60  ;;  %v9611_v37 = vunpack.i.h.bf16 %v15129_v0  ;;  %v9610_v29 = vunpack.i.l.bf16 %v15129_v0  ;;  %v15135_v0 = vld [vmem:[#allocation87_spill] sm:$0xff] }
 0x316   : > { %8580 = vmatmul.mubr.msk.bf16.gmra.mxu1 %vm2070_vm0, %v1266_v33 }
 0x317   : > { %8602 = vmatpush3.bf16.xpose.msra.mxu1 %v3425_v17  ;;  %8607 = vmatprep.mubr.msk.bf16.mxu1 %vm2070_vm0, %v1271_v50 }
 0x318   : > { %8592 = vmatmul.mubr.msk.bf16.vlgmr.msra.gmra.mxu0 %vm2070_vm0, %v1268_v39  ;;  %9077 = vmatprep.subr.msk.bf16.mxu1 %vm2070_vm0, %v1656_v31  ;;  %v1272_v31 = vpack.c.bf16 %v9611_v37, %v9610_v29  ;;  %v4138_v37 = vsub.f32 %v15135_v0, %v12107_v23 }
 0x319   : > { %8595 = vmatprep.mubr.msk.bf16.mxu0 %vm2070_vm0, %v1269_v38  ;;  %8616 = vmatpush3.bf16.msra.mxu0 %v15120_v60  ;;  %v1273_v38 = vpack.c.bf16 %v9646_v51, %v9645_v24 }
 0x31a   : > { %8617 = vmatprep.subr.bf16.mxu0 %v1981_v27 }
 0x31d   : > { %8618 = vmatpush3.bf16.msra.mxu0 %v1981_v27 }
 0x31e   : > { %8619 = vmatprep.subr.bf16.mxu0 %v15125_v30 }
 0x31f   : > { %8604 = vmatpush3.bf16.xpose.msra.mxu1 %v3422_v46  ;;  %v15134_v46 = vld [vmem:[#allocation117_spill] sm:$0xff] }
 0x320   : > { %8596 = vmatmul.mubr.msk.bf16.gmra.mxu0 %vm2070_vm0, %v1270_v12  ;;  %9078 = vmatprep.subr.msk.bf16.mxu1 %vm2070_vm0, %v1655_v15  ;;  %v9681_v16 = vunpack.i.h.bf16 %v15134_v46  ;;  %v9680_v42 = vunpack.i.l.bf16 %v15134_v46 }
 0x321   : > { %8620 = vmatpush3.bf16.msra.mxu0 %v15125_v30 }
 0x322   : > { %8621 = vmatprep.subr.bf16.mxu0 %v1979_v53 }
 0x324   : > { %v8433_v5 = vpop.f32.mrf.mxu0  ;;  %v8449_v19 = vpop.f32.mrf.mxu1 }
 0x325   : > { %8622 = vmatpush3.bf16.msra.mxu0 %v1979_v53  ;;  %v3529_v8 = vmul.f32 0.17677669, %v8433_v5  ;;  %v3757_v53 = vpop.xlane.xlu1 %3756 }
 0x326   : > { %8647 = vmatprep.subr.bf16.mxu0 %v15128_v54  ;;  %v2485_v58 = vpop.f32.mrf.mxu0  ;;  %v12111_v6 = vpop.f32.mrf.mxu1 }
 0x327   : > { %v12114_v40 = vadd.f32 %v3529_v8, %v11543_v34  ;;  %8606 = vmatpush3.bf16.xpose.msra.mxu1 %v3419_v63  ;;  %v3527_v59 = vmul.f32 0.17677669, %v2485_v58  ;;  %v3763_v8 = vpop.xlane.xlu0 %3762 }
 0x328   : > { %8631 = vmatprep.subr.bf16.mxu1 %v15130_v3  ;;  %v8434_v9 = vpop.f32.mrf.mxu0  ;;  %v8450_v60 = vpop.f32.mrf.mxu1 }
 0x329   : > { %v3530_v45 = vmul.f32 0.17677669, %v8434_v9  ;;  %v3854_v55 = vsel %vm3751_vm3, %v12114_v40, -inf  ;;  %v12126_v33 = vadd.f32 %v3527_v59, %v11554_v52  ;;  %v3537_v9 = vmul.f32 0.17677669, %v8449_v19 }
 0x32a   : > { %v2488_v20 = vpop.f32.mrf.mxu0  ;;  %3855 = vmax.xlane.f32.xlu1 %v3854_v55  ;;  %v2577_v26 = vpop.f32.mrf.mxu1  ;;  %v15137_v55 = vld [vmem:[#allocation91_spill] sm:$0xff] }
 0x32b   : > { %v12129_v50 = vadd.f32 %v3530_v45, %v11571_v14  ;;  %v3528_v39 = vmul.f32 0.17677669, %v2488_v20  ;;  %v3848_v30 = vsel %vm3751_vm3, %v12126_v33, -inf  ;;  %v1274_v45 = vpack.c.bf16 %v9681_v16, %v9680_v42  ;;  %v15136_v20 = vld [vmem:[#allocation23_spill] sm:$0xff]  ;;  %v3775_v16 = vpop.xlane.xlu0 %3774 }
 0x32c   : > { %v8437_v17 = vpop.f32.mrf.mxu0  ;;  %v8453_v29 = vpop.f32.mrf.mxu1 }
 0x32d   : > { %v3533_v25 = vmul.f32 0.17677669, %v8437_v17  ;;  %v3857_v10 = vsel %vm3751_vm3, %v12129_v50, -inf  ;;  %v12134_v27 = vadd.f32 %v3528_v39, %v11574_v28  ;;  %v4139_v39 = vsub.f32 %v15137_v55, %v3763_v8  ;;  %v15138_v17 = vld [vmem:[#allocation89_spill] sm:$0xff] }
 0x32e   : > { %8608 = vmatmul.mubr.msk.bf16.vlgmr.msra.gmra.mxu1 %vm2070_vm0, %v1272_v31  ;;  %v2501_v18 = vpop.f32.mrf.mxu0  ;;  %3858 = vmax.xlane.f32.xlu0 %v3857_v10  ;;  %v3538_v31 = vmul.f32 0.17677669, %v8450_v60  ;;  %v2590_v10 = vpop.f32.mrf.mxu1  ;;  %v12173_v60 = vadd.f32 %v3537_v9, %v11543_v34  ;;  %v3536_v8 = vmul.f32 0.17677669, %v2577_v26 }
 0x32f   : > { %v12140_v12 = vadd.f32 %v3533_v25, %v11580_v32  ;;  %8611 = vmatprep.mubr.msk.bf16.mxu1 %vm2070_vm0, %v1273_v38  ;;  %8632 = vmatpush3.bf16.msra.mxu1 %v15130_v3  ;;  %v3531_v15 = vmul.f32 0.17677669, %v2501_v18  ;;  %v3851_v59 = vsel %vm3751_vm3, %v12134_v27, -inf  ;;  %v4136_v38 = vsub.f32 %v15138_v17, %v12123_v1  ;;  %v3772_v25 = vpop.xlane.xlu1 %3771  ;;  %v15139_v18 = vld [vmem:[#allocation20_spill] sm:$0xff] }
 0x330   : > { %8633 = vmatprep.subr.bf16.mxu1 %v1985_v21  ;;  %3849 = vmax.xlane.f32.xlu1 %v3848_v30  ;;  %v8438_v5 = vpop.f32.mrf.mxu0  ;;  %v1983_v13 = vpack.c.bf16 %v15140_v61, %v15139_v18  ;;  %15141 = vst [vmem:[#allocation78_spill] sm:$0xff] %v12173_v60  ;;  %v15142_v1 = vld [vmem:[#allocation92_spill] sm:$0xff]  ;;  %v4270_v42 = vmul.f32 1.442695, %v4139_v39  ;;  %v8454_v0 = vpop.f32.mrf.mxu1  ;;  %v3878_v26 = vsel %vm3751_vm3, %v12173_v60, -inf  ;;  %v12200_v17 = vadd.f32 %v3536_v8, %v11574_v28  ;;  %v15150_v18 = vld [vmem:[#allocation95_spill] sm:$0xff] }
 0x331   : > { %v3534_v63 = vmul.f32 0.17677669, %v8438_v5  ;;  %v3866_v58 = vsel %vm3751_vm3, %v12140_v12, -inf  ;;  %v12155_v43 = vadd.f32 %v3531_v15, %v11607_v44  ;;  %v3535_v15 = vmul.f32 0.17677669, %v12111_v6  ;;  %v15144_v6 = vld [vmem:[#allocation93_spill] sm:$0xff] }
 0x332   : > { %v2504_v3 = vpop.f32.mrf.mxu0  ;;  %3852 = vmax.xlane.f32.xlu0 %v3851_v59  ;;  %v4137_v46 = vsub.f32 %v15142_v1, %v3757_v53  ;;  %v12181_v5 = vadd.f32 %v3538_v31, %v11571_v14  ;;  %v4142_v59 = vsub.f32 %v15144_v6, %v3772_v25  ;;  %v3542_v31 = vmul.f32 0.17677669, %v8454_v0  ;;  %15149 = vst [vmem:[#allocation56_spill] sm:$0xff] %v12200_v17  ;;  %v2593_v25 = vpop.f32.mrf.mxu1  ;;  %v15152_v1 = vld [vmem:[#allocation98_spill] sm:$0xff] }
 0x333   : > { %v12158_v51 = vadd.f32 %v3534_v63, %v11596_v7  ;;  %8634 = vmatpush3.bf16.msra.mxu1 %v1985_v21  ;;  %v3532_v24 = vmul.f32 0.17677669, %v2504_v3  ;;  %v4268_v21 = vmul.f32 1.442695, %v4138_v37  ;;  %v3860_v30 = vsel %vm3751_vm3, %v12155_v43, -inf  ;;  %v15145_v37 = vld [vmem:[#allocation79_spill] sm:$0xff]  ;;  %v3766_v39 = vpop.xlane.xlu1 %3765 }
 0x334   : > { %8635 = vmatprep.subr.bf16.mxu1 %v15136_v20  ;;  %3867 = vmax.xlane.f32.xlu1 %v3866_v58  ;;  %15143 = vst [vmem:[#allocation61_spill] sm:$0xff] %v12181_v5  ;;  %v4264_v58 = vmul.f32 1.442695, %v4136_v38  ;;  %v15146_v3 = vld [vmem:[#allocation83_spill] sm:$0xff]  ;;  %v12191_v53 = vadd.f32 %v3535_v15, %v11554_v52  ;;  %v3769_v38 = vpop.xlane.xlu0 %3768  ;;  %v4140_v61 = vsub.f32 %v15150_v18, %v3766_v39  ;;  %v3875_v8 = vsel %vm3751_vm3, %v12200_v17, -inf }
 0x335   : > { %v3869_v23 = vsel %vm3751_vm3, %v12158_v51, -inf  ;;  %v12165_v19 = vadd.f32 %v3532_v24, %v11616_v62  ;;  %v12188_v9 = vpack.c.bf16 %v15146_v3, %v15145_v37  ;;  %9933 = vpow2.f32 %v4268_v21  ;;  %v15160_v37 = vld [vmem:[#allocation107_spill] sm:$0xff] }
 0x336   : > { %8612 = vmatmul.mubr.msk.bf16.gmra.mxu1 %vm2070_vm0, %v1274_v45  ;;  %3870 = vmax.xlane.f32.xlu0 %v3869_v23  ;;  %v3541_v24 = vmul.f32 0.17677669, %v8453_v29  ;;  %v4266_v45 = vmul.f32 1.442695, %v4137_v46  ;;  %9935 = vpow2.f32 %v4270_v42  ;;  %v3881_v23 = vsel %vm3751_vm3, %v12181_v5, -inf }
 0x337   : > { %8636 = vmatpush3.bf16.msra.mxu1 %v15136_v20  ;;  %v3863_v63 = vsel %vm3751_vm3, %v12165_v19, -inf  ;;  %15147 = vst [vmem:[#allocation67_spill] sm:$0xff] %v12188_v9  ;;  %v15148_v20 = vld [vmem:[#allocation94_spill] sm:$0xff]  ;;  %9937 = vpow2.f32 %v4264_v58  ;;  %v4276_v29 = vmul.f32 1.442695, %v4142_v59  ;;  %v3872_v15 = vsel %vm3751_vm3, %v12191_v53, -inf }
 0x338   : > { %8637 = vmatprep.subr.bf16.mxu1 %v1983_v13  ;;  %3861 = vmax.xlane.f32.xlu1 %v3860_v30  ;;  %v4143_v55 = vsub.f32 %v15148_v20, %v3775_v16  ;;  %v3539_v21 = vmul.f32 0.17677669, %v2590_v10  ;;  %9939 = vpow2.f32 %v4266_v45  ;;  %v4141_v46 = vsub.f32 %v15152_v1, %v3769_v38 }
 0x339   : > { %v12210_v16 = vadd.f32 %v3542_v31, %v11596_v7  ;;  %v3540_v42 = vmul.f32 0.17677669, %v2593_v25  ;;  %9941 = vpow2.f32 %v4276_v29  ;;  %v3787_v29 = vpop.xlane.xlu0 %3786 }
 0x33a   : > { %3864 = vmax.xlane.f32.xlu0 %v3863_v63  ;;  %v4278_v30 = vmul.f32 1.442695, %v4143_v55  ;;  %v4272_v63 = vmul.f32 1.442695, %v4140_v61  ;;  %v12215_v10 = vadd.f32 %v3539_v21, %v11607_v44  ;;  %v4274_v6 = vmul.f32 1.442695, %v4141_v46  ;;  %v3784_v55 = vpop.xlane.xlu1 %3783 }
 0x33b   : > { %8638 = vmatpush3.bf16.msra.mxu1 %v1983_v13  ;;  %v12204_v13 = vadd.f32 %v3541_v24, %v11580_v32  ;;  %15153 = vst [vmem:[#allocation82_spill] sm:$0xff] %v12210_v16  ;;  %v3893_v59 = vsel %vm3751_vm3, %v12210_v16, -inf  ;;  %v12222_v0 = vadd.f32 %v3540_v42, %v11616_v62 }
 0x33c   : > { %8663 = vmatprep.subr.bf16.mxu1 %v12188_v9  ;;  %3879 = vmax.xlane.f32.xlu1 %v3878_v26  ;;  %15154 = vst [vmem:[#allocation88_spill] sm:$0xff] %v12215_v10  ;;  %9943 = vpow2.f32 %v4278_v30  ;;  %v3884_v24 = vsel %vm3751_vm3, %v12215_v10, -inf  ;;  %v15156_v30 = vld [vmem:[#allocation103_spill] sm:$0xff] }
 0x33d   : > { %15151 = vst [vmem:[#allocation72_spill] sm:$0xff] %v12204_v13  ;;  %v3890_v58 = vsel %vm3751_vm3, %v12204_v13, -inf  ;;  %15155 = vst [vmem:[#allocation100_spill] sm:$0xff] %v12222_v0  ;;  %9945 = vpow2.f32 %v4272_v63  ;;  %v3887_v45 = vsel %vm3751_vm3, %v12222_v0, -inf  ;;  %v4146_v1 = vsub.f32 %v15156_v30, %v3784_v55  ;;  %v3781_v46 = vpop.xlane.xlu0 %3780  ;;  %v15158_v55 = vld [vmem:[#allocation105_spill] sm:$0xff] }
 0x33e   : > { %3882 = vmax.xlane.f32.xlu0 %v3881_v23  ;;  %9947 = vpow2.f32 %v4274_v6  ;;  %v3778_v61 = vpop.xlane.xlu1 %3777  ;;  %v4145_v0 = vsub.f32 %v15160_v37, %v3781_v46 }
 0x340   : > { %3873 = vmax.xlane.f32.xlu1 %v3872_v15 }
 0x341   : > { %v3799_v9 = vpop.xlane.xlu0 %3798 }
 0x342   : > { %3876 = vmax.xlane.f32.xlu0 %v3875_v8  ;;  %v12226_v26 = vpop.eup %9933 }
 0x343   : > { %v12230_v20 = vpop.eup %9935  ;;  %v4526_v31 = vsel %vm3751_vm3, %v12226_v26, 0.0 }
 0x344   : > { %3891 = vmax.xlane.f32.xlu1 %v3890_v58  ;;  %v12232_v39 = vpop.eup %9937  ;;  %v4529_v38 = vsel %vm3751_vm3, %v12230_v20, 0.0 }
 0x345   : > { %v12236_v23 = vpop.eup %9939  ;;  %v4520_v25 = vsel %vm3751_vm3, %v12232_v39, 0.0 }
 0x346   : > { %3894 = vmax.xlane.f32.xlu0 %v3893_v59  ;;  %v12242_v18 = vpop.eup %9941  ;;  %v4523_v21 = vsel %vm3751_vm3, %v12236_v23, 0.0  ;;  %v15157_v59 = vld [vmem:[#allocation106_spill] sm:$0xff] }
 0x347   : > { %v4538_v42 = vsel %vm3751_vm3, %v12242_v18, 0.0 }
 0x348   : > { %3885 = vmax.xlane.f32.xlu1 %v3884_v24  ;;  %v4147_v24 = vsub.f32 %v15157_v59, %v3787_v29  ;;  %v15161_v59 = vld [vmem:[#allocation108_spill] sm:$0xff] }
 0x349   : > { %v12246_v15 = vpop.eup %9943 }
 0x34a   : > { %3888 = vmax.xlane.f32.xlu0 %v3887_v45  ;;  %v12251_v8 = vpop.eup %9945  ;;  %v4541_v58 = vsel %vm3751_vm3, %v12246_v15, 0.0  ;;  %v3796_v45 = vpop.xlane.xlu1 %3795 }
 0x34b   : > { %v12255_v6 = vpop.eup %9947  ;;  %v4532_v30 = vsel %vm3751_vm3, %v12251_v8, 0.0 }
 0x34c   : > { %4527 = vadd.xlane.f32.xlu1 %v4526_v31  ;;  %v4535_v29 = vsel %vm3751_vm3, %v12255_v6, 0.0 }
 0x34e   : > { %4530 = vadd.xlane.f32.xlu0 %v4529_v38  ;;  %v4284_v38 = vmul.f32 1.442695, %v4146_v1  ;;  %v3790_v37 = vpop.xlane.xlu1 %3789 }
 0x350   : > { %4521 = vadd.xlane.f32.xlu1 %v4520_v25  ;;  %v4144_v25 = vsub.f32 %v15158_v55, %v3778_v61  ;;  %9949 = vpow2.f32 %v4284_v38 }
 0x352   : > { %4524 = vadd.xlane.f32.xlu0 %v4523_v21 }
 0x354   : > { %4539 = vadd.xlane.f32.xlu1 %v4538_v42 }
 0x355   : > { %v8465_v63 = vpop.f32.mrf.mxu0 }
 0x356   : > { %v3545_v31 = vmul.f32 0.17677669, %v8465_v63  ;;  %4542 = vadd.xlane.f32.xlu0 %v4541_v58  ;;  %v4286_v63 = vmul.f32 1.442695, %v4147_v24  ;;  %v4280_v58 = vmul.f32 1.442695, %v4144_v25 }
 0x357   : > { %v2663_v21 = vpop.f32.mrf.mxu0  ;;  %v4282_v24 = vmul.f32 1.442695, %v4145_v0  ;;  %v15166_v25 = vld [vmem:[#allocation109_spill] sm:$0xff] }
 0x358   : > { %v12262_v42 = vadd.f32 %v3545_v31, %v11543_v34  ;;  %v3543_v3 = vmul.f32 0.17677669, %v2663_v21  ;;  %4533 = vadd.xlane.f32.xlu1 %v4532_v30  ;;  %v4150_v31 = vsub.f32 %v15161_v59, %v3796_v45  ;;  %9951 = vpow2.f32 %v4286_v63 }
 0x359   : > { %v8466_v16 = vpop.f32.mrf.mxu0  ;;  %9953 = vpow2.f32 %v4280_v58  ;;  %v4148_v59 = vsub.f32 %v15166_v25, %v3790_v37 }
 0x35a   : > { %15159 = vst [vmem:[#allocation52_spill] sm:$0xff] %v12262_v42  ;;  %v3546_v1 = vmul.f32 0.17677669, %v8466_v16  ;;  %v3902_v61 = vsel %vm3751_vm3, %v12262_v42, -inf  ;;  %4536 = vadd.xlane.f32.xlu0 %v4535_v29  ;;  %v12271_v55 = vadd.f32 %v3543_v3, %v11554_v52  ;;  %v15164_v16 = vld [vmem:[#allocation110_spill] sm:$0xff]  ;;  %9955 = vpow2.f32 %v4282_v24 }
 0x35b   : > { %v2666_v21 = vpop.f32.mrf.mxu0  ;;  %v4151_v10 = vsub.f32 %v15164_v16, %v3799_v9  ;;  %v4292_v3 = vmul.f32 1.442695, %v4150_v31  ;;  %v4288_v16 = vmul.f32 1.442695, %v4148_v59 }
 0x35c   : > { %15162 = vst [vmem:[#allocation99_spill] sm:$0xff] %v12271_v55  ;;  %v12274_v46 = vadd.f32 %v3546_v1, %v11571_v14  ;;  %v3544_v30 = vmul.f32 0.17677669, %v2666_v21  ;;  %3903 = vmax.xlane.f32.xlu1 %v3902_v61  ;;  %v3793_v1 = vpop.xlane.xlu0 %3792  ;;  %v3896_v0 = vsel %vm3751_vm3, %v12271_v55, -inf  ;;  %v15168_v21 = vld [vmem:[#allocation111_spill] sm:$0xff] }
 0x35d   : > { %v8469_v13 = vpop.f32.mrf.mxu0  ;;  %v4294_v63 = vmul.f32 1.442695, %v4151_v10  ;;  %9957 = vpow2.f32 %v4292_v3  ;;  %v12306_v59 = vpop.eup %9949 }
 0x35e   : > { %15163 = vst [vmem:[#allocation43_spill] sm:$0xff] %v12274_v46  ;;  %v3549_v29 = vmul.f32 0.17677669, %v8469_v13  ;;  %v3905_v38 = vsel %vm3751_vm3, %v12274_v46, -inf  ;;  %v12280_v45 = vadd.f32 %v3544_v30, %v11574_v28  ;;  %v4149_v30 = vsub.f32 %v15168_v21, %v3793_v1  ;;  %15172 = vst [vmem:[#allocation102_spill] sm:$0xff] %v12306_v59 }
 0x35f   : > { %v2679_v42 = vpop.f32.mrf.mxu0  ;;  %3906 = vmax.xlane.f32.xlu0 %v3905_v38  ;;  %9959 = vpow2.f32 %v4294_v63  ;;  %v4550_v63 = vsel %vm3751_vm3, %v12306_v59, 0.0 }
 0x360   : > { %15165 = vst [vmem:[#allocation104_spill] sm:$0xff] %v12280_v45  ;;  %v12286_v9 = vadd.f32 %v3549_v29, %v11580_v32  ;;  %v3547_v13 = vmul.f32 0.17677669, %v2679_v42  ;;  %3897 = vmax.xlane.f32.xlu1 %v3896_v0  ;;  %v3899_v37 = vsel %vm3751_vm3, %v12280_v45, -inf  ;;  %v4290_v24 = vmul.f32 1.442695, %v4149_v30 }
 0x361   : > { %v8470_v61 = vpop.f32.mrf.mxu0  ;;  %9961 = vpow2.f32 %v4288_v16 }
 0x362   : > { %15167 = vst [vmem:[#allocation48_spill] sm:$0xff] %v12286_v9  ;;  %v3550_v58 = vmul.f32 0.17677669, %v8470_v61  ;;  %v3914_v31 = vsel %vm3751_vm3, %v12286_v9, -inf  ;;  %v12294_v38 = vadd.f32 %v3547_v13, %v11607_v44  ;;  %9963 = vpow2.f32 %v4290_v24 }
 0x363   : > { %v2682_v29 = vpop.f32.mrf.mxu0  ;;  %3900 = vmax.xlane.f32.xlu0 %v3899_v37 }
 0x364   : > { %15169 = vst [vmem:[#allocation71_spill] sm:$0xff] %v12294_v38  ;;  %v12297_v42 = vadd.f32 %v3550_v58, %v11596_v7  ;;  %v3548_v10 = vmul.f32 0.17677669, %v2682_v29  ;;  %3915 = vmax.xlane.f32.xlu1 %v3914_v31  ;;  %v3908_v3 = vsel %vm3751_vm3, %v12294_v38, -inf }
 0x365   : > { %v12310_v13 = vpop.eup %9951 }
 0x366   : > { %15170 = vst [vmem:[#allocation46_spill] sm:$0xff] %v12297_v42  ;;  %v3917_v25 = vsel %vm3751_vm3, %v12297_v42, -inf  ;;  %v12302_v1 = vadd.f32 %v3548_v10, %v11616_v62  ;;  %15173 = vst [vmem:[#allocation60_spill] sm:$0xff] %v12310_v13  ;;  %v12314_v61 = vpop.eup %9953  ;;  %v4553_v58 = vsel %vm3751_vm3, %v12310_v13, 0.0 }
 0x367   : > { %3918 = vmax.xlane.f32.xlu0 %v3917_v25  ;;  %15174 = vst [vmem:[#allocation44_spill] sm:$0xff] %v12314_v61  ;;  %v12316_v21 = vpop.eup %9955  ;;  %v4544_v31 = vsel %vm3751_vm3, %v12314_v61, 0.0 }
 0x368   : > { %15171 = vst [vmem:[#allocation69_spill] sm:$0xff] %v12302_v1  ;;  %3909 = vmax.xlane.f32.xlu1 %v3908_v3  ;;  %v3911_v0 = vsel %vm3751_vm3, %v12302_v1, -inf  ;;  %15175 = vst [vmem:[#allocation64_spill] sm:$0xff] %v12316_v21  ;;  %v4547_v29 = vsel %vm3751_vm3, %v12316_v21, 0.0 }
 0x36a   : > { %v12322_v37 = vpop.eup %9957 }
 0x36b   : > { %3912 = vmax.xlane.f32.xlu0 %v3911_v0  ;;  %15176 = vst [vmem:[#allocation50_spill] sm:$0xff] %v12322_v37  ;;  %v4562_v3 = vsel %vm3751_vm3, %v12322_v37, 0.0 }
 0x36c   : > { %4551 = vadd.xlane.f32.xlu1 %v4550_v63  ;;  %v12326_v10 = vpop.eup %9959 }
 0x36d   : > { %15177 = vst [vmem:[#allocation96_spill] sm:$0xff] %v12326_v10 }
 0x36e   : > { %v8481_v30 = vpop.f32.mrf.mxu1  ;;  %v12330_v0 = vpop.eup %9961 }
 0x36f   : > { %4554 = vadd.xlane.f32.xlu0 %v4553_v58  ;;  %v3553_v24 = vmul.f32 0.17677669, %v8481_v30  ;;  %15178 = vst [vmem:[#allocation54_spill] sm:$0xff] %v12330_v0  ;;  %v12334_v1 = vpop.eup %9963  ;;  %v4556_v42 = vsel %vm3751_vm3, %v12330_v0, 0.0 }
 0x370   : > { %4545 = vadd.xlane.f32.xlu1 %v4544_v31  ;;  %v2752_v16 = vpop.f32.mrf.mxu1  ;;  %v4565_v31 = vsel %vm3751_vm3, %v12326_v10, 0.0  ;;  %15179 = vst [vmem:[#allocation62_spill] sm:$0xff] %v12334_v1  ;;  %v4559_v46 = vsel %vm3751_vm3, %v12334_v1, 0.0 }
 0x371   : > { %v12337_v38 = vadd.f32 %v3553_v24, %v11543_v34  ;;  %v3551_v37 = vmul.f32 0.17677669, %v2752_v16 }
 0x372   : > { %v8482_v25 = vpop.f32.mrf.mxu1 }
 0x373   : > { %4548 = vadd.xlane.f32.xlu0 %v4547_v29  ;;  %v3554_v58 = vmul.f32 0.17677669, %v8482_v25  ;;  %15180 = vst [vmem:[#allocation77_spill] sm:$0xff] %v12337_v38  ;;  %v12357_v16 = vadd.f32 %v3551_v37, %v11554_v52 }
 0x374   : > { %4563 = vadd.xlane.f32.xlu1 %v4562_v3  ;;  %v2755_v45 = vpop.f32.mrf.mxu1  ;;  %v3808_v3 = vpop.xlane.xlu1 %3807 }
 0x375   : > { %v8497_v63 = vpop.f32.mrf.mxu0  ;;  %v12342_v25 = vadd.f32 %v3554_v58, %v11571_v14  ;;  %v3552_v0 = vmul.f32 0.17677669, %v2755_v45  ;;  %15184 = vst [vmem:[#allocation68_spill] sm:$0xff] %v12357_v16 }
 0x376   : > { %v3561_v30 = vmul.f32 0.17677669, %v8497_v63  ;;  %v8485_v24 = vpop.f32.mrf.mxu1 }
 0x377   : > { %v2841_v55 = vpop.f32.mrf.mxu0  ;;  %4566 = vadd.xlane.f32.xlu0 %v4565_v31  ;;  %15181 = vst [vmem:[#allocation84_spill] sm:$0xff] %v12342_v25  ;;  %v3926_v31 = vsel %vm3751_vm3, %v12337_v38, -inf  ;;  %v12364_v21 = vadd.f32 %v3552_v0, %v11574_v28  ;;  %v3557_v61 = vmul.f32 0.17677669, %v8485_v24 }
 0x378   : > { %4557 = vadd.xlane.f32.xlu1 %v4556_v42  ;;  %v12347_v10 = vadd.f32 %v3561_v30, %v11543_v34  ;;  %v3811_v42 = vpop.xlane.xlu0 %3810  ;;  %v3559_v1 = vmul.f32 0.17677669, %v2841_v55  ;;  %v2768_v30 = vpop.f32.mrf.mxu1 }
 0x379   : > { %v8498_v29 = vpop.f32.mrf.mxu0  ;;  %v3802_v38 = vpop.xlane.xlu1 %3801  ;;  %15185 = vst [vmem:[#allocation74_spill] sm:$0xff] %v12364_v21  ;;  %v12380_v24 = vadd.f32 %v3557_v61, %v11580_v32  ;;  %v3555_v61 = vmul.f32 0.17677669, %v2768_v30 }
 0x37a   : > { %v3562_v9 = vmul.f32 0.17677669, %v8498_v29  ;;  %15182 = vst [vmem:[#allocation80_spill] sm:$0xff] %v12347_v10  ;;  %v3929_v29 = vsel %vm3751_vm3, %v12342_v25, -inf  ;;  %v15186_v25 = vld [vmem:[#allocation114_spill] sm:$0xff]  ;;  %v12368_v55 = vadd.f32 %v3559_v1, %v11554_v52  ;;  %v8486_v13 = vpop.f32.mrf.mxu1 }
 0x37b   : > { %v2844_v63 = vpop.f32.mrf.mxu0  ;;  %4560 = vadd.xlane.f32.xlu0 %v4559_v46  ;;  %v3950_v46 = vsel %vm3751_vm3, %v12347_v10, -inf  ;;  %v4154_v37 = vsub.f32 %v15186_v25, %v3808_v3  ;;  %v15189_v10 = vld [vmem:[#allocation115_spill] sm:$0xff]  ;;  %v3558_v0 = vmul.f32 0.17677669, %v8486_v13  ;;  %v3923_v3 = vsel %vm3751_vm3, %v12364_v21, -inf  ;;  %15190 = vst [vmem:[#allocation85_spill] sm:$0xff] %v12380_v24 }
 0x37c   : > { %3927 = vmax.xlane.f32.xlu1 %v3926_v31  ;;  %v12352_v58 = vadd.f32 %v3562_v9, %v11571_v14  ;;  %v3805_v31 = vpop.xlane.xlu0 %3804  ;;  %v3560_v45 = vmul.f32 0.17677669, %v2844_v63  ;;  %15187 = vst [vmem:[#allocation101_spill] sm:$0xff] %v12368_v55  ;;  %v15191_v13 = vld [vmem:[#allocation118_spill] sm:$0xff]  ;;  %v2771_v21 = vpop.f32.mrf.mxu1 }
 0x37d   : > { %v8501_v59 = vpop.f32.mrf.mxu0  ;;  %v3820_v17 = vpop.xlane.xlu1 %3819  ;;  %v4300_v1 = vmul.f32 1.442695, %v4154_v37 }
 0x37e   : > { %15183 = vst [vmem:[#allocation63_spill] sm:$0xff] %v12352_v58  ;;  %v3953_v9 = vsel %vm3751_vm3, %v12352_v58, -inf  ;;  %v4152_v58 = vsub.f32 %v15189_v10, %v3802_v38  ;;  %v12377_v25 = vadd.f32 %v3560_v45, %v11574_v28  ;;  %v3565_v60 = vmul.f32 0.17677669, %v8501_v59 }
 0x37f   : > { %3930 = vmax.xlane.f32.xlu0 %v3929_v29  ;;  %v2857_v5 = vpop.f32.mrf.mxu0  ;;  %v3920_v29 = vsel %vm3751_vm3, %v12357_v16, -inf  ;;  %v4153_v10 = vsub.f32 %v15191_v13, %v3805_v31  ;;  %v12387_v45 = vadd.f32 %v3558_v0, %v11596_v7  ;;  %9965 = vpow2.f32 %v4300_v1 }
 0x380   : > { %3951 = vmax.xlane.f32.xlu1 %v3950_v46  ;;  %v15188_v46 = vld [vmem:[#allocation116_spill] sm:$0xff]  ;;  %v4296_v38 = vmul.f32 1.442695, %v4152_v58  ;;  %v3947_v59 = vsel %vm3751_vm3, %v12377_v25, -inf  ;;  %v3938_v58 = vsel %vm3751_vm3, %v12380_v24, -inf }
 0x381   : > { %v4155_v63 = vsub.f32 %v15188_v46, %v3811_v42  ;;  %v8502_v16 = vpop.f32.mrf.mxu0  ;;  %v3944_v42 = vsel %vm3751_vm3, %v12368_v55, -inf  ;;  %v4158_v46 = vsub.f32 %v11791_v48, %v3820_v17  ;;  %15192 = vst [vmem:[#allocation19_spill] sm:$0xff] %v12387_v45  ;;  %v3814_v31 = vpop.xlane.xlu1 %3813  ;;  %v4298_v48 = vmul.f32 1.442695, %v4153_v10 }
 0x382   : > { %v3566_v37 = vmul.f32 0.17677669, %v8502_v16  ;;  %v4156_v30 = vsub.f32 %v11797_v56, %v3814_v31 }
 0x383   : > { %3954 = vmax.xlane.f32.xlu0 %v3953_v9  ;;  %v4302_v9 = vmul.f32 1.442695, %v4155_v63  ;;  %v4308_v16 = vmul.f32 1.442695, %v4158_v46  ;;  %v3556_v63 = vmul.f32 0.17677669, %v2771_v21  ;;  %v2860_v13 = vpop.f32.mrf.mxu0 }
 0x384   : > { %3921 = vmax.xlane.f32.xlu1 %v3920_v29  ;;  %v3823_v29 = vpop.xlane.xlu0 %3822  ;;  %v12398_v0 = vadd.f32 %v3566_v37, %v11596_v7  ;;  %v3564_v10 = vmul.f32 0.17677669, %v2860_v13  ;;  %v4304_v46 = vmul.f32 1.442695, %v4156_v30 }
 0x385   : > { %9967 = vpow2.f32 %v4302_v9  ;;  %v4159_v17 = vsub.f32 %v11805_v35, %v3823_v29  ;;  %v3563_v9 = vmul.f32 0.17677669, %v2857_v5  ;;  %v12412_v56 = vadd.f32 %v3556_v63, %v11616_v62 }
 0x386   : > { %9969 = vpow2.f32 %v4296_v38  ;;  %15194 = vst [vmem:[#allocation16_spill] sm:$0xff] %v12398_v0  ;;  %v3965_v29 = vsel %vm3751_vm3, %v12398_v0, -inf }
 0x387   : > { %3924 = vmax.xlane.f32.xlu0 %v3923_v3  ;;  %v12392_v3 = vadd.f32 %v3565_v60, %v11580_v32  ;;  %v3941_v60 = vsel %vm3751_vm3, %v12387_v45, -inf  ;;  %9971 = vpow2.f32 %v4298_v48  ;;  %v4310_v35 = vmul.f32 1.442695, %v4159_v17  ;;  %15196 = vst [vmem:[#allocation97_spill] sm:$0xff] %v12412_v56 }
 0x388   : > { %3945 = vmax.xlane.f32.xlu1 %v3944_v42  ;;  %v3817_v1 = vpop.xlane.xlu0 %3816  ;;  %v12404_v42 = vadd.f32 %v3555_v61, %v11607_v44  ;;  %9973 = vpow2.f32 %v4308_v16  ;;  %v12415_v5 = vadd.f32 %v3563_v9, %v11607_v44  ;;  %v12422_v61 = vadd.f32 %v3564_v10, %v11616_v62 }
 0x389   : > { %15193 = vst [vmem:[#allocation90_spill] sm:$0xff] %v12392_v3  ;;  %v3962_v38 = vsel %vm3751_vm3, %v12392_v3, -inf  ;;  %v4157_v21 = vsub.f32 %v11817_v36, %v3817_v1  ;;  %9975 = vpow2.f32 %v4310_v35  ;;  %v3935_v36 = vsel %vm3751_vm3, %v12412_v56, -inf  ;;  %v12438_v1 = vpop.xlane.xlu1 %3831 }
 0x38a   : > { %15195 = vst [vmem:[#allocation18_spill] sm:$0xff] %v12404_v42  ;;  %15197 = vst [vmem:[#allocation15_spill] sm:$0xff] %v12415_v5  ;;  %v3932_v37 = vsel %vm3751_vm3, %v12404_v42, -inf  ;;  %9977 = vpow2.f32 %v4304_v46  ;;  %v3959_v16 = vsel %vm3751_vm3, %v12422_v61, -inf }
 0x38b   : > { %3948 = vmax.xlane.f32.xlu0 %v3947_v59  ;;  %v4306_v59 = vmul.f32 1.442695, %v4157_v21  ;;  %15198 = vst [vmem:[#allocation12_spill] sm:$0xff] %v12422_v61 }
 0x38c   : > { %3939 = vmax.xlane.f32.xlu1 %v3938_v58  ;;  %v3956_v58 = vsel %vm3751_vm3, %v12415_v5, -inf  ;;  %v12426_v31 = vpop.eup %9965  ;;  %v12446_v10 = vpop.xlane.xlu0 %3834 }
 0x38d   : > { %15199 = vst [vmem:[#allocation14_spill] sm:$0xff] %v12426_v31  ;;  %9979 = vpow2.f32 %v4306_v59 }
 0x38e   : > { %v8513_v63 = vpop.f32.mrf.mxu1 }
 0x38f   : > { %3942 = vmax.xlane.f32.xlu0 %v3941_v60  ;;  %v4574_v60 = vsel %vm3751_vm3, %v12426_v31, 0.0 }
 0x390   : > { %3963 = vmax.xlane.f32.xlu1 %v3962_v38  ;;  %v2930_v13 = vpop.f32.mrf.mxu1 }
 0x392   : > { %v12428_v48 = vpop.eup %9967  ;;  %v8514_v59 = vpop.f32.mrf.mxu1 }
 0x393   : > { %3966 = vmax.xlane.f32.xlu0 %v3965_v29  ;;  %v12430_v17 = vpop.eup %9969  ;;  %v4577_v9 = vsel %vm3751_vm3, %v12428_v48, 0.0 }
 0x394   : > { %3933 = vmax.xlane.f32.xlu1 %v3932_v37  ;;  %v12436_v30 = vpop.eup %9971  ;;  %v4568_v35 = vsel %vm3751_vm3, %v12430_v17, 0.0  ;;  %v3569_v37 = vmul.f32 0.17677669, %v8513_v63  ;;  %v2933_v56 = vpop.f32.mrf.mxu1 }
 0x395   : > { %v12444_v21 = vpop.eup %9973  ;;  %v4571_v29 = vsel %vm3751_vm3, %v12436_v30, 0.0 }
 0x396   : > { %15200 = vst [vmem:[#allocation36_spill] sm:$0xff] %v12444_v21  ;;  %v12450_v46 = vpop.eup %9975  ;;  %v12465_v63 = vadd.f32 %v3569_v37, %v11543_v34  ;;  %v8517_v37 = vpop.f32.mrf.mxu1 }
 0x397   : > { %3936 = vmax.xlane.f32.xlu0 %v3935_v36  ;;  %v8529_v38 = vpop.f32.mrf.mxu0  ;;  %15201 = vst [vmem:[#allocation112_spill] sm:$0xff] %v12450_v46  ;;  %v4589_v3 = vsel %vm3751_vm3, %v12450_v46, 0.0 }
 0x398   : > { %3957 = vmax.xlane.f32.xlu1 %v3956_v58  ;;  %v4586_v58 = vsel %vm3751_vm3, %v12444_v21, 0.0  ;;  %15204 = vst [vmem:[#allocation25_spill] sm:$0xff] %v12465_v63  ;;  %v3577_v5 = vmul.f32 0.17677669, %v8529_v38  ;;  %v3567_v21 = vmul.f32 0.17677669, %v2930_v13 }
 0x399   : > { %v3019_v36 = vpop.f32.mrf.mxu0 }
 0x39a   : > { %v12477_v61 = vadd.f32 %v3577_v5, %v11543_v34  ;;  %v12489_v13 = vadd.f32 %v3567_v21, %v11554_v52  ;;  %v3575_v5 = vmul.f32 0.17677669, %v3019_v36  ;;  %v4162_v21 = vsub.f32 %v11848_v22, %v12438_v1 }
 0x39b   : > { %3960 = vmax.xlane.f32.xlu0 %v3959_v16  ;;  %v12454_v16 = vpop.eup %9977  ;;  %v8530_v55 = vpop.f32.mrf.mxu0  ;;  %v3573_v36 = vmul.f32 0.17677669, %v8517_v37 }
 0x39c   : > { %4575 = vadd.xlane.f32.xlu1 %v4574_v60  ;;  %15202 = vst [vmem:[#allocation28_spill] sm:$0xff] %v12454_v16  ;;  %v12456_v60 = vpop.xlane.xlu1 %3825  ;;  %v12462_v45 = vpop.eup %9979  ;;  %v3578_v0 = vmul.f32 0.17677669, %v8530_v55  ;;  %15206 = vst [vmem:[#allocation117_spill] sm:$0xff] %v12477_v61  ;;  %v12505_v42 = vadd.f32 %v3575_v5, %v11554_v52  ;;  %v4316_v5 = vmul.f32 1.442695, %v4162_v21 }
 0x39d   : > { %15203 = vst [vmem:[#allocation113_spill] sm:$0xff] %v12462_v45  ;;  %v4583_v24 = vsel %vm3751_vm3, %v12462_v45, 0.0  ;;  %v3022_v38 = vpop.f32.mrf.mxu0  ;;  %15208 = vst [vmem:[#allocation23_spill] sm:$0xff] %v12489_v13  ;;  %v2946_v45 = vpop.f32.mrf.mxu1 }
 0x39e   : > { %15210 = vst [vmem:[#allocation89_spill] sm:$0xff] %v12505_v42  ;;  %v3992_v31 = vsel %vm3751_vm3, %v12505_v42, -inf  ;;  %9981 = vpow2.f32 %v4316_v5 }
 0x39f   : > { %4578 = vadd.xlane.f32.xlu0 %v4577_v9  ;;  %v12458_v9 = vpop.xlane.xlu0 %3828  ;;  %v8533_v46 = vpop.f32.mrf.mxu0 }
 0x3a0   : > { %4569 = vadd.xlane.f32.xlu1 %v4568_v35  ;;  %v3570_v35 = vmul.f32 0.17677669, %v8514_v59 }
 0x3a2   : > { %v12472_v59 = vadd.f32 %v3570_v35, %v11571_v14  ;;  %v12484_v35 = vadd.f32 %v3578_v0, %v11571_v14  ;;  %v3576_v0 = vmul.f32 0.17677669, %v3022_v38 }
 0x3a3   : > { %4572 = vadd.xlane.f32.xlu0 %v4571_v29  ;;  %v4580_v29 = vsel %vm3751_vm3, %v12454_v16, 0.0  ;;  %v3568_v16 = vmul.f32 0.17677669, %v2933_v56 }
 0x3a4   : > { %4587 = vadd.xlane.f32.xlu1 %v4586_v58  ;;  %v12469_v58 = vpop.xlane.xlu1 %3843  ;;  %15205 = vst [vmem:[#allocation27_spill] sm:$0xff] %v12472_v59  ;;  %15207 = vst [vmem:[#allocation87_spill] sm:$0xff] %v12484_v35  ;;  %v3977_v55 = vsel %vm3751_vm3, %v12472_v59, -inf  ;;  %v12518_v37 = vadd.f32 %v3576_v0, %v11574_v28 }
 0x3a5   : > { %v12500_v59 = vadd.f32 %v3568_v16, %v11574_v28  ;;  %v4160_v16 = vsub.f32 %v11854_v2, %v12456_v60  ;;  %v4161_v60 = vsub.f32 %v11871_v4, %v12458_v9 }
 0x3a6   : > { %15211 = vst [vmem:[#allocation20_spill] sm:$0xff] %v12518_v37 }
 0x3a7   : > { %4590 = vadd.xlane.f32.xlu0 %v4589_v3  ;;  %v3974_v3 = vsel %vm3751_vm3, %v12465_v63, -inf  ;;  %15209 = vst [vmem:[#allocation91_spill] sm:$0xff] %v12500_v59  ;;  %v3971_v1 = vsel %vm3751_vm3, %v12500_v59, -inf }
 0x3a8   : > { %4581 = vadd.xlane.f32.xlu1 %v4580_v29  ;;  %v12481_v29 = vpop.xlane.xlu0 %3846  ;;  %v12493_v63 = vpop.xlane.xlu1 %3837 }
 0x3ab   : > { %4584 = vadd.xlane.f32.xlu0 %v4583_v24  ;;  %v3998_v24 = vsel %vm3751_vm3, %v12477_v61, -inf  ;;  %v3035_v61 = vpop.f32.mrf.mxu0 }
 0x3ac   : > { %3975 = vmax.xlane.f32.xlu1 %v3974_v3  ;;  %v12495_v56 = vpop.xlane.xlu0 %3840  ;;  %v4001_v3 = vsel %vm3751_vm3, %v12484_v35, -inf  ;;  %v4163_v35 = vsub.f32 %v11864_v11, %v12446_v10  ;;  %v4166_v11 = vsub.f32 %v11875_v49, %v12469_v58  ;;  %v4312_v10 = vmul.f32 1.442695, %v4160_v16 }
 0x3ad   : > { %v4314_v58 = vmul.f32 1.442695, %v4161_v60 }
 0x3ae   : > { %v4318_v21 = vmul.f32 1.442695, %v4163_v35  ;;  %v4324_v9 = vmul.f32 1.442695, %v4166_v11  ;;  %9983 = vpow2.f32 %v4312_v10  ;;  %v4167_v35 = vsub.f32 %v11896_v47, %v12481_v29 }
 0x3af   : > { %3978 = vmax.xlane.f32.xlu0 %v3977_v55  ;;  %v8518_v55 = vpop.f32.mrf.mxu1  ;;  %v3579_v11 = vmul.f32 0.17677669, %v3035_v61 }
 0x3b0   : > { %3999 = vmax.xlane.f32.xlu1 %v3998_v24  ;;  %v3968_v24 = vsel %vm3751_vm3, %v12489_v13, -inf  ;;  %v3574_v22 = vmul.f32 0.17677669, %v8518_v55  ;;  %v12521_v13 = vadd.f32 %v3573_v36, %v11580_v32  ;;  %v3995_v55 = vsel %vm3751_vm3, %v12518_v37, -inf }
 0x3b1   : > { %v2949_v42 = vpop.f32.mrf.mxu1  ;;  %9985 = vpow2.f32 %v4318_v21 }
 0x3b2   : > { %15212 = vst [vmem:[#allocation22_spill] sm:$0xff] %v12521_v13  ;;  %v3986_v4 = vsel %vm3751_vm3, %v12521_v13, -inf  ;;  %9987 = vpow2.f32 %v4324_v9 }
 0x3b3   : > { %4002 = vmax.xlane.f32.xlu0 %v4001_v3  ;;  %v12509_v38 = vpop.xlane.xlu1 %3855  ;;  %v3581_v3 = vmul.f32 0.17677669, %v8533_v46  ;;  %v12534_v46 = vadd.f32 %v3574_v22, %v11596_v7  ;;  %9989 = vpow2.f32 %v4314_v58 }
 0x3b4   : > { %3969 = vmax.xlane.f32.xlu1 %v3968_v24  ;;  %v8534_v24 = vpop.f32.mrf.mxu0 }
 0x3b5   : > { %15213 = vst [vmem:[#allocation92_spill] sm:$0xff] %v12534_v46  ;;  %v3582_v36 = vmul.f32 0.17677669, %v8534_v24  ;;  %v12539_v49 = vadd.f32 %v3581_v3, %v11580_v32  ;;  %v3989_v5 = vsel %vm3751_vm3, %v12534_v46, -inf  ;;  %v4164_v3 = vsub.f32 %v11885_v57, %v12493_v63 }
 0x3b6   : > { %v3038_v10 = vpop.f32.mrf.mxu0  ;;  %v4165_v57 = vsub.f32 %v11903_v41, %v12495_v56 }
 0x3b7   : > { %3972 = vmax.xlane.f32.xlu0 %v3971_v1  ;;  %v12525_v2 = vpop.xlane.xlu0 %3858  ;;  %v3571_v1 = vmul.f32 0.17677669, %v2946_v45  ;;  %15214 = vst [vmem:[#allocation93_spill] sm:$0xff] %v12539_v49  ;;  %v3572_v45 = vmul.f32 0.17677669, %v2949_v42  ;;  %v12550_v22 = vadd.f32 %v3582_v36, %v11596_v7  ;;  %v4010_v47 = vsel %vm3751_vm3, %v12539_v49, -inf }
 0x3b8   : > { %3993 = vmax.xlane.f32.xlu1 %v3992_v31  ;;  %v4326_v42 = vmul.f32 1.442695, %v4167_v35  ;;  %v3580_v63 = vmul.f32 0.17677669, %v3038_v10  ;;  %v4320_v36 = vmul.f32 1.442695, %v4164_v3  ;;  %v4171_v58 = vsub.f32 %v12129_v50, %v12525_v2 }
 0x3b9   : > { %v12531_v0 = vpop.xlane.xlu1 %3849  ;;  %15215 = vst [vmem:[#allocation94_spill] sm:$0xff] %v12550_v22  ;;  %v12557_v24 = vadd.f32 %v3571_v1, %v11607_v44  ;;  %v4013_v61 = vsel %vm3751_vm3, %v12550_v22, -inf  ;;  %v12570_v21 = vadd.f32 %v3572_v45, %v11616_v62  ;;  %v4170_v1 = vsub.f32 %v12114_v40, %v12509_v38 }
 0x3ba   : > { %9991 = vpow2.f32 %v4326_v42  ;;  %v4322_v56 = vmul.f32 1.442695, %v4165_v57  ;;  %v12588_v45 = vadd.f32 %v3580_v63, %v11616_v62  ;;  %v4168_v38 = vsub.f32 %v12126_v33, %v12531_v0 }
 0x3bb   : > { %3996 = vmax.xlane.f32.xlu0 %v3995_v55  ;;  %v12543_v31 = vpop.xlane.xlu0 %3852  ;;  %15216 = vst [vmem:[#allocation95_spill] sm:$0xff] %v12557_v24  ;;  %15217 = vst [vmem:[#allocation98_spill] sm:$0xff] %v12570_v21  ;;  %v12573_v55 = vadd.f32 %v3579_v11, %v11607_v44  ;;  %v3983_v35 = vsel %vm3751_vm3, %v12570_v21, -inf  ;;  %9993 = vpow2.f32 %v4320_v36  ;;  %v4332_v40 = vmul.f32 1.442695, %v4170_v1  ;;  %v12596_v11 = vpop.eup %9981 }
 0x3bc   : > { %3987 = vmax.xlane.f32.xlu1 %v3986_v4  ;;  %v3980_v4 = vsel %vm3751_vm3, %v12557_v24, -inf  ;;  %15219 = vst [vmem:[#allocation106_spill] sm:$0xff] %v12588_v45  ;;  %v12600_v2 = vpop.eup %9983  ;;  %9995 = vpow2.f32 %v4322_v56  ;;  %v4334_v10 = vmul.f32 1.442695, %v4171_v58  ;;  %v4007_v33 = vsel %vm3751_vm3, %v12588_v45, -inf }
 0x3bd   : > { %v12547_v16 = vpop.xlane.xlu1 %3867  ;;  %15218 = vst [vmem:[#allocation103_spill] sm:$0xff] %v12573_v55  ;;  %9997 = vpow2.f32 %v4332_v40  ;;  %v4328_v42 = vmul.f32 1.442695, %v4168_v38  ;;  %v4598_v57 = vsel %vm3751_vm3, %v12596_v11, 0.0  ;;  %v8545_v40 = vpop.f32.mrf.mxu1 }
 0x3be   : > { %v12606_v0 = vpop.eup %9985  ;;  %9999 = vpow2.f32 %v4334_v10  ;;  %v3585_v45 = vmul.f32 0.17677669, %v8545_v40 }
 0x3bf   : > { %3990 = vmax.xlane.f32.xlu0 %v3989_v5  ;;  %v12561_v29 = vpop.xlane.xlu0 %3870  ;;  %v4004_v5 = vsel %vm3751_vm3, %v12573_v55, -inf  ;;  %10001 = vpow2.f32 %v4328_v42  ;;  %v3108_v42 = vpop.f32.mrf.mxu1 }
 0x3c0   : > { %4011 = vmax.xlane.f32.xlu1 %v4010_v47  ;;  %v4169_v47 = vsub.f32 %v12134_v27, %v12543_v31  ;;  %v4601_v31 = vsel %vm3751_vm3, %v12606_v0, 0.0  ;;  %v12661_v37 = vadd.f32 %v3585_v45, %v11543_v34 }
 0x3c1   : > { %v12563_v60 = vpop.xlane.xlu1 %3861  ;;  %v8546_v22 = vpop.f32.mrf.mxu1 }
 0x3c2   : > { %v4330_v27 = vmul.f32 1.442695, %v4169_v47  ;;  %15227 = vst [vmem:[#allocation116_spill] sm:$0xff] %v12661_v37 }
 0x3c3   : > { %4014 = vmax.xlane.f32.xlu0 %v4013_v61  ;;  %v12579_v9 = vpop.xlane.xlu0 %3864  ;;  %v12612_v61 = vpop.eup %9987 }
 0x3c4   : > { %3981 = vmax.xlane.f32.xlu1 %v3980_v4  ;;  %15220 = vst [vmem:[#allocation105_spill] sm:$0xff] %v12612_v61  ;;  %v12616_v1 = vpop.eup %9989  ;;  %v4592_v4 = vsel %vm3751_vm3, %v12600_v2, 0.0  ;;  %10003 = vpow2.f32 %v4330_v27  ;;  %v3111_v45 = vpop.f32.mrf.mxu1 }
 0x3c5   : > { %v12581_v41 = vpop.xlane.xlu1 %3879  ;;  %v4595_v38 = vsel %vm3751_vm3, %v12616_v1, 0.0 }
 0x3c7   : > { %3984 = vmax.xlane.f32.xlu0 %v3983_v35  ;;  %v12594_v3 = vpop.xlane.xlu0 %3882  ;;  %v12626_v35 = vpop.eup %9991 }
 0x3c8   : > { %4005 = vmax.xlane.f32.xlu1 %v4004_v5  ;;  %v4610_v5 = vsel %vm3751_vm3, %v12612_v61, 0.0  ;;  %v12634_v47 = vpop.eup %9993  ;;  %v15276_v61 = vld [vmem:[#allocation75_spill] sm:$0xff] }
 0x3c9   : > { %v12598_v50 = vpop.xlane.xlu1 %3873  ;;  %15221 = vst [vmem:[#allocation107_spill] sm:$0xff] %v12634_v47  ;;  %v4604_v27 = vsel %vm3751_vm3, %v12634_v47, 0.0 }
 0x3cb   : > { %4008 = vmax.xlane.f32.xlu0 %v4007_v33  ;;  %v12610_v63 = vpop.xlane.xlu0 %3876 }
 0x3cc   : > { %4599 = vadd.xlane.f32.xlu1 %v4598_v57  ;;  %v8561_v57 = vpop.f32.mrf.mxu0 }
 0x3cd   : > { %v12614_v36 = vpop.xlane.xlu1 %3891 }
 0x3ce   : > { %v3197_v13 = vpop.f32.mrf.mxu0 }
 0x3cf   : > { %4602 = vadd.xlane.f32.xlu0 %v4601_v31  ;;  %v12622_v56 = vpop.xlane.xlu0 %3894  ;;  %v4613_v31 = vsel %vm3751_vm3, %v12626_v35, 0.0 }
 0x3d0   : > { %4593 = vadd.xlane.f32.xlu1 %v4592_v4  ;;  %v12638_v4 = vpop.eup %9995 }
 0x3d1   : > { %v12624_v58 = vpop.xlane.xlu1 %3885  ;;  %15222 = vst [vmem:[#allocation108_spill] sm:$0xff] %v12638_v4  ;;  %v12642_v46 = vpop.eup %9997  ;;  %v4607_v55 = vsel %vm3751_vm3, %v12638_v4, 0.0 }
 0x3d2   : > { %15223 = vst [vmem:[#allocation110_spill] sm:$0xff] %v12642_v46  ;;  %v12648_v21 = vpop.eup %9999 }
 0x3d3   : > { %4596 = vadd.xlane.f32.xlu0 %v4595_v38  ;;  %v12632_v10 = vpop.xlane.xlu0 %3888  ;;  %v4174_v38 = vsub.f32 %v12140_v12, %v12547_v16  ;;  %15224 = vst [vmem:[#allocation109_spill] sm:$0xff] %v12648_v21  ;;  %v12652_v59 = vpop.eup %10001  ;;  %v4625_v40 = vsel %vm3751_vm3, %v12648_v21, 0.0 }
 0x3d4   : > { %4611 = vadd.xlane.f32.xlu1 %v4610_v5  ;;  %15225 = vst [vmem:[#allocation111_spill] sm:$0xff] %v12652_v59 }
 0x3d5   : > { %v4528_v33 = vpop.xlane.xlu1 %4527  ;;  %v4340_v12 = vmul.f32 1.442695, %v4174_v38  ;;  %v4172_v38 = vsub.f32 %v12155_v43, %v12563_v60 }
 0x3d7   : > { %4614 = vadd.xlane.f32.xlu0 %v4613_v31  ;;  %v4531_v49 = vpop.xlane.xlu0 %4530  ;;  %v4622_v31 = vsel %vm3751_vm3, %v12642_v46, 0.0 }
 0x3d8   : > { %4605 = vadd.xlane.f32.xlu1 %v4604_v27  ;;  %10005 = vrcp.f32 %v4531_v49  ;;  %v3586_v49 = vmul.f32 0.17677669, %v8546_v22  ;;  %v8562_v27 = vpop.f32.mrf.mxu0  ;;  %v4616_v22 = vsel %vm3751_vm3, %v12652_v59, 0.0 }
 0x3d9   : > { %v4522_v5 = vpop.xlane.xlu1 %4521 }
 0x3da   : > { %10007 = vrcp.f32 %v4522_v5  ;;  %v4175_v5 = vsub.f32 %v12158_v51, %v12561_v29  ;;  %v3583_v51 = vmul.f32 0.17677669, %v3108_v42  ;;  %v12668_v29 = vadd.f32 %v3586_v49, %v11571_v14 }
 0x3db   : > { %10009 = vrcp.f32 %v4528_v33  ;;  %4608 = vadd.xlane.f32.xlu0 %v4607_v55  ;;  %v4525_v24 = vpop.xlane.xlu0 %4524  ;;  %v12658_v33 = vpop.eup %10003  ;;  %v3593_v55 = vmul.f32 0.17677669, %v8561_v57  ;;  %v4173_v57 = vsub.f32 %v12165_v19, %v12579_v9  ;;  %v4022_v42 = vsel %vm3751_vm3, %v12661_v37, -inf }
 0x3dc   : > { %4623 = vadd.xlane.f32.xlu1 %v4622_v31  ;;  %10011 = vrcp.f32 %v4525_v24  ;;  %15226 = vst [vmem:[#allocation114_spill] sm:$0xff] %v12658_v33  ;;  %15228 = vst [vmem:[#allocation115_spill] sm:$0xff] %v12668_v29  ;;  %v3594_v31 = vmul.f32 0.17677669, %v8562_v27  ;;  %v4342_v21 = vmul.f32 1.442695, %v4175_v5  ;;  %v3200_v9 = vpop.f32.mrf.mxu0 }
 0x3dd   : > { %v4540_v16 = vpop.xlane.xlu1 %4539  ;;  %10013 = vpow2.f32 %v4340_v12  ;;  %v4619_v43 = vsel %vm3751_vm3, %v12658_v33, 0.0  ;;  %v12675_v60 = vadd.f32 %v3593_v55, %v11543_v34  ;;  %v4336_v12 = vmul.f32 1.442695, %v4172_v38 }
 0x3de   : > { %v3584_v27 = vmul.f32 0.17677669, %v3111_v45  ;;  %v12687_v38 = vadd.f32 %v3583_v51, %v11554_v52  ;;  %v8549_v51 = vpop.f32.mrf.mxu1 }
 0x3df   : > { %4626 = vadd.xlane.f32.xlu0 %v4625_v40  ;;  %v4543_v24 = vpop.xlane.xlu0 %4542  ;;  %15229 = vst [vmem:[#allocation118_spill] sm:$0xff] %v12675_v60  ;;  %v4338_v40 = vmul.f32 1.442695, %v4173_v57 }
 0x3e0   : > { %4617 = vadd.xlane.f32.xlu1 %v4616_v22  ;;  %10015 = vrcp.f32 %v4543_v24  ;;  %15231 = vst [vmem:[#allocation120_spill] sm:$0xff] %v12687_v38  ;;  %v3591_v22 = vmul.f32 0.17677669, %v3197_v13  ;;  %v4046_v24 = vsel %vm3751_vm3, %v12675_v60, -inf }
 0x3e1   : > { %v4534_v46 = vpop.xlane.xlu1 %4533 }
 0x3e2   : > { %10017 = vrcp.f32 %v4534_v46  ;;  %v12682_v46 = vadd.f32 %v3594_v31, %v11571_v14 }
 0x3e3   : > { %10019 = vrcp.f32 %v4540_v16  ;;  %4620 = vadd.xlane.f32.xlu0 %v4619_v43  ;;  %v4537_v49 = vpop.xlane.xlu0 %4536  ;;  %v4025_v16 = vsel %vm3751_vm3, %v12668_v29, -inf }
 0x3e4   : > { %4023 = vmax.xlane.f32.xlu1 %v4022_v42  ;;  %10021 = vrcp.f32 %v4537_v49  ;;  %15230 = vst [vmem:[#allocation119_spill] sm:$0xff] %v12682_v46  ;;  %v12697_v49 = vadd.f32 %v3584_v27, %v11574_v28  ;;  %v4049_v13 = vsel %vm3751_vm3, %v12682_v46, -inf }
 0x3e5   : > { %v12679_v5 = vpop.xlane.xlu1 %3903  ;;  %v10006_v19 = vpop.eup %10005  ;;  %10023 = vpow2.f32 %v4342_v21  ;;  %v3592_v21 = vmul.f32 0.17677669, %v3200_v9 }
 0x3e6   : > { %10025 = vpow2.f32 %v4336_v12  ;;  %v5035_v57 = vmul.f32 %v10006_v19, %v12230_v20  ;;  %15232 = vst [vmem:[#allocation121_spill] sm:$0xff] %v12697_v49  ;;  %v4016_v20 = vsel %vm3751_vm3, %v12687_v38, -inf }
 0x3e7   : > { %v10008_v55 = vpop.eup %10007  ;;  %4026 = vmax.xlane.f32.xlu0 %v4025_v16  ;;  %10027 = vpow2.f32 %v4338_v40 }
 0x3e8   : > { %v10010_v45 = vpop.eup %10009  ;;  %4047 = vmax.xlane.f32.xlu1 %v4046_v24  ;;  %v12691_v31 = vpop.xlane.xlu0 %3906  ;;  %v5032_v12 = vmul.f32 %v10008_v55, %v12232_v39  ;;  %v12704_v24 = vadd.f32 %v3591_v22, %v11554_v52  ;;  %v12721_v55 = vadd.f32 %v3592_v21, %v11574_v28  ;;  %v4176_v21 = vsub.f32 %v12191_v53, %v12598_v50 }
 0x3e9   : > { %v10012_v43 = vpop.eup %10011  ;;  %v12694_v42 = vpop.xlane.xlu1 %3897  ;;  %v5034_v9 = vmul.f32 %v10010_v45, %v12226_v26  ;;  %v4019_v26 = vsel %vm3751_vm3, %v12697_v49, -inf }
 0x3ea   : > { %v5033_v16 = vmul.f32 %v10012_v43, %v12236_v23  ;;  %15233 = vst [vmem:[#allocation122_spill] sm:$0xff] %v12704_v24  ;;  %v12711_v40 = vpop.eup %10013  ;;  %v12715_v23 = vpop.f32.mrf.mxu1  ;;  %15235 = vst [vmem:[#allocation124_spill] sm:$0xff] %v12721_v55  ;;  %v4040_v43 = vsel %vm3751_vm3, %v12704_v24, -inf }
 0x3eb   : > { %4050 = vmax.xlane.f32.xlu0 %v4049_v13  ;;  %15234 = vst [vmem:[#allocation123_spill] sm:$0xff] %v12711_v40  ;;  %v5161_v60 = vpack.c.bf16 %v5035_v57, %v5034_v9  ;;  %v8565_v45 = vpop.f32.mrf.mxu0  ;;  %v15236_v57 = vld [vmem:[#allocation34_spill] sm:$0xff]  ;;  %v15237_v13 = vld [vmem:[#allocation40_spill] sm:$0xff]  ;;  %v4634_v53 = vsel %vm3751_vm3, %v12711_v40, 0.0 }
 0x3ec   : > { %4017 = vmax.xlane.f32.xlu1 %v4016_v20  ;;  %v12709_v27 = vpop.xlane.xlu0 %3900  ;;  %v5160_v19 = vpack.c.bf16 %v5033_v16, %v5032_v12  ;;  %v1989_v12 = vpack.c.bf16 %v15237_v13, %v15236_v57  ;;  %v8550_v46 = vpop.f32.mrf.mxu1  ;;  %v3589_v13 = vmul.f32 0.17677669, %v8549_v51  ;;  %v4344_v51 = vmul.f32 1.442695, %v4176_v21  ;;  %v15262_v40 = vld [vmem:[#allocation64_spill] sm:$0xff] }
 0x3ed   : > { %v12713_v29 = vpop.xlane.xlu1 %3915  ;;  %v10016_v39 = vpop.eup %10015 }
 0x3ee   : > { %8623 = vmatprep.mubr.msk.bf16.mxu0 %vm3751_vm3, %v5160_v19  ;;  %v3213_v37 = vpop.f32.mrf.mxu0  ;;  %10029 = vpow2.f32 %v4344_v51 }
 0x3ef   : > { %v10018_v22 = vpop.eup %10017  ;;  %4020 = vmax.xlane.f32.xlu0 %v4019_v26  ;;  %8624 = vmatmul.mubr.msk.bf16.vlgmr.msra.gmra.mxu0 %vm3751_vm3, %v5161_v60  ;;  %v5039_v26 = vmul.f32 %v10016_v39, %v12246_v15  ;;  %v4043_v60 = vsel %vm3751_vm3, %v12721_v55, -inf  ;;  %v15240_v15 = vld [vmem:[#allocation45_spill] sm:$0xff] }
 0x3f0   : > { %v10020_v16 = vpop.eup %10019  ;;  %4041 = vmax.xlane.f32.xlu1 %v4040_v43  ;;  %8648 = vmatpush3.bf16.msra.mxu0 %v15128_v54  ;;  %v12729_v9 = vpop.xlane.xlu0 %3918  ;;  %v5036_v57 = vmul.f32 %v10018_v22, %v12251_v8  ;;  %v9211_v39 = vunpack.i.h.bf16 %v15240_v15  ;;  %v3590_v22 = vmul.f32 0.17677669, %v8550_v46  ;;  %v15241_v55 = vld [vmem:[#allocation33_spill] sm:$0xff] }
 0x3f1   : > { %v10022_v20 = vpop.eup %10021  ;;  %v12733_v19 = vpop.xlane.xlu1 %3909  ;;  %8649 = vmatprep.subr.bf16.mxu0 %v1989_v12  ;;  %v5038_v50 = vmul.f32 %v10020_v16, %v12242_v18 }
 0x3f2   : > { %v5037_v43 = vmul.f32 %v10022_v20, %v12255_v6  ;;  %v12740_v54 = vpop.eup %10023  ;;  %v9210_v6 = vunpack.i.l.bf16 %v15240_v15  ;;  %v8566_v46 = vpop.f32.mrf.mxu0  ;;  %v12769_v15 = vadd.f32 %v3590_v22, %v11596_v7 }
 0x3f3   : > { %15238 = vst [vmem:[#allocation34_spill] sm:$0xff] %v12740_v54  ;;  %4044 = vmax.xlane.f32.xlu0 %v4043_v60  ;;  %v12745_v24 = vpop.eup %10025  ;;  %v5163_v38 = vpack.c.bf16 %v5039_v26, %v5038_v50  ;;  %v15242_v60 = vld [vmem:[#allocation78_spill] sm:$0xff]  ;;  %v4637_v16 = vsel %vm3751_vm3, %v12740_v54, 0.0 }
 0x3f4   : > { %15239 = vst [vmem:[#allocation40_spill] sm:$0xff] %v12745_v24  ;;  %4635 = vadd.xlane.f32.xlu1 %v4634_v53  ;;  %8650 = vmatpush3.bf16.msra.mxu0 %v1989_v12  ;;  %v12748_v49 = vpop.xlane.xlu0 %3912  ;;  %v5162_v8 = vpack.c.bf16 %v5037_v43, %v5036_v57  ;;  %v4178_v18 = vsub.f32 %v15242_v60, %v12581_v41  ;;  %v12757_v12 = vpop.eup %10027  ;;  %v3597_v43 = vmul.f32 0.17677669, %v8565_v45  ;;  %v4628_v21 = vsel %vm3751_vm3, %v12745_v24, 0.0  ;;  %v15245_v26 = vld [vmem:[#allocation30_spill] sm:$0xff]  ;;  %v15246_v41 = vld [vmem:[#allocation32_spill] sm:$0xff] }
 0x3f5   : > { %v4552_v20 = vpop.xlane.xlu1 %4551  ;;  %8651 = vmatprep.subr.bf16.mxu0 %v15241_v55  ;;  %15243 = vst [vmem:[#allocation45_spill] sm:$0xff] %v12757_v12  ;;  %v12760_v57 = vadd.f32 %v3589_v13, %v11580_v32  ;;  %v1987_v53 = vpack.c.bf16 %v15246_v41, %v15245_v26  ;;  %15247 = vst [vmem:[#allocation78_spill] sm:$0xff] %v12769_v15  ;;  %v15248_v45 = vld [vmem:[#allocation56_spill] sm:$0xff]  ;;  %v12773_v60 = vpack.c.bf16 %v9211_v39, %v9210_v6  ;;  %v3127_v26 = vpop.f32.mrf.mxu1 }
 0x3f6   : > { %8627 = vmatprep.mubr.msk.bf16.mxu0 %vm3751_vm3, %v5162_v8  ;;  %v4177_v13 = vsub.f32 %v15248_v45, %v12610_v63  ;;  %v12779_v22 = vadd.f32 %v3597_v43, %v11580_v32  ;;  %v4037_v43 = vsel %vm3751_vm3, %v12769_v15, -inf  ;;  %v3216_v41 = vpop.f32.mrf.mxu0 }
 0x3f7   : > { %15244 = vst [vmem:[#allocation33_spill] sm:$0xff] %v12760_v57  ;;  %4638 = vadd.xlane.f32.xlu0 %v4637_v16  ;;  %8628 = vmatmul.mubr.msk.bf16.gmra.mxu0 %vm3751_vm3, %v5163_v38  ;;  %v3598_v16 = vmul.f32 0.17677669, %v8566_v46  ;;  %v4348_v38 = vmul.f32 1.442695, %v4178_v18  ;;  %v4034_v63 = vsel %vm3751_vm3, %v12760_v57, -inf }
 0x3f8   : > { %4629 = vadd.xlane.f32.xlu1 %v4628_v21  ;;  %8652 = vmatpush3.bf16.msra.mxu0 %v15241_v55  ;;  %v4555_v50 = vpop.xlane.xlu0 %4554  ;;  %v4631_v21 = vsel %vm3751_vm3, %v12757_v12, 0.0  ;;  %v3587_v55 = vmul.f32 0.17677669, %v12715_v23  ;;  %15249 = vst [vmem:[#allocation30_spill] sm:$0xff] %v12779_v22  ;;  %v4346_v6 = vmul.f32 1.442695, %v4177_v13 }
 0x3f9   : > { %v4546_v8 = vpop.xlane.xlu1 %4545  ;;  %8653 = vmatprep.subr.bf16.mxu0 %v1987_v53  ;;  %v3588_v18 = vmul.f32 0.17677669, %v3127_v26  ;;  %v12785_v23 = vadd.f32 %v3598_v16, %v11596_v7  ;;  %v4058_v45 = vsel %vm3751_vm3, %v12779_v22, -inf }
 0x3fa   : > { %10031 = vrcp.f32 %v4546_v8  ;;  %v12790_v46 = vadd.f32 %v3587_v55, %v11607_v44  ;;  %v8577_v8 = vpop.f32.mrf.mxu1 }
 0x3fb   : > { %10033 = vrcp.f32 %v4555_v50  ;;  %4632 = vadd.xlane.f32.xlu0 %v4631_v21  ;;  %15250 = vst [vmem:[#allocation32_spill] sm:$0xff] %v12785_v23  ;;  %v4061_v21 = vsel %vm3751_vm3, %v12785_v23, -inf }
 0x3fc   : > { %10035 = vrcp.f32 %v4552_v20  ;;  %4035 = vmax.xlane.f32.xlu1 %v4034_v63  ;;  %8654 = vmatpush3.bf16.msra.mxu0 %v1987_v53  ;;  %v4549_v39 = vpop.xlane.xlu0 %4548  ;;  %15251 = vst [vmem:[#allocation56_spill] sm:$0xff] %v12790_v46  ;;  %v3595_v20 = vmul.f32 0.17677669, %v3213_v37  ;;  %v15252_v53 = vld [vmem:[#allocation61_spill] sm:$0xff]  ;;  %v12799_v37 = vadd.f32 %v3588_v18, %v11616_v62  ;;  %v4028_v26 = vsel %vm3751_vm3, %v12790_v46, -inf }
 0x3fd   : > { %v4564_v51 = vpop.xlane.xlu1 %4563  ;;  %10037 = vrcp.f32 %v4549_v39  ;;  %8679 = vmatprep.subr.bf16.mxu0 %v12773_v60  ;;  %v4179_v50 = vsub.f32 %v15252_v53, %v12594_v3  ;;  %v3286_v39 = vpop.f32.mrf.mxu1  ;;  %v3601_v18 = vmul.f32 0.17677669, %v8577_v8 }
 0x3fe   : > { %10039 = vpow2.f32 %v4348_v38  ;;  %v3596_v38 = vmul.f32 0.17677669, %v3216_v41  ;;  %15253 = vst [vmem:[#allocation61_spill] sm:$0xff] %v12799_v37  ;;  %v12802_v55 = vadd.f32 %v3595_v20, %v11607_v44  ;;  %v4031_v20 = vsel %vm3751_vm3, %v12799_v37, -inf  ;;  %v15261_v37 = vld [vmem:[#allocation44_spill] sm:$0xff] }
 0x3ff   : > { %4038 = vmax.xlane.f32.xlu0 %v4037_v43  ;;  %10041 = vpow2.f32 %v4346_v6  ;;  %v4350_v3 = vmul.f32 1.442695, %v4179_v50  ;;  %v12808_v43 = vpop.eup %10029  ;;  %v8593_v50 = vpop.f32.mrf.mxu0  ;;  %v12824_v22 = vadd.f32 %v3601_v18, %v11543_v34 }
 0x400   : > { %4059 = vmax.xlane.f32.xlu1 %v4058_v45  ;;  %v4567_v13 = vpop.xlane.xlu0 %4566  ;;  %15254 = vst [vmem:[#allocation125_spill] sm:$0xff] %v12802_v55  ;;  %15255 = vst [vmem:[#allocation126_spill] sm:$0xff] %v12808_v43  ;;  %v12813_v41 = vadd.f32 %v3596_v38, %v11616_v62 }
 0x401   : > { %v4558_v16 = vpop.xlane.xlu1 %4557  ;;  %10043 = vrcp.f32 %v4567_v13  ;;  %v3375_v57 = vpop.f32.mrf.mxu0 }
 0x402   : > { %10045 = vrcp.f32 %v4558_v16  ;;  %15256 = vst [vmem:[#allocation127_spill] sm:$0xff] %v12813_v41 }
 0x403   : > { %4062 = vmax.xlane.f32.xlu0 %v4061_v21  ;;  %10047 = vrcp.f32 %v4564_v51  ;;  %v4052_v51 = vsel %vm3751_vm3, %v12802_v55, -inf  ;;  %v8578_v21 = vpop.f32.mrf.mxu1  ;;  %v4640_v55 = vsel %vm3751_vm3, %v12808_v43, 0.0 }
 0x404   : > { %4029 = vmax.xlane.f32.xlu1 %v4028_v26  ;;  %v4561_v63 = vpop.xlane.xlu0 %4560  ;;  %v3602_v43 = vmul.f32 0.17677669, %v8578_v21 }
 0x405   : > { %10049 = vrcp.f32 %v4561_v63  ;;  %v12806_v6 = vpop.xlane.xlu1 %3927  ;;  %v15257_v63 = vld [vmem:[#allocation72_spill] sm:$0xff] }
 0x406   : > { %10051 = vpow2.f32 %v4350_v3  ;;  %v4182_v38 = vsub.f32 %v15257_v63, %v12614_v36  ;;  %15258 = vst [vmem:[#allocation72_spill] sm:$0xff] %v12824_v22  ;;  %v15259_v3 = vld [vmem:[#allocation60_spill] sm:$0xff]  ;;  %v15263_v63 = vld [vmem:[#allocation102_spill] sm:$0xff] }
 0x407   : > { %v10032_v53 = vpop.eup %10031  ;;  %4032 = vmax.xlane.f32.xlu0 %v4031_v20  ;;  %v4055_v20 = vsel %vm3751_vm3, %v12813_v41, -inf  ;;  %v3289_v41 = vpop.f32.mrf.mxu1 }
 0x408   : > { %v10034_v45 = vpop.eup %10033  ;;  %4053 = vmax.xlane.f32.xlu1 %v4052_v51  ;;  %v12817_v13 = vpop.xlane.xlu0 %3930  ;;  %v3609_v51 = vmul.f32 0.17677669, %v8593_v50  ;;  %v5040_v46 = vmul.f32 %v10032_v53, %v15261_v37 }
 0x409   : > { %v10036_v16 = vpop.eup %10035  ;;  %v12819_v8 = vpop.xlane.xlu1 %3951  ;;  %v5043_v15 = vmul.f32 %v10034_v45, %v15259_v3  ;;  %v15264_v45 = vld [vmem:[#allocation88_spill] sm:$0xff] }
 0x40a   : > { %v10038_v26 = vpop.eup %10037  ;;  %v5042_v18 = vmul.f32 %v10036_v16, %v15263_v63  ;;  %v4180_v3 = vsub.f32 %v15264_v45, %v12624_v58  ;;  %v8594_v16 = vpop.f32.mrf.mxu0  ;;  %v4070_v58 = vsel %vm3751_vm3, %v12824_v22, -inf  ;;  %v3599_v63 = vmul.f32 0.17677669, %v3286_v39  ;;  %v15272_v39 = vld [vmem:[#allocation96_spill] sm:$0xff] }
 0x40b   : > { %v12829_v23 = vpop.eup %10039  ;;  %4056 = vmax.xlane.f32.xlu0 %v4055_v20  ;;  %v5041_v36 = vmul.f32 %v10038_v26, %v15262_v40  ;;  %v4356_v26 = vmul.f32 1.442695, %v4182_v38  ;;  %v15267_v20 = vld [vmem:[#allocation81_spill] sm:$0xff] }
 0x40c   : > { %15260 = vst [vmem:[#allocation60_spill] sm:$0xff] %v12829_v23  ;;  %4641 = vadd.xlane.f32.xlu1 %v4640_v55  ;;  %v12836_v12 = vpop.xlane.xlu0 %3954  ;;  %v12842_v54 = vpop.eup %10041  ;;  %v4646_v37 = vsel %vm3751_vm3, %v12829_v23, 0.0  ;;  %v5165_v53 = vpack.c.bf16 %v5043_v15, %v5042_v18  ;;  %v12847_v55 = vadd.f32 %v3609_v51, %v11543_v34  ;;  %v15268_v15 = vld [vmem:[#allocation86_spill] sm:$0xff]  ;;  %v4352_v51 = vmul.f32 1.442695, %v4180_v3 }
 0x40d   : > { %v12840_v24 = vpop.xlane.xlu1 %3921  ;;  %v5164_v50 = vpack.c.bf16 %v5041_v36, %v5040_v46  ;;  %15265 = vst [vmem:[#allocation44_spill] sm:$0xff] %v12842_v54  ;;  %v1993_v36 = vpack.c.bf16 %v15268_v15, %v15267_v20  ;;  %v15269_v18 = vld [vmem:[#allocation82_spill] sm:$0xff]  ;;  %v3610_v23 = vmul.f32 0.17677669, %v8594_v16  ;;  %v4643_v15 = vsel %vm3751_vm3, %v12842_v54, 0.0 }
 0x40e   : > { %v10044_v40 = vpop.eup %10043  ;;  %15266 = vst [vmem:[#allocation64_spill] sm:$0xff] %v12847_v55  ;;  %v4183_v45 = vsub.f32 %v15269_v18, %v12622_v56  ;;  %10053 = vpow2.f32 %v4356_v26  ;;  %v4094_v56 = vsel %vm3751_vm3, %v12847_v55, -inf  ;;  %v15273_v18 = vld [vmem:[#allocation54_spill] sm:$0xff]  ;;  %v15286_v55 = vld [vmem:[#allocation52_spill] sm:$0xff] }
 0x40f   : > { %8639 = vmatprep.mubr.msk.bf16.mxu1 %vm3751_vm3, %v5164_v50  ;;  %4647 = vadd.xlane.f32.xlu0 %v4646_v37  ;;  %v10046_v46 = vpop.eup %10045  ;;  %v12859_v50 = vpop.f32.mrf.mxu1  ;;  %v15270_v37 = vld [vmem:[#allocation67_spill] sm:$0xff]  ;;  %v5047_v3 = vmul.f32 %v10044_v40, %v15272_v39  ;;  %v15274_v20 = vld [vmem:[#allocation62_spill] sm:$0xff]  ;;  %v3600_v40 = vmul.f32 0.17677669, %v3289_v41  ;;  %10055 = vpow2.f32 %v4352_v51  ;;  %v3607_v41 = vmul.f32 0.17677669, %v3375_v57 }
 0x410   : > { %4071 = vmax.xlane.f32.xlu1 %v4070_v58  ;;  %8640 = vmatmul.mubr.msk.bf16.vlgmr.msra.gmra.mxu1 %vm3751_vm3, %v5165_v53  ;;  %v12853_v21 = vpop.xlane.xlu0 %3924  ;;  %v10048_v38 = vpop.eup %10047  ;;  %v12865_v53 = vadd.f32 %v3602_v43, %v11571_v14  ;;  %v15275_v16 = vld [vmem:[#allocation70_spill] sm:$0xff] }
 0x411   : > { %8664 = vmatpush3.bf16.msra.mxu1 %v15270_v37  ;;  %v12862_v22 = vpop.xlane.xlu1 %3945  ;;  %v5044_v37 = vmul.f32 %v10046_v46, %v15273_v18  ;;  %v1992_v4 = vpack.c.bf16 %v15276_v61, %v15275_v16  ;;  %v15277_v54 = vld [vmem:[#allocation50_spill] sm:$0xff]  ;;  %v12881_v26 = vpop.f32.mrf.mxu1  ;;  %v12886_v46 = vadd.f32 %v3610_v23, %v11571_v14 }
 0x412   : > { %v10050_v58 = vpop.eup %10049  ;;  %15271 = vst [vmem:[#allocation102_spill] sm:$0xff] %v12865_v53  ;;  %8665 = vmatprep.subr.bf16.mxu1 %v1993_v36  ;;  %v5046_v47 = vmul.f32 %v10048_v38, %v15277_v54  ;;  %v4358_v54 = vmul.f32 1.442695, %v4183_v45  ;;  %v3378_v38 = vpop.f32.mrf.mxu0 }
 0x413   : > { %4644 = vadd.xlane.f32.xlu0 %v4643_v15  ;;  %v5045_v33 = vmul.f32 %v10050_v58, %v15274_v20  ;;  %v12874_v59 = vpop.eup %10051  ;;  %15278 = vst [vmem:[#allocation88_spill] sm:$0xff] %v12886_v46  ;;  %v4073_v20 = vsel %vm3751_vm3, %v12865_v53, -inf  ;;  %v12903_v57 = vpop.f32.mrf.mxu1 }
 0x414   : > { %4095 = vmax.xlane.f32.xlu1 %v4094_v56  ;;  %v12876_v43 = vpop.xlane.xlu0 %3948  ;;  %v5167_v58 = vpack.c.bf16 %v5047_v3, %v5046_v47  ;;  %v12891_v56 = vadd.f32 %v3599_v63, %v11554_v52  ;;  %v15281_v63 = vld [vmem:[#allocation73_spill] sm:$0xff]  ;;  %v15282_v3 = vld [vmem:[#allocation76_spill] sm:$0xff]  ;;  %10057 = vpow2.f32 %v4358_v54 }
 0x415   : > { %8666 = vmatpush3.bf16.msra.mxu1 %v1993_v36  ;;  %v12883_v15 = vpop.xlane.xlu1 %3939  ;;  %v5166_v39 = vpack.c.bf16 %v5045_v33, %v5044_v37  ;;  %v4649_v33 = vsel %vm3751_vm3, %v12874_v59, 0.0  ;;  %v15280_v36 = vld [vmem:[#allocation55_spill] sm:$0xff]  ;;  %v1991_v45 = vpack.c.bf16 %v15282_v3, %v15281_v63  ;;  %v15283_v37 = vld [vmem:[#allocation100_spill] sm:$0xff]  ;;  %v3603_v63 = vmul.f32 0.17677669, %v12881_v26 }
 0x416   : > { %8667 = vmatprep.subr.bf16.mxu1 %v1992_v4  ;;  %15279 = vst [vmem:[#allocation82_spill] sm:$0xff] %v12891_v56  ;;  %v9281_v23 = vunpack.i.h.bf16 %v15280_v36  ;;  %v9280_v51 = vunpack.i.l.bf16 %v15280_v36  ;;  %v12915_v36 = vadd.f32 %v3607_v41, %v11554_v52  ;;  %v4064_v53 = vsel %vm3751_vm3, %v12891_v56, -inf  ;;  %v8597_v41 = vpop.f32.mrf.mxu0 }
 0x417   : > { %8643 = vmatprep.mubr.msk.bf16.mxu1 %vm3751_vm3, %v5166_v39  ;;  %4074 = vmax.xlane.f32.xlu0 %v4073_v20  ;;  %v4181_v39 = vsub.f32 %v15283_v37, %v12632_v10  ;;  %v3608_v20 = vmul.f32 0.17677669, %v3378_v38  ;;  %v12925_v37 = vpop.f32.mrf.mxu1 }
 0x418   : > { %4650 = vadd.xlane.f32.xlu1 %v4649_v33  ;;  %8644 = vmatmul.mubr.msk.bf16.gmra.mxu1 %vm3751_vm3, %v5167_v58  ;;  %v12899_v47 = vpop.xlane.xlu0 %3942  ;;  %v4097_v33 = vsel %vm3751_vm3, %v12886_v46, -inf  ;;  %v12912_v58 = vadd.f32 %v3600_v40, %v11574_v28  ;;  %15285 = vst [vmem:[#allocation96_spill] sm:$0xff] %v12915_v36  ;;  %v12923_v38 = vpack.c.bf16 %v9281_v23, %v9280_v51  ;;  %v15288_v23 = vld [vmem:[#allocation43_spill] sm:$0xff] }
 0x419   : > { %8668 = vmatpush3.bf16.msra.mxu1 %v1992_v4  ;;  %v12905_v18 = vpop.xlane.xlu1 %3963  ;;  %v4186_v4 = vsub.f32 %v15286_v55, %v12679_v5  ;;  %v4354_v54 = vmul.f32 1.442695, %v4181_v39  ;;  %v12933_v55 = vadd.f32 %v3608_v20, %v11574_v28  ;;  %v4187_v51 = vsub.f32 %v15288_v23, %v12691_v31  ;;  %v12938_v46 = vpop.f32.mrf.mxu1 }
 0x41a   : > { %8669 = vmatprep.subr.bf16.mxu1 %v1991_v45  ;;  %15284 = vst [vmem:[#allocation67_spill] sm:$0xff] %v12912_v58  ;;  %v4067_v5 = vsel %vm3751_vm3, %v12912_v58, -inf  ;;  %v3391_v23 = vpop.f32.mrf.mxu0 }
 0x41b   : > { %4098 = vmax.xlane.f32.xlu0 %v4097_v33  ;;  %15287 = vst [vmem:[#allocation54_spill] sm:$0xff] %v12933_v55  ;;  %v4364_v33 = vmul.f32 1.442695, %v4186_v4  ;;  %v12942_v39 = vpop.eup %10053  ;;  %10059 = vpow2.f32 %v4354_v54  ;;  %v4091_v4 = vsel %vm3751_vm3, %v12933_v55, -inf  ;;  %v3611_v55 = vmul.f32 0.17677669, %v3391_v23 }
 0x41c   : > { %4065 = vmax.xlane.f32.xlu1 %v4064_v53  ;;  %v12921_v10 = vpop.xlane.xlu0 %3966  ;;  %v3605_v53 = vmul.f32 0.17677669, %v12859_v50  ;;  %15289 = vst [vmem:[#allocation62_spill] sm:$0xff] %v12942_v39  ;;  %v3613_v50 = vmul.f32 0.17677669, %v8597_v41  ;;  %v12950_v56 = vpop.eup %10055  ;;  %v15295_v23 = vld [vmem:[#allocation46_spill] sm:$0xff] }
 0x41d   : > { %8670 = vmatpush3.bf16.msra.mxu1 %v1991_v45  ;;  %v12927_v40 = vpop.xlane.xlu1 %3933  ;;  %v4088_v45 = vsel %vm3751_vm3, %v12915_v36, -inf  ;;  %15290 = vst [vmem:[#allocation50_spill] sm:$0xff] %v12950_v56  ;;  %10061 = vpow2.f32 %v4364_v33  ;;  %v3464_v36 = vpop.f32.mrf.mxu1  ;;  %v15293_v33 = vld [vmem:[#allocation48_spill] sm:$0xff]  ;;  %v4191_v16 = vsub.f32 %v15295_v23, %v12729_v9  ;;  %v12976_v26 = vadd.f32 %v3611_v55, %v11607_v44 }
 0x41e   : > { %8695 = vmatprep.subr.bf16.mxu1 %v12923_v38  ;;  %v12953_v31 = vadd.f32 %v3605_v53, %v11580_v32  ;;  %v12960_v41 = vadd.f32 %v3613_v50, %v11580_v32  ;;  %v4652_v53 = vsel %vm3751_vm3, %v12950_v56, 0.0  ;;  %v3606_v55 = vmul.f32 0.17677669, %v12903_v57 }
 0x41f   : > { %4068 = vmax.xlane.f32.xlu0 %v4067_v5  ;;  %v4366_v5 = vmul.f32 1.442695, %v4187_v51  ;;  %v4190_v51 = vsub.f32 %v15293_v33, %v12713_v29  ;;  %v12967_v61 = vpop.f32.mrf.mxu1  ;;  %15296 = vst [vmem:[#allocation43_spill] sm:$0xff] %v12976_v26 }
 0x420   : > { %4089 = vmax.xlane.f32.xlu1 %v4088_v45  ;;  %v12944_v58 = vpop.xlane.xlu0 %3936  ;;  %15291 = vst [vmem:[#allocation55_spill] sm:$0xff] %v12953_v31  ;;  %v4658_v45 = vsel %vm3751_vm3, %v12942_v39, 0.0  ;;  %15292 = vst [vmem:[#allocation100_spill] sm:$0xff] %v12960_v41  ;;  %v4106_v29 = vsel %vm3751_vm3, %v12960_v41, -inf  ;;  %v8598_v41 = vpop.f32.mrf.mxu0 }
 0x421   : > { %v12946_v20 = vpop.xlane.xlu1 %3957  ;;  %10063 = vpow2.f32 %v4366_v5  ;;  %v12981_v5 = vadd.f32 %v3603_v63, %v11607_v44  ;;  %v12983_v33 = vpop.f32.mrf.mxu1  ;;  %v15298_v63 = vld [vmem:[#allocation99_spill] sm:$0xff] }
 0x423   : > { %4092 = vmax.xlane.f32.xlu0 %v4091_v4  ;;  %v4082_v4 = vsel %vm3751_vm3, %v12953_v31, -inf  ;;  %15297 = vst [vmem:[#allocation48_spill] sm:$0xff] %v12981_v5  ;;  %v4184_v31 = vsub.f32 %v15298_v63, %v12694_v42  ;;  %v3614_v42 = vmul.f32 0.17677669, %v8598_v41 }
 0x424   : > { %4659 = vadd.xlane.f32.xlu1 %v4658_v45  ;;  %v12957_v3 = vpop.xlane.xlu0 %3960  ;;  %v12971_v45 = vpop.eup %10057 }
 0x425   : > { %v4576_v54 = vpop.xlane.xlu1 %4575  ;;  %15294 = vst [vmem:[#allocation52_spill] sm:$0xff] %v12971_v45  ;;  %v4360_v63 = vmul.f32 1.442695, %v4184_v31  ;;  %v13015_v41 = vadd.f32 %v3614_v42, %v11596_v7  ;;  %v15307_v42 = vld [vmem:[#allocation63_spill] sm:$0xff] }
 0x427   : > { %4653 = vadd.xlane.f32.xlu0 %v4652_v53  ;;  %v4372_v53 = vmul.f32 1.442695, %v4190_v51  ;;  %v4100_v51 = vsel %vm3751_vm3, %v12976_v26, -inf  ;;  %v3615_v26 = vmul.f32 0.17677669, %v3464_v36  ;;  %15304 = vst [vmem:[#allocation129_spill] sm:$0xff] %v13015_v41 }
 0x428   : > { %4083 = vmax.xlane.f32.xlu1 %v4082_v4  ;;  %v4579_v50 = vpop.xlane.xlu0 %4578  ;;  %v4661_v4 = vsel %vm3751_vm3, %v12971_v45, 0.0  ;;  %v3604_v36 = vmul.f32 0.17677669, %v12925_v37 }
 0x429   : > { %v4570_v39 = vpop.xlane.xlu1 %4569 }
 0x42a   : > { %10065 = vrcp.f32 %v4570_v39  ;;  %v4374_v39 = vmul.f32 1.442695, %v4191_v16 }
 0x42b   : > { %10067 = vrcp.f32 %v4579_v50  ;;  %4107 = vmax.xlane.f32.xlu0 %v4106_v29  ;;  %v12992_v50 = vpop.eup %10059  ;;  %v12994_v29 = vpop.f32.mrf.mxu1 }
 0x42c   : > { %10069 = vrcp.f32 %v4576_v54  ;;  %4662 = vadd.xlane.f32.xlu1 %v4661_v4  ;;  %v4573_v9 = vpop.xlane.xlu0 %4572  ;;  %15299 = vst [vmem:[#allocation46_spill] sm:$0xff] %v12992_v50  ;;  %v4076_v54 = vsel %vm3751_vm3, %v12981_v5, -inf  ;;  %v12998_v57 = vpop.eup %10061  ;;  %v13001_v4 = vadd.f32 %v3606_v55, %v11596_v7  ;;  %v15302_v5 = vld [vmem:[#allocation77_spill] sm:$0xff] }
 0x42d   : > { %v4588_v23 = vpop.xlane.xlu1 %4587  ;;  %10071 = vrcp.f32 %v4573_v9  ;;  %15300 = vst [vmem:[#allocation99_spill] sm:$0xff] %v12998_v57  ;;  %v4194_v56 = vsub.f32 %v15302_v5, %v12806_v6  ;;  %v4670_v55 = vsel %vm3751_vm3, %v12998_v57, 0.0  ;;  %v15305_v6 = vld [vmem:[#allocation104_spill] sm:$0xff] }
 0x42e   : > { %10073 = vpow2.f32 %v4372_v53  ;;  %15301 = vst [vmem:[#allocation128_spill] sm:$0xff] %v13001_v4  ;;  %v4655_v53 = vsel %vm3751_vm3, %v12992_v50, 0.0  ;;  %v4185_v5 = vsub.f32 %v15305_v6, %v12709_v27 }
 0x42f   : > { %4101 = vmax.xlane.f32.xlu0 %v4100_v51  ;;  %10075 = vpow2.f32 %v4374_v39  ;;  %v13005_v51 = vpop.f32.mrf.mxu1  ;;  %v4380_v37 = vmul.f32 1.442695, %v4194_v56  ;;  %v13039_v56 = vadd.f32 %v3604_v36, %v11616_v62 }
 0x430   : > { %4077 = vmax.xlane.f32.xlu1 %v4076_v54  ;;  %v4591_v16 = vpop.xlane.xlu0 %4590  ;;  %v13011_v54 = vpop.eup %10063 }
 0x431   : > { %v4582_v9 = vpop.xlane.xlu1 %4581  ;;  %10077 = vrcp.f32 %v4591_v16  ;;  %15303 = vst [vmem:[#allocation77_spill] sm:$0xff] %v13011_v54  ;;  %v3394_v16 = vpop.f32.mrf.mxu0  ;;  %v4673_v57 = vsel %vm3751_vm3, %v13011_v54, 0.0  ;;  %15310 = vst [vmem:[#allocation131_spill] sm:$0xff] %v13039_v56 }
 0x432   : > { %10079 = vrcp.f32 %v4582_v9  ;;  %v13022_v9 = vadd.f32 %v3615_v26, %v11554_v52  ;;  %v3612_v26 = vmul.f32 0.17677669, %v3394_v16 }
 0x433   : > { %4656 = vadd.xlane.f32.xlu0 %v4655_v53  ;;  %10081 = vrcp.f32 %v4588_v23  ;;  %v4085_v23 = vsel %vm3751_vm3, %v13001_v4, -inf  ;;  %v4109_v4 = vsel %vm3751_vm3, %v13015_v41, -inf }
 0x434   : > { %4671 = vadd.xlane.f32.xlu1 %v4670_v55  ;;  %v4585_v31 = vpop.xlane.xlu0 %4584  ;;  %15306 = vst [vmem:[#allocation104_spill] sm:$0xff] %v13022_v9  ;;  %v13026_v55 = vpop.f32.mrf.mxu1 }
 0x435   : > { %10083 = vrcp.f32 %v4585_v31  ;;  %v13017_v39 = vpop.xlane.xlu1 %3975  ;;  %v4203_v31 = vsub.f32 %v15307_v42, %v12836_v12  ;;  %v4362_v12 = vmul.f32 1.442695, %v4185_v5  ;;  %v4201_v42 = vsub.f32 %v12377_v25, %v12876_v43  ;;  %v15313_v25 = vld [vmem:[#allocation14_spill] sm:$0xff] }
 0x436   : > { %10085 = vpow2.f32 %v4360_v63  ;;  %v3483_v54 = vpop.f32.mrf.mxu1 }
 0x437   : > { %v10066_v53 = vpop.eup %10065  ;;  %4086 = vmax.xlane.f32.xlu0 %v4085_v23  ;;  %10087 = vpow2.f32 %v4380_v37  ;;  %v4398_v16 = vmul.f32 1.442695, %v4203_v31 }
 0x438   : > { %v10068_v63 = vpop.eup %10067  ;;  %4674 = vadd.xlane.f32.xlu1 %v4673_v57  ;;  %v13032_v27 = vpop.xlane.xlu0 %3978  ;;  %v4112_v57 = vsel %vm3751_vm3, %v13022_v9, -inf  ;;  %10089 = vpow2.f32 %v4362_v12 }
 0x439   : > { %15308 = vst [vmem:[#allocation63_spill] sm:$0xff] %v13032_v27  ;;  %v10070_v52 = vpop.eup %10069  ;;  %v13034_v6 = vpop.xlane.xlu1 %3999  ;;  %v5051_v23 = vmul.f32 %v10068_v63, %v12428_v48  ;;  %v15312_v27 = vld [vmem:[#allocation49_spill] sm:$0xff]  ;;  %10091 = vpow2.f32 %v4398_v16 }
 0x43a   : > { %15309 = vst [vmem:[#allocation130_spill] sm:$0xff] %v13034_v6  ;;  %v10072_v50 = vpop.eup %10071  ;;  %v5048_v6 = vmul.f32 %v10066_v53, %v12430_v17  ;;  %v9226_v5 = vunpack.i.h.bf16 %v15312_v27  ;;  %v9225_v45 = vunpack.i.l.bf16 %v15312_v27  ;;  %v5050_v43 = vmul.f32 %v10070_v52, %v15313_v25  ;;  %v15317_v52 = vld [vmem:[#allocation18_spill] sm:$0xff] }
 0x43b   : > { %4110 = vmax.xlane.f32.xlu0 %v4109_v4  ;;  %v5049_v41 = vmul.f32 %v10072_v50, %v12436_v30  ;;  %v13048_v36 = vpop.eup %10073  ;;  %v4079_v4 = vsel %vm3751_vm3, %v13039_v56, -inf  ;;  %v13060_v17 = vadd.f32 %v3612_v26, %v11616_v62  ;;  %v3620_v50 = vmul.f32 0.17677669, %v3483_v54  ;;  %v15318_v26 = vld [vmem:[#allocation42_spill] sm:$0xff]  ;;  %v15325_v56 = vld [vmem:[#allocation47_spill] sm:$0xff] }
 0x43c   : > { %15311 = vst [vmem:[#allocation132_spill] sm:$0xff] %v13048_v36  ;;  %4113 = vmax.xlane.f32.xlu1 %v4112_v57  ;;  %v13053_v48 = vpop.xlane.xlu0 %4002  ;;  %v13062_v30 = vpop.eup %10075  ;;  %v4394_v53 = vmul.f32 1.442695, %v4201_v42  ;;  %v5169_v31 = vpack.c.bf16 %v5051_v23, %v5050_v43  ;;  %v4196_v57 = vsub.f32 %v15317_v52, %v12927_v40  ;;  %v9176_v25 = vunpack.i.h.bf16 %v15318_v26  ;;  %v15319_v23 = vld [vmem:[#allocation71_spill] sm:$0xff] }
 0x43d   : > { %15314 = vst [vmem:[#allocation49_spill] sm:$0xff] %v13053_v48  ;;  %v13055_v63 = vpop.xlane.xlu1 %3969  ;;  %v5168_v37 = vpack.c.bf16 %v5049_v41, %v5048_v6  ;;  %15315 = vst [vmem:[#allocation14_spill] sm:$0xff] %v13060_v17  ;;  %v4682_v41 = vsel %vm3751_vm3, %v13048_v36, 0.0  ;;  %v9175_v9 = vunpack.i.l.bf16 %v15318_v26  ;;  %v1997_v12 = vpack.c.bf16 %v9226_v5, %v9225_v45  ;;  %v15323_v26 = vld [vmem:[#allocation28_spill] sm:$0xff] }
 0x43e   : > { %15316 = vst [vmem:[#allocation133_spill] sm:$0xff] %v13062_v30  ;;  %v10078_v27 = vpop.eup %10077  ;;  %v3617_v40 = vmul.f32 0.17677669, %v12938_v46  ;;  %v4188_v16 = vsub.f32 %v15319_v23, %v12733_v19  ;;  %10093 = vpow2.f32 %v4394_v53  ;;  %v13085_v45 = vadd.f32 %v3620_v50, %v11616_v62  ;;  %v15321_v46 = vld [vmem:[#allocation112_spill] sm:$0xff] }
 0x43f   : > { %8655 = vmatprep.mubr.msk.bf16.mxu0 %vm3751_vm3, %v5168_v37  ;;  %4080 = vmax.xlane.f32.xlu0 %v4079_v4  ;;  %v10080_v6 = vpop.eup %10079  ;;  %v4103_v37 = vsel %vm3751_vm3, %v13060_v17, -inf  ;;  %v5055_v5 = vmul.f32 %v10078_v27, %v15321_v46  ;;  %v4384_v19 = vmul.f32 1.442695, %v4196_v57  ;;  %v15324_v17 = vld [vmem:[#allocation113_spill] sm:$0xff]  ;;  %v9191_v36 = vunpack.i.h.bf16 %v15325_v56  ;;  %v15326_v27 = vld [vmem:[#allocation36_spill] sm:$0xff] }
 0x440   : > { %4683 = vadd.xlane.f32.xlu1 %v4682_v41  ;;  %8656 = vmatmul.mubr.msk.bf16.vlgmr.msra.gmra.mxu0 %vm3751_vm3, %v5169_v31  ;;  %v13072_v54 = vpop.xlane.xlu0 %3972  ;;  %v10082_v42 = vpop.eup %10081  ;;  %v4685_v31 = vsel %vm3751_vm3, %v13062_v30, 0.0  ;;  %15320 = vst [vmem:[#allocation18_spill] sm:$0xff] %v13085_v45  ;;  %v5052_v23 = vmul.f32 %v10080_v6, %v15323_v26  ;;  %v9190_v30 = vunpack.i.l.bf16 %v15325_v56  ;;  %v1996_v50 = vpack.c.bf16 %v9176_v25, %v9175_v9  ;;  %v15328_v56 = vld [vmem:[#allocation85_spill] sm:$0xff] }
 0x441   : > { %8680 = vmatpush3.bf16.msra.mxu0 %v12773_v60  ;;  %v13078_v43 = vpop.xlane.xlu1 %3993  ;;  %v15322_v60 = vld [vmem:[#allocation12_spill] sm:$0xff]  ;;  %v5054_v46 = vmul.f32 %v10082_v42, %v15326_v27  ;;  %v4368_v6 = vmul.f32 1.442695, %v4188_v16  ;;  %10095 = vpow2.f32 %v4384_v19  ;;  %v4127_v25 = vsel %vm3751_vm3, %v13085_v45, -inf  ;;  %v15333_v27 = vld [vmem:[#allocation69_spill] sm:$0xff] }
 0x442   : > { %v10084_v4 = vpop.eup %10083  ;;  %8681 = vmatprep.subr.bf16.mxu0 %v1997_v12  ;;  %v4205_v41 = vsub.f32 %v15322_v60, %v12957_v3  ;;  %v13102_v3 = vadd.f32 %v3617_v40, %v11543_v34  ;;  %v15330_v34 = vld [vmem:[#allocation65_spill] sm:$0xff] }
 0x443   : > { %v13088_v52 = vpop.eup %10085  ;;  %4104 = vmax.xlane.f32.xlu0 %v4103_v37  ;;  %v5053_v53 = vmul.f32 %v10084_v4, %v15324_v17  ;;  %v5171_v37 = vpack.c.bf16 %v5055_v5, %v5054_v46  ;;  %v4198_v4 = vsub.f32 %v15328_v56, %v12883_v15  ;;  %v9351_v42 = vunpack.i.h.bf16 %v15330_v34 }
 0x444   : > { %4686 = vadd.xlane.f32.xlu1 %v4685_v31  ;;  %v13096_v62 = vpop.xlane.xlu0 %3996  ;;  %15327 = vst [vmem:[#allocation42_spill] sm:$0xff] %v13102_v3  ;;  %v4664_v17 = vsel %vm3751_vm3, %v13088_v52, 0.0  ;;  %v4402_v9 = vmul.f32 1.442695, %v4205_v41  ;;  %v9350_v40 = vunpack.i.l.bf16 %v15330_v34  ;;  %v1995_v15 = vpack.c.bf16 %v9191_v36, %v9190_v30  ;;  %v15331_v41 = vld [vmem:[#allocation16_spill] sm:$0xff] }
 0x445   : > { %8682 = vmatpush3.bf16.msra.mxu0 %v1997_v12  ;;  %v13099_v57 = vpop.xlane.xlu1 %3987  ;;  %v5170_v48 = vpack.c.bf16 %v5053_v53, %v5052_v23  ;;  %v13111_v12 = vpop.eup %10087  ;;  %10097 = vpow2.f32 %v4368_v6  ;;  %v4118_v5 = vsel %vm3751_vm3, %v13102_v3, -inf  ;;  %v4388_v60 = vmul.f32 1.442695, %v4198_v4 }
 0x446   : > { %8683 = vmatprep.subr.bf16.mxu0 %v1996_v50  ;;  %15329 = vst [vmem:[#allocation71_spill] sm:$0xff] %v13111_v12  ;;  %v13123_v19 = vpop.eup %10089  ;;  %v4207_v26 = vsub.f32 %v15331_v41, %v12921_v10  ;;  %10099 = vpow2.f32 %v4402_v9  ;;  %v4694_v36 = vsel %vm3751_vm3, %v13111_v12, 0.0  ;;  %v3616_v10 = vmul.f32 0.17677669, %v12983_v33 }
 0x447   : > { %8659 = vmatprep.mubr.msk.bf16.mxu0 %vm3751_vm3, %v5170_v48  ;;  %4665 = vadd.xlane.f32.xlu0 %v4664_v17  ;;  %v3618_v48 = vmul.f32 0.17677669, %v12967_v61  ;;  %v13129_v30 = vpop.eup %10091  ;;  %v13133_v61 = vpack.c.bf16 %v9351_v42, %v9350_v40  ;;  %v4189_v46 = vsub.f32 %v15333_v27, %v12748_v49  ;;  %v4667_v6 = vsel %vm3751_vm3, %v13123_v19, 0.0 }
 0x448   : > { %4128 = vmax.xlane.f32.xlu1 %v4127_v25  ;;  %8660 = vmatmul.mubr.msk.bf16.gmra.mxu0 %vm3751_vm3, %v5171_v37  ;;  %v13116_v16 = vpop.xlane.xlu0 %3990  ;;  %10101 = vpow2.f32 %v4388_v60  ;;  %v4406_v37 = vmul.f32 1.442695, %v4207_v26  ;;  %v4721_v56 = vsel %vm3751_vm3, %v13129_v30, 0.0  ;;  %v13157_v9 = vadd.f32 %v3616_v10, %v11574_v28  ;;  %v15338_v10 = vld [vmem:[#allocation68_spill] sm:$0xff] }
 0x449   : > { %8684 = vmatpush3.bf16.msra.mxu0 %v1996_v50  ;;  %v13118_v31 = vpop.xlane.xlu1 %4011  ;;  %v13138_v50 = vadd.f32 %v3618_v48, %v11571_v14  ;;  %v4370_v4 = vmul.f32 1.442695, %v4189_v46  ;;  %v3621_v40 = vmul.f32 0.17677669, %v12994_v29  ;;  %v15336_v48 = vld [vmem:[#allocation80_spill] sm:$0xff]  ;;  %v4192_v27 = vsub.f32 %v15338_v10, %v12840_v24 }
 0x44a   : > { %8685 = vmatprep.subr.bf16.mxu0 %v1995_v15  ;;  %15334 = vst [vmem:[#allocation12_spill] sm:$0xff] %v13157_v9  ;;  %10103 = vpow2.f32 %v4406_v37  ;;  %v4115_v28 = vsel %vm3751_vm3, %v13157_v9, -inf  ;;  %v3619_v46 = vmul.f32 0.17677669, %v13005_v51 }
 0x44b   : > { %4119 = vmax.xlane.f32.xlu0 %v4118_v5  ;;  %15332 = vst [vmem:[#allocation112_spill] sm:$0xff] %v13138_v50  ;;  %v13146_v17 = vpop.eup %10093  ;;  %v4121_v49 = vsel %vm3751_vm3, %v13138_v50, -inf  ;;  %10105 = vpow2.f32 %v4370_v4  ;;  %v4202_v5 = vsub.f32 %v15336_v48, %v12819_v8  ;;  %v13177_v29 = vadd.f32 %v3621_v40, %v11580_v32  ;;  %v15379_v50 = vld [vmem:[#allocation123_spill] sm:$0xff] }
 0x44c   : > { %4695 = vadd.xlane.f32.xlu1 %v4694_v36  ;;  %v13131_v23 = vpop.xlane.xlu0 %4014  ;;  %v4715_v25 = vsel %vm3751_vm3, %v13146_v17, 0.0  ;;  %v13189_v51 = vadd.f32 %v3619_v46, %v11607_v44  ;;  %v15342_v44 = vld [vmem:[#allocation74_spill] sm:$0xff] }
 0x44d   : > { %8686 = vmatpush3.bf16.msra.mxu0 %v1995_v15  ;;  %v13135_v53 = vpop.xlane.xlu1 %3981  ;;  %15337 = vst [vmem:[#allocation113_spill] sm:$0xff] %v13177_v29  ;;  %v4130_v48 = vsel %vm3751_vm3, %v13177_v29, -inf  ;;  %v4193_v10 = vsub.f32 %v15342_v44, %v12853_v21 }
 0x44e   : > { %8711 = vmatprep.subr.bf16.mxu0 %v13133_v61  ;;  %v13161_v34 = vpop.eup %10095  ;;  %15339 = vst [vmem:[#allocation47_spill] sm:$0xff] %v13189_v51  ;;  %v4124_v46 = vsel %vm3751_vm3, %v13189_v51, -inf }
 0x44f   : > { %4668 = vadd.xlane.f32.xlu0 %v4667_v6  ;;  %15335 = vst [vmem:[#allocation28_spill] sm:$0xff] %v13161_v34  ;;  %v4700_v41 = vsel %vm3751_vm3, %v13161_v34, 0.0  ;;  %v4396_v6 = vmul.f32 1.442695, %v4202_v5  ;;  %v4378_v21 = vmul.f32 1.442695, %v4193_v10 }
 0x450   : > { %4722 = vadd.xlane.f32.xlu1 %v4721_v56  ;;  %v13150_v14 = vpop.xlane.xlu0 %3984 }
 0x451   : > { %v13152_v33 = vpop.xlane.xlu1 %4005 }
 0x452   : > { %v13170_v60 = vpop.eup %10097 }
 0x453   : > { %4122 = vmax.xlane.f32.xlu0 %v4121_v49  ;;  %v13174_v26 = vpop.eup %10099  ;;  %v4676_v37 = vsel %vm3751_vm3, %v13170_v60, 0.0  ;;  %v4376_v49 = vmul.f32 1.442695, %v4192_v27 }
 0x454   : > { %4716 = vadd.xlane.f32.xlu1 %v4715_v25  ;;  %v13163_v42 = vpop.xlane.xlu0 %4008  ;;  %v4727_v56 = vsel %vm3751_vm3, %v13174_v26, 0.0  ;;  %v15340_v25 = vld [vmem:[#allocation101_spill] sm:$0xff] }
 0x455   : > { %v4600_v15 = vpop.xlane.xlu1 %4599  ;;  %v13186_v4 = vpop.eup %10101  ;;  %v4200_v40 = vsub.f32 %v15340_v25, %v12862_v22  ;;  %v3622_v22 = vmul.f32 0.17677669, %v13026_v55 }
 0x456   : > { %v4706_v5 = vsel %vm3751_vm3, %v13186_v4, 0.0 }
 0x457   : > { %4116 = vmax.xlane.f32.xlu0 %v4115_v28  ;;  %v15341_v28 = vld [vmem:[#allocation84_spill] sm:$0xff]  ;;  %v13211_v55 = vadd.f32 %v3622_v22, %v11596_v7 }
 0x458   : > { %4701 = vadd.xlane.f32.xlu1 %v4700_v41  ;;  %v4603_v36 = vpop.xlane.xlu0 %4602  ;;  %v4195_v41 = vsub.f32 %v15341_v28, %v12817_v13 }
 0x459   : > { %v4594_v8 = vpop.xlane.xlu1 %4593  ;;  %15343 = vst [vmem:[#allocation36_spill] sm:$0xff] %v13211_v55  ;;  %v4133_v7 = vsel %vm3751_vm3, %v13211_v55, -inf  ;;  %v15361_v55 = vld [vmem:[#allocation66_spill] sm:$0xff] }
 0x45a   : > { %10107 = vrcp.f32 %v4594_v8  ;;  %v4392_v8 = vmul.f32 1.442695, %v4200_v40 }
 0x45b   : > { %10109 = vrcp.f32 %v4603_v36  ;;  %4677 = vadd.xlane.f32.xlu0 %v4676_v37  ;;  %v4382_v37 = vmul.f32 1.442695, %v4195_v41  ;;  %v15344_v41 = vld [vmem:[#allocation15_spill] sm:$0xff] }
 0x45c   : > { %10111 = vrcp.f32 %v4600_v15  ;;  %4728 = vadd.xlane.f32.xlu1 %v4727_v56  ;;  %v4597_v32 = vpop.xlane.xlu0 %4596  ;;  %v13197_v15 = vpop.eup %10103 }
 0x45d   : > { %v4612_v24 = vpop.xlane.xlu1 %4611  ;;  %10113 = vrcp.f32 %v4597_v32  ;;  %v4733_v13 = vsel %vm3751_vm3, %v13197_v15, 0.0 }
 0x45e   : > { %10115 = vpow2.f32 %v4396_v6  ;;  %v13206_v6 = vpop.eup %10105 }
 0x45f   : > { %4131 = vmax.xlane.f32.xlu0 %v4130_v48  ;;  %10117 = vpow2.f32 %v4376_v49  ;;  %v4679_v49 = vsel %vm3751_vm3, %v13206_v6, 0.0 }
 0x460   : > { %4707 = vadd.xlane.f32.xlu1 %v4706_v5  ;;  %v4615_v36 = vpop.xlane.xlu0 %4614 }
 0x461   : > { %v4606_v27 = vpop.xlane.xlu1 %4605  ;;  %10119 = vrcp.f32 %v4615_v36  ;;  %v4204_v36 = vsub.f32 %v15344_v41, %v12946_v20 }
 0x462   : > { %10121 = vrcp.f32 %v4606_v27 }
 0x463   : > { %4125 = vmax.xlane.f32.xlu0 %v4124_v46  ;;  %10123 = vrcp.f32 %v4612_v24 }
 0x464   : > { %4734 = vadd.xlane.f32.xlu1 %v4733_v13  ;;  %v4609_v56 = vpop.xlane.xlu0 %4608 }
 0x465   : > { %v4624_v32 = vpop.xlane.xlu1 %4623  ;;  %10125 = vrcp.f32 %v4609_v56 }
 0x466   : > { %10127 = vpow2.f32 %v4392_v8  ;;  %v15345_v8 = vld [vmem:[#allocation58_spill] sm:$0xff] }
 0x467   : > { %v10108_v25 = vpop.eup %10107  ;;  %4680 = vadd.xlane.f32.xlu0 %v4679_v49  ;;  %10129 = vpow2.f32 %v4382_v37  ;;  %v9296_v46 = vunpack.i.h.bf16 %v15345_v8  ;;  %v9295_v13 = vunpack.i.l.bf16 %v15345_v8  ;;  %v4400_v49 = vmul.f32 1.442695, %v4204_v36 }
 0x468   : > { %v10110_v40 = vpop.eup %10109  ;;  %v4627_v48 = vpop.xlane.xlu0 %4626  ;;  %10131 = vpow2.f32 %v4378_v21  ;;  %v5056_v27 = vmul.f32 %v10108_v25, %v12600_v2 }
 0x469   : > { %v10112_v5 = vpop.eup %10111  ;;  %v4618_v24 = vpop.xlane.xlu1 %4617  ;;  %v5059_v44 = vmul.f32 %v10110_v40, %v12606_v0  ;;  %10133 = vrcp.f32 %v4627_v48  ;;  %v15346_v40 = vld [vmem:[#allocation97_spill] sm:$0xff]  ;;  %v2001_v41 = vpack.c.bf16 %v9296_v46, %v9295_v13  ;;  %v15351_v46 = vld [vmem:[#allocation107_spill] sm:$0xff] }
 0x46a   : > { %v10114_v28 = vpop.eup %10113  ;;  %10135 = vrcp.f32 %v4618_v24  ;;  %v5058_v20 = vmul.f32 %v10112_v5, %v12596_v11  ;;  %v4197_v2 = vsub.f32 %v15346_v40, %v12944_v58  ;;  %v15349_v58 = vld [vmem:[#allocation19_spill] sm:$0xff]  ;;  %v15353_v40 = vld [vmem:[#allocation53_spill] sm:$0xff] }
 0x46b   : > { %v13220_v10 = vpop.eup %10115  ;;  %4134 = vmax.xlane.f32.xlu0 %v4133_v7  ;;  %v5057_v22 = vmul.f32 %v10114_v28, %v12616_v1  ;;  %10137 = vrcp.f32 %v4624_v32  ;;  %v15347_v32 = vld [vmem:[#allocation51_spill] sm:$0xff] }
 0x46c   : > { %v4621_v0 = vpop.xlane.xlu0 %4620  ;;  %v13229_v21 = vpop.eup %10117  ;;  %v5173_v25 = vpack.c.bf16 %v5059_v44, %v5058_v20  ;;  %v4718_v1 = vsel %vm3751_vm3, %v13220_v10, 0.0  ;;  %v9246_v5 = vunpack.i.h.bf16 %v15347_v32  ;;  %v9245_v24 = vunpack.i.l.bf16 %v15347_v32 }
 0x46d   : > { %10139 = vrcp.f32 %v4621_v0  ;;  %v13227_v37 = vpop.xlane.xlu1 %4023  ;;  %v5172_v56 = vpack.c.bf16 %v5057_v22, %v5056_v27  ;;  %v4199_v44 = vsub.f32 %v15349_v58, %v12899_v47  ;;  %v4386_v22 = vmul.f32 1.442695, %v4197_v2  ;;  %v15354_v2 = vld [vmem:[#allocation105_spill] sm:$0xff] }
 0x46e   : > { %v10120_v48 = vpop.eup %10119  ;;  %10141 = vpow2.f32 %v4400_v49  ;;  %v4688_v8 = vsel %vm3751_vm3, %v13229_v21, 0.0  ;;  %v2000_v49 = vpack.c.bf16 %v9246_v5, %v9245_v24 }
 0x46f   : > { %8671 = vmatprep.mubr.msk.bf16.mxu1 %vm3751_vm3, %v5172_v56  ;;  %4719 = vadd.xlane.f32.xlu0 %v4718_v1  ;;  %v10122_v11 = vpop.eup %10121  ;;  %v5063_v20 = vmul.f32 %v10120_v48, %v12626_v35  ;;  %v15352_v56 = vld [vmem:[#allocation108_spill] sm:$0xff]  ;;  %v15356_v35 = vld [vmem:[#allocation90_spill] sm:$0xff]  ;;  %10143 = vpow2.f32 %v4386_v22 }
 0x470   : > { %8672 = vmatmul.mubr.msk.bf16.vlgmr.msra.gmra.mxu1 %vm3751_vm3, %v5173_v25  ;;  %v13239_v28 = vpop.xlane.xlu0 %4026  ;;  %v10124_v36 = vpop.eup %10123  ;;  %v5060_v13 = vmul.f32 %v10122_v11, %v15351_v46  ;;  %v9260_v25 = vunpack.i.l.bf16 %v15353_v40  ;;  %v4206_v48 = vsub.f32 %v15356_v35, %v12905_v18  ;;  %v15357_v11 = vld [vmem:[#allocation17_spill] sm:$0xff] }
 0x471   : > { %15348 = vst [vmem:[#allocation85_spill] sm:$0xff] %v13239_v28  ;;  %8696 = vmatpush3.bf16.msra.mxu1 %v12923_v38  ;;  %v13244_v7 = vpop.xlane.xlu1 %4047  ;;  %v9261_v38 = vunpack.i.h.bf16 %v15353_v40  ;;  %v5062_v32 = vmul.f32 %v10124_v36, %v15354_v2  ;;  %v15358_v2 = vld [vmem:[#allocation109_spill] sm:$0xff] }
 0x472   : > { %15350 = vst [vmem:[#allocation65_spill] sm:$0xff] %v13244_v7  ;;  %v10126_v27 = vpop.eup %10125  ;;  %8697 = vmatprep.subr.bf16.mxu1 %v2001_v41  ;;  %v4404_v22 = vmul.f32 1.442695, %v4206_v48 }
 0x473   : > { %v13249_v0 = vpop.eup %10127  ;;  %4689 = vadd.xlane.f32.xlu0 %v4688_v8  ;;  %v5061_v47 = vmul.f32 %v10126_v27, %v15352_v56  ;;  %v4390_v56 = vmul.f32 1.442695, %v4199_v44  ;;  %v5175_v24 = vpack.c.bf16 %v5063_v20, %v5062_v32  ;;  %v1999_v40 = vpack.c.bf16 %v9261_v38, %v9260_v25  ;;  %v15359_v32 = vld [vmem:[#allocation111_spill] sm:$0xff] }
 0x474   : > { %v13255_v1 = vpop.xlane.xlu0 %4050  ;;  %v13258_v58 = vpop.eup %10129  ;;  %v4712_v5 = vsel %vm3751_vm3, %v13249_v0, 0.0  ;;  %v9366_v38 = vunpack.i.h.bf16 %v15361_v55  ;;  %v9365_v25 = vunpack.i.l.bf16 %v15361_v55  ;;  %v15364_v55 = vld [vmem:[#allocation23_spill] sm:$0xff] }
 0x475   : > { %15355 = vst [vmem:[#allocation16_spill] sm:$0xff] %v13258_v58  ;;  %8698 = vmatpush3.bf16.msra.mxu1 %v2001_v41  ;;  %v13262_v8 = vpop.xlane.xlu1 %4017  ;;  %9703 = vrot.lane.b32.xlu1 %v15357_v11, %s10604_s23  ;;  %v5174_v27 = vpack.c.bf16 %v5061_v47, %v5060_v13  ;;  %v13266_v46 = vpop.eup %10131  ;;  %10145 = vpow2.f32 %v4390_v56  ;;  %v4697_v20 = vsel %vm3751_vm3, %v13258_v58, 0.0 }
 0x476   : > { %8699 = vmatprep.subr.bf16.mxu1 %v2000_v49  ;;  %v10134_v36 = vpop.eup %10133  ;;  %10147 = vpow2.f32 %v4404_v22  ;;  %v2005_v22 = vpack.c.bf16 %v9366_v38, %v9365_v25  ;;  %v15367_v38 = vld [vmem:[#allocation20_spill] sm:$0xff] }
 0x477   : > { %8675 = vmatprep.mubr.msk.bf16.mxu1 %vm3751_vm3, %v5174_v27  ;;  %4713 = vadd.xlane.f32.xlu0 %v4712_v5  ;;  %v10136_v18 = vpop.eup %10135  ;;  %v5067_v35 = vmul.f32 %v10134_v36, %v15358_v2  ;;  %v15360_v5 = vld [vmem:[#allocation114_spill] sm:$0xff]  ;;  %v4691_v2 = vsel %vm3751_vm3, %v13266_v46, 0.0  ;;  %v4217_v25 = vsub.f32 %v15367_v38, %v13096_v62 }
 0x478   : > { %8676 = vmatmul.mubr.msk.bf16.gmra.mxu1 %vm3751_vm3, %v5175_v24  ;;  %v13272_v41 = vpop.xlane.xlu0 %4020  ;;  %v10138_v13 = vpop.eup %10137  ;;  %v5064_v27 = vmul.f32 %v10136_v18, %v15359_v32  ;;  %v15363_v18 = vld [vmem:[#allocation57_spill] sm:$0xff]  ;;  %v15375_v38 = vld [vmem:[#allocation34_spill] sm:$0xff] }
 0x479   : > { %8700 = vmatpush3.bf16.msra.mxu1 %v2000_v49  ;;  %v13274_v47 = vpop.xlane.xlu1 %4041  ;;  %v15362_v49 = vld [vmem:[#allocation110_spill] sm:$0xff]  ;;  %v9315_v32 = vunpack.i.l.bf16 %v15363_v18 }
 0x47a   : > { %v10140_v44 = vpop.eup %10139  ;;  %8701 = vmatprep.subr.bf16.mxu1 %v1999_v40  ;;  %v5066_v45 = vmul.f32 %v10138_v13, %v15362_v49  ;;  %v4208_v13 = vsub.f32 %v15364_v55, %v13055_v63 }
 0x47b   : > { %4698 = vadd.xlane.f32.xlu0 %v4697_v20  ;;  %v5065_v24 = vmul.f32 %v10140_v44, %v15360_v5  ;;  %v13288_v20 = vpop.eup %10141  ;;  %v9316_v44 = vunpack.i.h.bf16 %v15363_v18  ;;  %v15366_v5 = vld [vmem:[#allocation59_spill] sm:$0xff] }
 0x47c   : > { %v13284_v29 = vpop.xlane.xlu0 %4044  ;;  %v5177_v36 = vpack.c.bf16 %v5067_v35, %v5066_v45  ;;  %v4724_v35 = vsel %vm3751_vm3, %v13288_v20, 0.0  ;;  %v9330_v63 = vunpack.i.l.bf16 %v15366_v5 }
 0x47d   : > { %8702 = vmatpush3.bf16.msra.mxu1 %v1999_v40  ;;  %v4636_v48 = vpop.xlane.xlu1 %4635  ;;  %v5176_v56 = vpack.c.bf16 %v5065_v24, %v5064_v27  ;;  %v13299_v27 = vpop.eup %10143  ;;  %v9331_v24 = vunpack.i.h.bf16 %v15366_v5  ;;  %v2004_v49 = vpack.c.bf16 %v9316_v44, %v9315_v32  ;;  %v4426_v44 = vmul.f32 1.442695, %v4217_v25 }
 0x47e   : > { %15365 = vst [vmem:[#allocation69_spill] sm:$0xff] %v13299_v27 }
 0x47f   : > { %8687 = vmatprep.mubr.msk.bf16.mxu0 %vm3751_vm3, %v5176_v56  ;;  %4692 = vadd.xlane.f32.xlu0 %v4691_v2  ;;  %v4408_v56 = vmul.f32 1.442695, %v4208_v13  ;;  %v4703_v2 = vsel %vm3751_vm3, %v13299_v27, 0.0  ;;  %v2003_v55 = vpack.c.bf16 %v9331_v24, %v9330_v63 }
 0x480   : > { %8688 = vmatmul.mubr.msk.bf16.vlgmr.msra.gmra.mxu0 %vm3751_vm3, %v5177_v36  ;;  %v4639_v40 = vpop.xlane.xlu0 %4638 }
 0x481   : > { %8712 = vmatpush3.bf16.msra.mxu0 %v13133_v61  ;;  %v4630_v45 = vpop.xlane.xlu1 %4629 }
 0x482   : > { %10149 = vrcp.f32 %v4630_v45  ;;  %8713 = vmatprep.subr.bf16.mxu0 %v2005_v22  ;;  %v13309_v18 = vpop.eup %10145 }
 0x483   : > { %10151 = vrcp.f32 %v4639_v40  ;;  %4725 = vadd.xlane.f32.xlu0 %v4724_v35  ;;  %v13317_v13 = vpop.eup %10147 }
 0x484   : > { %10153 = vrcp.f32 %v4636_v48  ;;  %v4633_v61 = vpop.xlane.xlu0 %4632  ;;  %v4709_v48 = vsel %vm3751_vm3, %v13309_v18, 0.0  ;;  %v4730_v45 = vsel %vm3751_vm3, %v13317_v13, 0.0 }
 0x485   : > { %8714 = vmatpush3.bf16.msra.mxu0 %v2005_v22  ;;  %10155 = vrcp.f32 %v4633_v61  ;;  %v13305_v36 = vpop.xlane.xlu1 %4035  ;;  %v15376_v61 = vld [vmem:[#allocation40_spill] sm:$0xff] }
 0x486   : > { %15368 = vst [vmem:[#allocation80_spill] sm:$0xff] %v13305_v36  ;;  %8715 = vmatprep.subr.bf16.mxu0 %v2004_v49  ;;  %10157 = vpow2.f32 %v4408_v56 }
 0x487   : > { %4704 = vadd.xlane.f32.xlu0 %v4703_v2  ;;  %10159 = vpow2.f32 %v4426_v44  ;;  %v15377_v44 = vld [vmem:[#allocation45_spill] sm:$0xff] }
 0x488   : > { %v13311_v32 = vpop.xlane.xlu0 %4038 }
 0x489   : > { %15369 = vst [vmem:[#allocation68_spill] sm:$0xff] %v13311_v32  ;;  %8716 = vmatpush3.bf16.msra.mxu0 %v2004_v49  ;;  %v13313_v62 = vpop.xlane.xlu1 %4059 }
 0x48a   : > { %15370 = vst [vmem:[#allocation101_spill] sm:$0xff] %v13313_v62  ;;  %8717 = vmatprep.subr.bf16.mxu0 %v2003_v55 }
 0x48b   : > { %4710 = vadd.xlane.f32.xlu0 %v4709_v48 }
 0x48c   : > { %v13319_v40 = vpop.xlane.xlu0 %4062 }
 0x48d   : > { %15371 = vst [vmem:[#allocation84_spill] sm:$0xff] %v13319_v40  ;;  %8718 = vmatpush3.bf16.msra.mxu0 %v2003_v55  ;;  %v13321_v22 = vpop.xlane.xlu1 %4029 }
 0x48e   : > { %15372 = vst [vmem:[#allocation74_spill] sm:$0xff] %v13321_v22 }
 0x48f   : > { %v10150_v35 = vpop.eup %10149  ;;  %4731 = vadd.xlane.f32.xlu0 %v4730_v45 }
 0x490   : > { %v10152_v5 = vpop.eup %10151  ;;  %v13325_v24 = vpop.xlane.xlu0 %4032  ;;  %v5068_v2 = vmul.f32 %v10150_v35, %v15376_v61 }
 0x491   : > { %15373 = vst [vmem:[#allocation15_spill] sm:$0xff] %v13325_v24  ;;  %v10154_v49 = vpop.eup %10153  ;;  %v13327_v63 = vpop.xlane.xlu1 %4053  ;;  %v5071_v25 = vmul.f32 %v10152_v5, %v15375_v38  ;;  %v15383_v38 = vld [vmem:[#allocation79_spill] sm:$0xff] }
 0x492   : > { %15374 = vst [vmem:[#allocation58_spill] sm:$0xff] %v13327_v63  ;;  %v10156_v56 = vpop.eup %10155  ;;  %v5070_v9 = vmul.f32 %v10154_v49, %v15379_v50 }
 0x493   : > { %v5069_v55 = vmul.f32 %v10156_v56, %v15377_v44  ;;  %v13335_v51 = vpop.eup %10157 }
 0x494   : > { %v13332_v48 = vpop.xlane.xlu0 %4056  ;;  %v5179_v62 = vpack.c.bf16 %v5071_v25, %v5070_v9  ;;  %v4736_v5 = vsel %vm3751_vm3, %v13335_v51, 0.0  ;;  %v13341_v35 = vpop.eup %10159  ;;  %v15384_v25 = vld [vmem:[#allocation83_spill] sm:$0xff] }
 0x495   : > { %15378 = vst [vmem:[#allocation97_spill] sm:$0xff] %v13332_v48  ;;  %v4642_v45 = vpop.xlane.xlu1 %4641  ;;  %v5178_v3 = vpack.c.bf16 %v5069_v55, %v5068_v2  ;;  %v4763_v49 = vsel %vm3751_vm3, %v13341_v35, 0.0  ;;  %v13353_v61 = vpack.i.bf16 %v15384_v25, %v15383_v38  ;;  %v15392_v25 = vld [vmem:[#allocation44_spill] sm:$0xff]  ;;  %v15424_v48 = vld [vmem:[#allocation77_spill] sm:$0xff] }
 0x496   : > { %10161 = vrcp.f32 %v4642_v45 }
 0x497   : > { %8691 = vmatprep.mubr.msk.bf16.mxu0 %vm3751_vm3, %v5178_v3  ;;  %15385 = vst [vmem:[#allocation108_spill] sm:$0xff] %v13353_v61 }
 0x498   : > { %8692 = vmatmul.mubr.msk.bf16.gmra.mxu0 %vm3751_vm3, %v5179_v62  ;;  %v4648_v11 = vpop.xlane.xlu0 %4647 }
 0x499   : > { %v13343_v56 = vpop.xlane.xlu1 %4071  ;;  %4737 = vadd.xlane.f32.xlu1 %v4736_v5 }
 0x49a   : > { %15380 = vst [vmem:[#allocation51_spill] sm:$0xff] %v13343_v56 }
 0x49c   : > { %v4645_v50 = vpop.xlane.xlu0 %4644 }
 0x49d   : > { %10163 = vrcp.f32 %v4645_v50  ;;  %v13347_v9 = vpop.xlane.xlu1 %4095  ;;  %4764 = vadd.xlane.f32.xlu1 %v4763_v49 }
 0x49e   : > { %15381 = vst [vmem:[#allocation19_spill] sm:$0xff] %v13347_v9  ;;  %10165 = vrcp.f32 %v4648_v11  ;;  %v15390_v11 = vld [vmem:[#allocation91_spill] sm:$0xff]  ;;  %v15391_v9 = vld [vmem:[#allocation126_spill] sm:$0xff] }
 0x49f   : > { %v4209_v49 = vsub.f32 %v15390_v11, %v13072_v54  ;;  %v15396_v11 = vld [vmem:[#allocation60_spill] sm:$0xff] }
 0x4a0   : > { %v13349_v3 = vpop.xlane.xlu0 %4074 }
 0x4a1   : > { %15382 = vst [vmem:[#allocation107_spill] sm:$0xff] %v13349_v3  ;;  %v4651_v62 = vpop.xlane.xlu1 %4650 }
 0x4a2   : > { %10167 = vrcp.f32 %v4651_v62 }
 0x4a3   : > { %v10162_v55 = vpop.eup %10161 }
 0x4a4   : > { %v13355_v2 = vpop.xlane.xlu0 %4098  ;;  %v5072_v38 = vmul.f32 %v10162_v55, %v15391_v9 }
 0x4a5   : > { %15386 = vst [vmem:[#allocation53_spill] sm:$0xff] %v13355_v2  ;;  %v13357_v44 = vpop.xlane.xlu1 %4065  ;;  %9698 = vrot.lane.b32.xlu0 %v13353_v61, %s10603_s21  ;;  %v15394_v61 = vld [vmem:[#allocation29_spill] sm:$0xff] }
 0x4a6   : > { %15387 = vst [vmem:[#allocation105_spill] sm:$0xff] %v13357_v44 }
 0x4a8   : > { %v13361_v45 = vpop.xlane.xlu0 %4068 }
 0x4a9   : > { %15388 = vst [vmem:[#allocation90_spill] sm:$0xff] %v13361_v45  ;;  %v13363_v5 = vpop.xlane.xlu1 %4089  ;;  %v15395_v45 = vld [vmem:[#allocation89_spill] sm:$0xff] }
 0x4aa   : > { %15389 = vst [vmem:[#allocation109_spill] sm:$0xff] %v13363_v5  ;;  %v10164_v50 = vpop.eup %10163  ;;  %v4216_v32 = vsub.f32 %v15395_v45, %v13078_v43  ;;  %v4410_v5 = vmul.f32 1.442695, %v4209_v49 }
 0x4ab   : > { %v5073_v62 = vmul.f32 %v10164_v50, %v15392_v25  ;;  %v10166_v44 = vpop.eup %10165 }
 0x4ac   : > { %v13369_v3 = vpop.xlane.xlu0 %4092  ;;  %v5074_v9 = vmul.f32 %v10166_v44, %v15396_v11  ;;  %v4424_v25 = vmul.f32 1.442695, %v4216_v32  ;;  %10169 = vpow2.f32 %v4410_v5  ;;  %v15402_v44 = vld [vmem:[#allocation49_spill] sm:$0xff]  ;;  %v15403_v32 = vld [vmem:[#allocation87_spill] sm:$0xff] }
 0x4ad   : > { %15393 = vst [vmem:[#allocation111_spill] sm:$0xff] %v13369_v3  ;;  %v4660_v2 = vpop.xlane.xlu1 %4659  ;;  %v5180_v56 = vpack.c.bf16 %v5073_v62, %v5072_v38  ;;  %v4219_v5 = vsub.f32 %v15403_v32, %v15402_v44 }
 0x4ae   : > { %9713 = vrot.lane.b32.xlu1 %v15394_v61, %s10604_s23  ;;  %10171 = vpow2.f32 %v4424_v25  ;;  %v15412_v61 = vld [vmem:[#allocation62_spill] sm:$0xff] }
 0x4af   : > { %8703 = vmatprep.mubr.msk.bf16.mxu1 %vm3751_vm3, %v5180_v56  ;;  %v10168_v40 = vpop.eup %10167  ;;  %v15400_v56 = vld [vmem:[#allocation25_spill] sm:$0xff]  ;;  %v4430_v25 = vmul.f32 1.442695, %v4219_v5 }
 0x4b0   : > { %v4654_v54 = vpop.xlane.xlu0 %4653  ;;  %v5075_v55 = vmul.f32 %v10168_v40, %v12874_v59  ;;  %v4210_v45 = vsub.f32 %v15400_v56, %v13017_v39 }
 0x4b1   : > { %v13378_v50 = vpop.xlane.xlu1 %4083 }
 0x4b2   : > { %15397 = vst [vmem:[#allocation114_spill] sm:$0xff] %v13378_v50  ;;  %v5181_v38 = vpack.c.bf16 %v5075_v55, %v5074_v9  ;;  %v4412_v40 = vmul.f32 1.442695, %v4210_v45 }
 0x4b4   : > { %v13380_v62 = vpop.xlane.xlu0 %4107  ;;  %8704 = vmatmul.mubr.msk.bf16.vlgmr.msra.gmra.mxu1 %vm3751_vm3, %v5181_v38 }
 0x4b5   : > { %15398 = vst [vmem:[#allocation66_spill] sm:$0xff] %v13380_v62  ;;  %v4663_v3 = vpop.xlane.xlu1 %4662 }
 0x4b6   : > { %10173 = vrcp.f32 %v4663_v3 }
 0x4b7   : > { %10175 = vrcp.f32 %v4654_v54 }
 0x4b8   : > { %v13383_v43 = vpop.xlane.xlu0 %4101  ;;  %10177 = vrcp.f32 %v4660_v2 }
 0x4b9   : > { %15399 = vst [vmem:[#allocation110_spill] sm:$0xff] %v13383_v43  ;;  %v13387_v49 = vpop.xlane.xlu1 %4077  ;;  %v13391_v9 = vpop.eup %10169  ;;  %v15409_v43 = vld [vmem:[#allocation52_spill] sm:$0xff] }
 0x4ba   : > { %15401 = vst [vmem:[#allocation57_spill] sm:$0xff] %v13387_v49  ;;  %v4739_v39 = vsel %vm3751_vm3, %v13391_v9, 0.0 }
 0x4bb   : > { %v13397_v3 = vpop.eup %10171 }
 0x4bc   : > { %v4657_v59 = vpop.xlane.xlu0 %4656  ;;  %v4760_v2 = vsel %vm3751_vm3, %v13397_v3, 0.0 }
 0x4bd   : > { %v4672_v11 = vpop.xlane.xlu1 %4671  ;;  %10179 = vrcp.f32 %v4657_v59 }
 0x4be   : > { %10181 = vpow2.f32 %v4412_v40 }
 0x4bf   : > { %10183 = vpow2.f32 %v4430_v25  ;;  %v15410_v25 = vld [vmem:[#allocation50_spill] sm:$0xff] }
 0x4c0   : > { %v13393_v55 = vpop.xlane.xlu0 %4086 }
 0x4c1   : > { %15404 = vst [vmem:[#allocation23_spill] sm:$0xff] %v13393_v55  ;;  %v4675_v38 = vpop.xlane.xlu1 %4674 }
 0x4c2   : > { %10185 = vrcp.f32 %v4675_v38  ;;  %v15420_v38 = vld [vmem:[#allocation63_spill] sm:$0xff] }
 0x4c3   : > { %v10174_v59 = vpop.eup %10173 }
 0x4c4   : > { %v13399_v56 = vpop.xlane.xlu0 %4110  ;;  %4740 = vadd.xlane.f32.xlu0 %v4739_v39  ;;  %v10176_v44 = vpop.eup %10175 }
 0x4c5   : > { %15405 = vst [vmem:[#allocation59_spill] sm:$0xff] %v13399_v56  ;;  %v13401_v54 = vpop.xlane.xlu1 %4113  ;;  %v10178_v32 = vpop.eup %10177  ;;  %v5079_v56 = vmul.f32 %v10174_v59, %v15409_v43  ;;  %v5076_v55 = vmul.f32 %v10176_v44, %v15410_v25 }
 0x4c6   : > { %15406 = vst [vmem:[#allocation20_spill] sm:$0xff] %v13401_v54  ;;  %v15411_v54 = vld [vmem:[#allocation46_spill] sm:$0xff] }
 0x4c8   : > { %v13405_v45 = vpop.xlane.xlu0 %4080  ;;  %4761 = vadd.xlane.f32.xlu0 %v4760_v2 }
 0x4c9   : > { %15407 = vst [vmem:[#allocation34_spill] sm:$0xff] %v13405_v45  ;;  %v13407_v40 = vpop.xlane.xlu1 %4683  ;;  %v5078_v45 = vmul.f32 %v10178_v32, %v15412_v61 }
 0x4ca   : > { %v10180_v5 = vpop.eup %10179 }
 0x4cb   : > { %v5077_v50 = vmul.f32 %v10180_v5, %v15411_v54  ;;  %v13414_v49 = vpop.eup %10181  ;;  %v5183_v36 = vpack.c.bf16 %v5079_v56, %v5078_v45  ;;  %v15416_v45 = vld [vmem:[#allocation81_spill] sm:$0xff] }
 0x4cc   : > { %v13409_v62 = vpop.xlane.xlu0 %4104  ;;  %v13422_v43 = vpop.eup %10183 }
 0x4cd   : > { %15408 = vst [vmem:[#allocation40_spill] sm:$0xff] %v13409_v62  ;;  %v4687_v39 = vpop.xlane.xlu1 %4686  ;;  %v5182_v2 = vpack.c.bf16 %v5077_v50, %v5076_v55  ;;  %v4742_v62 = vsel %vm3751_vm3, %v13414_v49, 0.0  ;;  %v4769_v61 = vsel %vm3751_vm3, %v13422_v43, 0.0 }
 0x4cf   : > { %8707 = vmatprep.mubr.msk.bf16.mxu1 %vm3751_vm3, %v5182_v2 }
 0x4d0   : > { %v4666_v63 = vpop.xlane.xlu0 %4665  ;;  %8708 = vmatmul.mubr.msk.bf16.gmra.mxu1 %vm3751_vm3, %v5183_v36  ;;  %v15417_v36 = vld [vmem:[#allocation86_spill] sm:$0xff] }
 0x4d1   : > { %v13418_v24 = vpop.xlane.xlu1 %4128  ;;  %10187 = vrcp.f32 %v4666_v63  ;;  %v10186_v63 = vpop.eup %10185 }
 0x4d2   : > { %15413 = vst [vmem:[#allocation45_spill] sm:$0xff] %v13418_v24  ;;  %4743 = vadd.xlane.f32.xlu1 %v4742_v62  ;;  %10189 = vrcp.f32 %v4672_v11  ;;  %v13437_v62 = vpack.i.bf16 %v15417_v36, %v15416_v45  ;;  %v15421_v11 = vld [vmem:[#allocation27_spill] sm:$0xff]  ;;  %v15423_v45 = vld [vmem:[#allocation117_spill] sm:$0xff]  ;;  %v5083_v22 = vmul.f32 %v10186_v63, %v15424_v48 }
 0x4d3   : > { %v4211_v25 = vsub.f32 %v15421_v11, %v15420_v38  ;;  %v15426_v11 = vld [vmem:[#allocation99_spill] sm:$0xff] }
 0x4d4   : > { %v13425_v54 = vpop.xlane.xlu0 %4119  ;;  %15418 = vst [vmem:[#allocation83_spill] sm:$0xff] %v13437_v62 }
 0x4d5   : > { %15414 = vst [vmem:[#allocation123_spill] sm:$0xff] %v13425_v54  ;;  %v13427_v59 = vpop.xlane.xlu1 %4695 }
 0x4d6   : > { %4770 = vadd.xlane.f32.xlu1 %v4769_v61 }
 0x4d8   : > { %v4669_v50 = vpop.xlane.xlu0 %4668 }
 0x4d9   : > { %v13431_v55 = vpop.xlane.xlu1 %4722  ;;  %10191 = vrcp.f32 %v4669_v50 }
 0x4dc   : > { %v13433_v56 = vpop.xlane.xlu0 %4122 }
 0x4dd   : > { %15415 = vst [vmem:[#allocation79_spill] sm:$0xff] %v13433_v56  ;;  %v4717_v44 = vpop.xlane.xlu1 %4716  ;;  %v15422_v56 = vld [vmem:[#allocation130_spill] sm:$0xff] }
 0x4de   : > { %9708 = vrot.lane.b32.xlu0 %v13437_v62, %s10603_s21  ;;  %v10188_v61 = vpop.eup %10187  ;;  %v4218_v36 = vsub.f32 %v15423_v45, %v15422_v56  ;;  %v15425_v62 = vld [vmem:[#allocation13_spill] sm:$0xff] }
 0x4df   : > { %v10190_v24 = vpop.eup %10189  ;;  %v5080_v12 = vmul.f32 %v10188_v61, %v13088_v52 }
 0x4e0   : > { %v13441_v32 = vpop.xlane.xlu0 %4116  ;;  %v5082_v7 = vmul.f32 %v10190_v24, %v15426_v11  ;;  %v4428_v58 = vmul.f32 1.442695, %v4218_v36  ;;  %v15427_v24 = vld [vmem:[#allocation95_spill] sm:$0xff] }
 0x4e1   : > { %15419 = vst [vmem:[#allocation91_spill] sm:$0xff] %v13441_v32  ;;  %v13443_v5 = vpop.xlane.xlu1 %4701  ;;  %v4414_v32 = vmul.f32 1.442695, %v4211_v25  ;;  %v15428_v25 = vld [vmem:[#allocation106_spill] sm:$0xff] }
 0x4e2   : > { %v5185_v56 = vpack.c.bf16 %v5083_v22, %v5082_v7  ;;  %v4221_v61 = vsub.f32 %v15428_v25, %v13163_v42 }
 0x4e3   : > { %10193 = vpow2.f32 %v4414_v32 }
 0x4e4   : > { %v4678_v2 = vpop.xlane.xlu0 %4677  ;;  %10195 = vpow2.f32 %v4428_v58 }
 0x4e5   : > { %v13447_v50 = vpop.xlane.xlu1 %4728  ;;  %10197 = vrcp.f32 %v4687_v39 }
 0x4e6   : > { %v10192_v54 = vpop.eup %10191  ;;  %10199 = vrcp.f32 %v4678_v2 }
 0x4e7   : > { %9723 = vrot.lane.b32.xlu1 %v15425_v62, %s10604_s23  ;;  %v5081_v38 = vmul.f32 %v10192_v54, %v13123_v19  ;;  %10201 = vrcp.f32 %v13407_v40  ;;  %v4434_v40 = vmul.f32 1.442695, %v4221_v61 }
 0x4e8   : > { %v13454_v34 = vpop.xlane.xlu0 %4131 }
 0x4e9   : > { %v13459_v27 = vpop.xlane.xlu1 %4707  ;;  %v5184_v28 = vpack.c.bf16 %v5081_v38, %v5080_v12  ;;  %v4212_v12 = vsub.f32 %v15427_v24, %v13135_v53 }
 0x4eb   : > { %8719 = vmatprep.mubr.msk.bf16.mxu0 %vm3751_vm3, %v5184_v28  ;;  %v4416_v32 = vmul.f32 1.442695, %v4212_v12 }
 0x4ec   : > { %v13462_v48 = vpop.xlane.xlu0 %4125  ;;  %8720 = vmatmul.mubr.msk.bf16.vlgmr.msra.gmra.mxu0 %vm3751_vm3, %v5185_v56  ;;  %v15429_v56 = vld [vmem:[#allocation133_spill] sm:$0xff] }
 0x4ed   : > { %v13465_v63 = vpop.xlane.xlu1 %4734 }
 0x4f0   : > { %v4681_v52 = vpop.xlane.xlu0 %4680  ;;  %v13476_v39 = vpop.eup %10193 }
 0x4f1   : > { %v9704_v19 = vpop.permute.xlu1 %9703  ;;  %10203 = vrcp.f32 %v4681_v52  ;;  %v13478_v2 = vpop.eup %10195  ;;  %v4745_v36 = vsel %vm3751_vm3, %v13476_v39, 0.0 }
 0x4f2   : > { %v9706_v7 = vunpack.i.h.bf16 %v9704_v19  ;;  %v9705_v22 = vunpack.i.l.bf16 %v9704_v19  ;;  %10205 = vpow2.f32 %v4416_v32  ;;  %v10198_v53 = vpop.eup %10197  ;;  %v4766_v24 = vsel %vm3751_vm3, %v13478_v2, 0.0 }
 0x4f3   : > { %v10200_v38 = vpop.eup %10199  ;;  %10207 = vpow2.f32 %v4434_v40  ;;  %v5087_v52 = vmul.f32 %v10198_v53, %v15429_v56 }
 0x4f4   : > { %v2014_v28 = vpack.c.bf16 %v9706_v7, %v9705_v22  ;;  %v13470_v54 = vpop.xlane.xlu0 %4134  ;;  %v10202_v11 = vpop.eup %10201  ;;  %10209 = vrcp.f32 %v4717_v44  ;;  %v5084_v12 = vmul.f32 %v10200_v38, %v13170_v60  ;;  %v15430_v22 = vld [vmem:[#allocation132_spill] sm:$0xff] }
 0x4f6   : > { %8743 = vmatprep.subr.bf16.mxu0 %v2014_v28 }
 0x4f7   : > { %8744 = vmatpush3.bf16.msra.mxu0 %v2014_v28  ;;  %v5086_v28 = vmul.f32 %v10202_v11, %v15430_v22 }
 0x4f8   : > { %v13474_v58 = vpop.xlane.xlu0 %4719 }
 0x4f9   : > { %v5187_v25 = vpack.c.bf16 %v5087_v52, %v5086_v28 }
 0x4fc   : > { %v4690_v45 = vpop.xlane.xlu0 %4689 }
 0x4fd   : > { %4746 = vadd.xlane.f32.xlu0 %v4745_v36 }
 0x4fe   : > { %v10204_v42 = vpop.eup %10203 }
 0x4ff   : > { %v5085_v7 = vmul.f32 %v10204_v42, %v13206_v6  ;;  %v13492_v44 = vpop.eup %10205 }
 0x500   : > { %v4714_v19 = vpop.xlane.xlu0 %4713  ;;  %v4748_v60 = vsel %vm3751_vm3, %v13492_v44, 0.0  ;;  %v13496_v6 = vpop.eup %10207 }
 0x501   : > { %10211 = vrcp.f32 %v4714_v19  ;;  %4767 = vadd.xlane.f32.xlu0 %v4766_v24  ;;  %v5186_v32 = vpack.c.bf16 %v5085_v7, %v5084_v12  ;;  %v10210_v53 = vpop.eup %10209  ;;  %v4775_v11 = vsel %vm3751_vm3, %v13496_v6, 0.0  ;;  %v15431_v12 = vld [vmem:[#allocation70_spill] sm:$0xff]  ;;  %v15432_v7 = vld [vmem:[#allocation75_spill] sm:$0xff] }
 0x502   : > { %10213 = vrcp.f32 %v4690_v45  ;;  %v5097_v45 = vmul.f32 %v10210_v53, %v13146_v17  ;;  %v13510_v22 = vpack.i.bf16 %v15432_v7, %v15431_v12 }
 0x503   : > { %8723 = vmatprep.mubr.msk.bf16.mxu0 %vm3751_vm3, %v5186_v32 }
 0x504   : > { %v13489_v61 = vpop.xlane.xlu0 %4698  ;;  %8724 = vmatmul.mubr.msk.bf16.gmra.mxu0 %vm3751_vm3, %v5187_v25 }
 0x508   : > { %v4693_v40 = vpop.xlane.xlu0 %4692 }
 0x509   : > { %10215 = vrcp.f32 %v4693_v40  ;;  %v15433_v40 = vld [vmem:[#allocation98_spill] sm:$0xff] }
 0x50a   : > { %10217 = vrcp.f32 %v13459_v27 }
 0x50b   : > { %4749 = vadd.xlane.f32.xlu1 %v4748_v60  ;;  %v4213_v60 = vsub.f32 %v15433_v40, %v13150_v14 }
 0x50c   : > { %v13498_v36 = vpop.xlane.xlu0 %4725 }
 0x50e   : > { %v10212_v38 = vpop.eup %10211 }
 0x50f   : > { %4776 = vadd.xlane.f32.xlu1 %v4775_v11  ;;  %v5096_v42 = vmul.f32 %v10212_v38, %v13249_v0  ;;  %v10214_v19 = vpop.eup %10213 }
 0x510   : > { %v13504_v56 = vpop.xlane.xlu0 %4704  ;;  %v5088_v17 = vmul.f32 %v10214_v19, %v13229_v21  ;;  %v15435_v21 = vld [vmem:[#allocation103_spill] sm:$0xff] }
 0x511   : > { %v5192_v52 = vpack.c.bf16 %v5097_v45, %v5096_v42  ;;  %v15434_v42 = vld [vmem:[#allocation24_spill] sm:$0xff]  ;;  %v4220_v45 = vsub.f32 %v15435_v21, %v13152_v33 }
 0x513   : > { %8751 = vmatprep.mubr.msk.bf16.mxu0 %vm3751_vm3, %v5192_v52  ;;  %v4432_v7 = vmul.f32 1.442695, %v4220_v45 }
 0x514   : > { %v4711_v24 = vpop.xlane.xlu0 %4710 }
 0x515   : > { %10219 = vrcp.f32 %v4711_v24 }
 0x516   : > { %v10216_v28 = vpop.eup %10215  ;;  %10221 = vrcp.f32 %v13465_v63 }
 0x517   : > { %9718 = vrot.lane.b32.xlu0 %v13510_v22, %s10603_s21  ;;  %v5089_v0 = vmul.f32 %v10216_v28, %v13266_v46  ;;  %v10218_v63 = vpop.eup %10217  ;;  %v4418_v46 = vmul.f32 1.442695, %v4213_v60 }
 0x518   : > { %v4732_v27 = vpop.xlane.xlu0 %4731  ;;  %v13525_v24 = vmul.f32 %v10218_v63, %v13186_v4 }
 0x519   : > { %10223 = vrcp.f32 %v4732_v27  ;;  %v5188_v32 = vpack.c.bf16 %v5089_v0, %v5088_v17 }
 0x51a   : > { %10225 = vpow2.f32 %v4418_v46 }
 0x51b   : > { %8735 = vmatprep.mubr.msk.bf16.mxu1 %vm3751_vm3, %v5188_v32  ;;  %10227 = vpow2.f32 %v4432_v7  ;;  %v15436_v32 = vld [vmem:[#allocation22_spill] sm:$0xff] }
 0x51c   : > { %v9699_v25 = vpop.permute.xlu0 %9698 }
 0x51d   : > { %v9701_v53 = vunpack.i.h.bf16 %v9699_v25  ;;  %v9700_v38 = vunpack.i.l.bf16 %v9699_v25  ;;  %v4214_v25 = vsub.f32 %v15436_v32, %v13099_v57 }
 0x51f   : > { %v2010_v11 = vpack.c.bf16 %v9701_v53, %v9700_v38  ;;  %v4420_v38 = vmul.f32 1.442695, %v4214_v25 }
 0x520   : > { %9733 = vrot.lane.b32.xlu1 %v15434_v42, %s10604_s23 }
 0x521   : > { %8727 = vmatprep.subr.bf16.mxu1 %v2010_v11  ;;  %10229 = vpow2.f32 %v4420_v38 }
 0x522   : > { %v10220_v52 = vpop.eup %10219  ;;  %v4738_v19 = vpop.xlane.xlu1 %4737  ;;  %8728 = vmatpush3.bf16.msra.mxu1 %v2010_v11  ;;  %v15437_v11 = vld [vmem:[#allocation94_spill] sm:$0xff] }
 0x523   : > { %v13528_v14 = vmul.f32 %v10220_v52, %v13309_v18  ;;  %v10222_v12 = vpop.eup %10221  ;;  %v4223_v63 = vsub.f32 %v15437_v11, %v13131_v23 }
 0x524   : > { %v13536_v27 = vmul.f32 %v10222_v12, %v13197_v15 }
 0x525   : > { %v4438_v15 = vmul.f32 1.442695, %v4223_v63 }
 0x526   : > { %v10224_v17 = vpop.eup %10223  ;;  %v4765_v0 = vpop.xlane.xlu1 %4764 }
 0x527   : > { %v13533_v33 = vmul.f32 %v10224_v17, %v13317_v13  ;;  %v13544_v13 = vpop.eup %10225  ;;  %10231 = vpow2.f32 %v4438_v15  ;;  %v15438_v17 = vld [vmem:[#allocation73_spill] sm:$0xff]  ;;  %v15441_v15 = vld [vmem:[#allocation35_spill] sm:$0xff] }
 0x528   : > { %v4751_v21 = vsel %vm3751_vm3, %v13544_v13, 0.0  ;;  %v13548_v45 = vpop.eup %10227  ;;  %10233 = vrcp.f32 %v4738_v19 }
 0x529   : > { %v5195_v4 = vpack.c.bf16 %v13536_v27, %v13533_v33  ;;  %v4772_v57 = vsel %vm3751_vm3, %v13548_v45, 0.0  ;;  %v15451_v27 = vld [vmem:[#allocation38_spill] sm:$0xff] }
 0x52a   : > { %v9714_v18 = vpop.permute.xlu1 %9713 }
 0x52b   : > { %v9716_v40 = vunpack.i.h.bf16 %v9714_v18  ;;  %v9715_v60 = vunpack.i.l.bf16 %v9714_v18  ;;  %v15439_v18 = vld [vmem:[#allocation76_spill] sm:$0xff] }
 0x52c   : > { %v13562_v32 = vpack.i.bf16 %v15439_v18, %v15438_v17 }
 0x52d   : > { %v2013_v53 = vpack.c.bf16 %v9716_v40, %v9715_v60  ;;  %v15440_v60 = vld [vmem:[#allocation92_spill] sm:$0xff] }
 0x52e   : > { %v13552_v46 = vpop.eup %10229 }
 0x52f   : > { %8745 = vmatprep.subr.bf16.mxu0 %v2013_v53  ;;  %v4754_v23 = vsel %vm3751_vm3, %v13552_v46, 0.0 }
 0x530   : > { %8746 = vmatpush3.bf16.msra.mxu0 %v2013_v53  ;;  %v4215_v53 = vsub.f32 %v15440_v60, %v13116_v16 }
 0x534   : > { %v13556_v52 = vpop.eup %10231 }
 0x535   : > { %v4781_v12 = vsel %vm3751_vm3, %v13556_v52, 0.0  ;;  %v10234_v19 = vpop.eup %10233 }
 0x536   : > { %4752 = vadd.xlane.f32.xlu0 %v4751_v21  ;;  %v15442_v21 = vld [vmem:[#allocation93_spill] sm:$0xff] }
 0x53a   : > { %4773 = vadd.xlane.f32.xlu0 %v4772_v57  ;;  %v4222_v57 = vsub.f32 %v15442_v21, %v13118_v31 }
 0x53c   : > { %v4436_v18 = vmul.f32 1.442695, %v4222_v57 }
 0x544   : > { %4755 = vadd.xlane.f32.xlu1 %v4754_v23 }
 0x548   : > { %4782 = vadd.xlane.f32.xlu1 %v4781_v12 }
 0x54d   : > { %v4741_v7 = vpop.xlane.xlu0 %4740 }
 0x54e   : > { %10235 = vrcp.f32 %v4741_v7  ;;  %v13573_v7 = vmul.f32 %v10234_v19, %v13335_v51 }
 0x54f   : > { %10237 = vrcp.f32 %v4765_v0  ;;  %v4422_v0 = vmul.f32 1.442695, %v4215_v53 }
 0x550   : > { %9728 = vrot.lane.b32.xlu0 %v13562_v32, %s10603_s21 }
 0x551   : > { %v4762_v25 = vpop.xlane.xlu0 %4761 }
 0x552   : > { %10239 = vrcp.f32 %v4762_v25 }
 0x553   : > { %10241 = vpow2.f32 %v4422_v0  ;;  %v15444_v0 = vld [vmem:[#allocation124_spill] sm:$0xff] }
 0x554   : > { %10243 = vpow2.f32 %v4436_v18 }
 0x555   : > { %v9709_v40 = vpop.permute.xlu0 %9708 }
 0x556   : > { %v9711_v38 = vunpack.i.h.bf16 %v9709_v40  ;;  %v9710_v11 = vunpack.i.l.bf16 %v9709_v40 }
 0x558   : > { %v2009_v63 = vpack.c.bf16 %v9711_v38, %v9710_v11  ;;  %v15443_v38 = vld [vmem:[#allocation120_spill] sm:$0xff] }
 0x559   : > { %9743 = vrot.lane.b32.xlu1 %v15441_v15, %s10604_s23  ;;  %v4224_v11 = vsub.f32 %v15443_v38, %v13262_v8 }
 0x55a   : > { %8729 = vmatprep.subr.bf16.mxu1 %v2009_v63 }
 0x55b   : > { %v10236_v23 = vpop.eup %10235  ;;  %v4744_v12 = vpop.xlane.xlu1 %4743  ;;  %8730 = vmatpush3.bf16.msra.mxu1 %v2009_v63  ;;  %v4440_v57 = vmul.f32 1.442695, %v4224_v11 }
 0x55c   : > { %v13576_v16 = vmul.f32 %v10236_v23, %v13391_v9  ;;  %v10238_v17 = vpop.eup %10237  ;;  %v4233_v23 = vsub.f32 %v15444_v0, %v13284_v29 }
 0x55d   : > { %v13584_v53 = vmul.f32 %v10238_v17, %v13341_v35  ;;  %10245 = vpow2.f32 %v4440_v57  ;;  %v15446_v57 = vld [vmem:[#allocation121_spill] sm:$0xff] }
 0x55e   : > { %v4458_v35 = vmul.f32 1.442695, %v4233_v23  ;;  %v4225_v0 = vsub.f32 %v15446_v57, %v13272_v41 }
 0x55f   : > { %v10240_v40 = vpop.eup %10239  ;;  %v4771_v60 = vpop.xlane.xlu1 %4770 }
 0x560   : > { %v13581_v31 = vmul.f32 %v10240_v40, %v13397_v3  ;;  %v13592_v3 = vpop.eup %10241  ;;  %10247 = vpow2.f32 %v4458_v35 }
 0x561   : > { %v4757_v17 = vsel %vm3751_vm3, %v13592_v3, 0.0  ;;  %v13596_v18 = vpop.eup %10243  ;;  %10249 = vrcp.f32 %v4744_v12 }
 0x562   : > { %v5200_v51 = vpack.c.bf16 %v13584_v53, %v13581_v31  ;;  %v4778_v8 = vsel %vm3751_vm3, %v13596_v18, 0.0 }
 0x563   : > { %v9724_v9 = vpop.permute.xlu1 %9723 }
 0x564   : > { %v9726_v63 = vunpack.i.h.bf16 %v9724_v9  ;;  %v9725_v19 = vunpack.i.l.bf16 %v9724_v9 }
 0x566   : > { %v2012_v21 = vpack.c.bf16 %v9726_v63, %v9725_v19  ;;  %v15445_v63 = vld [vmem:[#allocation26_spill] sm:$0xff] }
 0x568   : > { %8747 = vmatprep.subr.bf16.mxu0 %v2012_v21 }
 0x569   : > { %8748 = vmatpush3.bf16.msra.mxu0 %v2012_v21 }
 0x56a   : > { %v13600_v40 = vpop.eup %10245 }
 0x56b   : > { %v4784_v29 = vsel %vm3751_vm3, %v13600_v40, 0.0 }
 0x56d   : > { %v13604_v9 = vpop.eup %10247 }
 0x56e   : > { %v4811_v38 = vsel %vm3751_vm3, %v13604_v9, 0.0 }
 0x56f   : > { %4758 = vadd.xlane.f32.xlu0 %v4757_v17  ;;  %v10250_v17 = vpop.eup %10249 }
 0x573   : > { %4779 = vadd.xlane.f32.xlu0 %v4778_v8  ;;  %v15448_v8 = vld [vmem:[#allocation122_spill] sm:$0xff] }
 0x57d   : > { %4785 = vadd.xlane.f32.xlu1 %v4784_v29  ;;  %v4232_v29 = vsub.f32 %v15448_v8, %v13274_v47 }
 0x581   : > { %4812 = vadd.xlane.f32.xlu1 %v4811_v38  ;;  %v4442_v38 = vmul.f32 1.442695, %v4225_v0 }
 0x586   : > { %v4747_v11 = vpop.xlane.xlu0 %4746 }
 0x587   : > { %10251 = vrcp.f32 %v4747_v11  ;;  %v13621_v11 = vmul.f32 %v10250_v17, %v13414_v49 }
 0x588   : > { %10253 = vrcp.f32 %v4771_v60  ;;  %v15447_v60 = vld [vmem:[#allocation41_spill] sm:$0xff] }
 0x589   : > { %9738 = vrot.lane.b32.xlu0 %v15445_v63, %s10604_s23 }
 0x58a   : > { %v4768_v19 = vpop.xlane.xlu0 %4767 }
 0x58b   : > { %10255 = vrcp.f32 %v4768_v19  ;;  %v4456_v19 = vmul.f32 1.442695, %v4232_v29 }
 0x58c   : > { %10257 = vrcp.f32 %v13474_v58 }
 0x58d   : > { %10259 = vrcp.f32 %v13498_v36 }
 0x58e   : > { %v9719_v21 = vpop.permute.xlu0 %9718  ;;  %10261 = vrcp.f32 %v13431_v55 }
 0x58f   : > { %v9721_v23 = vunpack.i.h.bf16 %v9719_v21  ;;  %v9720_v35 = vunpack.i.l.bf16 %v9719_v21  ;;  %10263 = vrcp.f32 %v13447_v50 }
 0x590   : > { %10265 = vpow2.f32 %v4442_v38 }
 0x591   : > { %v2008_v12 = vpack.c.bf16 %v9721_v23, %v9720_v35  ;;  %10267 = vpow2.f32 %v4456_v19  ;;  %v15450_v19 = vld [vmem:[#allocation119_spill] sm:$0xff] }
 0x592   : > { %9753 = vrot.lane.b32.xlu1 %v15447_v60, %s10604_s23  ;;  %v4235_v50 = vsub.f32 %v15450_v19, %v13255_v1 }
 0x593   : > { %8731 = vmatprep.subr.bf16.mxu1 %v2008_v12 }
 0x594   : > { %v10252_v41 = vpop.eup %10251  ;;  %v4750_v58 = vpop.xlane.xlu1 %4749  ;;  %8732 = vmatpush3.bf16.msra.mxu1 %v2008_v12  ;;  %v15449_v12 = vld [vmem:[#allocation116_spill] sm:$0xff]  ;;  %v4462_v28 = vmul.f32 1.442695, %v4235_v50  ;;  %v15453_v50 = vld [vmem:[#allocation115_spill] sm:$0xff] }
 0x595   : > { %v13624_v55 = vmul.f32 %v10252_v41, %v13476_v39  ;;  %v10254_v36 = vpop.eup %10253  ;;  %v4226_v17 = vsub.f32 %v15449_v12, %v13227_v37 }
 0x596   : > { %v13629_v47 = vmul.f32 %v10254_v36, %v13422_v43 }
 0x598   : > { %v10256_v21 = vpop.eup %10255  ;;  %v4777_v57 = vpop.xlane.xlu1 %4776 }
 0x599   : > { %v13632_v0 = vmul.f32 %v10256_v21, %v13478_v2  ;;  %v10258_v39 = vpop.eup %10257  ;;  %v4444_v21 = vmul.f32 1.442695, %v4226_v17 }
 0x59a   : > { %v10260_v35 = vpop.eup %10259  ;;  %v5098_v43 = vmul.f32 %v10258_v39, %v13220_v10 }
 0x59b   : > { %v10262_v38 = vpop.eup %10261  ;;  %v5100_v2 = vmul.f32 %v10260_v35, %v13288_v20  ;;  %10269 = vpow2.f32 %v4444_v21  ;;  %v15459_v21 = vld [vmem:[#allocation71_spill] sm:$0xff] }
 0x59c   : > { %v9734_v23 = vpop.permute.xlu1 %9733  ;;  %v10264_v41 = vpop.eup %10263  ;;  %v5099_v49 = vmul.f32 %v10262_v38, %v13129_v30  ;;  %10271 = vpow2.f32 %v4462_v28 }
 0x59d   : > { %v9736_v8 = vunpack.i.h.bf16 %v9734_v23  ;;  %v9735_v29 = vunpack.i.l.bf16 %v9734_v23  ;;  %v5101_v25 = vmul.f32 %v10264_v41, %v13174_v26  ;;  %v13644_v12 = vpop.eup %10265  ;;  %10273 = vrcp.f32 %v13489_v61  ;;  %v15452_v61 = vld [vmem:[#allocation85_spill] sm:$0xff] }
 0x59e   : > { %v5193_v37 = vpack.c.bf16 %v5099_v49, %v5098_v43  ;;  %v4787_v10 = vsel %vm3751_vm3, %v13644_v12, 0.0  ;;  %v13650_v1 = vpop.eup %10267  ;;  %10275 = vrcp.f32 %v13504_v56  ;;  %v4227_v49 = vsub.f32 %v15453_v50, %v15452_v61  ;;  %v15457_v41 = vld [vmem:[#allocation65_spill] sm:$0xff]  ;;  %v15458_v43 = vld [vmem:[#allocation118_spill] sm:$0xff] }
 0x59f   : > { %v2011_v36 = vpack.c.bf16 %v9736_v8, %v9735_v29  ;;  %v5194_v23 = vpack.c.bf16 %v5101_v25, %v5100_v2  ;;  %v4808_v30 = vsel %vm3751_vm3, %v13650_v1, 0.0  ;;  %10277 = vrcp.f32 %v13427_v59  ;;  %v15456_v29 = vld [vmem:[#allocation69_spill] sm:$0xff] }
 0x5a0   : > { %10279 = vrcp.f32 %v13443_v5  ;;  %v15454_v5 = vld [vmem:[#allocation16_spill] sm:$0xff]  ;;  %v4446_v2 = vmul.f32 1.442695, %v4227_v49 }
 0x5a1   : > { %8749 = vmatprep.subr.bf16.mxu0 %v2011_v36  ;;  %10281 = vrcp.f32 %v4750_v58 }
 0x5a2   : > { %8750 = vmatpush3.bf16.msra.mxu0 %v2011_v36  ;;  %v4234_v36 = vsub.f32 %v15458_v43, %v15457_v41 }
 0x5a5   : > { %8752 = vmatmul.mubr.msk.bf16.vlgmr.msra.gmra.mxu0 %vm3751_vm3, %v5193_v37 }
 0x5a6   : > { %8755 = vmatprep.mubr.msk.bf16.mxu0 %vm3751_vm3, %v5194_v23 }
 0x5a8   : > { %4788 = vadd.xlane.f32.xlu0 %v4787_v10  ;;  %v13662_v26 = vpop.eup %10269  ;;  %v15460_v10 = vld [vmem:[#allocation28_spill] sm:$0xff] }
 0x5a9   : > { %v4790_v20 = vsel %vm3751_vm3, %v13662_v26, 0.0  ;;  %v13666_v28 = vpop.eup %10271 }
 0x5aa   : > { %v4817_v25 = vsel %vm3751_vm3, %v13666_v28, 0.0  ;;  %v10274_v31 = vpop.eup %10273 }
 0x5ab   : > { %v5091_v58 = vmul.f32 %v10274_v31, %v15454_v5 }
 0x5ac   : > { %4809 = vadd.xlane.f32.xlu0 %v4808_v30 }
 0x5ad   : > { %8756 = vmatmul.mubr.msk.bf16.gmra.mxu0 %vm3751_vm3, %v5195_v4 }
 0x5ae   : > { %8783 = vmatprep.mubr.msk.bf16.mxu0 %vm3751_vm3, %v5200_v51  ;;  %v10276_v51 = vpop.eup %10275 }
 0x5af   : > { %v10278_v59 = vpop.eup %10277  ;;  %v5093_v38 = vmul.f32 %v10276_v51, %v15456_v29  ;;  %v15465_v29 = vld [vmem:[#allocation97_spill] sm:$0xff] }
 0x5b0   : > { %v10280_v35 = vpop.eup %10279  ;;  %v5090_v19 = vmul.f32 %v10278_v59, %v15459_v21  ;;  %v15462_v59 = vld [vmem:[#allocation56_spill] sm:$0xff] }
 0x5b1   : > { %v10282_v8 = vpop.eup %10281  ;;  %v5092_v30 = vmul.f32 %v10280_v35, %v15460_v10  ;;  %v15467_v10 = vld [vmem:[#allocation21_spill] sm:$0xff] }
 0x5b3   : > { %v5190_v31 = vpack.c.bf16 %v5093_v38, %v5092_v30  ;;  %v15466_v38 = vld [vmem:[#allocation127_spill] sm:$0xff] }
 0x5b4   : > { %v4237_v41 = vsub.f32 %v15466_v38, %v15465_v29 }
 0x5b6   : > { %4791 = vadd.xlane.f32.xlu1 %v4790_v20  ;;  %v5189_v20 = vpack.c.bf16 %v5091_v58, %v5090_v19 }
 0x5ba   : > { %4818 = vadd.xlane.f32.xlu1 %v4817_v25  ;;  %v13687_v25 = vmul.f32 %v10282_v8, %v13492_v44  ;;  %v15463_v8 = vpack.c.bf16 %v13528_v14, %v13525_v24 }
 0x5bf   : > { %v4753_v33 = vpop.xlane.xlu0 %4752 }
 0x5c0   : > { %10283 = vrcp.f32 %v4753_v33 }
 0x5c1   : > { %10285 = vrcp.f32 %v4777_v57  ;;  %v15455_v57 = vld [vmem:[#allocation31_spill] sm:$0xff] }
 0x5c2   : > { %9748 = vrot.lane.b32.xlu0 %v15451_v27, %s10604_s23 }
 0x5c3   : > { %v4774_v4 = vpop.xlane.xlu0 %4773 }
 0x5c4   : > { %10287 = vrcp.f32 %v4774_v4 }
 0x5c5   : > { %10289 = vpow2.f32 %v4446_v2 }
 0x5c7   : > { %v9729_v53 = vpop.permute.xlu0 %9728 }
 0x5c8   : > { %v9731_v56 = vunpack.i.h.bf16 %v9729_v53  ;;  %v9730_v39 = vunpack.i.l.bf16 %v9729_v53  ;;  %v4460_v53 = vmul.f32 1.442695, %v4234_v36  ;;  %v4466_v36 = vmul.f32 1.442695, %v4237_v41 }
 0x5ca   : > { %v2007_v17 = vpack.c.bf16 %v9731_v56, %v9730_v39  ;;  %10291 = vpow2.f32 %v4460_v53  ;;  %v15461_v39 = vld [vmem:[#allocation74_spill] sm:$0xff] }
 0x5cb   : > { %9763 = vrot.lane.b32.xlu1 %v15455_v57, %s10604_s23  ;;  %v4228_v35 = vsub.f32 %v15462_v59, %v15461_v39 }
 0x5cc   : > { %8733 = vmatprep.subr.bf16.mxu1 %v2007_v17 }
 0x5cd   : > { %v10284_v37 = vpop.eup %10283  ;;  %v4756_v23 = vpop.xlane.xlu1 %4755  ;;  %8734 = vmatpush3.bf16.msra.mxu1 %v2007_v17 }
 0x5ce   : > { %v13690_v33 = vmul.f32 %v10284_v37, %v13544_v13  ;;  %v10286_v4 = vpop.eup %10285 }
 0x5cf   : > { %v13700_v44 = vmul.f32 %v10286_v4, %v13496_v6  ;;  %v15464_v6 = vpack.c.bf16 %v13576_v16, %v13573_v7  ;;  %v15468_v4 = vld [vmem:[#allocation15_spill] sm:$0xff] }
 0x5d0   : > { %8736 = vmatmul.mubr.msk.bf16.vlgmr.msra.gmra.mxu1 %vm3751_vm3, %v5189_v20 }
 0x5d1   : > { %v10288_v61 = vpop.eup %10287  ;;  %v4783_v50 = vpop.xlane.xlu1 %4782  ;;  %8739 = vmatprep.mubr.msk.bf16.mxu1 %vm3751_vm3, %v5190_v31  ;;  %v15469_v31 = vld [vmem:[#allocation61_spill] sm:$0xff] }
 0x5d2   : > { %v13697_v49 = vmul.f32 %v10288_v61, %v13548_v45  ;;  %v4448_v45 = vmul.f32 1.442695, %v4228_v35  ;;  %v13716_v43 = vpop.eup %10289  ;;  %v4229_v53 = vsub.f32 %v15469_v31, %v15468_v4  ;;  %v15470_v35 = vld [vmem:[#allocation39_spill] sm:$0xff] }
 0x5d3   : > { %v4793_v24 = vsel %vm3751_vm3, %v13716_v43, 0.0 }
 0x5d4   : > { %v5202_v13 = vpack.c.bf16 %v13700_v44, %v13697_v49  ;;  %10293 = vpow2.f32 %v4448_v45 }
 0x5d5   : > { %v9744_v56 = vpop.permute.xlu1 %9743  ;;  %10295 = vpow2.f32 %v4466_v36 }
 0x5d6   : > { %v9746_v5 = vunpack.i.h.bf16 %v9744_v56  ;;  %v9745_v58 = vunpack.i.l.bf16 %v9744_v56  ;;  %10297 = vrcp.f32 %v4756_v23  ;;  %v15471_v23 = vld [vmem:[#allocation58_spill] sm:$0xff] }
 0x5d7   : > { %v13720_v14 = vpop.eup %10291 }
 0x5d8   : > { %v2022_v17 = vpack.c.bf16 %v9746_v5, %v9745_v58  ;;  %8740 = vmatmul.mubr.msk.bf16.gmra.mxu1 %vm3751_vm3, %v15463_v8  ;;  %v4814_v7 = vsel %vm3751_vm3, %v13720_v14, 0.0  ;;  %v15472_v5 = vld [vmem:[#allocation125_spill] sm:$0xff] }
 0x5d9   : > { %8767 = vmatprep.mubr.msk.bf16.mxu1 %vm3751_vm3, %v15464_v6  ;;  %v4236_v58 = vsub.f32 %v15472_v5, %v15471_v23 }
 0x5da   : > { %8775 = vmatprep.subr.bf16.mxu0 %v2022_v17 }
 0x5db   : > { %8776 = vmatpush3.bf16.msra.mxu0 %v2022_v17  ;;  %v4464_v38 = vmul.f32 1.442695, %v4236_v58 }
 0x5e1   : > { %4794 = vadd.xlane.f32.xlu0 %v4793_v24  ;;  %v13724_v16 = vpop.eup %10293 }
 0x5e2   : > { %v4796_v2 = vsel %vm3751_vm3, %v13724_v16, 0.0  ;;  %v13728_v21 = vpop.eup %10295 }
 0x5e3   : > { %v4823_v19 = vsel %vm3751_vm3, %v13728_v21, 0.0  ;;  %v10298_v59 = vpop.eup %10297 }
 0x5e4   : > { %v13741_v6 = vmul.f32 %v10298_v59, %v13552_v46 }
 0x5e5   : > { %4815 = vadd.xlane.f32.xlu0 %v4814_v7 }
 0x5ef   : > { %4797 = vadd.xlane.f32.xlu1 %v4796_v2 }
 0x5f3   : > { %4824 = vadd.xlane.f32.xlu1 %v4823_v19  ;;  %v15473_v19 = vld [vmem:[#allocation80_spill] sm:$0xff] }
 0x5f8   : > { %v4759_v37 = vpop.xlane.xlu0 %4758 }
 0x5f9   : > { %10299 = vrcp.f32 %v4759_v37  ;;  %v15474_v37 = vld [vmem:[#allocation33_spill] sm:$0xff] }
 0x5fa   : > { %10301 = vrcp.f32 %v4783_v50  ;;  %v4450_v50 = vmul.f32 1.442695, %v4229_v53 }
 0x5fb   : > { %9758 = vrot.lane.b32.xlu0 %v15467_v10, %s10604_s23 }
 0x5fc   : > { %v4780_v30 = vpop.xlane.xlu0 %4779 }
 0x5fd   : > { %10303 = vrcp.f32 %v4780_v30  ;;  %v4230_v30 = vsub.f32 %v15474_v37, %v15473_v19  ;;  %v15478_v37 = vld [vmem:[#allocation68_spill] sm:$0xff] }
 0x5fe   : > { %10305 = vpow2.f32 %v4450_v50 }
 0x5ff   : > { %10307 = vpow2.f32 %v4464_v38  ;;  %v4452_v53 = vmul.f32 1.442695, %v4230_v30  ;;  %v15479_v30 = vld [vmem:[#allocation78_spill] sm:$0xff] }
 0x600   : > { %v9739_v20 = vpop.permute.xlu0 %9738 }
 0x601   : > { %v9741_v61 = vunpack.i.h.bf16 %v9739_v20  ;;  %v9740_v56 = vunpack.i.l.bf16 %v9739_v20  ;;  %10309 = vpow2.f32 %v4452_v53 }
 0x603   : > { %v2018_v39 = vpack.c.bf16 %v9741_v61, %v9740_v56  ;;  %v15475_v61 = vld [vmem:[#allocation84_spill] sm:$0xff] }
 0x604   : > { %9773 = vrot.lane.b32.xlu1 %v15470_v35, %s10604_s23  ;;  %v15476_v56 = vld [vmem:[#allocation32_spill] sm:$0xff] }
 0x605   : > { %8759 = vmatprep.subr.bf16.mxu1 %v2018_v39 }
 0x606   : > { %v10300_v17 = vpop.eup %10299  ;;  %v4786_v8 = vpop.xlane.xlu1 %4785  ;;  %8760 = vmatpush3.bf16.msra.mxu1 %v2018_v39  ;;  %v4239_v39 = vsub.f32 %v15476_v56, %v15475_v61  ;;  %v15480_v56 = vld [vmem:[#allocation17_spill] sm:$0xff] }
 0x607   : > { %v13744_v45 = vmul.f32 %v10300_v17, %v13592_v3  ;;  %v10302_v29 = vpop.eup %10301 }
 0x608   : > { %v13752_v2 = vmul.f32 %v10302_v29, %v13556_v52  ;;  %v4470_v52 = vmul.f32 1.442695, %v4239_v39  ;;  %v15482_v39 = vld [vmem:[#allocation30_spill] sm:$0xff] }
 0x60a   : > { %v10304_v36 = vpop.eup %10303  ;;  %v4813_v24 = vpop.xlane.xlu1 %4812  ;;  %10311 = vpow2.f32 %v4470_v52 }
 0x60b   : > { %v13749_v7 = vmul.f32 %v10304_v36, %v13596_v18  ;;  %v13760_v18 = vpop.eup %10305  ;;  %10313 = vrcp.f32 %v4786_v8  ;;  %v15477_v36 = vld [vmem:[#allocation37_spill] sm:$0xff] }
 0x60c   : > { %v4799_v59 = vsel %vm3751_vm3, %v13760_v18, 0.0  ;;  %v13764_v23 = vpop.eup %10307  ;;  %v15481_v8 = vld [vmem:[#allocation101_spill] sm:$0xff] }
 0x60d   : > { %v5203_v46 = vpack.c.bf16 %v13752_v2, %v13749_v7  ;;  %v4820_v5 = vsel %vm3751_vm3, %v13764_v23, 0.0  ;;  %v4238_v52 = vsub.f32 %v15482_v39, %v15481_v8  ;;  %v15494_v7 = vld [vmem:[#allocation102_spill] sm:$0xff] }
 0x60e   : > { %v9754_v3 = vpop.permute.xlu1 %9753  ;;  %v13768_v58 = vpop.eup %10309 }
 0x60f   : > { %v9756_v20 = vunpack.i.h.bf16 %v9754_v3  ;;  %v9755_v4 = vunpack.i.l.bf16 %v9754_v3  ;;  %v4802_v50 = vsel %vm3751_vm3, %v13768_v58, 0.0 }
 0x611   : > { %v2021_v31 = vpack.c.bf16 %v9756_v20, %v9755_v4  ;;  %v4231_v20 = vsub.f32 %v15479_v30, %v15478_v37 }
 0x613   : > { %8777 = vmatprep.subr.bf16.mxu0 %v2021_v31 }
 0x614   : > { %8778 = vmatpush3.bf16.msra.mxu0 %v2021_v31 }
 0x617   : > { %v13772_v17 = vpop.eup %10311 }
 0x618   : > { %v4829_v29 = vsel %vm3751_vm3, %v13772_v17, 0.0  ;;  %v10314_v61 = vpop.eup %10313 }
 0x61a   : > { %4800 = vadd.xlane.f32.xlu0 %v4799_v59 }
 0x61e   : > { %4821 = vadd.xlane.f32.xlu0 %v4820_v5 }
 0x628   : > { %4803 = vadd.xlane.f32.xlu1 %v4802_v50  ;;  %v13785_v50 = vmul.f32 %v10314_v61, %v13600_v40 }
 0x62c   : > { %4830 = vadd.xlane.f32.xlu1 %v4829_v29 }
 0x631   : > { %v4789_v38 = vpop.xlane.xlu0 %4788 }
 0x632   : > { %10315 = vrcp.f32 %v4789_v38 }
 0x633   : > { %10317 = vrcp.f32 %v4813_v24  ;;  %v4454_v24 = vmul.f32 1.442695, %v4231_v20 }
 0x634   : > { %9768 = vrot.lane.b32.xlu0 %v15477_v36, %s10604_s23 }
 0x635   : > { %v4810_v3 = vpop.xlane.xlu0 %4809 }
 0x636   : > { %10319 = vrcp.f32 %v4810_v3  ;;  %v4468_v3 = vmul.f32 1.442695, %v4238_v52 }
 0x637   : > { %10321 = vpow2.f32 %v4454_v24 }
 0x638   : > { %10323 = vpow2.f32 %v4468_v3 }
 0x639   : > { %v9749_v19 = vpop.permute.xlu0 %9748 }
 0x63a   : > { %v9751_v4 = vunpack.i.h.bf16 %v9749_v19  ;;  %v9750_v31 = vunpack.i.l.bf16 %v9749_v19 }
 0x63c   : > { %v2017_v53 = vpack.c.bf16 %v9751_v4, %v9750_v31  ;;  %v15483_v31 = vld [vmem:[#allocation105_spill] sm:$0xff] }
 0x63d   : > { %9783 = vrot.lane.b32.xlu1 %v15480_v56, %s10605_s9 }
 0x63e   : > { %8761 = vmatprep.subr.bf16.mxu1 %v2017_v53 }
 0x63f   : > { %v10316_v59 = vpop.eup %10315  ;;  %v4792_v5 = vpop.xlane.xlu1 %4791  ;;  %8762 = vmatpush3.bf16.msra.mxu1 %v2017_v53  ;;  %v15484_v53 = vld [vmem:[#allocation82_spill] sm:$0xff] }
 0x640   : > { %v13788_v29 = vmul.f32 %v10316_v59, %v13644_v12  ;;  %v10318_v38 = vpop.eup %10317  ;;  %v4240_v61 = vsub.f32 %v15484_v53, %v15483_v31  ;;  %v15486_v53 = vld [vmem:[#allocation29_spill] sm:$0xff] }
 0x641   : > { %v13796_v4 = vmul.f32 %v10318_v38, %v13604_v9 }
 0x642   : > { %v4472_v52 = vmul.f32 1.442695, %v4240_v61 }
 0x643   : > { %v10320_v37 = vpop.eup %10319  ;;  %v4819_v30 = vpop.xlane.xlu1 %4818 }
 0x644   : > { %v13793_v20 = vmul.f32 %v10320_v37, %v13650_v1  ;;  %v13802_v24 = vpop.eup %10321  ;;  %10325 = vpow2.f32 %v4472_v52 }
 0x645   : > { %v4805_v9 = vsel %vm3751_vm3, %v13802_v24, 0.0  ;;  %v13806_v1 = vpop.eup %10323  ;;  %10327 = vrcp.f32 %v4792_v5 }
 0x646   : > { %v5208_v40 = vpack.c.bf16 %v13796_v4, %v13793_v20  ;;  %v4826_v59 = vsel %vm3751_vm3, %v13806_v1, 0.0 }
 0x647   : > { %v9764_v12 = vpop.permute.xlu1 %9763 }
 0x648   : > { %v9766_v56 = vunpack.i.h.bf16 %v9764_v12  ;;  %v9765_v8 = vunpack.i.l.bf16 %v9764_v12  ;;  %v15485_v12 = vld [vmem:[#allocation108_spill] sm:$0xff] }
 0x64a   : > { %v2020_v39 = vpack.c.bf16 %v9766_v56, %v9765_v8  ;;  %v15487_v56 = vld [vmem:[#allocation90_spill] sm:$0xff]  ;;  %v15488_v8 = vld [vmem:[#allocation67_spill] sm:$0xff] }
 0x64c   : > { %8779 = vmatprep.subr.bf16.mxu0 %v2020_v39 }
 0x64d   : > { %8780 = vmatpush3.bf16.msra.mxu0 %v2020_v39  ;;  %v4241_v39 = vsub.f32 %v15488_v8, %v15487_v56 }
 0x64f   : > { %v4474_v5 = vmul.f32 1.442695, %v4241_v39 }
 0x651   : > { %v13810_v38 = vpop.eup %10325 }
 0x652   : > { %v4832_v3 = vsel %vm3751_vm3, %v13810_v38, 0.0 }
 0x653   : > { %4806 = vadd.xlane.f32.xlu0 %v4805_v9 }
 0x657   : > { %4827 = vadd.xlane.f32.xlu0 %v4826_v59 }
 0x661   : > { %4833 = vadd.xlane.f32.xlu1 %v4832_v3  ;;  %v10328_v3 = vpop.eup %10327 }
 0x662   : > { %v13821_v19 = vmul.f32 %v10328_v3, %v13662_v26 }
 0x66a   : > { %v4795_v37 = vpop.xlane.xlu0 %4794 }
 0x66b   : > { %10329 = vrcp.f32 %v4795_v37 }
 0x66c   : > { %10331 = vrcp.f32 %v4819_v30 }
 0x66d   : > { %9778 = vrot.lane.b32.xlu0 %v15485_v12, %s10604_s23 }
 0x66e   : > { %v4816_v31 = vpop.xlane.xlu0 %4815 }
 0x66f   : > { %10333 = vrcp.f32 %v4816_v31 }
 0x670   : > { %10335 = vpow2.f32 %v4474_v5 }
 0x672   : > { %9793 = vrot.lane.b32.xlu1 %v15486_v53, %s10605_s9  ;;  %v9759_v61 = vpop.permute.xlu0 %9758 }
 0x673   : > { %v9761_v52 = vunpack.i.h.bf16 %v9759_v61  ;;  %v9760_v9 = vunpack.i.l.bf16 %v9759_v61 }
 0x675   : > { %v2016_v59 = vpack.c.bf16 %v9761_v52, %v9760_v9  ;;  %v15489_v52 = vld [vmem:[#allocation51_spill] sm:$0xff]  ;;  %v15490_v9 = vld [vmem:[#allocation72_spill] sm:$0xff] }
 0x676   : > { %v4242_v39 = vsub.f32 %v15490_v9, %v15489_v52  ;;  %v15496_v9 = vld [vmem:[#allocation48_spill] sm:$0xff] }
 0x677   : > { %8763 = vmatprep.subr.bf16.mxu1 %v2016_v59 }
 0x678   : > { %v10330_v37 = vpop.eup %10329  ;;  %v4798_v30 = vpop.xlane.xlu1 %4797  ;;  %8764 = vmatpush3.bf16.msra.mxu1 %v2016_v59  ;;  %v4476_v3 = vmul.f32 1.442695, %v4242_v39 }
 0x679   : > { %v13824_v31 = vmul.f32 %v10330_v37, %v13716_v43  ;;  %v10332_v53 = vpop.eup %10331 }
 0x67a   : > { %v13831_v41 = vmul.f32 %v10332_v53, %v13666_v28  ;;  %10337 = vpow2.f32 %v4476_v3  ;;  %v15491_v28 = vpack.c.bf16 %v13629_v47, %v13632_v0  ;;  %v15492_v0 = vld [vmem:[#allocation83_spill] sm:$0xff] }
 0x67b   : > { %10339 = vrcp.f32 %v4798_v30 }
 0x67c   : > { %v10334_v8 = vpop.eup %10333  ;;  %v4825_v61 = vpop.xlane.xlu1 %4824 }
 0x67d   : > { %v13834_v59 = vmul.f32 %v10334_v8, %v13720_v14  ;;  %v13838_v56 = vpop.eup %10335 }
 0x67e   : > { %v4835_v14 = vsel %vm3751_vm3, %v13838_v56, 0.0 }
 0x67f   : > { %v5209_v26 = vpack.c.bf16 %v13831_v41, %v13834_v59 }
 0x680   : > { %v9774_v43 = vpop.permute.xlu1 %9773 }
 0x681   : > { %v9776_v5 = vunpack.i.h.bf16 %v9774_v43  ;;  %v9775_v37 = vunpack.i.l.bf16 %v9774_v43 }
 0x683   : > { %v2019_v51 = vpack.c.bf16 %v9776_v5, %v9775_v37  ;;  %v15497_v5 = vpack.c.bf16 %v13624_v55, %v13621_v11 }
 0x685   : > { %8781 = vmatprep.subr.bf16.mxu0 %v2019_v51 }
 0x686   : > { %8782 = vmatpush3.bf16.msra.mxu0 %v2019_v51 }
 0x687   : > { %v13854_v51 = vpop.eup %10337 }
 0x688   : > { %v4838_v47 = vsel %vm3751_vm3, %v13854_v51, 0.0  ;;  %v10340_v30 = vpop.eup %10339 }
 0x689   : > { %8784 = vmatmul.mubr.msk.bf16.vlgmr.msra.gmra.mxu0 %vm3751_vm3, %v15491_v28 }
 0x68a   : > { %8787 = vmatprep.mubr.msk.bf16.mxu0 %vm3751_vm3, %v5202_v13  ;;  %v15493_v13 = vld [vmem:[#allocation107_spill] sm:$0xff] }
 0x68b   : > { %v4243_v2 = vsub.f32 %v15494_v7, %v15493_v13 }
 0x68c   : > { %4836 = vadd.xlane.f32.xlu0 %v4835_v14 }
 0x68d   : > { %v4478_v20 = vmul.f32 1.442695, %v4243_v2 }
 0x691   : > { %8788 = vmatmul.mubr.msk.bf16.gmra.mxu0 %vm3751_vm3, %v5203_v46 }
 0x692   : > { %8815 = vmatprep.mubr.msk.bf16.mxu0 %vm3751_vm3, %v5208_v40 }
 0x696   : > { %4839 = vadd.xlane.f32.xlu1 %v4838_v47  ;;  %v15498_v47 = vpack.c.bf16 %v13690_v33, %v13687_v25  ;;  %v15499_v25 = vpack.c.bf16 %v13744_v45, %v13741_v6 }
 0x6a2   : > { %9788 = vrot.lane.b32.xlu0 %v15492_v0, %s10604_s23 }
 0x6a3   : > { %v4801_v49 = vpop.xlane.xlu0 %4800 }
 0x6a4   : > { %10341 = vrcp.f32 %v4801_v49 }
 0x6a5   : > { %10343 = vrcp.f32 %v4825_v61  ;;  %v15495_v61 = vld [vmem:[#allocation57_spill] sm:$0xff] }
 0x6a6   : > { %v4244_v39 = vsub.f32 %v15496_v9, %v15495_v61  ;;  %v15504_v61 = vld [vmem:[#allocation55_spill] sm:$0xff] }
 0x6a7   : > { %9803 = vrot.lane.b32.xlu1 %v15425_v62, %s10605_s9  ;;  %v4822_v44 = vpop.xlane.xlu0 %4821  ;;  %v13871_v62 = vmul.f32 %v10340_v30, %v13724_v16 }
 0x6a8   : > { %10345 = vrcp.f32 %v4822_v44  ;;  %v4480_v16 = vmul.f32 1.442695, %v4244_v39 }
 0x6a9   : > { %10347 = vpow2.f32 %v4478_v20 }
 0x6aa   : > { %10349 = vpow2.f32 %v4480_v16 }
 0x6ab   : > { %v9769_v46 = vpop.permute.xlu0 %9768 }
 0x6ac   : > { %v9771_v4 = vunpack.i.h.bf16 %v9769_v46  ;;  %v9770_v40 = vunpack.i.l.bf16 %v9769_v46 }
 0x6ae   : > { %v2015_v53 = vpack.c.bf16 %v9771_v4, %v9770_v40 }
 0x6b0   : > { %8765 = vmatprep.subr.bf16.mxu1 %v2015_v53 }
 0x6b1   : > { %v10342_v8 = vpop.eup %10341  ;;  %v4804_v52 = vpop.xlane.xlu1 %4803  ;;  %8766 = vmatpush3.bf16.msra.mxu1 %v2015_v53 }
 0x6b2   : > { %v13874_v43 = vmul.f32 %v10342_v8, %v13760_v18  ;;  %v10344_v3 = vpop.eup %10343  ;;  %10351 = vrcp.f32 %v4804_v52  ;;  %v15503_v8 = vld [vmem:[#allocation114_spill] sm:$0xff] }
 0x6b3   : > { %v13890_v49 = vmul.f32 %v10344_v3, %v13728_v21  ;;  %v4246_v9 = vsub.f32 %v15504_v61, %v15503_v8  ;;  %v15505_v3 = vld [vmem:[#allocation109_spill] sm:$0xff] }
 0x6b4   : > { %8768 = vmatmul.mubr.msk.bf16.vlgmr.msra.gmra.mxu1 %vm3751_vm3, %v15497_v5  ;;  %v5206_v37 = vpack.c.bf16 %v13874_v43, %v13871_v62  ;;  %v15506_v5 = vld [vmem:[#allocation96_spill] sm:$0xff]  ;;  %v15527_v43 = vld [vmem:[#allocation42_spill] sm:$0xff] }
 0x6b5   : > { %v10346_v28 = vpop.eup %10345  ;;  %v4831_v14 = vpop.xlane.xlu1 %4830  ;;  %8771 = vmatprep.mubr.msk.bf16.mxu1 %vm3751_vm3, %v15498_v47  ;;  %v4484_v47 = vmul.f32 1.442695, %v4246_v9 }
 0x6b6   : > { %v13887_v18 = vmul.f32 %v10346_v28, %v13764_v23  ;;  %v13898_v33 = vpop.eup %10347  ;;  %v15500_v23 = vpack.c.bf16 %v13788_v29, %v13785_v50  ;;  %v15501_v50 = vld [vmem:[#allocation34_spill] sm:$0xff]  ;;  %v15502_v29 = vld [vmem:[#allocation131_spill] sm:$0xff]  ;;  %v4248_v28 = vsub.f32 %v15506_v5, %v15505_v3 }
 0x6b7   : > { %v4841_v21 = vsel %vm3751_vm3, %v13898_v33, 0.0  ;;  %v13906_v2 = vpop.eup %10349  ;;  %v4245_v46 = vsub.f32 %v15502_v29, %v15501_v50 }
 0x6b8   : > { %v5210_v11 = vpack.c.bf16 %v13890_v49, %v13887_v18  ;;  %v4844_v6 = vsel %vm3751_vm3, %v13906_v2, 0.0  ;;  %v15523_v18 = vld [vmem:[#allocation66_spill] sm:$0xff]  ;;  %v15524_v49 = vld [vmem:[#allocation100_spill] sm:$0xff] }
 0x6b9   : > { %v9784_v55 = vpop.permute.xlu1 %9783  ;;  %v4482_v4 = vmul.f32 1.442695, %v4245_v46 }
 0x6ba   : > { %v9786_v44 = vunpack.i.h.bf16 %v9784_v55  ;;  %v9785_v13 = vunpack.i.l.bf16 %v9784_v55 }
 0x6bc   : > { %v2030_v7 = vpack.c.bf16 %v9786_v44, %v9785_v13  ;;  %8772 = vmatmul.mubr.msk.bf16.gmra.mxu1 %vm3751_vm3, %v15499_v25  ;;  %v4488_v25 = vmul.f32 1.442695, %v4248_v28 }
 0x6bd   : > { %8799 = vmatprep.mubr.msk.bf16.mxu1 %vm3751_vm3, %v15500_v23  ;;  %v15507_v23 = vld [vmem:[#allocation111_spill] sm:$0xff] }
 0x6be   : > { %8807 = vmatprep.subr.bf16.mxu0 %v2030_v7 }
 0x6bf   : > { %8808 = vmatpush3.bf16.msra.mxu0 %v2030_v7  ;;  %v10352_v39 = vpop.eup %10351 }
 0x6c1   : > { %4842 = vadd.xlane.f32.xlu0 %v4841_v21  ;;  %v15508_v21 = vld [vmem:[#allocation54_spill] sm:$0xff] }
 0x6cb   : > { %4845 = vadd.xlane.f32.xlu1 %v4844_v6  ;;  %v4249_v6 = vsub.f32 %v15508_v21, %v15507_v23 }
 0x6d7   : > { %9798 = vrot.lane.b32.xlu0 %v13510_v22, %s10604_s23 }
 0x6dc   : > { %9813 = vrot.lane.b32.xlu1 %v15434_v42, %s10605_s9  ;;  %v4807_v45 = vpop.xlane.xlu0 %4806 }
 0x6dd   : > { %10353 = vrcp.f32 %v4807_v45 }
 0x6de   : > { %10355 = vrcp.f32 %v4831_v14  ;;  %v13921_v14 = vmul.f32 %v10352_v39, %v13768_v58  ;;  %v15510_v39 = vld [vmem:[#allocation128_spill] sm:$0xff] }
 0x6e0   : > { %v4828_v20 = vpop.xlane.xlu0 %4827 }
 0x6e1   : > { %10357 = vrcp.f32 %v4828_v20 }
 0x6e2   : > { %10359 = vpow2.f32 %v4482_v4 }
 0x6e3   : > { %10361 = vpow2.f32 %v4484_v47 }
 0x6e4   : > { %v9779_v40 = vpop.permute.xlu0 %9778  ;;  %10363 = vpow2.f32 %v4488_v25 }
 0x6e5   : > { %v9781_v53 = vunpack.i.h.bf16 %v9779_v40  ;;  %v9780_v30 = vunpack.i.l.bf16 %v9779_v40  ;;  %v4490_v40 = vmul.f32 1.442695, %v4249_v6  ;;  %v15511_v6 = vld [vmem:[#allocation53_spill] sm:$0xff] }
 0x6e7   : > { %v2026_v52 = vpack.c.bf16 %v9781_v53, %v9780_v30  ;;  %10365 = vpow2.f32 %v4490_v40 }
 0x6e9   : > { %8791 = vmatprep.subr.bf16.mxu1 %v2026_v52 }
 0x6ea   : > { %v10354_v42 = vpop.eup %10353  ;;  %v4834_v16 = vpop.xlane.xlu1 %4833  ;;  %8792 = vmatpush3.bf16.msra.mxu1 %v2026_v52  ;;  %v15509_v52 = vld [vmem:[#allocation23_spill] sm:$0xff] }
 0x6eb   : > { %v13924_v55 = vmul.f32 %v10354_v42, %v13802_v24  ;;  %v10356_v44 = vpop.eup %10355  ;;  %v4247_v42 = vsub.f32 %v15510_v39, %v15509_v52  ;;  %10367 = vrcp.f32 %v4834_v16  ;;  %v15513_v52 = vld [vmem:[#allocation110_spill] sm:$0xff]  ;;  %v15514_v39 = vld [vmem:[#allocation43_spill] sm:$0xff] }
 0x6ec   : > { %v13934_v58 = vmul.f32 %v10356_v44, %v13772_v17 }
 0x6ed   : > { %v5207_v13 = vpack.c.bf16 %v13924_v55, %v13921_v14  ;;  %v4486_v5 = vmul.f32 1.442695, %v4247_v42  ;;  %v4252_v42 = vsub.f32 %v15514_v39, %v15513_v52 }
 0x6ee   : > { %v10358_v7 = vpop.eup %10357  ;;  %v9794_v45 = vpop.permute.xlu1 %9793 }
 0x6ef   : > { %v9796_v50 = vunpack.i.h.bf16 %v9794_v45  ;;  %v9795_v29 = vunpack.i.l.bf16 %v9794_v45  ;;  %v13931_v46 = vmul.f32 %v10358_v7, %v13806_v1  ;;  %v13938_v4 = vpop.eup %10359  ;;  %v15512_v45 = vld [vmem:[#allocation88_spill] sm:$0xff] }
 0x6f0   : > { %v4847_v53 = vsel %vm3751_vm3, %v13938_v4, 0.0  ;;  %v13942_v1 = vpop.eup %10361 }
 0x6f1   : > { %v2029_v24 = vpack.c.bf16 %v9796_v50, %v9795_v29  ;;  %v5211_v20 = vpack.c.bf16 %v13934_v58, %v13931_v46  ;;  %v4850_v17 = vsel %vm3751_vm3, %v13942_v1, 0.0  ;;  %v13946_v30 = vpop.eup %10363  ;;  %v4251_v50 = vsub.f32 %v15512_v45, %v15511_v6 }
 0x6f2   : > { %v4856_v8 = vsel %vm3751_vm3, %v13946_v30, 0.0 }
 0x6f3   : > { %8809 = vmatprep.subr.bf16.mxu0 %v2029_v24 }
 0x6f4   : > { %8810 = vmatpush3.bf16.msra.mxu0 %v2029_v24  ;;  %v13950_v61 = vpop.eup %10365 }
 0x6f5   : > { %v4859_v9 = vsel %vm3751_vm3, %v13950_v61, 0.0 }
 0x6f6   : > { %4848 = vadd.xlane.f32.xlu0 %v4847_v53 }
 0x6f8   : > { %v10368_v23 = vpop.eup %10367 }
 0x6f9   : > { %v13963_v40 = vmul.f32 %v10368_v23, %v13810_v38  ;;  %v4496_v38 = vmul.f32 1.442695, %v4252_v42 }
 0x700   : > { %4851 = vadd.xlane.f32.xlu1 %v4850_v17 }
 0x704   : > { %4857 = vadd.xlane.f32.xlu1 %v4856_v8 }
 0x708   : > { %4860 = vadd.xlane.f32.xlu1 %v4859_v9  ;;  %v4494_v9 = vmul.f32 1.442695, %v4251_v50  ;;  %v15517_v50 = vld [vmem:[#allocation19_spill] sm:$0xff] }
 0x70c   : > { %9808 = vrot.lane.b32.xlu0 %v13562_v32, %s10604_s23 }
 0x715   : > { %v4837_v3 = vpop.xlane.xlu0 %4836 }
 0x716   : > { %10369 = vrcp.f32 %v4837_v3 }
 0x717   : > { %10371 = vpow2.f32 %v4486_v5  ;;  %v15516_v5 = vld [vmem:[#allocation14_spill] sm:$0xff] }
 0x718   : > { %10373 = vpow2.f32 %v4494_v9 }
 0x719   : > { %9823 = vrot.lane.b32.xlu1 %v15451_v27, %s10605_s9  ;;  %v9789_v28 = vpop.permute.xlu0 %9788  ;;  %10375 = vpow2.f32 %v4496_v38 }
 0x71a   : > { %v9791_v47 = vunpack.i.h.bf16 %v9789_v28  ;;  %v9790_v44 = vunpack.i.l.bf16 %v9789_v28 }
 0x71c   : > { %v2025_v7 = vpack.c.bf16 %v9791_v47, %v9790_v44 }
 0x71e   : > { %8793 = vmatprep.subr.bf16.mxu1 %v2025_v7 }
 0x71f   : > { %v4840_v25 = vpop.xlane.xlu1 %4839  ;;  %8794 = vmatpush3.bf16.msra.mxu1 %v2025_v7 }
 0x723   : > { %v10370_v21 = vpop.eup %10369  ;;  %v9804_v16 = vpop.permute.xlu1 %9803 }
 0x724   : > { %v9806_v29 = vunpack.i.h.bf16 %v9804_v16  ;;  %v9805_v24 = vunpack.i.l.bf16 %v9804_v16  ;;  %v13966_v27 = vmul.f32 %v10370_v21, %v13838_v56  ;;  %v13970_v8 = vpop.eup %10371  ;;  %v15515_v56 = vld [vmem:[#allocation40_spill] sm:$0xff] }
 0x725   : > { %v4853_v3 = vsel %vm3751_vm3, %v13970_v8, 0.0  ;;  %v4253_v28 = vsub.f32 %v15516_v5, %v15515_v56  ;;  %v13978_v44 = vpop.eup %10373  ;;  %v15518_v16 = vld [vmem:[#allocation64_spill] sm:$0xff] }
 0x726   : > { %v2028_v53 = vpack.c.bf16 %v9806_v29, %v9805_v24  ;;  %v5212_v17 = vpack.c.bf16 %v13966_v27, %v13963_v40  ;;  %v4865_v7 = vsel %vm3751_vm3, %v13978_v44, 0.0  ;;  %v13982_v23 = vpop.eup %10375  ;;  %v4250_v29 = vsub.f32 %v15518_v16, %v15517_v50  ;;  %v15519_v50 = vld [vmem:[#allocation59_spill] sm:$0xff] }
 0x727   : > { %v4498_v47 = vmul.f32 1.442695, %v4253_v28  ;;  %v4868_v21 = vsel %vm3751_vm3, %v13982_v23, 0.0  ;;  %v15529_v27 = vld [vmem:[#allocation91_spill] sm:$0xff] }
 0x728   : > { %8811 = vmatprep.subr.bf16.mxu0 %v2028_v53 }
 0x729   : > { %8812 = vmatpush3.bf16.msra.mxu0 %v2028_v53  ;;  %10377 = vpow2.f32 %v4498_v47  ;;  %v4492_v53 = vmul.f32 1.442695, %v4250_v29  ;;  %v15521_v29 = vld [vmem:[#allocation20_spill] sm:$0xff] }
 0x72a   : > { %10379 = vrcp.f32 %v4840_v25 }
 0x72b   : > { %4854 = vadd.xlane.f32.xlu0 %v4853_v3 }
 0x736   : > { %v13986_v6 = vpop.eup %10377 }
 0x737   : > { %v4871_v45 = vsel %vm3751_vm3, %v13986_v6, 0.0 }
 0x73d   : > { %4866 = vadd.xlane.f32.xlu1 %v4865_v7 }
 0x741   : > { %4869 = vadd.xlane.f32.xlu1 %v4868_v21  ;;  %9818 = vrot.lane.b32.xlu0 %v15445_v63, %s10605_s9  ;;  %v10380_v63 = vpop.eup %10379 }
 0x742   : > { %v13997_v5 = vmul.f32 %v10380_v63, %v13854_v51  ;;  %v15520_v51 = vld [vmem:[#allocation129_spill] sm:$0xff] }
 0x743   : > { %v4255_v16 = vsub.f32 %v15520_v51, %v15519_v50  ;;  %v15528_v50 = vld [vmem:[#allocation47_spill] sm:$0xff] }
 0x744   : > { %v4260_v51 = vsub.f32 %v15528_v50, %v13462_v48 }
 0x745   : > { %4872 = vadd.xlane.f32.xlu1 %v4871_v45 }
 0x74a   : > { %v4843_v24 = vpop.xlane.xlu0 %4842 }
 0x74b   : > { %10381 = vrcp.f32 %v4843_v24  ;;  %v15522_v24 = vld [vmem:[#allocation104_spill] sm:$0xff] }
 0x74c   : > { %10383 = vpow2.f32 %v4492_v53  ;;  %v4256_v53 = vsub.f32 %v15522_v24, %v15521_v29  ;;  %v15532_v24 = vld [vmem:[#allocation112_spill] sm:$0xff] }
 0x74e   : > { %v9799_v9 = vpop.permute.xlu0 %9798 }
 0x74f   : > { %v9801_v52 = vunpack.i.h.bf16 %v9799_v9  ;;  %v9800_v39 = vunpack.i.l.bf16 %v9799_v9  ;;  %v4504_v9 = vmul.f32 1.442695, %v4256_v53 }
 0x751   : > { %v2024_v42 = vpack.c.bf16 %v9801_v52, %v9800_v39 }
 0x753   : > { %8795 = vmatprep.subr.bf16.mxu1 %v2024_v42 }
 0x754   : > { %v4846_v3 = vpop.xlane.xlu1 %4845  ;;  %8796 = vmatpush3.bf16.msra.mxu1 %v2024_v42 }
 0x756   : > { %9833 = vrot.lane.b32.xlu1 %v15477_v36, %s10605_s9 }
 0x758   : > { %v10382_v38 = vpop.eup %10381  ;;  %v9814_v56 = vpop.permute.xlu1 %9813 }
 0x759   : > { %v14000_v25 = vmul.f32 %v10382_v38, %v13898_v33  ;;  %v9816_v28 = vunpack.i.h.bf16 %v9814_v56  ;;  %v9815_v47 = vunpack.i.l.bf16 %v9814_v56  ;;  %v14004_v45 = vpop.eup %10383  ;;  %v4502_v33 = vmul.f32 1.442695, %v4255_v16 }
 0x75a   : > { %v4862_v36 = vsel %vm3751_vm3, %v14004_v45, 0.0  ;;  %v15525_v56 = vpack.c.bf16 %v13824_v31, %v13821_v19  ;;  %v4512_v16 = vmul.f32 1.442695, %v4260_v51 }
 0x75b   : > { %v5213_v7 = vpack.c.bf16 %v14000_v25, %v13997_v5  ;;  %v2027_v21 = vpack.c.bf16 %v9816_v28, %v9815_v47  ;;  %10385 = vpow2.f32 %v4502_v33 }
 0x75c   : > { %10387 = vpow2.f32 %v4504_v9 }
 0x75d   : > { %8813 = vmatprep.subr.bf16.mxu0 %v2027_v21  ;;  %10389 = vrcp.f32 %v4846_v3 }
 0x75e   : > { %8814 = vmatpush3.bf16.msra.mxu0 %v2027_v21 }
 0x760   : > { %4863 = vadd.xlane.f32.xlu0 %v4862_v36 }
 0x761   : > { %8816 = vmatmul.mubr.msk.bf16.vlgmr.msra.gmra.mxu0 %vm3751_vm3, %v5209_v26 }
 0x762   : > { %8819 = vmatprep.mubr.msk.bf16.mxu0 %vm3751_vm3, %v5210_v11  ;;  %v4254_v11 = vsub.f32 %v15524_v49, %v15523_v18 }
 0x768   : > { %v14024_v41 = vpop.eup %10385 }
 0x769   : > { %8820 = vmatmul.mubr.msk.bf16.gmra.mxu0 %vm3751_vm3, %v5211_v20  ;;  %v4877_v59 = vsel %vm3751_vm3, %v14024_v41, 0.0  ;;  %v14030_v26 = vpop.eup %10387  ;;  %v4500_v20 = vmul.f32 1.442695, %v4254_v11 }
 0x76a   : > { %v4880_v46 = vsel %vm3751_vm3, %v14030_v26, 0.0  ;;  %v10390_v38 = vpop.eup %10389 }
 0x76b   : > { %v14047_v47 = vmul.f32 %v10390_v38, %v13906_v2 }
 0x776   : > { %9828 = vrot.lane.b32.xlu0 %v15467_v10, %s10605_s9 }
 0x77a   : > { %4878 = vadd.xlane.f32.xlu1 %v4877_v59 }
 0x77e   : > { %4881 = vadd.xlane.f32.xlu1 %v4880_v46 }
 0x77f   : > { %v4849_v58 = vpop.xlane.xlu0 %4848 }
 0x780   : > { %10391 = vrcp.f32 %v4849_v58 }
 0x781   : > { %10393 = vpow2.f32 %v4500_v20 }
 0x783   : > { %v9809_v52 = vpop.permute.xlu0 %9808 }
 0x784   : > { %v9811_v10 = vunpack.i.h.bf16 %v9809_v52  ;;  %v9810_v39 = vunpack.i.l.bf16 %v9809_v52 }
 0x786   : > { %v2023_v42 = vpack.c.bf16 %v9811_v10, %v9810_v39 }
 0x788   : > { %8797 = vmatprep.subr.bf16.mxu1 %v2023_v42 }
 0x789   : > { %v14036_v63 = vpop.xlane.xlu1 %4851  ;;  %8798 = vmatpush3.bf16.msra.mxu1 %v2023_v42 }
 0x78c   : > { %8800 = vmatmul.mubr.msk.bf16.vlgmr.msra.gmra.mxu1 %vm3751_vm3, %v15525_v56 }
 0x78d   : > { %v10392_v3 = vpop.eup %10391  ;;  %v4858_v28 = vpop.xlane.xlu1 %4857  ;;  %8803 = vmatprep.mubr.msk.bf16.mxu1 %vm3751_vm3, %v5206_v37 }
 0x78e   : > { %v14050_v21 = vmul.f32 %v10392_v3, %v13938_v4  ;;  %10395 = vrcp.f32 %v4858_v28  ;;  %v14056_v31 = vpop.eup %10393 }
 0x78f   : > { %9843 = vrot.lane.b32.xlu1 %v15447_v60, %s10605_s9  ;;  %v4874_v62 = vsel %vm3751_vm3, %v14056_v31, 0.0  ;;  %v15526_v60 = vld [vmem:[#allocation123_spill] sm:$0xff] }
 0x790   : > { %v5214_v19 = vpack.c.bf16 %v14050_v21, %v14047_v47  ;;  %v4258_v37 = vsub.f32 %v15527_v43, %v15526_v60  ;;  %v15533_v60 = vld [vmem:[#allocation113_spill] sm:$0xff] }
 0x791   : > { %v4861_v36 = vpop.xlane.xlu1 %4860  ;;  %v4262_v43 = vsub.f32 %v15533_v60, %v13454_v34  ;;  %v15534_v34 = vld [vmem:[#allocation45_spill] sm:$0xff] }
 0x792   : > { %10397 = vrcp.f32 %v4861_v36  ;;  %v4508_v4 = vmul.f32 1.442695, %v4258_v37 }
 0x793   : > { %v4516_v37 = vmul.f32 1.442695, %v4262_v43 }
 0x794   : > { %8804 = vmatmul.mubr.msk.bf16.gmra.mxu1 %vm3751_vm3, %v5207_v13  ;;  %10399 = vpow2.f32 %v4508_v4 }
 0x795   : > { %4875 = vadd.xlane.f32.xlu0 %v4874_v62  ;;  %8831 = vmatprep.mubr.msk.bf16.mxu1 %vm3751_vm3, %v5212_v17  ;;  %10401 = vpow2.f32 %v4512_v16  ;;  %v15530_v17 = vld [vmem:[#allocation12_spill] sm:$0xff]  ;;  %v9824_v18 = vpop.permute.xlu1 %9823 }
 0x796   : > { %v4257_v29 = vsub.f32 %v15530_v17, %v15529_v27  ;;  %v9826_v46 = vunpack.i.h.bf16 %v9824_v18  ;;  %v9825_v58 = vunpack.i.l.bf16 %v9824_v18  ;;  %v15536_v27 = vld [vmem:[#allocation36_spill] sm:$0xff] }
 0x797   : > { %v4263_v17 = vsub.f32 %v15536_v27, %v13470_v54 }
 0x798   : > { %v4506_v9 = vmul.f32 1.442695, %v4257_v29  ;;  %v2033_v39 = vpack.c.bf16 %v9826_v46, %v9825_v58 }
 0x79a   : > { %10403 = vpow2.f32 %v4506_v9  ;;  %v4518_v9 = vmul.f32 1.442695, %v4263_v17 }
 0x79b   : > { %v10396_v2 = vpop.eup %10395 }
 0x79c   : > { %v5144_v55 = vmul.f32 %v10396_v2, %v13946_v30 }
 0x79f   : > { %v10398_v14 = vpop.eup %10397 }
 0x7a0   : > { %v5145_v13 = vmul.f32 %v10398_v14, %v13950_v61  ;;  %v15531_v61 = vld [vmem:[#allocation79_spill] sm:$0xff] }
 0x7a1   : > { %v14077_v40 = vpop.eup %10399  ;;  %v4259_v53 = vsub.f32 %v15532_v24, %v15531_v61 }
 0x7a2   : > { %v5216_v33 = vpack.c.bf16 %v5145_v13, %v5144_v55  ;;  %v4886_v48 = vsel %vm3751_vm3, %v14077_v40, 0.0  ;;  %v14083_v30 = vpop.eup %10401  ;;  %v15535_v55 = vld [vmem:[#allocation18_spill] sm:$0xff] }
 0x7a3   : > { %v4510_v49 = vmul.f32 1.442695, %v4259_v53  ;;  %v4261_v13 = vsub.f32 %v15535_v55, %v15534_v34 }
 0x7a4   : > { %8847 = vmatprep.mubr.msk.bf16.mxu0 %vm3751_vm3, %v5216_v33 }
 0x7a5   : > { %10405 = vpow2.f32 %v4510_v49 }
 0x7a7   : > { %v14089_v42 = vpop.eup %10403 }
 0x7a8   : > { %v4883_v56 = vsel %vm3751_vm3, %v14089_v42, 0.0 }
 0x7ab   : > { %9838 = vrot.lane.b32.xlu0 %v15441_v15, %s10605_s9  ;;  %v4892_v15 = vsel %vm3751_vm3, %v14083_v30, 0.0 }
 0x7b2   : > { %v14095_v3 = vpop.eup %10405 }
 0x7b3   : > { %4887 = vadd.xlane.f32.xlu1 %v4886_v48  ;;  %v4889_v36 = vsel %vm3751_vm3, %v14095_v3, 0.0 }
 0x7b4   : > { %v4855_v59 = vpop.xlane.xlu0 %4854 }
 0x7b7   : > { %4893 = vadd.xlane.f32.xlu1 %v4892_v15 }
 0x7b8   : > { %v9819_v11 = vpop.permute.xlu0 %9818 }
 0x7b9   : > { %v9821_v20 = vunpack.i.h.bf16 %v9819_v11  ;;  %v9820_v52 = vunpack.i.l.bf16 %v9819_v11 }
 0x7bb   : > { %v2034_v10 = vpack.c.bf16 %v9821_v20, %v9820_v52 }
 0x7bd   : > { %8823 = vmatprep.subr.bf16.mxu1 %v2034_v10 }
 0x7be   : > { %8824 = vmatpush3.bf16.msra.mxu1 %v2034_v10 }
 0x7bf   : > { %8825 = vmatprep.subr.bf16.mxu1 %v2033_v39 }
 0x7c2   : > { %8826 = vmatpush3.bf16.msra.mxu1 %v2033_v39 }
 0x7c6   : > { %v4867_v38 = vpop.xlane.xlu1 %4866 }
 0x7c8   : > { %9853 = vrot.lane.b32.xlu1 %v15470_v35, %s10605_s9 }
 0x7ca   : > { %v4870_v28 = vpop.xlane.xlu1 %4869  ;;  %4884 = vadd.xlane.f32.xlu0 %v4883_v56 }
 0x7cb   : > { %10407 = vrcp.f32 %v4870_v28 }
 0x7ce   : > { %v4873_v62 = vpop.xlane.xlu1 %4872  ;;  %4890 = vadd.xlane.f32.xlu0 %v4889_v36 }
 0x7cf   : > { %10409 = vrcp.f32 %v4873_v62  ;;  %v14163_v62 = vpop.f32.mrf.mxu1 }
 0x7d0   : > { %10411 = vpow2.f32 %v4516_v37 }
 0x7d1   : > { %10413 = vrcp.f32 %v4867_v38  ;;  %v14167_v43 = vpop.f32.mrf.mxu1 }
 0x7d2   : > { %v9834_v33 = vpop.permute.xlu1 %9833 }
 0x7d3   : > { %v9836_v29 = vunpack.i.h.bf16 %v9834_v33  ;;  %v9835_v48 = vunpack.i.l.bf16 %v9834_v33 }
 0x7d5   : > { %v2031_v18 = vpack.c.bf16 %v9836_v29, %v9835_v48 }
 0x7d8   : > { %v10408_v2 = vpop.eup %10407 }
 0x7d9   : > { %v14102_v4 = vmul.f32 %v10408_v2, %v13982_v23 }
 0x7dc   : > { %v10410_v35 = vpop.eup %10409 }
 0x7dd   : > { %v14105_v50 = vmul.f32 %v10410_v35, %v13986_v6  ;;  %v14111_v14 = vpop.eup %10411  ;;  %v4514_v6 = vmul.f32 1.442695, %v4261_v13 }
 0x7de   : > { %v4898_v23 = vsel %vm3751_vm3, %v14111_v14, 0.0 }
 0x7df   : > { %v5218_v51 = vpack.c.bf16 %v14105_v50, %v14102_v4 }
 0x7e4   : > { %9848 = vrot.lane.b32.xlu0 %v15455_v57, %s10605_s9 }
 0x7e9   : > { %v4864_v16 = vpop.xlane.xlu0 %4863 }
 0x7ea   : > { %10415 = vrcp.f32 %v4864_v16 }
 0x7eb   : > { %10417 = vrcp.f32 %v4855_v59  ;;  %v10414_v59 = vpop.eup %10413 }
 0x7ec   : > { %4899 = vadd.xlane.f32.xlu1 %v4898_v23  ;;  %10419 = vrcp.f32 %v14036_v63  ;;  %v14121_v54 = vmul.f32 %v10414_v59, %v13978_v44 }
 0x7ed   : > { %v9829_v57 = vpop.permute.xlu0 %9828  ;;  %10421 = vpow2.f32 %v4514_v6 }
 0x7ee   : > { %v9831_v61 = vunpack.i.h.bf16 %v9829_v57  ;;  %v9830_v24 = vunpack.i.l.bf16 %v9829_v57  ;;  %10423 = vpow2.f32 %v4518_v9 }
 0x7f0   : > { %v2032_v53 = vpack.c.bf16 %v9831_v61, %v9830_v24 }
 0x7f2   : > { %8827 = vmatprep.subr.bf16.mxu1 %v2032_v53 }
 0x7f3   : > { %8828 = vmatpush3.bf16.msra.mxu1 %v2032_v53 }
 0x7f4   : > { %8829 = vmatprep.subr.bf16.mxu1 %v2031_v18 }
 0x7f7   : > { %v10416_v15 = vpop.eup %10415  ;;  %8830 = vmatpush3.bf16.msra.mxu1 %v2031_v18 }
 0x7f8   : > { %v14124_v63 = vmul.f32 %v10416_v15, %v14004_v45  ;;  %v10418_v49 = vpop.eup %10417 }
 0x7f9   : > { %v10420_v11 = vpop.eup %10419  ;;  %v5143_v44 = vmul.f32 %v10418_v49, %v13970_v8 }
 0x7fa   : > { %v5217_v46 = vpack.c.bf16 %v14121_v54, %v14124_v63  ;;  %8832 = vmatmul.mubr.msk.bf16.vlgmr.msra.gmra.mxu1 %vm3751_vm3, %v5213_v7  ;;  %v5142_v45 = vmul.f32 %v10420_v11, %v13942_v1  ;;  %v14140_v58 = vpop.eup %10421 }
 0x7fb   : > { %8835 = vmatprep.mubr.msk.bf16.mxu1 %vm3751_vm3, %v5214_v19  ;;  %v4895_v5 = vsel %vm3751_vm3, %v14140_v58, 0.0  ;;  %v14145_v25 = vpop.eup %10423  ;;  %v14153_v19 = vpop.f32.mrf.mxu0 }
 0x7fc   : > { %v5215_v20 = vpack.c.bf16 %v5143_v44, %v5142_v45  ;;  %v4901_v7 = vsel %vm3751_vm3, %v14145_v25, 0.0 }
 0x7fd   : > { %9863 = vrot.lane.b32.xlu1 %v15492_v0, %s10605_s9  ;;  %v14157_v28 = vpop.f32.mrf.mxu0 }
 0x802   : > { %8836 = vmatmul.mubr.msk.bf16.gmra.mxu1 %vm3751_vm3, %v5215_v20 }
 0x803   : > { %4896 = vadd.xlane.f32.xlu0 %v4895_v5  ;;  %v4879_v8 = vpop.xlane.xlu1 %4878 }
 0x807   : > { %4902 = vadd.xlane.f32.xlu0 %v4901_v7  ;;  %v4882_v47 = vpop.xlane.xlu1 %4881 }
 0x808   : > { %10425 = vrcp.f32 %v4882_v47 }
 0x80b   : > { %v9844_v1 = vpop.permute.xlu1 %9843 }
 0x80c   : > { %v9846_v52 = vunpack.i.h.bf16 %v9844_v1  ;;  %v9845_v10 = vunpack.i.l.bf16 %v9844_v1 }
 0x80e   : > { %v2037_v36 = vpack.c.bf16 %v9846_v52, %v9845_v10 }
 0x81d   : > { %9858 = vrot.lane.b32.xlu0 %v15485_v12, %s10605_s9  ;;  %v14159_v12 = vpop.f32.mrf.mxu0 }
 0x81e   : > { %v4876_v0 = vpop.xlane.xlu0 %4875 }
 0x821   : > { %9868 = vrot.lane.b32.xlu0 %v13510_v22, %s10605_s9  ;;  %v14161_v22 = vpop.f32.mrf.mxu0 }
 0x822   : > { %v9839_v21 = vpop.permute.xlu0 %9838  ;;  %v6456_v4 = vpack.c.bf16 %v14161_v22, %v14157_v28 }
 0x823   : > { %v9841_v39 = vunpack.i.h.bf16 %v9839_v21  ;;  %v9840_v38 = vunpack.i.l.bf16 %v9839_v21  ;;  %v14165_v60 = vpop.f32.mrf.mxu0  ;;  %v10426_v21 = vpop.eup %10425 }
 0x825   : > { %v2038_v56 = vpack.c.bf16 %v9841_v39, %v9840_v38  ;;  %9873 = vrot.lane.b32.xlu0 %v13562_v32, %s10605_s9  ;;  %v14169_v37 = vpop.f32.mrf.mxu0  ;;  %v14171_v32 = vpop.f32.mrf.mxu1 }
 0x827   : > { %8839 = vmatprep.subr.bf16.mxu0 %v2038_v56  ;;  %v14173_v2 = vpop.f32.mrf.mxu0  ;;  %v14175_v35 = vpop.f32.mrf.mxu1 }
 0x828   : > { %8840 = vmatpush3.bf16.msra.mxu0 %v2038_v56  ;;  %v9925_v56 = vld [vmem:[#allocation7 + $0x8] sm:$0xff]  }
 0x829   : > { %8841 = vmatprep.subr.bf16.mxu0 %v2037_v36  ;;  %v14177_v34 = vpop.f32.mrf.mxu0  ;;  %v14181_v13 = vpop.f32.mrf.mxu1 }
 0x82b   : > { %v14179_v55 = vpop.f32.mrf.mxu0  ;;  %v14185_v33 = vpop.f32.mrf.mxu1 }
 0x82c   : > { %8842 = vmatpush3.bf16.msra.mxu0 %v2037_v36 }
 0x82d   : > { %v14183_v16 = vpop.f32.mrf.mxu0  ;;  %v14189_v6 = vpop.f32.mrf.mxu1 }
 0x82f   : > { %v14187_v23 = vpop.f32.mrf.mxu0  ;;  %v14195_v57 = vpop.f32.mrf.mxu1 }
 0x831   : > { %v14191_v27 = vpop.f32.mrf.mxu0  ;;  %v14197_v29 = vpop.f32.mrf.mxu1 }
 0x833   : > { %v14199_v48 = vpop.f32.mrf.mxu0  ;;  %v14203_v53 = vpop.f32.mrf.mxu1 }
 0x835   : > { %v14205_v9 = vpop.f32.mrf.mxu0  ;;  %v14209_v59 = vpop.f32.mrf.mxu1 }
 0x837   : > { %v14211_v15 = vpop.f32.mrf.mxu0  ;;  %v14213_v44 = vpop.f32.mrf.mxu1 }
 0x839   : > { %v14215_v47 = vpop.f32.mrf.mxu0  ;;  %v14219_v10 = vpop.f32.mrf.mxu1 }
 0x83b   : > { %v14217_v52 = vpop.f32.mrf.mxu0 }
 0x83c   : > { %v14193_v17 = vpop.xlane.xlu1 %4887 }
 0x83d   : > { %v14223_v36 = vpop.f32.mrf.mxu0 }
 0x840   : > { %v14201_v61 = vpop.xlane.xlu1 %4893 }
 0x844   : > { %v9854_v49 = vpop.permute.xlu1 %9853 }
 0x845   : > { %v9856_v45 = vunpack.i.h.bf16 %v9854_v49  ;;  %v9855_v20 = vunpack.i.l.bf16 %v9854_v49 }
 0x847   : > { %v2035_v39 = vpack.c.bf16 %v9856_v45, %v9855_v20  ;;  %v14228_v20 = vpop.f32.mrf.mxu0 }
 0x853   : > { %v4885_v24 = vpop.xlane.xlu0 %4884 }
 0x854   : > { %10427 = vrcp.f32 %v4885_v24  ;;  %v14225_v24 = vpop.f32.mrf.mxu1 }
 0x855   : > { %10429 = vrcp.f32 %v4876_v0 }
 0x856   : > { %10431 = vrcp.f32 %v4879_v8  ;;  %v5152_v8 = vmul.f32 %v10426_v21, %v14030_v26 }
 0x857   : > { %v14207_v18 = vpop.xlane.xlu0 %4890  ;;  %10433 = vrcp.f32 %v14193_v17  ;;  %v6466_v17 = vpack.c.bf16 %v14215_v47, %v14205_v9 }
 0x858   : > { %10435 = vrcp.f32 %v14207_v18 }
 0x85b   : > { %v9849_v11 = vpop.permute.xlu0 %9848 }
 0x85c   : > { %v9851_v5 = vunpack.i.h.bf16 %v9849_v11  ;;  %v9850_v7 = vunpack.i.l.bf16 %v9849_v11  ;;  %v9926_v11 = vld [vmem:[#allocation7] sm:$0xff]  }
 0x85e   : > { %v2036_v1 = vpack.c.bf16 %v9851_v5, %v9850_v7  ;;  %v14230_v7 = vpop.f32.mrf.mxu1 }
 0x860   : > { %8843 = vmatprep.subr.bf16.mxu0 %v2036_v1  ;;  %v14243_v21 = vpop.f32.mrf.mxu1 }
 0x861   : > { %v10428_v38 = vpop.eup %10427  ;;  %8844 = vmatpush3.bf16.msra.mxu0 %v2036_v1  ;;  %v14241_v1 = vpop.f32.mrf.mxu0 }
 0x862   : > { %8845 = vmatprep.subr.bf16.mxu0 %v2035_v39  ;;  %v5153_v0 = vmul.f32 %v10428_v38, %v14089_v42  ;;  %v10430_v45 = vpop.eup %10429  ;;  %v9927_v42 = vld [vmem:[#allocation7 + $0x28] sm:$0xff]   ;;  %v14248_v54 = vpop.f32.mrf.mxu1 }
 0x863   : > { %v10432_v5 = vpop.eup %10431  ;;  %v5150_v26 = vmul.f32 %v10430_v45, %v14056_v31  ;;  %v14246_v38 = vpop.f32.mrf.mxu0 }
 0x864   : > { %v5220_v49 = vpack.c.bf16 %v5153_v0, %v5152_v8  ;;  %v14256_v50 = vpop.f32.mrf.mxu1  ;;  %v9929_v8 = vld [vmem:[#allocation7 + $0x20] sm:$0xff]   ;;  %v6458_v0 = vpack.c.bf16 %v14177_v34, %v14169_v37 }
 0x865   : > { %8846 = vmatpush3.bf16.msra.mxu0 %v2035_v39  ;;  %v5151_v39 = vmul.f32 %v10432_v5, %v14024_v41  ;;  %v14253_v31 = vpop.f32.mrf.mxu0  ;;  %v6457_v41 = vpack.c.bf16 %v14159_v12, %v14153_v19  ;;  %v6459_v19 = vpack.c.bf16 %v14173_v2, %v14165_v60  ;;  %v6460_v12 = vpack.c.bf16 %v14175_v35, %v14167_v43 }
 0x866   : > { %8863 = vmatprep.mubr.msk.bf16.mxu1 %vm3751_vm3, %v5220_v49  ;;  %8871 = vmatprep.subr.bf16.mxu0 %v9925_v56  ;;  %v6461_v5 = vpack.c.bf16 %v14171_v32, %v14163_v62  ;;  %v6462_v60 = vpack.c.bf16 %v14195_v57, %v14185_v33  ;;  %v6463_v62 = vpack.c.bf16 %v14189_v6, %v14181_v13 }
 0x867   : > { %v5219_v63 = vpack.c.bf16 %v5151_v39, %v5150_v26  ;;  %v6464_v33 = vpack.c.bf16 %v14191_v27, %v14183_v16  ;;  %v6465_v27 = vpack.c.bf16 %v14187_v23, %v14179_v55 }
 0x868   : > { %8848 = vmatmul.mubr.msk.bf16.vlgmr.msra.gmra.mxu0 %vm3751_vm3, %v5217_v46  ;;  %v14262_v46 = vpop.f32.mrf.mxu1 }
 0x869   : > { %8851 = vmatprep.mubr.msk.bf16.mxu0 %vm3751_vm3, %v5218_v51  ;;  %8872 = vmatpush3.bf16.msra.mxu0 %v9925_v56  ;;  %v14258_v51 = vpop.f32.mrf.mxu0 }
 0x86a   : > { %8873 = vmatprep.subr.bf16.mxu0 %v9926_v11  ;;  %v14270_v22 = vpop.f32.mrf.mxu1 }
 0x86b   : > { %v14267_v28 = vpop.f32.mrf.mxu0 }
 0x86c   : > { %v14274_v49 = vpop.f32.mrf.mxu1 }
 0x86d   : > { %8874 = vmatpush3.bf16.msra.mxu0 %v9926_v11  ;;  %v14272_v56 = vpop.f32.mrf.mxu0 }
 0x86e   : > { %8943 = vmatprep.subr.bf16.mxu0 %v9927_v42  ;;  %v14282_v34 = vpop.f32.mrf.mxu1 }
 0x86f   : > { %v14280_v37 = vpop.f32.mrf.mxu0 }
 0x870   : > { %8852 = vmatmul.mubr.msk.bf16.gmra.mxu0 %vm3751_vm3, %v5219_v63  ;;  %v14288_v45 = vpop.f32.mrf.mxu1 }
 0x871   : > { %8875 = vmatprep.mubr.msk.bf16.mxu0 %vm2070_vm0, %v6456_v4  ;;  %v14286_v11 = vpop.f32.mrf.mxu0 }
 0x872   : > { %v14296_v43 = vpop.f32.mrf.mxu1 }
 0x873   : > { %v14294_v2 = vpop.f32.mrf.mxu0 }
 0x874   : > { %v14302_v26 = vpop.f32.mrf.mxu1 }
 0x875   : > { %v14299_v35 = vpop.f32.mrf.mxu0 }
 0x876   : > { %v14308_v32 = vpop.f32.mrf.mxu1 }
 0x877   : > { %v14304_v63 = vpop.f32.mrf.mxu0 }
 0x878   : > { %8876 = vmatmul.mubr.msk.bf16.vlgmr.msra.gmra.mxu0 %vm2070_vm0, %v6457_v41  ;;  %v14316_v41 = vpop.f32.mrf.mxu1 }
 0x879   : > { %8879 = vmatprep.mubr.msk.bf16.mxu0 %vm2070_vm0, %v6458_v0  ;;  %8944 = vmatpush3.bf16.msra.mxu0 %v9927_v42  ;;  %v4900_v42 = vpop.xlane.xlu1 %4899  ;;  %v14313_v4 = vpop.f32.mrf.mxu0 }
 0x87a   : > { %8945 = vmatprep.subr.bf16.mxu0 %v9929_v8 }
 0x87d   : > { %8946 = vmatpush3.bf16.msra.mxu0 %v9929_v8  ;;  %v9864_v8 = vpop.permute.xlu1 %9863 }
 0x87e   : > { %v9866_v6 = vunpack.i.h.bf16 %v9864_v8  ;;  %v9865_v0 = vunpack.i.l.bf16 %v9864_v8 }
 0x880   : > { %8880 = vmatmul.mubr.msk.bf16.gmra.mxu0 %vm2070_vm0, %v6459_v19 }
 0x881   : > { %8883 = vmatprep.mubr.msk.bf16.mxu0 %vm2070_vm0, %v6460_v12  ;;  %v14322_v12 = vpop.f32.mrf.mxu0 }
 0x883   : > { %v14329_v18 = vpop.f32.mrf.mxu0 }
 0x885   : > { %v5886_v23 = vpop.f32.mrf.mxu0 }
 0x888   : > { %8884 = vmatmul.mubr.msk.bf16.gmra.mxu0 %vm2070_vm0, %v6461_v5  ;;  %v14324_v5 = vpop.f32.mrf.mxu1 }
 0x889   : > { %8887 = vmatprep.mubr.msk.bf16.mxu0 %vm2070_vm0, %v6462_v60 }
 0x88a   : > { %v14333_v55 = vpop.f32.mrf.mxu1 }
 0x88c   : > { %v4897_v39 = vpop.xlane.xlu0 %4896 }
 0x88d   : > { %10437 = vrcp.f32 %v4897_v39 }
 0x88e   : > { %10439 = vrcp.f32 %v14201_v61 }
 0x890   : > { %v4903_v57 = vpop.xlane.xlu0 %4902  ;;  %8888 = vmatmul.mubr.msk.bf16.gmra.mxu0 %vm2070_vm0, %v6463_v62  ;;  %v2041_v62 = vpack.c.bf16 %v9866_v6, %v9865_v0  ;;  %v14337_v6 = vpop.f32.mrf.mxu1 }
 0x891   : > { %8891 = vmatprep.mubr.msk.bf16.mxu0 %vm2070_vm0, %v6464_v33  ;;  %10441 = vrcp.f32 %v4903_v57  ;;  %v10434_v0 = vpop.eup %10433  ;;  %v8754_v57 = vpop.f32.mrf.mxu0 }
 0x892   : > { %10443 = vrcp.f32 %v4900_v42 }
 0x894   : > { %v9859_v13 = vpop.permute.xlu0 %9858 }
 0x895   : > { %v9861_v19 = vunpack.i.h.bf16 %v9859_v13  ;;  %v9860_v16 = vunpack.i.l.bf16 %v9859_v13 }
 0x897   : > { %v2042_v60 = vpack.c.bf16 %v9861_v19, %v9860_v16  ;;  %v6467_v19 = vpack.c.bf16 %v14211_v15, %v14199_v48  ;;  %v6468_v16 = vpack.c.bf16 %v14213_v44, %v14203_v53  ;;  %v5154_v44 = vmul.f32 %v10434_v0, %v14077_v40 }
 0x898   : > { %v9869_v39 = vpop.permute.xlu0 %9868  ;;  %8892 = vmatmul.mubr.msk.bf16.gmra.mxu0 %vm2070_vm0, %v6465_v27  ;;  %v10436_v27 = vpop.eup %10435  ;;  %v6471_v0 = vpack.c.bf16 %v14230_v7, %v14219_v10  ;;  %v6489_v10 = vpack.c.bf16 %v8754_v57, %v14329_v18  ;;  %v6473_v7 = vpack.c.bf16 %v14228_v20, %v14217_v52  ;;  %v6475_v20 = vpack.c.bf16 %v14258_v51, %v14246_v38 }
 0x899   : > { %v9871_v33 = vunpack.i.h.bf16 %v9869_v39  ;;  %v9870_v8 = vunpack.i.l.bf16 %v9869_v39  ;;  %8855 = vmatprep.subr.bf16.mxu1 %v2042_v60  ;;  %8895 = vmatprep.mubr.msk.bf16.mxu0 %vm2070_vm0, %v6466_v17  ;;  %v5155_v15 = vmul.f32 %v10436_v27, %v14095_v3  ;;  %v9928_v39 = vld [vmem:[#allocation7 + $0x18] sm:$0xff]   ;;  %v9930_v3 = vld [vmem:[#allocation7 + $0x10] sm:$0xff]   ;;  %v6477_v38 = vpack.c.bf16 %v14262_v46, %v14248_v54 }
 0x89a   : > { %8856 = vmatpush3.bf16.msra.mxu1 %v2042_v60  ;;  %v10438_v17 = vpop.eup %10437  ;;  %v14343_v60 = vpop.f32.mrf.mxu1  ;;  %v6479_v54 = vpack.c.bf16 %v14288_v45, %v14274_v49  ;;  %v6481_v49 = vpack.c.bf16 %v14286_v11, %v14272_v56  ;;  %v6483_v56 = vpack.c.bf16 %v14313_v4, %v14299_v35  ;;  %v6485_v35 = vpack.c.bf16 %v14316_v41, %v14302_v26 }
 0x89b   : > { %8857 = vmatprep.subr.bf16.mxu1 %v2041_v62  ;;  %v2040_v9 = vpack.c.bf16 %v9871_v33, %v9870_v8  ;;  %v10440_v48 = vpop.eup %10439  ;;  %v5157_v53 = vmul.f32 %v10438_v17, %v14140_v58  ;;  %v6469_v33 = vpack.c.bf16 %v14209_v59, %v14197_v29  ;;  %v9931_v29 = vld [vmem:[#allocation7 + $0x38] sm:$0xff]   ;;  %v6487_v26 = vpack.c.bf16 %v14343_v60, %v14333_v55 }
 0x89c   : > { %v9874_v61 = vpop.permute.xlu0 %9873  ;;  %v14350_v8 = vpop.f32.mrf.mxu1 }
 0x89d   : > { %v9876_v47 = vunpack.i.h.bf16 %v9874_v61  ;;  %v9875_v13 = vunpack.i.l.bf16 %v9874_v61  ;;  %v5156_v61 = vmul.f32 %v10440_v48, %v14083_v30 }
 0x89e   : > { %8858 = vmatpush3.bf16.msra.mxu1 %v2041_v62  ;;  %v5889_v62 = vpop.f32.mrf.mxu0 }
 0x89f   : > { %8859 = vmatprep.subr.bf16.mxu1 %v2040_v9  ;;  %v2039_v42 = vpack.c.bf16 %v9876_v47, %v9875_v13  ;;  %v5221_v47 = vpack.c.bf16 %v5155_v15, %v5154_v44  ;;  %v10442_v13 = vpop.eup %10441  ;;  %v5222_v40 = vpack.c.bf16 %v5157_v53, %v5156_v61  ;;  %v6488_v27 = vpack.c.bf16 %v5889_v62, %v5886_v23 }
 0x8a0   : > { %8896 = vmatmul.mubr.msk.bf16.gmra.mxu0 %vm2070_vm0, %v6467_v19  ;;  %v8757_v19 = vpop.f32.mrf.mxu0  ;;  %v10444_v58 = vpop.eup %10443  ;;  %v5159_v30 = vmul.f32 %v10442_v13, %v14145_v25 }
 0x8a1   : > { %8899 = vmatprep.mubr.msk.bf16.mxu0 %vm2070_vm0, %v6468_v16  ;;  %v14355_v16 = vpop.f32.mrf.mxu1 }
 0x8a2   : > { %8860 = vmatpush3.bf16.msra.mxu1 %v2040_v9  ;;  %v6470_v9 = vpack.c.bf16 %v14243_v21, %v14225_v24  ;;  %v5902_v59 = vpop.f32.mrf.mxu0  ;;  %v5158_v21 = vmul.f32 %v10444_v58, %v14111_v14 }
 0x8a3   : > { %8861 = vmatprep.subr.bf16.mxu1 %v2039_v42  ;;  %v5963_v24 = vpop.f32.mrf.mxu1 }
 0x8a4   : > { %v5223_v17 = vpack.c.bf16 %v5159_v30, %v5158_v21  ;;  %v8758_v48 = vpop.f32.mrf.mxu0 }
 0x8a5   : > { %v8770_v15 = vpop.f32.mrf.mxu1  ;;  %v6491_v52 = vpack.c.bf16 %v8758_v48, %v8757_v19 }
 0x8a6   : > { %8862 = vmatpush3.bf16.msra.mxu1 %v2039_v42  ;;  %v6472_v42 = vpack.c.bf16 %v14241_v1, %v14223_v36  ;;  %v5905_v14 = vpop.f32.mrf.mxu0  ;;  %v6474_v36 = vpack.c.bf16 %v14267_v28, %v14253_v31  ;;  %v6476_v28 = vpack.c.bf16 %v14270_v22, %v14256_v50  ;;  %v6478_v50 = vpack.c.bf16 %v14296_v43, %v14282_v34 }
 0x8a7   : > { %8907 = vmatprep.subr.bf16.mxu1 %v9928_v39  ;;  %v5966_v25 = vpop.f32.mrf.mxu1  ;;  %v6490_v23 = vpack.c.bf16 %v5905_v14, %v5902_v59  ;;  %v6480_v34 = vpack.c.bf16 %v14294_v2, %v14280_v37  ;;  %v6482_v37 = vpack.c.bf16 %v14322_v12, %v14304_v63  ;;  %v6484_v63 = vpack.c.bf16 %v14324_v5, %v14308_v32 }
 0x8a8   : > { %8900 = vmatmul.mubr.msk.bf16.gmra.mxu0 %vm2070_vm0, %v6469_v33  ;;  %v8785_v1 = vpop.f32.mrf.mxu0  ;;  %v6492_v31 = vpack.c.bf16 %v5966_v25, %v5963_v24  ;;  %v6486_v32 = vpack.c.bf16 %v14350_v8, %v14337_v6 }
 0x8a9   : > { %8864 = vmatmul.mubr.msk.bf16.vlgmr.msra.gmra.mxu1 %vm3751_vm3, %v5221_v47  ;;  %8903 = vmatprep.mubr.msk.bf16.mxu0 %vm2070_vm0, %v6470_v9  ;;  %v8773_v62 = vpop.f32.mrf.mxu1  ;;  %v6493_v9 = vpack.c.bf16 %v8770_v15, %v14355_v16 }
 0x8aa   : > { %8867 = vmatprep.mubr.msk.bf16.mxu1 %vm3751_vm3, %v5222_v40  ;;  %8908 = vmatpush3.bf16.msra.mxu1 %v9928_v39  ;;  %v9932_v39 = vld [vmem:[#allocation7 + $0x30] sm:$0xff]   ;;  %v6040_v18 = vpop.f32.mrf.mxu0 }
 0x8ab   : > { %8909 = vmatprep.subr.bf16.mxu1 %v9930_v3  ;;  %v5979_v57 = vpop.f32.mrf.mxu1 }
 0x8ac   : > { %v8786_v53 = vpop.f32.mrf.mxu0 }
 0x8ad   : > { %v8774_v44 = vpop.f32.mrf.mxu1  ;;  %v6497_v30 = vpack.c.bf16 %v8786_v53, %v8785_v1 }
 0x8ae   : > { %8910 = vmatpush3.bf16.msra.mxu1 %v9930_v3  ;;  %v6043_v33 = vpop.f32.mrf.mxu0  ;;  %v6495_v19 = vpack.c.bf16 %v8774_v44, %v8773_v62 }
 0x8af   : > { %8979 = vmatprep.subr.bf16.mxu1 %v9931_v29  ;;  %v5982_v61 = vpop.f32.mrf.mxu1  ;;  %v6496_v46 = vpack.c.bf16 %v6043_v33, %v6040_v18 }
 0x8b0   : > { %8904 = vmatmul.mubr.msk.bf16.gmra.mxu0 %vm2070_vm0, %v6471_v0  ;;  %v6494_v51 = vpack.c.bf16 %v5982_v61, %v5979_v57  ;;  %v8789_v22 = vpop.f32.mrf.mxu0 }
 0x8b1   : > { %8868 = vmatmul.mubr.msk.bf16.gmra.mxu1 %vm3751_vm3, %v5223_v17  ;;  %8947 = vmatprep.mubr.msk.bf16.mxu0 %vm2070_vm0, %v6488_v27  ;;  %v8801_v47 = vpop.f32.mrf.mxu1 }
 0x8b2   : > { %8911 = vmatprep.mubr.msk.bf16.mxu1 %vm2070_vm0, %v6472_v42  ;;  %v6056_v3 = vpop.f32.mrf.mxu0 }
 0x8b3   : > { %v6117_v13 = vpop.f32.mrf.mxu1 }
 0x8b4   : > { %v8790_v43 = vpop.f32.mrf.mxu0 }
 0x8b5   : > { %v8802_v16 = vpop.f32.mrf.mxu1  ;;  %v6499_v21 = vpack.c.bf16 %v8790_v43, %v8789_v22 }
 0x8b6   : > { %v6059_v40 = vpop.f32.mrf.mxu0  ;;  %v6501_v42 = vpack.c.bf16 %v8802_v16, %v8801_v47 }
 0x8b7   : > { %v6120_v58 = vpop.f32.mrf.mxu1  ;;  %v6498_v45 = vpack.c.bf16 %v6059_v40, %v6056_v3 }
 0x8b8   : > { %8948 = vmatmul.mubr.msk.bf16.vlgmr.msra.gmra.mxu0 %vm2070_vm0, %v6489_v10  ;;  %v6500_v11 = vpack.c.bf16 %v6120_v58, %v6117_v13 }
 0x8b9   : > { %8912 = vmatmul.mubr.msk.bf16.vlgmr.msra.gmra.mxu1 %vm2070_vm0, %v6473_v7  ;;  %8951 = vmatprep.mubr.msk.bf16.mxu0 %vm2070_vm0, %v6490_v23  ;;  %v8805_v2 = vpop.f32.mrf.mxu1 }
 0x8ba   : > { %8915 = vmatprep.mubr.msk.bf16.mxu1 %vm2070_vm0, %v6474_v36  ;;  %8980 = vmatpush3.bf16.msra.mxu1 %v9931_v29  ;;  %v8817_v29 = vpop.f32.mrf.mxu0 }
 0x8bb   : > { %8981 = vmatprep.subr.bf16.mxu1 %v9932_v39  ;;  %v6133_v59 = vpop.f32.mrf.mxu1 }
 0x8bc   : > { %v6194_v24 = vpop.f32.mrf.mxu0 }
 0x8bd   : > { %v8806_v12 = vpop.f32.mrf.mxu1 }
 0x8be   : > { %8982 = vmatpush3.bf16.msra.mxu1 %v9932_v39  ;;  %v8818_v0 = vpop.f32.mrf.mxu0  ;;  %v6503_v25 = vpack.c.bf16 %v8806_v12, %v8805_v2 }
 0x8bf   : > { %v6136_v27 = vpop.f32.mrf.mxu1  ;;  %v6505_v23 = vpack.c.bf16 %v8818_v0, %v8817_v29 }
 0x8c0   : > { %8952 = vmatmul.mubr.msk.bf16.gmra.mxu0 %vm2070_vm0, %v6491_v52  ;;  %v6197_v17 = vpop.f32.mrf.mxu0  ;;  %v6502_v4 = vpack.c.bf16 %v6136_v27, %v6133_v59 }
 0x8c1   : > { %8916 = vmatmul.mubr.msk.bf16.gmra.mxu1 %vm2070_vm0, %v6475_v20  ;;  %8955 = vmatprep.mubr.msk.bf16.mxu0 %vm2070_vm0, %v6492_v31  ;;  %v8833_v48 = vpop.f32.mrf.mxu1  ;;  %v6504_v41 = vpack.c.bf16 %v6197_v17, %v6194_v24 }
 0x8c2   : > { %8919 = vmatprep.mubr.msk.bf16.mxu1 %vm2070_vm0, %v6476_v28  ;;  %v8821_v5 = vpop.f32.mrf.mxu0 }
 0x8c3   : > { %v6271_v14 = vpop.f32.mrf.mxu1 }
 0x8c4   : > { %v6210_v15 = vpop.f32.mrf.mxu0 }
 0x8c5   : > { %v8834_v8 = vpop.f32.mrf.mxu1 }
 0x8c6   : > { %v8822_v6 = vpop.f32.mrf.mxu0  ;;  %v6509_v57 = vpack.c.bf16 %v8834_v8, %v8833_v48 }
 0x8c7   : > { %v6274_v7 = vpop.f32.mrf.mxu1  ;;  %v6507_v55 = vpack.c.bf16 %v8822_v6, %v8821_v5 }
 0x8c8   : > { %8956 = vmatmul.mubr.msk.bf16.gmra.mxu0 %vm2070_vm0, %v6493_v9  ;;  %v6213_v10 = vpop.f32.mrf.mxu0  ;;  %v6508_v60 = vpack.c.bf16 %v6274_v7, %v6271_v14 }
 0x8c9   : > { %8920 = vmatmul.mubr.msk.bf16.gmra.mxu1 %vm2070_vm0, %v6477_v38  ;;  %8959 = vmatprep.mubr.msk.bf16.mxu0 %vm2070_vm0, %v6494_v51  ;;  %v6506_v39 = vpack.c.bf16 %v6213_v10, %v6210_v15  ;;  %v8837_v36 = vpop.f32.mrf.mxu1 }
 0x8ca   : > { %8923 = vmatprep.mubr.msk.bf16.mxu1 %vm2070_vm0, %v6478_v50 }
 0x8cb   : > { %v6287_v1 = vpop.f32.mrf.mxu1 }
 0x8cd   : > { %v8838_v62 = vpop.f32.mrf.mxu1 }
 0x8ce   : > { %v6511_v20 = vpack.c.bf16 %v8838_v62, %v8837_v36 }
 0x8cf   : > { %v6290_v18 = vpop.f32.mrf.mxu1 }
 0x8d0   : > { %8960 = vmatmul.mubr.msk.bf16.gmra.mxu0 %vm2070_vm0, %v6495_v19  ;;  %v6510_v52 = vpack.c.bf16 %v6290_v18, %v6287_v1 }
 0x8d1   : > { %8924 = vmatmul.mubr.msk.bf16.gmra.mxu1 %vm2070_vm0, %v6479_v54  ;;  %8963 = vmatprep.mubr.msk.bf16.mxu0 %vm2070_vm0, %v6496_v46 }
 0x8d2   : > { %8927 = vmatprep.mubr.msk.bf16.mxu1 %vm2070_vm0, %v6480_v34 }
 0x8d8   : > { %8964 = vmatmul.mubr.msk.bf16.gmra.mxu0 %vm2070_vm0, %v6497_v30 }
 0x8d9   : > { %8928 = vmatmul.mubr.msk.bf16.gmra.mxu1 %vm2070_vm0, %v6481_v49  ;;  %8967 = vmatprep.mubr.msk.bf16.mxu0 %vm2070_vm0, %v6498_v45 }
 0x8da   : > { %8931 = vmatprep.mubr.msk.bf16.mxu1 %vm2070_vm0, %v6482_v37 }
 0x8e0   : > { %8968 = vmatmul.mubr.msk.bf16.gmra.mxu0 %vm2070_vm0, %v6499_v21 }
 0x8e1   : > { %8932 = vmatmul.mubr.msk.bf16.gmra.mxu1 %vm2070_vm0, %v6483_v56  ;;  %8971 = vmatprep.mubr.msk.bf16.mxu0 %vm2070_vm0, %v6500_v11 }
 0x8e2   : > { %8935 = vmatprep.mubr.msk.bf16.mxu1 %vm2070_vm0, %v6484_v63 }
 0x8e8   : > { %8972 = vmatmul.mubr.msk.bf16.gmra.mxu0 %vm2070_vm0, %v6501_v42 }
 0x8e9   : > { %8936 = vmatmul.mubr.msk.bf16.gmra.mxu1 %vm2070_vm0, %v6485_v35  ;;  %8975 = vmatprep.mubr.msk.bf16.mxu0 %vm2070_vm0, %v6502_v4 }
 0x8ea   : > { %8939 = vmatprep.mubr.msk.bf16.mxu1 %vm2070_vm0, %v6486_v32 }
 0x8f0   : > { %8976 = vmatmul.mubr.msk.bf16.gmra.mxu0 %vm2070_vm0, %v6503_v25 }
 0x8f1   : > { %8940 = vmatmul.mubr.msk.bf16.gmra.mxu1 %vm2070_vm0, %v6487_v26 }
 0x8f2   : > { %8983 = vmatprep.mubr.msk.bf16.mxu1 %vm2070_vm0, %v6504_v41 }
 0x8f9   : > { %8984 = vmatmul.mubr.msk.bf16.vlgmr.msra.gmra.mxu1 %vm2070_vm0, %v6505_v23 }
 0x8fa   : > { %8987 = vmatprep.mubr.msk.bf16.mxu1 %vm2070_vm0, %v6506_v39 }
 0x901   : > { %8988 = vmatmul.mubr.msk.bf16.gmra.mxu1 %vm2070_vm0, %v6507_v55 }
 0x902   : > { %8991 = vmatprep.mubr.msk.bf16.mxu1 %vm2070_vm0, %v6508_v60 }
 0x909   : > { %8992 = vmatmul.mubr.msk.bf16.gmra.mxu1 %vm2070_vm0, %v6509_v57 }
 0x90a   : > { %8995 = vmatprep.mubr.msk.bf16.mxu1 %vm2070_vm0, %v6510_v52 }
 0x911   : > { %8996 = vmatmul.mubr.msk.bf16.gmra.mxu1 %vm2070_vm0, %v6511_v20 }
 0x928   : > { %v8849_v31 = vpop.f32.mrf.mxu0 }
 0x92a   : > { %v6348_v28 = vpop.f32.mrf.mxu0 }
 0x92c   : > { %v8850_v53 = vpop.f32.mrf.mxu0 }
 0x92d   : > { %v6513_v61 = vpack.c.bf16 %v8850_v53, %v8849_v31 }
 0x92e   : > { %v6351_v44 = vpop.f32.mrf.mxu0 }
 0x92f   : > { %v6512_v33 = vpack.c.bf16 %v6351_v44, %v6348_v28 }
 0x930   : > { %v8853_v9 = vpop.f32.mrf.mxu0 }
 0x931   : > { %8999 = vmatprep.mubr.msk.bf16.mxu1 %vm2070_vm0, %v6512_v33 }
 0x932   : > { %v6364_v38 = vpop.f32.mrf.mxu0  ;;  %9000 = vmatmul.mubr.msk.bf16.gmra.mxu1 %vm2070_vm0, %v6513_v61 }
 0x934   : > { %v8854_v51 = vpop.f32.mrf.mxu0 }
 0x935   : > { %v6515_v47 = vpack.c.bf16 %v8854_v51, %v8853_v9 }
 0x936   : > { %v6367_v50 = vpop.f32.mrf.mxu0 }
 0x937   : > { %v6514_v22 = vpack.c.bf16 %v6367_v50, %v6364_v38 }
 0x938   : > { %v14443_v3 = vpop.f32.mrf.mxu0 }
 0x939   : > { %9003 = vmatprep.mubr.msk.bf16.mxu1 %vm2070_vm0, %v6514_v22 }
 0x93a   : > { %v14446_v13 = vpop.f32.mrf.mxu0  ;;  %9004 = vmatmul.mubr.msk.bf16.gmra.mxu1 %vm2070_vm0, %v6515_v47 }
 0x93c   : > { %v14449_v19 = vpop.f32.mrf.mxu0 }
 0x93e   : > { %v14451_v54 = vpop.f32.mrf.mxu0 }
 0x940   : > { %v14453_v46 = vpop.f32.mrf.mxu0 }
 0x942   : > { %v14455_v34 = vpop.f32.mrf.mxu0 }
 0x944   : > { %v14457_v43 = vpop.f32.mrf.mxu0 }
 0x946   : > { %v14459_v16 = vpop.f32.mrf.mxu0 }
 0x948   : > { %v14461_v40 = vpop.f32.mrf.mxu0 }
 0x94a   : > { %v14463_v58 = vpop.f32.mrf.mxu0 }
 0x94c   : > { %v14465_v30 = vpop.f32.mrf.mxu0 }
 0x94e   : > { %v14467_v49 = vpop.f32.mrf.mxu0 }
 0x950   : > { %v14469_v45 = vpop.f32.mrf.mxu0 }
 0x952   : > { %v14471_v37 = vpop.f32.mrf.mxu0 }
 0x954   : > { %v14473_v2 = vpop.f32.mrf.mxu0 }
 0x956   : > { %v14475_v29 = vpop.f32.mrf.mxu0 }
 0x958   : > { %v8893_v59 = vpop.f32.mrf.mxu0 }
 0x95a   : > { %v6694_v24 = vpop.f32.mrf.mxu0 }
 0x95c   : > { %v8894_v21 = vpop.f32.mrf.mxu0 }
 0x95e   : > { %v6697_v56 = vpop.f32.mrf.mxu0 }
 0x960   : > { %v8897_v11 = vpop.f32.mrf.mxu0 }
 0x962   : > { %v6710_v0 = vpop.f32.mrf.mxu0 }
 0x964   : > { %v8898_v35 = vpop.f32.mrf.mxu0 }
 0x966   : > { %v6713_v48 = vpop.f32.mrf.mxu0 }
 0x968   : > { %v8901_v26 = vpop.f32.mrf.mxu0 }
 0x969   : > { %v8865_v63 = vpop.f32.mrf.mxu1 }
 0x96a   : > { %v6726_v10 = vpop.f32.mrf.mxu0 }
 0x96b   : > { %v6425_v12 = vpop.f32.mrf.mxu1 }
 0x96c   : > { %v8902_v39 = vpop.f32.mrf.mxu0 }
 0x96d   : > { %v8866_v27 = vpop.f32.mrf.mxu1 }
 0x96e   : > { %v6517_v4 = vpack.c.bf16 %v8866_v27, %v8865_v63  ;;  %v6729_v55 = vpop.f32.mrf.mxu0 }
 0x96f   : > { %v6428_v17 = vpop.f32.mrf.mxu1 }
 0x970   : > { %v6516_v42 = vpack.c.bf16 %v6428_v17, %v6425_v12  ;;  %v8905_v18 = vpop.f32.mrf.mxu0 }
 0x971   : > { %v8869_v32 = vpop.f32.mrf.mxu1 }
 0x972   : > { %9007 = vmatprep.mubr.msk.bf16.mxu1 %vm2070_vm0, %v6516_v42  ;;  %v6742_v20 = vpop.f32.mrf.mxu0 }
 0x973   : > { %v6441_v5 = vpop.f32.mrf.mxu1  ;;  %9008 = vmatmul.mubr.msk.bf16.gmra.mxu1 %vm2070_vm0, %v6517_v4 }
 0x974   : > { %v8906_v53 = vpop.f32.mrf.mxu0 }
 0x975   : > { %v8870_v15 = vpop.f32.mrf.mxu1 }
 0x976   : > { %v6519_v41 = vpack.c.bf16 %v8870_v15, %v8869_v32  ;;  %v6745_v61 = vpop.f32.mrf.mxu0 }
 0x977   : > { %v6444_v14 = vpop.f32.mrf.mxu1 }
 0x978   : > { %v6518_v25 = vpack.c.bf16 %v6444_v14, %v6441_v5  ;;  %v8949_v51 = vpop.f32.mrf.mxu0 }
 0x979   : > { %v8913_v6 = vpop.f32.mrf.mxu1 }
 0x97a   : > { %9011 = vmatprep.mubr.msk.bf16.mxu1 %vm2070_vm0, %v6518_v25  ;;  %v7072_v12 = vpop.f32.mrf.mxu0 }
 0x97b   : > { %v6851_v8 = vpop.f32.mrf.mxu1  ;;  %9012 = vmatmul.mubr.msk.bf16.gmra.mxu1 %vm2070_vm0, %v6519_v41 }
 0x97c   : > { %v8950_v32 = vpop.f32.mrf.mxu0 }
 0x97d   : > { %v8914_v7 = vpop.f32.mrf.mxu1 }
 0x97e   : > { %v7075_v41 = vpop.f32.mrf.mxu0 }
 0x97f   : > { %v14481_v23 = vpop.f32.mrf.mxu1 }
 0x981   : > { %v14483_v36 = vpop.f32.mrf.mxu1 }
 0x983   : > { %v14485_v1 = vpop.f32.mrf.mxu1 }
 0x985   : > { %v14487_v60 = vpop.f32.mrf.mxu1 }
 0x987   : > { %v14489_v62 = vpop.f32.mrf.mxu1 }
 0x989   : > { %v14491_v57 = vpop.f32.mrf.mxu1 }
 0x98b   : > { %v14493_v52 = vpop.f32.mrf.mxu1 }
 0x98d   : > { %v14495_v31 = vpop.f32.mrf.mxu1 }
 0x98f   : > { %v14497_v28 = vpop.f32.mrf.mxu1 }
 0x991   : > { %v14499_v44 = vpop.f32.mrf.mxu1 }
 0x993   : > { %v14501_v33 = vpop.f32.mrf.mxu1 }
 0x995   : > { %v14503_v9 = vpop.f32.mrf.mxu1 }
 0x997   : > { %v14505_v38 = vpop.f32.mrf.mxu1 }
 0x999   : > { %v8929_v50 = vpop.f32.mrf.mxu1 }
 0x99a   : > { %v14507_v22 = vadd.f32 %v8929_v50, %v8893_v59 }
 0x99b   : > { %v6915_v47 = vpop.f32.mrf.mxu1 }
 0x99c   : > { %v14509_v63 = vadd.f32 %v6915_v47, %v6694_v24 }
 0x99d   : > { %v8930_v27 = vpop.f32.mrf.mxu1 }
 0x99e   : > { %15537 = vst [vmem:[#allocation126_spill] sm:$0xff] %v14509_v63  ;;  %v14511_v17 = vadd.f32 %v8930_v27, %v8894_v21  ;;  %v8953_v63 = vpop.f32.mrf.mxu0 }
 0x99f   : > { %v6918_v42 = vpop.f32.mrf.mxu1 }
 0x9a0   : > { %v14513_v4 = vadd.f32 %v6918_v42, %v6697_v56 }
 0x9a1   : > { %v8933_v5 = vpop.f32.mrf.mxu1 }
 0x9a2   : > { %15538 = vst [vmem:[#allocation44_spill] sm:$0xff] %v14513_v4  ;;  %v14515_v15 = vadd.f32 %v8933_v5, %v8897_v11  ;;  %v7088_v4 = vpop.f32.mrf.mxu0 }
 0x9a3   : > { %v6931_v14 = vpop.f32.mrf.mxu1 }
 0x9a4   : > { %v14517_v25 = vadd.f32 %v6931_v14, %v6710_v0 }
 0x9a5   : > { %v8934_v59 = vpop.f32.mrf.mxu1 }
 0x9a6   : > { %v14519_v50 = vadd.f32 %v8934_v59, %v8898_v35  ;;  %v8954_v35 = vpop.f32.mrf.mxu0 }
 0x9a7   : > { %v6934_v24 = vpop.f32.mrf.mxu1 }
 0x9a8   : > { %15539 = vst [vmem:[#allocation89_spill] sm:$0xff] %v14519_v50  ;;  %v14521_v47 = vadd.f32 %v6934_v24, %v6713_v48  ;;  %v7426_v24 = vadd.f32 %v8913_v6, %v14443_v3  ;;  %v14546_v3 = vld [vmem:[%s14709_s3] ss:$0 sm:$0xff]  ;;  %v7423_v6 = vadd.f32 %v14481_v23, %v14451_v54 }
 0x9a9   : > { %v8937_v21 = vpop.f32.mrf.mxu1 }
 0x9aa   : > { %v14523_v27 = vadd.f32 %v8937_v21, %v8901_v26  ;;  %v7091_v21 = vpop.f32.mrf.mxu0 }
 0x9ab   : > { %v6947_v56 = vpop.f32.mrf.mxu1 }
 0x9ac   : > { %v14525_v42 = vadd.f32 %v6947_v56, %v6726_v10  ;;  %v7420_v56 = vadd.f32 %v6851_v8, %v14446_v13 }
 0x9ad   : > { %v8938_v11 = vpop.f32.mrf.mxu1 }
 0x9ae   : > { %15540 = vst [vmem:[#allocation60_spill] sm:$0xff] %v14525_v42  ;;  %v14527_v5 = vadd.f32 %v8938_v11, %v8902_v39  ;;  %v7429_v11 = vadd.f32 %v8914_v7, %v14449_v19  ;;  %v7421_v8 = vadd.f32 %v7420_v56, %v7072_v12  ;;  %v7438_v19 = vadd.f32 %v14483_v36, %v14453_v46 }
 0x9af   : > { %v6950_v0 = vpop.f32.mrf.mxu1  ;;  %v7424_v12 = vadd.f32 %v7423_v6, %v7075_v41  ;;  %v7441_v36 = vadd.f32 %v14487_v60, %v14457_v43  ;;  %v7450_v43 = vadd.f32 %v14491_v57, %v14461_v40  ;;  %v7453_v40 = vadd.f32 %v14495_v31, %v14465_v30 }
 0x9b0   : > { %v14529_v14 = vadd.f32 %v6950_v0, %v6729_v55  ;;  %v7427_v0 = vadd.f32 %v8949_v51, %v7426_v24  ;;  %v7432_v24 = vadd.f32 %v14485_v1, %v14455_v34  ;;  %v7439_v34 = vadd.f32 %v8953_v63, %v7438_v19 }
 0x9b1   : > { %v8941_v59 = vpop.f32.mrf.mxu1  ;;  %v7442_v6 = vadd.f32 %v8954_v35, %v7441_v36  ;;  %v7462_v30 = vadd.f32 %v14499_v44, %v14469_v45  ;;  %v7465_v45 = vadd.f32 %v14503_v9, %v14473_v2 }
 0x9b2   : > { %v14531_v50 = vadd.f32 %v8941_v59, %v8905_v18  ;;  %v8957_v18 = vpop.f32.mrf.mxu0 }
 0x9b3   : > { %v6963_v48 = vpop.f32.mrf.mxu1 }
 0x9b4   : > { %v14534_v26 = vadd.f32 %v6963_v48, %v6742_v20  ;;  %v7104_v51 = vpop.f32.mrf.mxu0 }
 0x9b5   : > { %v8942_v10 = vpop.f32.mrf.mxu1 }
 0x9b6   : > { %v14537_v42 = vadd.f32 %v8942_v10, %v8906_v53  ;;  %v8958_v1 = vpop.f32.mrf.mxu0 }
 0x9b7   : > { %v6966_v39 = vpop.f32.mrf.mxu1 }
 0x9b8   : > { %v14540_v55 = vadd.f32 %v6966_v39, %v6745_v61  ;;  %v7430_v61 = vadd.f32 %v8950_v32, %v7429_v11  ;;  %v7435_v39 = vadd.f32 %v14489_v62, %v14459_v16  ;;  %v7444_v16 = vadd.f32 %v14493_v52, %v14463_v58 }
 0x9b9   : > { %v8985_v59 = vpop.f32.mrf.mxu1  ;;  %v7447_v58 = vadd.f32 %v14497_v28, %v14467_v49  ;;  %v7456_v49 = vadd.f32 %v14501_v33, %v14471_v37  ;;  %v7459_v37 = vadd.f32 %v14505_v38, %v14475_v29 }
 0x9ba   : > { %v7428_v13 = vadd.f32 %v8985_v59, %v7427_v0  ;;  %v7433_v0 = vadd.f32 %v7432_v24, %v7088_v4 }
 0x9bb   : > { %v7293_v20 = vpop.f32.mrf.mxu1 }
 0x9bc   : > { %v7525_v7 = vadd.f32 %v14546_v3, %v7428_v13  ;;  %v7422_v53 = vadd.f32 %v7421_v8, %v7293_v20  ;;  %v7107_v13 = vpop.f32.mrf.mxu0  ;;  %v7436_v20 = vadd.f32 %v7435_v39, %v7091_v21 }
 0x9bd   : > { %v8986_v48 = vpop.f32.mrf.mxu1 }
 0x9be   : > { %7557 = vst [vmem:[%s14555_s8 + $0x10] sm:$0xff] %v7525_v7  ;;  %v7523_v54 = vadd.f32 %v14546_v3, %v7422_v53  ;;  %v7431_v23 = vadd.f32 %v8986_v48, %v7430_v61  ;;  %v7451_v7 = vadd.f32 %v8957_v18, %v7450_v43  ;;  %v8961_v53 = vpop.f32.mrf.mxu0  ;;  %v7445_v48 = vadd.f32 %v7444_v16, %v7104_v51 }
 0x9bf   : > { %v7296_v46 = vpop.f32.mrf.mxu1 }
 0x9c0   : > { %7555 = vst [vmem:[%s14555_s8] sm:$0xff] %v7523_v54  ;;  %v7526_v32 = vadd.f32 %v14546_v3, %v7431_v23  ;;  %v7425_v10 = vadd.f32 %v7424_v12, %v7296_v46  ;;  %v7454_v54 = vadd.f32 %v8958_v1, %v7453_v40  ;;  %v7120_v23 = vpop.f32.mrf.mxu0  ;;  %v7448_v46 = vadd.f32 %v7447_v58, %v7107_v13 }
 0x9c1   : > { %v8989_v56 = vpop.f32.mrf.mxu1  ;;  %v7457_v39 = vadd.f32 %v7456_v49, %v7120_v23 }
 0x9c2   : > { %7558 = vst [vmem:[%s14555_s8 + $0x18] sm:$0xff] %v7526_v32  ;;  %v7524_v11 = vadd.f32 %v14546_v3, %v7425_v10  ;;  %v7440_v41 = vadd.f32 %v8989_v56, %v7439_v34  ;;  %v7463_v10 = vadd.f32 %v8961_v53, %v7462_v30  ;;  %v8962_v34 = vpop.f32.mrf.mxu0  ;;  %v15542_v30 = vld [vmem:[#allocation44_spill] sm:$0xff] }
 0x9c3   : > { %v7309_v59 = vpop.f32.mrf.mxu1 }
 0x9c4   : > { %7556 = vst [vmem:[%s14555_s8 + $0x8] sm:$0xff] %v7524_v11  ;;  %v7529_v60 = vadd.f32 %v14546_v3, %v7440_v41  ;;  %v7434_v63 = vadd.f32 %v7433_v0, %v7309_v59  ;;  %v7466_v41 = vadd.f32 %v8962_v34, %v7465_v45  ;;  %v7123_v0 = vpop.f32.mrf.mxu0 }
 0x9c5   : > { %v8990_v8 = vpop.f32.mrf.mxu1  ;;  %v7460_v38 = vadd.f32 %v7459_v37, %v7123_v0 }
 0x9c6   : > { %7561 = vst [vmem:[%s14555_s8 + $0x30] sm:$0xff] %v7529_v60  ;;  %v7527_v62 = vadd.f32 %v14546_v3, %v7434_v63  ;;  %v7443_v4 = vadd.f32 %v8990_v8, %v7442_v6  ;;  %v8965_v8 = vpop.f32.mrf.mxu0 }
 0x9c7   : > { %v7312_v19 = vpop.f32.mrf.mxu1 }
 0x9c8   : > { %7559 = vst [vmem:[%s14555_s8 + $0x20] sm:$0xff] %v7527_v62  ;;  %v7530_v57 = vadd.f32 %v14546_v3, %v7443_v4  ;;  %v7437_v35 = vadd.f32 %v7436_v20, %v7312_v19  ;;  %v7136_v16 = vpop.f32.mrf.mxu0  ;;  %v7475_v20 = vadd.f32 %v8965_v8, %v14507_v22 }
 0x9c9   : > { %v8993_v61 = vpop.f32.mrf.mxu1 }
 0x9ca   : > { %7562 = vst [vmem:[%s14555_s8 + $0x38] sm:$0xff] %v7530_v57  ;;  %v7528_v52 = vadd.f32 %v14546_v3, %v7437_v35  ;;  %v7452_v21 = vadd.f32 %v8993_v61, %v7451_v7  ;;  %v8966_v62 = vpop.f32.mrf.mxu0  ;;  %v15541_v35 = vld [vmem:[#allocation126_spill] sm:$0xff] }
 0x9cb   : > { %v7325_v24 = vpop.f32.mrf.mxu1  ;;  %v7469_v7 = vadd.f32 %v15541_v35, %v7136_v16 }
 0x9cc   : > { %7560 = vst [vmem:[%s14555_s8 + $0x28] sm:$0xff] %v7528_v52  ;;  %v7533_v31 = vadd.f32 %v14546_v3, %v7452_v21  ;;  %v7446_v18 = vadd.f32 %v7445_v48, %v7325_v24  ;;  %v7139_v4 = vpop.f32.mrf.mxu0  ;;  %v7478_v52 = vadd.f32 %v8966_v62, %v14511_v17 }
 0x9cd   : > { %v8994_v12 = vpop.f32.mrf.mxu1 }
 0x9ce   : > { %7565 = vst [vmem:[%s14555_s8 + $0x50] sm:$0xff] %v7533_v31  ;;  %v7531_v28 = vadd.f32 %v14546_v3, %v7446_v18  ;;  %v7455_v51 = vadd.f32 %v8994_v12, %v7454_v54  ;;  %v8969_v19 = vpop.f32.mrf.mxu0  ;;  %v7472_v31 = vadd.f32 %v15542_v30, %v7139_v4 }
 0x9cf   : > { %v7328_v36 = vpop.f32.mrf.mxu1  ;;  %v7487_v12 = vadd.f32 %v8969_v19, %v14515_v15 }
 0x9d0   : > { %7563 = vst [vmem:[%s14555_s8 + $0x40] sm:$0xff] %v7531_v28  ;;  %v7534_v44 = vadd.f32 %v14546_v3, %v7455_v51  ;;  %v7449_v32 = vadd.f32 %v7448_v46, %v7328_v36  ;;  %v7152_v21 = vpop.f32.mrf.mxu0 }
 0x9d1   : > { %v8997_v1 = vpop.f32.mrf.mxu1  ;;  %v7481_v46 = vadd.f32 %v14517_v25, %v7152_v21 }
 0x9d2   : > { %7566 = vst [vmem:[%s14555_s8 + $0x58] sm:$0xff] %v7534_v44  ;;  %v7532_v33 = vadd.f32 %v14546_v3, %v7449_v32  ;;  %v7464_v56 = vadd.f32 %v8997_v1, %v7463_v10  ;;  %v8970_v49 = vpop.f32.mrf.mxu0  ;;  %v15543_v32 = vld [vmem:[#allocation89_spill] sm:$0xff] }
 0x9d3   : > { %v7341_v11 = vpop.f32.mrf.mxu1  ;;  %v7490_v10 = vadd.f32 %v8970_v49, %v15543_v32 }
 0x9d4   : > { %7564 = vst [vmem:[%s14555_s8 + $0x48] sm:$0xff] %v7532_v33  ;;  %v7537_v2 = vadd.f32 %v14546_v3, %v7464_v56  ;;  %v7458_v9 = vadd.f32 %v7457_v39, %v7341_v11  ;;  %v7155_v34 = vpop.f32.mrf.mxu0 }
 0x9d5   : > { %v8998_v59 = vpop.f32.mrf.mxu1  ;;  %v7484_v33 = vadd.f32 %v14521_v47, %v7155_v34 }
 0x9d6   : > { %7569 = vst [vmem:[%s14555_s8 + $0x70] sm:$0xff] %v7537_v2  ;;  %v7535_v43 = vadd.f32 %v14546_v3, %v7458_v9  ;;  %v7467_v29 = vadd.f32 %v8998_v59, %v7466_v41  ;;  %v8973_v2 = vpop.f32.mrf.mxu0 }
 0x9d7   : > { %v7344_v60 = vpop.f32.mrf.mxu1  ;;  %v7499_v59 = vadd.f32 %v8973_v2, %v14523_v27 }
 0x9d8   : > { %7567 = vst [vmem:[%s14555_s8 + $0x60] sm:$0xff] %v7535_v43  ;;  %v7538_v63 = vadd.f32 %v14546_v3, %v7467_v29  ;;  %v7461_v6 = vadd.f32 %v7460_v38, %v7344_v60  ;;  %v7168_v9 = vpop.f32.mrf.mxu0  ;;  %v15544_v38 = vld [vmem:[#allocation60_spill] sm:$0xff] }
 0x9d9   : > { %v7493_v60 = vadd.f32 %v15544_v38, %v7168_v9 }
 0x9da   : > { %7570 = vst [vmem:[%s14555_s8 + $0x78] sm:$0xff] %v7538_v63  ;;  %v7536_v13 = vadd.f32 %v14546_v3, %v7461_v6  ;;  %v8974_v41 = vpop.f32.mrf.mxu0 }
 0x9db   : > { %v7502_v8 = vadd.f32 %v8974_v41, %v14527_v5 }
 0x9dc   : > { %7568 = vst [vmem:[%s14555_s8 + $0x68] sm:$0xff] %v7536_v13  ;;  %v7171_v0 = vpop.f32.mrf.mxu0 }
 0x9de   : > { %v8977_v43 = vpop.f32.mrf.mxu0 }
 0x9df   : > { %v7511_v35 = vadd.f32 %v8977_v43, %v14531_v50 }
 0x9e0   : > { %v7184_v16 = vpop.f32.mrf.mxu0 }
 0x9f2   : > { %v9001_v40 = vpop.f32.mrf.mxu1 }
 0x9f3   : > { %v7476_v57 = vadd.f32 %v9001_v40, %v7475_v20  ;;  %v7496_v20 = vadd.f32 %v14529_v14, %v7171_v0 }
 0x9f4   : > { %v7357_v53 = vpop.f32.mrf.mxu1 }
 0x9f5   : > { %v7541_v61 = vadd.f32 %v14546_v3, %v7476_v57  ;;  %v7470_v58 = vadd.f32 %v7469_v7, %v7357_v53  ;;  %v8978_v7 = vpop.f32.mrf.mxu0 }
 0x9f6   : > { %v9002_v48 = vpop.f32.mrf.mxu1 }
 0x9f7   : > { %7573 = vst [vmem:[%s14555_s8 + $0x90] sm:$0xff] %v7541_v61  ;;  %v7539_v24 = vadd.f32 %v14546_v3, %v7470_v58  ;;  %v7479_v22 = vadd.f32 %v9002_v48, %v7478_v52  ;;  %v7505_v58 = vadd.f32 %v14534_v26, %v7184_v16  ;;  %v7514_v48 = vadd.f32 %v8978_v7, %v14537_v42  ;;  %v7187_v50 = vpop.f32.mrf.mxu0 }
 0x9f8   : > { %v7360_v18 = vpop.f32.mrf.mxu1 }
 0x9f9   : > { %7571 = vst [vmem:[%s14555_s8 + $0x80] sm:$0xff] %v7539_v24  ;;  %v7542_v54 = vadd.f32 %v14546_v3, %v7479_v22  ;;  %v7473_v23 = vadd.f32 %v7472_v31, %v7360_v18  ;;  %v7508_v31 = vadd.f32 %v14540_v55, %v7187_v50 }
 0x9fa   : > { %v9005_v28 = vpop.f32.mrf.mxu1 }
 0x9fb   : > { %7574 = vst [vmem:[%s14555_s8 + $0x98] sm:$0xff] %v7542_v54  ;;  %v7540_v17 = vadd.f32 %v14546_v3, %v7473_v23  ;;  %v7488_v51 = vadd.f32 %v9005_v28, %v7487_v12 }
 0x9fc   : > { %v7373_v36 = vpop.f32.mrf.mxu1 }
 0x9fd   : > { %7572 = vst [vmem:[%s14555_s8 + $0x88] sm:$0xff] %v7540_v17  ;;  %v7545_v45 = vadd.f32 %v14546_v3, %v7488_v51  ;;  %v7482_v44 = vadd.f32 %v7481_v46, %v7373_v36 }
 0x9fe   : > { %v9006_v15 = vpop.f32.mrf.mxu1 }
 0x9ff   : > { %7577 = vst [vmem:[%s14555_s8 + $0xb0] sm:$0xff] %v7545_v45  ;;  %v7543_v1 = vadd.f32 %v14546_v3, %v7482_v44  ;;  %v7491_v37 = vadd.f32 %v9006_v15, %v7490_v10 }
 0xa00   : > { %v7376_v56 = vpop.f32.mrf.mxu1 }
 0xa01   : > { %7575 = vst [vmem:[%s14555_s8 + $0xa0] sm:$0xff] %v7543_v1  ;;  %v7546_v25 = vadd.f32 %v14546_v3, %v7491_v37  ;;  %v7485_v39 = vadd.f32 %v7484_v33, %v7376_v56 }
 0xa03   : > { %7578 = vst [vmem:[%s14555_s8 + $0xb8] sm:$0xff] %v7546_v25  ;;  %v7544_v11 = vadd.f32 %v14546_v3, %v7485_v39 }
 0xa05   : > { %7576 = vst [vmem:[%s14555_s8 + $0xa8] sm:$0xff] %v7544_v11 }
 0xa33   : > { %v9009_v29 = vpop.f32.mrf.mxu1 }
 0xa34   : > { %v7500_v47 = vadd.f32 %v9009_v29, %v7499_v59 }
 0xa35   : > { %v7389_v63 = vpop.f32.mrf.mxu1 }
 0xa36   : > { %v7549_v6 = vadd.f32 %v14546_v3, %v7500_v47  ;;  %v7494_v13 = vadd.f32 %v7493_v60, %v7389_v63 }
 0xa37   : > { %v9010_v62 = vpop.f32.mrf.mxu1 }
 0xa38   : > { %7581 = vst [vmem:[%s14555_s8 + $0xd0] sm:$0xff] %v7549_v6  ;;  %v7547_v4 = vadd.f32 %v14546_v3, %v7494_v13  ;;  %v7503_v27 = vadd.f32 %v9010_v62, %v7502_v8 }
 0xa39   : > { %v7392_v19 = vpop.f32.mrf.mxu1 }
 0xa3a   : > { %7579 = vst [vmem:[%s14555_s8 + $0xc0] sm:$0xff] %v7547_v4  ;;  %v7550_v40 = vadd.f32 %v14546_v3, %v7503_v27  ;;  %v7497_v57 = vadd.f32 %v7496_v20, %v7392_v19 }
 0xa3b   : > { %v9013_v53 = vpop.f32.mrf.mxu1 }
 0xa3c   : > { %7582 = vst [vmem:[%s14555_s8 + $0xd8] sm:$0xff] %v7550_v40  ;;  %v7548_v5 = vadd.f32 %v14546_v3, %v7497_v57  ;;  %v7512_v61 = vadd.f32 %v9013_v53, %v7511_v35 }
 0xa3d   : > { %v7405_v14 = vpop.f32.mrf.mxu1 }
 0xa3e   : > { %7580 = vst [vmem:[%s14555_s8 + $0xc8] sm:$0xff] %v7548_v5  ;;  %v7553_v52 = vadd.f32 %v14546_v3, %v7512_v61  ;;  %v7506_v21 = vadd.f32 %v7505_v58, %v7405_v14 }
 0xa3f   : > { %v9014_v24 = vpop.f32.mrf.mxu1 }
 0xa40   : > { %7585 = vst [vmem:[%s14555_s8 + $0xf0] sm:$0xff] %v7553_v52  ;;  %v7551_v22 = vadd.f32 %v14546_v3, %v7506_v21  ;;  %v7515_v30 = vadd.f32 %v9014_v24, %v7514_v48 }
 0xa41   : > { %v7408_v26 = vpop.f32.mrf.mxu1 }
 0xa42   : > { %7583 = vst [vmem:[%s14555_s8 + $0xe0] sm:$0xff] %v7551_v22  ;;  %v7554_v18 = vadd.f32 %v14546_v3, %v7515_v30  ;;  %v7509_v54 = vadd.f32 %v7508_v31, %v7408_v26 }
 0xa44   : > { %7586 = vst [vmem:[%s14555_s8 + $0xf8] sm:$0xff] %v7554_v18  ;;  %v7552_v42 = vadd.f32 %v14546_v3, %v7509_v54 }
 0xa46   : > { %7584 = vst [vmem:[%s14555_s8 + $0xe8] sm:$0xff] %v7552_v42 }
 0xa47   : > { %10538 = shalt.err (!%p10535_p9)
}
 0xa48   : > { %s10539_s21 = scalar_lea.hbm %s14658_s6, 4096  ;;  %s10543_s10 = scalar_lea.hbm %s14710_s4, 8192 }
 0xa49   : > { %p10540_p13 = scmp.ne.s32.totalorder %s14658_s6, %s10539_s21  ;;  %p10544_p4 = scmp.lt.s32.totalorder %s14658_s6, %s14710_s4 }
 0xa4a   : > { %p10545_p8 = scmp.lt.s32.totalorder %s10543_s10, %s10539_s21 }
 0xa4b   : > { %p10541_p5 = pnand %p10540_p13, %p15545_p10 }
 0xa4c   : > { %p10546_p7 = por %p10545_p8, %p10544_p4 }
 0xa4d   : > { %p10542_p0 = pneg %p10541_p5 }
 0xa4f   : > { %p10547_p11 = pnand %p10546_p7, %p10542_p0 }
 0xa51   : > { %10550 = shalt.err (!%p10547_p11)
}
 0xa52   : > { %s10608_s8 = smov 128   ;;  %s10609_s11 = smov 8  }
 0xa53   : > { %9089 = dma.vmem_to_hbm [thread:$0]  (%p15545_p10), %s14660_s29, 4096, %s14658_s6, %s7588_s19, %s10608_s8, %s10608_s8, %s10609_s11  }
 0xa54 PF: > { %s7617_s26 = sand.u32 1, %s10581_s15   ;;  %p15546_p1 = scmp.ne.s32.totalorder %s14967_s22, 0 }
 0xa55   : > { %p15547_p2 = scmp.ge.s32.totalorder %s10593_s18, 2  ;;  %s7618_s30 = scalar_lea.sflag [#allocation4], %s7617_s26 }
 0xa57   : > { %p9103_p6 = pnand %p15547_p2, %p15546_p1 }
 0xa59   : > { %p9104_p12 = pneg %p9103_p6 }
 0xa5b   : > { %10576 = dma.done.wait (%p9104_p12), %s7618_s30, 4096  }
 0xa5c   : > { %10578 = vsyncadd (%p9104_p12), %s7618_s30, 4294963200  ;;  %p18_p3 = scmp.ge.s32.totalorder %s10710_s13, 4   ;;  %s15548_s15 = smov %s10585_s16 }
 0xa5d   : > { %s15549_s16 = smov %s10589_s17  ;;  %s15550_s17 = smov %s10719_s24 }
 0xa5e   : > { %s15551_s18 = smov %s10710_s13  ;;  %20 = sbr.rel (!%p18_p3) target bundleno = 6 (0x6), region = 89 }
 0xa63   :  { %7623 = vsyncpa [#allocation3], 1 }
 0xa64   :  { %7625 = vsyncpa [#allocation3 + $0x1], 1 }
 0xa65   :  { %7626 = vsyncpa [#allocation6], 1 }
 0xa66   :  { %7627 = vsyncpa [#allocation4], 1 }
 0xa67   :  { %7629 = vsyncpa [#allocation4 + $0x1], 1 }

</bundles_post_ra>
